<compile_context>
chip_gen: v5e
topology: v5e:2x2
jax: 0.10.0
libtpu: 0.0.40
codegen_flags: <defaults>
</compile_context>

<pallas_src>
from functools import partial

import jax
import jax.numpy as jnp
from jax.experimental import pallas as pl
from jax.experimental.pallas import tpu as pltpu

LN_EPS = 1e-5

# tanh-approx GELU runs on the EUP (nearly free under the matmuls); the exact
# erf form matches PyTorch F.gelu bit-for-bit semantics but burns VALU slots.
GELU_APPROXIMATE = True


def _gelu(x):
    if GELU_APPROXIMATE:
        return jax.nn.gelu(x, approximate=True)
    return 0.5 * x * (1.0 + jax.lax.erf(x * 0.7071067811865476))


def _layernorm(x, gamma, beta, out_dtype=None):
    # Single-pass statistics (sum and sum-of-squares together), f32 accum.
    xf = x.astype(jnp.float32)
    mu = jnp.mean(xf, axis=-1, keepdims=True)
    ex2 = jnp.mean(xf * xf, axis=-1, keepdims=True)
    var = jnp.maximum(ex2 - mu * mu, 0.0)
    y = (xf - mu) * jax.lax.rsqrt(var + LN_EPS) * gamma + beta
    return y if out_dtype is None else y.astype(out_dtype)


def gmlp_fused_kernel(x_ref, pd_ref, pf_ref, bs_ref,
                      w1u_ref, w1v_ref, ws_ref, w2_ref, o_ref, *, seq_len):
    # grid = (batch_block, layer).  o_ref holds the running (Bb*S, D)
    # activation for this batch block; its index_map ignores the layer axis,
    # so Pallas keeps it VMEM-resident across layers and only writes it back
    # to HBM when the batch block changes.
    @pl.when(pl.program_id(1) == 0)
    def _():
        o_ref[...] = x_ref[...]

    rows, _ = o_ref.shape
    n_batch = rows // seq_len

    pd = pd_ref[0]          # (3, D) f32: [ln1_gamma, ln1_beta, proj2_bias]
    pf = pf_ref[0]          # (4, F) f32: [b1_u, b1_v, sgu_gamma, sgu_beta]
    bs = bs_ref[0]          # (S, 1) f32: spatial Conv1d bias (init 1.0)

    x = o_ref[...]          # (Bb*S, D) f32 running activation (== residual)

    # --- LayerNorm(d_model) ---
    xn_b = _layernorm(x, pd[0:1], pd[1:2], out_dtype=jnp.bfloat16)

    # --- channel_projection_1 split into u / v halves (bf16 MXU, f32 acc) ---
    u = _gelu(jnp.dot(xn_b, w1u_ref[0],
                      preferred_element_type=jnp.float32) + pf[0:1])
    v = _gelu(jnp.dot(xn_b, w1v_ref[0],
                      preferred_element_type=jnp.float32) + pf[1:2])
    u_b = u.astype(jnp.bfloat16)

    # --- SpatialGatingUnit ---
    vn_b = _layernorm(v, pf[2:3], pf[3:4], out_dtype=jnp.bfloat16)
    ws = ws_ref[0]          # (S, S) bf16
    # Conv1d(seq, seq, k=1) over NCL == matmul over the sequence axis; it
    # contracts over seq per batch element, so do Bb small 2-D dots (no
    # batched-dot transpose games).
    sv_parts = []
    for b in range(n_batch):
        vb = jax.lax.slice_in_dim(vn_b, b * seq_len, (b + 1) * seq_len, axis=0)
        sv_parts.append(jnp.dot(ws, vb, preferred_element_type=jnp.float32) + bs)
    sv = sv_parts[0] if n_batch == 1 else jnp.concatenate(sv_parts, axis=0)
    gated = u_b * sv.astype(jnp.bfloat16)        # (Bb*S, F) bf16

    # --- channel_projection_2 + residual (re-read o_ref; no residual temp) ---
    y = jnp.dot(gated, w2_ref[0], preferred_element_type=jnp.float32) + pd[2:3]
    o_ref[...] = (y + o_ref[...]).astype(o_ref.dtype)


def _vmem_limit_bytes():
    cap = 128 * 1024 * 1024
    try:
        info = pltpu.get_tpu_info()
        cap = int(getattr(info, "vmem_capacity_bytes", cap))
    except Exception:
        pass
    # Leave ~24 MiB headroom for Mosaic internal scratch / pipeline buffers.
    # -> ~100 MiB on 128 MiB parts (v5e/v6e), ~40 MiB on the 64 MiB v7x.
    return max(32 * 1024 * 1024, min(100 * 1024 * 1024, cap - 24 * 1024 * 1024))


def _pick_batch_block(B, S, D, F, vmem_budget):
    """Pick Bb (a divisor of B) to amortize weight DMA and fill the MXU."""
    divisors = [d for d in range(1, B + 1) if B % d == 0]

    def fits(bb):
        weights = 4 * (3 * D * F + S * S)       # bf16 weights, double-buffered
        act_io = 16 * bb * S * D                # x + out f32 blocks, 2 buffers
        slabs = 14 * bb * S * F                 # live u/v/vn/sv intermediates
        return weights + act_io + slabs <= int(0.8 * vmem_budget)

    fitting = [d for d in divisors if fits(d)] or [1]
    target = -(-512 // S)                       # >= ~512 LHS rows when possible
    good = [d for d in fitting if d >= target]
    bb = min(good) if good else max(fitting)
    # v7x megacore: keep >= 2 steps on the parallel batch axis when that does
    # not drop the LHS below ~256 rows.
    if B // bb < 2:
        alt = [d for d in fitting if d * S >= 256 and B // d >= 2]
        if alt:
            bb = max(alt)
    return bb


def gmlp_forward(x, params):
    """Fused gMLP stack.  x: (B, S, D) f32; params: dict from init_params."""
    B, S, D = x.shape
    L, _, F = params["w1u"].shape

    vmem_limit = _vmem_limit_bytes()
    Bb = _pick_batch_block(B, S, D, F, vmem_limit)

    # Pack the 8 small per-layer vectors into two stacked slabs (fewer DMA
    # descriptors, no tiny lane-padded blocks).
    lnp_d = jnp.stack([params["g1"], params["be1"], params["b2"]], axis=1)      # (L,3,D)
    lnp_f = jnp.stack([params["b1u"], params["b1v"],
                       params["gv"], params["bv"]], axis=1)                     # (L,4,F)
    bs3 = params["bs"][:, :, None]                                              # (L,S,1)

    # Matmul weights stored / streamed as bf16 (halves weight HBM traffic);
    # LN params and biases stay f32.
    inputs = (
        x.reshape(B * S, D),
        lnp_d, lnp_f, bs3,
        params["w1u"].astype(jnp.bfloat16),
        params["w1v"].astype(jnp.bfloat16),
        params["ws"].astype(jnp.bfloat16),
        params["w2"].astype(jnp.bfloat16),
    )
    # TODO(synk): for very wide d_ffn (v7x ~>1536 with 64 MiB VMEM) add an
    # F-tiling grid axis with a VMEM accumulator; not needed at the module's
    # default d_ffn=512.  fp8 weights (v7x) / Buffered(3) weight pipeline
    # (v5e) are further per-generation knobs not wired here.

    def layer_spec(a):
        return pl.BlockSpec((1,) + a.shape[1:], lambda b, l: (l, 0, 0))

    act_spec = pl.BlockSpec((Bb * S, D), lambda b, l: (b, 0))
    in_specs = [act_spec] + [layer_spec(a) for a in inputs[1:]]

    flops = 2 * B * L * S * (3 * D * F + S * F)
    transcendentals = B * L * S * 2 * F
    bytes_accessed = 2 * x.nbytes + (B // Bb) * sum(int(a.nbytes) for a in inputs[1:])

    out = pl.pallas_call(
        partial(gmlp_fused_kernel, seq_len=S),
        out_shape=jax.ShapeDtypeStruct((B * S, D), x.dtype),
        grid_spec=pltpu.PrefetchScalarGridSpec(
            num_scalar_prefetch=0,
            grid=(B // Bb, L),
            in_specs=in_specs,
            out_specs=act_spec,
        ),
        compiler_params=pltpu.CompilerParams(
            dimension_semantics=("parallel", "arbitrary"),
            vmem_limit_bytes=vmem_limit,
        ),
        cost_estimate=pl.CostEstimate(
            flops=flops,
            transcendentals=transcendentals,
            bytes_accessed=bytes_accessed,
        ),
    )(*inputs)
    return out.reshape(B, S, D)


def init_params(key, d_model, d_ffn, seq_len, num_layers):
    """Stacked per-layer parameters (leading axis = layer), all f32."""
    L = num_layers
    ks = jax.random.split(key, 7)
    nrm = lambda k, shape: jax.random.normal(k, shape, jnp.float32) * 0.05
    return {
        # LayerNorm(d_model)
        "g1": jnp.ones((L, d_model), jnp.float32),
        "be1": jnp.zeros((L, d_model), jnp.float32),
        # channel_projection_1: Linear(d_model, 2*d_ffn), stored as two halves
        "w1u": nrm(ks[0], (L, d_model, d_ffn)),
        "w1v": nrm(ks[1], (L, d_model, d_ffn)),
        "b1u": nrm(ks[2], (L, d_ffn)),
        "b1v": nrm(ks[3], (L, d_ffn)),
        # SGU LayerNorm(d_ffn)
        "gv": jnp.ones((L, d_ffn), jnp.float32),
        "bv": jnp.zeros((L, d_ffn), jnp.float32),
        # SGU spatial_projection: Conv1d(seq_len, seq_len, k=1); bias init 1.0
        "ws": nrm(ks[4], (L, seq_len, seq_len)),
        "bs": jnp.ones((L, seq_len), jnp.float32),
        # channel_projection_2: Linear(d_ffn, d_model)
        "w2": nrm(ks[5], (L, d_ffn, d_model)),
        "b2": nrm(ks[6], (L, d_model)),
    }


# ---------------- pure-JAX f32 reference (exact PyTorch semantics) ----------
def _ref_layernorm(x, gamma, beta):
    mu = jnp.mean(x, axis=-1, keepdims=True)
    var = jnp.mean(jnp.square(x - mu), axis=-1, keepdims=True)
    return (x - mu) * jax.lax.rsqrt(var + LN_EPS) * gamma + beta


def _ref_gelu(x):
    return 0.5 * x * (1.0 + jax.lax.erf(x * 0.7071067811865476))


def gmlp_reference(x, params):
    L, _, F = params["w1u"].shape
    for l in range(L):
        residual = x
        xn = _ref_layernorm(x, params["g1"][l], params["be1"][l])
        w_full = jnp.concatenate([params["w1u"][l], params["w1v"][l]], axis=1)
        b_full = jnp.concatenate([params["b1u"][l], params["b1v"][l]])
        h = _ref_gelu(xn @ w_full + b_full)
        u, v = h[..., :F], h[..., F:]
        vn = _ref_layernorm(v, params["gv"][l], params["bv"][l])
        sv = jnp.einsum("os,bsf->bof", params["ws"][l], vn) \
            + params["bs"][l][None, :, None]
        x = (u * sv) @ params["w2"][l] + params["b2"][l] + residual
    return x


if __name__ == "__main__":
    # Small, lane-dense shapes: D, F multiples of 128; S multiple of 8.
    batch, d_model, d_ffn, seq_len, num_layers = 4, 128, 256, 64, 2

    key = jax.random.PRNGKey(0)
    kx, kp = jax.random.split(key)
    x = jax.random.normal(kx, (batch, seq_len, d_model), jnp.float32)
    params = init_params(kp, d_model, d_ffn, seq_len, num_layers)

    out = jax.block_until_ready(gmlp_forward(x, params))
    ref = jax.block_until_ready(gmlp_reference(x, params))

    assert out.shape == (batch, seq_len, d_model)
    max_err = float(jnp.max(jnp.abs(out - ref)))
    # bf16 MXU operands (f32 accumulation) + tanh-approx GELU vs f32/erf ref.
    assert jnp.allclose(out, ref, atol=4e-2, rtol=4e-2), (
        "mismatch vs reference; max abs err = %g" % max_err)

    print("KERNEL_OK")
</pallas_src>

<mosaic_0001>
module attributes {stable_mosaic.version = 11 : i64} {
  func.func @gmlp_fused_kernel(%arg0: i32, %arg1: i32, %arg2: memref<256x128xf32, #tpu.memory_space<vmem>>, %arg3: memref<1x3x128xf32, #tpu.memory_space<vmem>>, %arg4: memref<1x4x256xf32, #tpu.memory_space<vmem>>, %arg5: memref<1x64x1xf32, #tpu.memory_space<vmem>>, %arg6: memref<1x128x256xbf16, #tpu.memory_space<vmem>>, %arg7: memref<1x128x256xbf16, #tpu.memory_space<vmem>>, %arg8: memref<1x64x64xbf16, #tpu.memory_space<vmem>>, %arg9: memref<1x256x128xbf16, #tpu.memory_space<vmem>>, %arg10: memref<256x128xf32, #tpu.memory_space<vmem>>) attributes {dimension_semantics = [#tpu.dimension_semantics<parallel>, #tpu.dimension_semantics<arbitrary>], iteration_bounds = array<i64: 1, 2>, scalar_prefetch = 0 : i64, scratch_operands = 0 : i64, tpu.core_type = #tpu.core_type<tc>, window_params = [{transform_indices = @transform_0, window_bounds = array<i64: 256, 128>}, {transform_indices = @transform_1, window_bounds = array<i64: 1, 3, 128>}, {transform_indices = @transform_2, window_bounds = array<i64: 1, 4, 256>}, {transform_indices = @transform_3, window_bounds = array<i64: 1, 64, 1>}, {transform_indices = @transform_4, window_bounds = array<i64: 1, 128, 256>}, {transform_indices = @transform_5, window_bounds = array<i64: 1, 128, 256>}, {transform_indices = @transform_6, window_bounds = array<i64: 1, 64, 64>}, {transform_indices = @transform_7, window_bounds = array<i64: 1, 256, 128>}, {transform_indices = @transform_8, window_bounds = array<i64: 256, 128>}]} {
    %c0_i32 = arith.constant 0 : i32
    %0 = arith.cmpi eq, %arg1, %c0_i32 : i32
    %1 = arith.extui %0 : i1 to i32
    %c0_i32_0 = arith.constant 0 : i32
    %2 = arith.cmpi ne, %1, %c0_i32_0 : i32
    scf.if %2 {
      %c0_53 = arith.constant 0 : index
      %c0_54 = arith.constant 0 : index
      %133 = vector.load %arg2[%c0_53, %c0_54] : memref<256x128xf32, #tpu.memory_space<vmem>>, vector<256x128xf32>
      %c0_55 = arith.constant 0 : index
      %c0_56 = arith.constant 0 : index
      %134 = vector.load %arg10[%c0_55, %c0_56] : memref<256x128xf32, #tpu.memory_space<vmem>>, vector<256x128xf32>
      tpu.vector_store %arg10[%c0_55, %c0_56], %133 {strides = array<i32>} : memref<256x128xf32, #tpu.memory_space<vmem>>, vector<256x128xf32>,
    } else {
    }
    %c0 = arith.constant 0 : index
    %c0_1 = arith.constant 0 : index
    %c0_2 = arith.constant 0 : index
    %3 = vector.load %arg3[%c0, %c0_1, %c0_2] : memref<1x3x128xf32, #tpu.memory_space<vmem>>, vector<1x3x128xf32>
    %4 = vector.shape_cast %3 : vector<1x3x128xf32> to vector<3x128xf32>
    %c0_3 = arith.constant 0 : index
    %c0_4 = arith.constant 0 : index
    %c0_5 = arith.constant 0 : index
    %5 = vector.load %arg4[%c0_3, %c0_4, %c0_5] : memref<1x4x256xf32, #tpu.memory_space<vmem>>, vector<1x4x256xf32>
    %6 = vector.shape_cast %5 : vector<1x4x256xf32> to vector<4x256xf32>
    %c0_6 = arith.constant 0 : index
    %c0_7 = arith.constant 0 : index
    %c0_8 = arith.constant 0 : index
    %7 = vector.load %arg5[%c0_6, %c0_7, %c0_8] : memref<1x64x1xf32, #tpu.memory_space<vmem>>, vector<1x64x1xf32>
    %8 = vector.shape_cast %7 : vector<1x64x1xf32> to vector<64x1xf32>
    %c0_9 = arith.constant 0 : index
    %c0_10 = arith.constant 0 : index
    %9 = vector.load %arg10[%c0_9, %c0_10] : memref<256x128xf32, #tpu.memory_space<vmem>>, vector<256x128xf32>
    %10 = vector.extract_strided_slice %4 {offsets = [0, 0], sizes = [1, 128], strides = [1, 1]} : vector<3x128xf32> to vector<1x128xf32>
    %11 = vector.extract_strided_slice %4 {offsets = [1, 0], sizes = [1, 128], strides = [1, 1]} : vector<3x128xf32> to vector<1x128xf32>
    %cst = arith.constant dense<0.000000e+00> : vector<256xf32>
    %12 = vector.multi_reduction <add>, %9, %cst [1] : vector<256x128xf32> to vector<256xf32>
    %13 = vector.shape_cast %12 : vector<256xf32> to vector<256x1xf32>
    %cst_11 = arith.constant 1.280000e+02 : f32
    %14 = vector.broadcast %cst_11 : f32 to vector<256x1xf32>
    %15 = arith.divf %13, %14 : vector<256x1xf32>
    %16 = arith.mulf %9, %9 : vector<256x128xf32>
    %cst_12 = arith.constant dense<0.000000e+00> : vector<256xf32>
    %17 = vector.multi_reduction <add>, %16, %cst_12 [1] : vector<256x128xf32> to vector<256xf32>
    %18 = vector.shape_cast %17 : vector<256xf32> to vector<256x1xf32>
    %cst_13 = arith.constant 1.280000e+02 : f32
    %19 = vector.broadcast %cst_13 : f32 to vector<256x1xf32>
    %20 = arith.divf %18, %19 : vector<256x1xf32>
    %21 = arith.mulf %15, %15 : vector<256x1xf32>
    %22 = arith.subf %20, %21 : vector<256x1xf32>
    %cst_14 = arith.constant 0.000000e+00 : f32
    %23 = vector.broadcast %cst_14 : f32 to vector<256x1xf32>
    %24 = arith.maximumf %22, %23 : vector<256x1xf32>
    %25 = vector.broadcast %15 : vector<256x1xf32> to vector<256x128xf32>
    %26 = arith.subf %9, %25 : vector<256x128xf32>
    %cst_15 = arith.constant 9.99999974E-6 : f32
    %27 = vector.broadcast %cst_15 : f32 to vector<256x1xf32>
    %28 = arith.addf %24, %27 : vector<256x1xf32>
    %29 = math.rsqrt %28 : vector<256x1xf32>
    %30 = vector.broadcast %29 : vector<256x1xf32> to vector<256x128xf32>
    %31 = arith.mulf %26, %30 : vector<256x128xf32>
    %32 = vector.broadcast %10 : vector<1x128xf32> to vector<256x128xf32>
    %33 = arith.mulf %31, %32 : vector<256x128xf32>
    %34 = vector.broadcast %11 : vector<1x128xf32> to vector<256x128xf32>
    %35 = arith.addf %33, %34 : vector<256x128xf32>
    %36 = arith.truncf %35 : vector<256x128xf32> to vector<256x128xbf16>
    %c0_16 = arith.constant 0 : index
    %c0_17 = arith.constant 0 : index
    %c0_18 = arith.constant 0 : index
    %37 = vector.load %arg6[%c0_16, %c0_17, %c0_18] : memref<1x128x256xbf16, #tpu.memory_space<vmem>>, vector<1x128x256xbf16>
    %38 = vector.shape_cast %37 : vector<1x128x256xbf16> to vector<128x256xbf16>
    %cst_19 = arith.constant dense<0.000000e+00> : vector<256x256xf32>
    %39 = tpu.matmul %36, %38, %cst_19 {dimension_numbers = #tpu.dot_dimension_numbers<[1], [0], [0], [1], [0, 0, 1, 1], [], []>} : vector<256x128xbf16>, vector<128x256xbf16>, vector<256x256xf32> -> vector<256x256xf32>
    %40 = vector.extract_strided_slice %6 {offsets = [0, 0], sizes = [1, 256], strides = [1, 1]} : vector<4x256xf32> to vector<1x256xf32>
    %41 = vector.broadcast %40 : vector<1x256xf32> to vector<256x256xf32>
    %42 = arith.addf %39, %41 : vector<256x256xf32>
    %43 = arith.mulf %42, %42 : vector<256x256xf32>
    %44 = arith.mulf %42, %43 : vector<256x256xf32>
    %cst_20 = arith.constant 4.471500e-02 : f32
    %45 = vector.broadcast %cst_20 : f32 to vector<256x256xf32>
    %46 = arith.mulf %45, %44 : vector<256x256xf32>
    %47 = arith.addf %42, %46 : vector<256x256xf32>
    %cst_21 = arith.constant 0.797884583 : f32
    %48 = vector.broadcast %cst_21 : f32 to vector<256x256xf32>
    %49 = arith.mulf %48, %47 : vector<256x256xf32>
    %50 = math.tanh %49 : vector<256x256xf32>
    %cst_22 = arith.constant 1.000000e+00 : f32
    %51 = vector.broadcast %cst_22 : f32 to vector<256x256xf32>
    %52 = arith.addf %51, %50 : vector<256x256xf32>
    %cst_23 = arith.constant 5.000000e-01 : f32
    %53 = vector.broadcast %cst_23 : f32 to vector<256x256xf32>
    %54 = arith.mulf %53, %52 : vector<256x256xf32>
    %55 = arith.mulf %42, %54 : vector<256x256xf32>
    %c0_24 = arith.constant 0 : index
    %c0_25 = arith.constant 0 : index
    %c0_26 = arith.constant 0 : index
    %56 = vector.load %arg7[%c0_24, %c0_25, %c0_26] : memref<1x128x256xbf16, #tpu.memory_space<vmem>>, vector<1x128x256xbf16>
    %57 = vector.shape_cast %56 : vector<1x128x256xbf16> to vector<128x256xbf16>
    %cst_27 = arith.constant dense<0.000000e+00> : vector<256x256xf32>
    %58 = tpu.matmul %36, %57, %cst_27 {dimension_numbers = #tpu.dot_dimension_numbers<[1], [0], [0], [1], [0, 0, 1, 1], [], []>} : vector<256x128xbf16>, vector<128x256xbf16>, vector<256x256xf32> -> vector<256x256xf32>
    %59 = vector.extract_strided_slice %6 {offsets = [1, 0], sizes = [1, 256], strides = [1, 1]} : vector<4x256xf32> to vector<1x256xf32>
    %60 = vector.broadcast %59 : vector<1x256xf32> to vector<256x256xf32>
    %61 = arith.addf %58, %60 : vector<256x256xf32>
    %62 = arith.mulf %61, %61 : vector<256x256xf32>
    %63 = arith.mulf %61, %62 : vector<256x256xf32>
    %cst_28 = arith.constant 4.471500e-02 : f32
    %64 = vector.broadcast %cst_28 : f32 to vector<256x256xf32>
    %65 = arith.mulf %64, %63 : vector<256x256xf32>
    %66 = arith.addf %61, %65 : vector<256x256xf32>
    %cst_29 = arith.constant 0.797884583 : f32
    %67 = vector.broadcast %cst_29 : f32 to vector<256x256xf32>
    %68 = arith.mulf %67, %66 : vector<256x256xf32>
    %69 = math.tanh %68 : vector<256x256xf32>
    %cst_30 = arith.constant 1.000000e+00 : f32
    %70 = vector.broadcast %cst_30 : f32 to vector<256x256xf32>
    %71 = arith.addf %70, %69 : vector<256x256xf32>
    %cst_31 = arith.constant 5.000000e-01 : f32
    %72 = vector.broadcast %cst_31 : f32 to vector<256x256xf32>
    %73 = arith.mulf %72, %71 : vector<256x256xf32>
    %74 = arith.mulf %61, %73 : vector<256x256xf32>
    %75 = arith.truncf %55 : vector<256x256xf32> to vector<256x256xbf16>
    %76 = vector.extract_strided_slice %6 {offsets = [2, 0], sizes = [1, 256], strides = [1, 1]} : vector<4x256xf32> to vector<1x256xf32>
    %77 = vector.extract_strided_slice %6 {offsets = [3, 0], sizes = [1, 256], strides = [1, 1]} : vector<4x256xf32> to vector<1x256xf32>
    %cst_32 = arith.constant dense<0.000000e+00> : vector<256xf32>
    %78 = vector.multi_reduction <add>, %74, %cst_32 [1] : vector<256x256xf32> to vector<256xf32>
    %79 = vector.shape_cast %78 : vector<256xf32> to vector<256x1xf32>
    %cst_33 = arith.constant 2.560000e+02 : f32
    %80 = vector.broadcast %cst_33 : f32 to vector<256x1xf32>
    %81 = arith.divf %79, %80 : vector<256x1xf32>
    %82 = arith.mulf %74, %74 : vector<256x256xf32>
    %cst_34 = arith.constant dense<0.000000e+00> : vector<256xf32>
    %83 = vector.multi_reduction <add>, %82, %cst_34 [1] : vector<256x256xf32> to vector<256xf32>
    %84 = vector.shape_cast %83 : vector<256xf32> to vector<256x1xf32>
    %cst_35 = arith.constant 2.560000e+02 : f32
    %85 = vector.broadcast %cst_35 : f32 to vector<256x1xf32>
    %86 = arith.divf %84, %85 : vector<256x1xf32>
    %87 = arith.mulf %81, %81 : vector<256x1xf32>
    %88 = arith.subf %86, %87 : vector<256x1xf32>
    %cst_36 = arith.constant 0.000000e+00 : f32
    %89 = vector.broadcast %cst_36 : f32 to vector<256x1xf32>
    %90 = arith.maximumf %88, %89 : vector<256x1xf32>
    %91 = vector.broadcast %81 : vector<256x1xf32> to vector<256x256xf32>
    %92 = arith.subf %74, %91 : vector<256x256xf32>
    %cst_37 = arith.constant 9.99999974E-6 : f32
    %93 = vector.broadcast %cst_37 : f32 to vector<256x1xf32>
    %94 = arith.addf %90, %93 : vector<256x1xf32>
    %95 = math.rsqrt %94 : vector<256x1xf32>
    %96 = vector.broadcast %95 : vector<256x1xf32> to vector<256x256xf32>
    %97 = arith.mulf %92, %96 : vector<256x256xf32>
    %98 = vector.broadcast %76 : vector<1x256xf32> to vector<256x256xf32>
    %99 = arith.mulf %97, %98 : vector<256x256xf32>
    %100 = vector.broadcast %77 : vector<1x256xf32> to vector<256x256xf32>
    %101 = arith.addf %99, %100 : vector<256x256xf32>
    %102 = arith.truncf %101 : vector<256x256xf32> to vector<256x256xbf16>
    %c0_38 = arith.constant 0 : index
    %c0_39 = arith.constant 0 : index
    %c0_40 = arith.constant 0 : index
    %103 = vector.load %arg8[%c0_38, %c0_39, %c0_40] : memref<1x64x64xbf16, #tpu.memory_space<vmem>>, vector<1x64x64xbf16>
    %104 = vector.shape_cast %103 : vector<1x64x64xbf16> to vector<64x64xbf16>
    %105 = vector.extract_strided_slice %102 {offsets = [0, 0], sizes = [64, 256], strides = [1, 1]} : vector<256x256xbf16> to vector<64x256xbf16>
    %cst_41 = arith.constant dense<0.000000e+00> : vector<64x256xf32>
    %106 = tpu.matmul %104, %105, %cst_41 {dimension_numbers = #tpu.dot_dimension_numbers<[1], [0], [0], [1], [0, 0, 1, 1], [], []>} : vector<64x64xbf16>, vector<64x256xbf16>, vector<64x256xf32> -> vector<64x256xf32>
    %107 = vector.broadcast %8 : vector<64x1xf32> to vector<64x256xf32>
    %108 = arith.addf %106, %107 : vector<64x256xf32>
    %109 = vector.extract_strided_slice %102 {offsets = [64, 0], sizes = [64, 256], strides = [1, 1]} : vector<256x256xbf16> to vector<64x256xbf16>
    %cst_42 = arith.constant dense<0.000000e+00> : vector<64x256xf32>
    %110 = tpu.matmul %104, %109, %cst_42 {dimension_numbers = #tpu.dot_dimension_numbers<[1], [0], [0], [1], [0, 0, 1, 1], [], []>} : vector<64x64xbf16>, vector<64x256xbf16>, vector<64x256xf32> -> vector<64x256xf32>
    %111 = vector.broadcast %8 : vector<64x1xf32> to vector<64x256xf32>
    %112 = arith.addf %110, %111 : vector<64x256xf32>
    %113 = vector.extract_strided_slice %102 {offsets = [128, 0], sizes = [64, 256], strides = [1, 1]} : vector<256x256xbf16> to vector<64x256xbf16>
    %cst_43 = arith.constant dense<0.000000e+00> : vector<64x256xf32>
    %114 = tpu.matmul %104, %113, %cst_43 {dimension_numbers = #tpu.dot_dimension_numbers<[1], [0], [0], [1], [0, 0, 1, 1], [], []>} : vector<64x64xbf16>, vector<64x256xbf16>, vector<64x256xf32> -> vector<64x256xf32>
    %115 = vector.broadcast %8 : vector<64x1xf32> to vector<64x256xf32>
    %116 = arith.addf %114, %115 : vector<64x256xf32>
    %117 = vector.extract_strided_slice %102 {offsets = [192, 0], sizes = [64, 256], strides = [1, 1]} : vector<256x256xbf16> to vector<64x256xbf16>
    %cst_44 = arith.constant dense<0.000000e+00> : vector<64x256xf32>
    %118 = tpu.matmul %104, %117, %cst_44 {dimension_numbers = #tpu.dot_dimension_numbers<[1], [0], [0], [1], [0, 0, 1, 1], [], []>} : vector<64x64xbf16>, vector<64x256xbf16>, vector<64x256xf32> -> vector<64x256xf32>
    %119 = vector.broadcast %8 : vector<64x1xf32> to vector<64x256xf32>
    %120 = arith.addf %118, %119 : vector<64x256xf32>
    %121 = tpu.concatenate %108, %112, %116, %120 in 0 : vector<64x256xf32>, vector<64x256xf32>, vector<64x256xf32>, vector<64x256xf32> -> vector<256x256xf32>
    %122 = arith.truncf %121 : vector<256x256xf32> to vector<256x256xbf16>
    %123 = arith.mulf %75, %122 : vector<256x256xbf16>
    %c0_45 = arith.constant 0 : index
    %c0_46 = arith.constant 0 : index
    %c0_47 = arith.constant 0 : index
    %124 = vector.load %arg9[%c0_45, %c0_46, %c0_47] : memref<1x256x128xbf16, #tpu.memory_space<vmem>>, vector<1x256x128xbf16>
    %125 = vector.shape_cast %124 : vector<1x256x128xbf16> to vector<256x128xbf16>
    %cst_48 = arith.constant dense<0.000000e+00> : vector<256x128xf32>
    %126 = tpu.matmul %123, %125, %cst_48 {dimension_numbers = #tpu.dot_dimension_numbers<[1], [0], [0], [1], [0, 0, 1, 1], [], []>} : vector<256x256xbf16>, vector<256x128xbf16>, vector<256x128xf32> -> vector<256x128xf32>
    %127 = vector.extract_strided_slice %4 {offsets = [2, 0], sizes = [1, 128], strides = [1, 1]} : vector<3x128xf32> to vector<1x128xf32>
    %128 = vector.broadcast %127 : vector<1x128xf32> to vector<256x128xf32>
    %129 = arith.addf %126, %128 : vector<256x128xf32>
    %c0_49 = arith.constant 0 : index
    %c0_50 = arith.constant 0 : index
    %130 = vector.load %arg10[%c0_49, %c0_50] : memref<256x128xf32, #tpu.memory_space<vmem>>, vector<256x128xf32>
    %131 = arith.addf %129, %130 : vector<256x128xf32>
    %c0_51 = arith.constant 0 : index
    %c0_52 = arith.constant 0 : index
    %132 = vector.load %arg10[%c0_51, %c0_52] : memref<256x128xf32, #tpu.memory_space<vmem>>, vector<256x128xf32>
    tpu.vector_store %arg10[%c0_51, %c0_52], %131 {strides = array<i32>} : memref<256x128xf32, #tpu.memory_space<vmem>>, vector<256x128xf32>,
    return
  }
  func.func @transform_0(%arg0: i32, %arg1: i32) -> (i32, i32) {
    %c0_i32 = arith.constant 0 : i32
    %c0_i32_0 = arith.constant 0 : i32
    return %arg0, %c0_i32 : i32, i32
  }
  func.func @transform_1(%arg0: i32, %arg1: i32) -> (i32, i32, i32) {
    %c0_i32 = arith.constant 0 : i32
    %c0_i32_0 = arith.constant 0 : i32
    %c0_i32_1 = arith.constant 0 : i32
    return %arg1, %c0_i32, %c0_i32_0 : i32, i32, i32
  }
  func.func @transform_2(%arg0: i32, %arg1: i32) -> (i32, i32, i32) {
    %c0_i32 = arith.constant 0 : i32
    %c0_i32_0 = arith.constant 0 : i32
    %c0_i32_1 = arith.constant 0 : i32
    return %arg1, %c0_i32, %c0_i32_0 : i32, i32, i32
  }
  func.func @transform_3(%arg0: i32, %arg1: i32) -> (i32, i32, i32) {
    %c0_i32 = arith.constant 0 : i32
    %c0_i32_0 = arith.constant 0 : i32
    %c0_i32_1 = arith.constant 0 : i32
    return %arg1, %c0_i32, %c0_i32_0 : i32, i32, i32
  }
  func.func @transform_4(%arg0: i32, %arg1: i32) -> (i32, i32, i32) {
    %c0_i32 = arith.constant 0 : i32
    %c0_i32_0 = arith.constant 0 : i32
    %c0_i32_1 = arith.constant 0 : i32
    return %arg1, %c0_i32, %c0_i32_0 : i32, i32, i32
  }
  func.func @transform_5(%arg0: i32, %arg1: i32) -> (i32, i32, i32) {
    %c0_i32 = arith.constant 0 : i32
    %c0_i32_0 = arith.constant 0 : i32
    %c0_i32_1 = arith.constant 0 : i32
    return %arg1, %c0_i32, %c0_i32_0 : i32, i32, i32
  }
  func.func @transform_6(%arg0: i32, %arg1: i32) -> (i32, i32, i32) {
    %c0_i32 = arith.constant 0 : i32
    %c0_i32_0 = arith.constant 0 : i32
    %c0_i32_1 = arith.constant 0 : i32
    return %arg1, %c0_i32, %c0_i32_0 : i32, i32, i32
  }
  func.func @transform_7(%arg0: i32, %arg1: i32) -> (i32, i32, i32) {
    %c0_i32 = arith.constant 0 : i32
    %c0_i32_0 = arith.constant 0 : i32
    %c0_i32_1 = arith.constant 0 : i32
    return %arg1, %c0_i32, %c0_i32_0 : i32, i32, i32
  }
  func.func @transform_8(%arg0: i32, %arg1: i32) -> (i32, i32) {
    %c0_i32 = arith.constant 0 : i32
    %c0_i32_0 = arith.constant 0 : i32
    return %arg0, %c0_i32 : i32, i32
  }
}

</mosaic_0001>

<bundles_post_ra>
// kernel: tpu_custom_call.1
= control target key start
LH: loop header
LB: loop body
LE: loop exit
PB: predicated region body
PF: predicated region fallthrough
CT: control target
= control target key end

     0   :  { %s11499_s0 = inlined_call_operand.hbm [shape: f32[256,128], index: 0, kind: input, shape index: {}]   ;;  %s11500_s1 = inlined_call_operand.vmem [shape: f32[2,3,128], index: 1, kind: input, shape index: {}]   ;;  %s11501_s2 = inlined_call_operand.vmem [shape: f32[2,4,256], index: 2, kind: input, shape index: {}]   ;;  %s11502_s3 = inlined_call_operand.vmem [shape: f32[2,64,1], index: 3, kind: input, shape index: {}]   ;;  %s11503_s4 = inlined_call_operand.hbm [shape: bf16[2,128,256], index: 4, kind: input, shape index: {}]   ;;  %s11504_s5 = inlined_call_operand.hbm [shape: bf16[2,128,256], index: 5, kind: input, shape index: {}]   ;;  %s11505_s6 = inlined_call_operand.vmem [shape: bf16[2,64,64], index: 6, kind: input, shape index: {}]   ;;  %s11506_s7 = inlined_call_operand.hbm [shape: bf16[2,256,128], index: 7, kind: input, shape index: {}]   ;;  %s11507_s8 = inlined_call_operand.hbm [shape: f32[256,128], index: 8, kind: output, shape index: {}]  }
   0x1   :  { %11700 = sst [smem:[#allocation155_spill]] %s11499_s0 }
   0x2   :  { %11701 = sst [smem:[#allocation156_spill]] %s11503_s4 }
   0x3   :  { %11702 = sst [smem:[#allocation157_spill]] %s11504_s5 }
   0x4   :  { %11703 = sst [smem:[#allocation158_spill]] %s11505_s6 }
   0x5   :  { %11704 = sst [smem:[#allocation159_spill]] %s11507_s8 }
   0x6   :  { %13 = vsyncpa [#allocation3], 0 }
   0x7   :  { %14 = vsyncpa [#allocation6], 0 }
   0x8   :  { %16 = vsyncpa [#allocation6 + $0x1], 0 }
   0x9   :  { %17 = vsyncpa [#allocation9], 0 }
   0xa   :  { %19 = vsyncpa [#allocation9 + $0x1], 0 }
   0xb   :  { %20 = vsyncpa [#allocation4], 0  ;;  %s6704_s27 = smov 0   ;;  %s6706_s28 = smov 0  }
   0xc   :  { %s6708_s29 = smov 0   ;;  %s6710_s30 = smov 0  }
   0xd   :  { %s6712_s9 = smov 0   ;;  %s6714_s10 = smov 0  }
   0xe LB: > { %11705 = sst [smem:[#allocation15_spill]] %s6642_s9  ;;  %s35_s11 = sadd.s32 1, %s6642_s9  ;;  %s6646_s10 = sphi %s6714_s10, %s26_s10   ;;  %s6642_s9 = sphi %s6712_s9, %s12241_s9   ;;  %s6638_s30 = sphi %s6710_s30, %s12240_s30   ;;  %s6634_s29 = sphi %s6708_s29, %s12244_s29   ;;  %s6630_s28 = sphi %s6706_s28, %s12243_s28   ;;  %s6626_s27 = sphi %s6704_s27, %s12242_s27  }
   0xf   : > { %11706 = sst [smem:[#allocation16_spill]] %s6646_s10  ;;  %s149_s12 = sadd.s32 1, %s6634_s29 }
  0x10   : > { %p36_p0 = scmp.ge.s32.totalorder %s35_s11, 2  ;;  %p156_p1 = scmp.ne.s32.totalorder %s6634_s29, %s6630_s28 }
  0x11   : > { %p157_p2 = scmp.eq.s32.totalorder %s6646_s10, 0  ;;  %p5925_p5 = scmp.lt.s32.totalorder %s6646_s10, 2 }
  0x12   : > { %s12246_s11 = smov (%p36_p0, %s35_s11), 0  ;;  %s330_s15 = sand.u32 1, %s6646_s10  }
  0x13   : > { %11707 = sst [smem:[#allocation17_spill]] %s12246_s11  ;;  %p6741_p3 = por %p157_p2, %p156_p1 }
  0x14   : > { %s146_s14 = ssub.s32 %s6642_s9, %s12246_s11  ;;  %s11508_s16 = sand.u32 1, %s6634_s29  }
  0x15   : > { %p147_p4 = scmp.eq.s32.totalorder %s146_s14, 0  ;;  %s6755_s18 = sshll.u32 %s11508_s16, 7 }
  0x16   : > { %s6758_s19 = sshll.u32 %s6642_s9, 7  ;;  %s11710_s4 = sld [smem:[#allocation156_spill]] }
  0x17   : > { %s6751_s17 = scalar_select %p147_p4, %s6634_s29, %s149_s12  }
  0x18   : > { %s334_s23 = scalar_lea.vmem [#allocation5], %s6755_s18  ;;  %p6767_p6 = pnand %p5925_p5, %p6741_p3 }
  0x19   : > { %11709 = sst [smem:[#allocation18_spill]] %s6751_s17  ;;  %s342_s24 = sshll.u32 %s334_s23, 4  ;;  %s343_s24 = int_to_ptr.vmem [resolvable:$true] %s342_s24 }
  0x1a   : > { %s6771_s12 = scalar_lea.sflag [#allocation6], %s330_s15  ;;  %s6648_s14 = smov 128  }
  0x1b   : > { %s6649_s16 = smov 8   ;;  %s6777_s20 = sadd.s32 4294967295, %s6646_s10  }
  0x1c   : > { %s339_s22 = scalar_lea.hbm %s11710_s4, %s6758_s19  ;;  %p162_p7 = scmp.ne.s32.totalorder %s6630_s28, %s6626_s27 }
  0x1d   : > { %s340_s25 = sshll.u32 %s339_s22, 4  ;;  %p163_p8 = scmp.eq.s32.totalorder %s6777_s20, 0  ;;  %s341_s25 = int_to_ptr.hbm [resolvable:$true] %s340_s25 }
  0x1e   : > { %5917 = dma.hbm_to_vmem [thread:$0]  (!%p6767_p6), %s341_s25, 2048, %s343_s24, %s6771_s12, %s6648_s14, %s6648_s14, %s6649_s16  }
  0x1f   : > { %p5553_p9 = scmp.ge.s32.totalorder %s6646_s10, 1  ;;  %p277_p10 = scmp.lt.s32.totalorder %s6646_s10, 3 }
  0x20   : > { %p6786_p11 = por %p163_p8, %p162_p7  ;;  %s11714_s0 = sld [smem:[#allocation155_spill]] }
  0x21   : > { %p6790_p12 = pnand %p5553_p9, %p277_p10  ;;  %s6650_s23 = smov [#allocation2]  }
  0x22   : > { %s293_s24 = sshll.u32 %s6650_s23, 4  ;;  %s11715_s5 = sld [smem:[#allocation157_spill]]  ;;  %s294_s24 = int_to_ptr.vmem [resolvable:$true] %s293_s24 }
  0x23   : > { %p5910_p13 = pneg %p6790_p12  ;;  %s356_s21 = scalar_lea.vmem [#allocation7], %s6755_s18 }
  0x24   : > { %s364_s22 = sshll.u32 %s356_s21, 4  ;;  %s391_s23 = scalar_lea.hbm %s11506_s7, %s6758_s19  ;;  %s365_s22 = int_to_ptr.vmem [resolvable:$true] %s364_s22 }
  0x25   : > { %p5911_p0 = pnand %p5910_p13, %p163_p8  ;;  %s392_s10 = sshll.u32 %s391_s23, 4  ;;  %s393_s10 = int_to_ptr.hbm [resolvable:$true] %s392_s10 }
  0x26   : > { %s291_s27 = sshll.u32 %s11714_s0, 4  ;;  %s386_s8 = scalar_lea.vmem [#allocation8], %s6755_s18  ;;  %s292_s27 = int_to_ptr.hbm [resolvable:$true] %s291_s27 }
  0x27   : > { %5913 = dma.hbm_to_vmem [thread:$0]  (!%p5911_p0), %s292_s27, 4096, %s294_s24, [#allocation3], %s6648_s14, %s6648_s14, %s6649_s16  }
  0x28   : > { %s361_s11 = scalar_lea.hbm %s11715_s5, %s6758_s19  ;;  %s394_s6 = sshll.u32 %s386_s8, 4  ;;  %s395_s6 = int_to_ptr.vmem [resolvable:$true] %s394_s6 }
  0x29   : > { %s362_s9 = sshll.u32 %s361_s11, 4  ;;  %s11716_s4 = sand.u32 1, %s6634_s29   ;;  %s363_s9 = int_to_ptr.hbm [resolvable:$true] %s362_s9 }
  0x2a   : > { %5920 = dma.hbm_to_vmem [thread:$0]  (!%p6767_p6), %s363_s9, 2048, %s365_s22, %s6771_s12, %s6648_s14, %s6648_s14, %s6649_s16  }
  0x2b   : > { %s383_s25 = scalar_lea.sflag [#allocation9], %s11716_s4  ;;  %s6651_s11 = smov 64  }
  0x2c   : > { %s6652_s5 = smov 4   ;;  %406 = sbr.rel (%p6790_p12) target bundleno = 1439 (0x59f), region = 52 }
  0x2d   : > { %5923 = dma.hbm_to_vmem [thread:$0]  (!%p6767_p6), %s393_s10, 2048, %s395_s6, %s383_s25, %s6651_s11, %s6651_s11, %s6652_s5  }
  0x31   : > { %6609 = dma.done.wait (%p163_p8), [#allocation3], 4096  }
  0x32   : > { %6611 = vsyncadd (%p163_p8), [#allocation3], 4294963200  ;;  %s413_s0 = sand.u32 1, %s6777_s20   ;;  %s415_s8 = sand.u32 1, %s6630_s28  }
  0x33   : > { %s5567_s9 = sshll.u32 %s415_s8, 7  ;;  %s414_s16 = scalar_lea.sflag [#allocation6], %s413_s0 }
  0x34   : > { %s6826_s17 = scalar_lea.vmem [#allocation5], %s5567_s9 }
  0x35   : > { %6613 = dma.done.wait (%p6786_p11), %s414_s16, 4096  }
  0x36   : > { %6615 = vsyncadd (%p6786_p11), %s414_s16, 4294963200  ;;  %s6832_s5 = scalar_lea.vmem [#allocation7], %s5567_s9  ;;  %s434_s6 = scalar_lea.sflag [#allocation9], %s415_s8 }
  0x37   : > { %s6834_s10 = scalar_lea.vmem [#allocation8], %s5567_s9 }
  0x38   : > { %6617 = dma.done.wait (%p6786_p11), %s434_s6, 2048  }
  0x39   : > { %6619 = vsyncadd (%p6786_p11), %s434_s6, 4294965248  ;;  %p496_p1 = scmp.lt.s32.totalorder %s6638_s30, 1  ;;  %s11717_s8 = sld [smem:[#allocation158_spill]] }
  0x3a   : > { %p5577_p2 = scmp.ne.s32.totalorder %s6638_s30, 0 }
  0x3b   : > { %s497_s18 = scalar_select %p496_p1, %s6638_s30, 1 }
  0x3c   : > { %520 = sbr.rel (%p5577_p2) target bundleno = 98 (0x62), region = 72 }
  0x3d   : > { %s5570_s19 = sshll.u32 %s497_s18, 2  ;;  %s5825_s26 = sshll.u32 %s497_s18, 3 }
  0x3e   : > { %s6845_s15 = scalar_lea.vmem %s11500_s1, %s5570_s19  ;;  %s6850_s21 = scalar_lea.vmem %s11501_s2, %s5825_s26 }
  0x3f   : > { %s5826_s22 = sshll.u32 %s497_s18, 6  ;;  %s5827_s23 = sshll.u32 %s497_s18, 5 }
  0x40   : > { %s6855_s25 = scalar_lea.vmem %s11502_s3, %s5826_s22  ;;  %s6860_s9 = scalar_lea.vmem %s11717_s8, %s5827_s23 }
  0x41   : > { %v521_v0 = vld [vmem:[#allocation2] sm:$0xff]  ;;  %v522_v1 = vld [vmem:[#allocation2 + $0x8] sm:$0xff]  ;;  %v523_v2 = vld [vmem:[#allocation2 + $0x10] sm:$0xff] }
  0x42   : > { %553 = vst [vmem:[#allocation10] sm:$0xff] %v521_v0  ;;  %v524_v3 = vld [vmem:[#allocation2 + $0x18] sm:$0xff]  ;;  %v525_v4 = vld [vmem:[#allocation2 + $0x20] sm:$0xff]  ;;  %v526_v5 = vld [vmem:[#allocation2 + $0x28] sm:$0xff] }
  0x43   : > { %554 = vst [vmem:[#allocation10 + $0x8] sm:$0xff] %v522_v1  ;;  %v527_v6 = vld [vmem:[#allocation2 + $0x30] sm:$0xff]  ;;  %v528_v7 = vld [vmem:[#allocation2 + $0x38] sm:$0xff]  ;;  %v529_v8 = vld [vmem:[#allocation2 + $0x40] sm:$0xff] }
  0x44   : > { %555 = vst [vmem:[#allocation10 + $0x10] sm:$0xff] %v523_v2  ;;  %v530_v9 = vld [vmem:[#allocation2 + $0x48] sm:$0xff]  ;;  %v531_v10 = vld [vmem:[#allocation2 + $0x50] sm:$0xff]  ;;  %v532_v11 = vld [vmem:[#allocation2 + $0x58] sm:$0xff] }
  0x45   : > { %556 = vst [vmem:[#allocation10 + $0x18] sm:$0xff] %v524_v3  ;;  %v533_v12 = vld [vmem:[#allocation2 + $0x60] sm:$0xff]  ;;  %v534_v13 = vld [vmem:[#allocation2 + $0x68] sm:$0xff]  ;;  %v535_v14 = vld [vmem:[#allocation2 + $0x70] sm:$0xff] }
  0x46   : > { %557 = vst [vmem:[#allocation10 + $0x20] sm:$0xff] %v525_v4  ;;  %v536_v15 = vld [vmem:[#allocation2 + $0x78] sm:$0xff]  ;;  %v537_v16 = vld [vmem:[#allocation2 + $0x80] sm:$0xff]  ;;  %v538_v17 = vld [vmem:[#allocation2 + $0x88] sm:$0xff] }
  0x47   : > { %558 = vst [vmem:[#allocation10 + $0x28] sm:$0xff] %v526_v5  ;;  %v539_v18 = vld [vmem:[#allocation2 + $0x90] sm:$0xff]  ;;  %v540_v19 = vld [vmem:[#allocation2 + $0x98] sm:$0xff]  ;;  %v541_v20 = vld [vmem:[#allocation2 + $0xa0] sm:$0xff] }
  0x48   : > { %559 = vst [vmem:[#allocation10 + $0x30] sm:$0xff] %v527_v6  ;;  %v542_v21 = vld [vmem:[#allocation2 + $0xa8] sm:$0xff]  ;;  %v543_v22 = vld [vmem:[#allocation2 + $0xb0] sm:$0xff]  ;;  %v544_v23 = vld [vmem:[#allocation2 + $0xb8] sm:$0xff] }
  0x49   : > { %560 = vst [vmem:[#allocation10 + $0x38] sm:$0xff] %v528_v7  ;;  %v545_v24 = vld [vmem:[#allocation2 + $0xc0] sm:$0xff]  ;;  %v546_v25 = vld [vmem:[#allocation2 + $0xc8] sm:$0xff]  ;;  %v547_v26 = vld [vmem:[#allocation2 + $0xd0] sm:$0xff] }
  0x4a   : > { %561 = vst [vmem:[#allocation10 + $0x40] sm:$0xff] %v529_v8  ;;  %v548_v27 = vld [vmem:[#allocation2 + $0xd8] sm:$0xff]  ;;  %v549_v28 = vld [vmem:[#allocation2 + $0xe0] sm:$0xff]  ;;  %v550_v29 = vld [vmem:[#allocation2 + $0xe8] sm:$0xff] }
  0x4b   : > { %562 = vst [vmem:[#allocation10 + $0x48] sm:$0xff] %v530_v9  ;;  %v551_v30 = vld [vmem:[#allocation2 + $0xf0] sm:$0xff]  ;;  %v552_v31 = vld [vmem:[#allocation2 + $0xf8] sm:$0xff] }
  0x4c   : > { %563 = vst [vmem:[#allocation10 + $0x50] sm:$0xff] %v531_v10 }
  0x4d   : > { %564 = vst [vmem:[#allocation10 + $0x58] sm:$0xff] %v532_v11 }
  0x4e   : > { %565 = vst [vmem:[#allocation10 + $0x60] sm:$0xff] %v533_v12 }
  0x4f   : > { %566 = vst [vmem:[#allocation10 + $0x68] sm:$0xff] %v534_v13 }
  0x50   : > { %567 = vst [vmem:[#allocation10 + $0x70] sm:$0xff] %v535_v14 }
  0x51   : > { %568 = vst [vmem:[#allocation10 + $0x78] sm:$0xff] %v536_v15 }
  0x52   : > { %569 = vst [vmem:[#allocation10 + $0x80] sm:$0xff] %v537_v16 }
  0x53   : > { %570 = vst [vmem:[#allocation10 + $0x88] sm:$0xff] %v538_v17 }
  0x54   : > { %571 = vst [vmem:[#allocation10 + $0x90] sm:$0xff] %v539_v18 }
  0x55   : > { %572 = vst [vmem:[#allocation10 + $0x98] sm:$0xff] %v540_v19 }
  0x56   : > { %573 = vst [vmem:[#allocation10 + $0xa0] sm:$0xff] %v541_v20 }
  0x57   : > { %574 = vst [vmem:[#allocation10 + $0xa8] sm:$0xff] %v542_v21 }
  0x58   : > { %575 = vst [vmem:[#allocation10 + $0xb0] sm:$0xff] %v543_v22 }
  0x59   : > { %576 = vst [vmem:[#allocation10 + $0xb8] sm:$0xff] %v544_v23 }
  0x5a   : > { %577 = vst [vmem:[#allocation10 + $0xc0] sm:$0xff] %v545_v24 }
  0x5b   : > { %578 = vst [vmem:[#allocation10 + $0xc8] sm:$0xff] %v546_v25 }
  0x5c   : > { %579 = vst [vmem:[#allocation10 + $0xd0] sm:$0xff] %v547_v26 }
  0x5d   : > { %580 = vst [vmem:[#allocation10 + $0xd8] sm:$0xff] %v548_v27 }
  0x5e   : > { %581 = vst [vmem:[#allocation10 + $0xe0] sm:$0xff] %v549_v28 }
  0x5f   : > { %582 = vst [vmem:[#allocation10 + $0xe8] sm:$0xff] %v550_v29 }
  0x60   : > { %583 = vst [vmem:[#allocation10 + $0xf0] sm:$0xff] %v551_v30 }
  0x61   : > { %584 = vst [vmem:[#allocation10 + $0xf8] sm:$0xff] %v552_v31 }
  0x62 PF: > { %v6863_v32 = vld [vmem:[#allocation10 + $0x80] sm:$0xff]  ;;  %v6865_v33 = vld [vmem:[#allocation10 + $0x90] sm:$0xff]  ;;  %v6871_v35 = vld [vmem:[#allocation10 + $0x88] sm:$0xff]  ;;  %v6653_v4 = vmov 128.0   ;;  %s6656_s30 = smov [#allocation10]   ;;  %s12237_s6 = sld [smem:[#allocation159_spill]] }
  0x63   : > { %659 = vadd.xlane.f32.xlu0 %v6863_v32  ;;  %663 = vadd.xlane.f32.xlu2 %v6865_v33  ;;  %v746_v34 = vmul.f32 %v6863_v32, %v6863_v32  ;;  %v6873_v36 = vld [vmem:[#allocation10 + $0x98] sm:$0xff]  ;;  %v747_v37 = vmul.f32 %v6871_v35, %v6871_v35  ;;  %v748_v38 = vmul.f32 %v6865_v33, %v6865_v33  ;;  %v6881_v39 = vld [vmem:[#allocation10 + $0xa0] sm:$0xff]  ;;  %v6886_v41 = vld [vmem:[#allocation10 + $0xa8] sm:$0xff]  ;;  %5991 = vrcp.f32 %v6653_v4  ;;  %s5380_s16 = sshll.u32 %s6656_s30, 4  ;;  %p5927_p3 = scmp.eq.s32.totalorder %s6777_s20, 1  ;;  %s5381_s16 = int_to_ptr.vmem [resolvable:$true] %s5380_s16 }
  0x64   : > { %v749_v40 = vmul.f32 %v6873_v36, %v6873_v36  ;;  %v751_v42 = vmul.f32 %v6886_v41, %v6886_v41  ;;  %v750_v43 = vmul.f32 %v6881_v39, %v6881_v39  ;;  %v6893_v44 = vld [vmem:[#allocation10 + $0xb0] sm:$0xff]  ;;  %v6897_v46 = vld [vmem:[#allocation10 + $0xb8] sm:$0xff]  ;;  %v6903_v48 = vld [vmem:[#allocation10 + $0xc8] sm:$0xff]  ;;  %s6657_s18 = smov 128   ;;  %s6658_s19 = smov 8  }
  0x65   : > { %794 = vadd.xlane.f32.xlu1 %v746_v34  ;;  %v752_v45 = vmul.f32 %v6893_v44, %v6893_v44  ;;  %v753_v47 = vmul.f32 %v6897_v46, %v6897_v46  ;;  %v6905_v49 = vld [vmem:[#allocation10 + $0xc0] sm:$0xff]  ;;  %v6911_v51 = vld [vmem:[#allocation10 + $0xd0] sm:$0xff]  ;;  %v755_v52 = vmul.f32 %v6903_v48, %v6903_v48  ;;  %v6916_v53 = vld [vmem:[#allocation10 + $0xd8] sm:$0xff] }
  0x66   : > { %v754_v50 = vmul.f32 %v6905_v49, %v6905_v49  ;;  %v757_v54 = vmul.f32 %v6916_v53, %v6916_v53  ;;  %v756_v55 = vmul.f32 %v6911_v51, %v6911_v51  ;;  %v6923_v56 = vld [vmem:[#allocation10 + $0xe0] sm:$0xff]  ;;  %v624_v58 = vld [vmem:[#allocation10 + $0xe8] sm:$0xff]  ;;  %v597_v5 = vld [vmem:[#allocation10 + $0x10] sm:$0xff] }
  0x67   : > { %v758_v57 = vmul.f32 %v6923_v56, %v6923_v56  ;;  %v759_v59 = vmul.f32 %v624_v58, %v624_v58  ;;  %v625_v61 = vld [vmem:[#allocation10 + $0xf0] sm:$0xff]  ;;  %v595_v63 = vld [vmem:[#allocation10] sm:$0xff]  ;;  %v596_v1 = vld [vmem:[#allocation10 + $0x8] sm:$0xff]  ;;  %v732_v6 = vmul.f32 %v597_v5, %v597_v5 }
  0x68   : > { %v626_v60 = vld [vmem:[#allocation10 + $0xf8] sm:$0xff]  ;;  %v760_v62 = vmul.f32 %v625_v61, %v625_v61  ;;  %v731_v2 = vmul.f32 %v596_v1, %v596_v1  ;;  %v730_v3 = vmul.f32 %v595_v63, %v595_v63  ;;  %v5636_v9 = vld [vmem:[%s6826_s17 + $0x70] sm:$0xf]  ;;  %v5842_v11 = vld [vmem:[%s6826_s17 + $0x74] sm:$0xf] }
  0x69   : > { %v761_v0 = vmul.f32 %v626_v60, %v626_v60  ;;  %v6928_v7 = vpop.eup %5991  ;;  %v598_v8 = vld [vmem:[#allocation10 + $0x18] sm:$0xff]  ;;  %v5628_v16 = vld [vmem:[%s6826_s17 + $0x60] sm:$0xf]  ;;  %v5841_v17 = vld [vmem:[%s6826_s17 + $0x64] sm:$0xf0] }
  0x6a   : > { %v5843_v10 = vld [vmem:[%s6826_s17 + $0x74] sm:$0xf0]  ;;  %v5638_v13 = vld [vmem:[%s6826_s17 + $0x78] sm:$0xf0]  ;;  %v692_v14 = vmul.f32 128.0, %v6928_v7  ;;  %v733_v19 = vmul.f32 %v598_v8, %v598_v8  ;;  %v5629_v20 = vor.u32 %v5841_v17, %v5628_v16  ;;  %v600_v23 = vld [vmem:[#allocation10 + $0x28] sm:$0xff]  ;;  %vm696_vm0 = vweird.f32 %v6928_v7 }
  0x6b   : > { %661 = vadd.xlane.f32.xlu0 %v6871_v35  ;;  %665 = vadd.xlane.f32.xlu2 %v6873_v36  ;;  %v5637_v12 = vor.u32 %v5843_v10, %v5636_v9  ;;  %v5641_v15 = vor.u32 %v5842_v11, %v5638_v13  ;;  %v5840_v18 = vld [vmem:[%s6826_s17 + $0x64] sm:$0xf]  ;;  %v5630_v21 = vld [vmem:[%s6826_s17 + $0x68] sm:$0xf0]  ;;  %v5620_v26 = vld [vmem:[%s6826_s17 + $0x50] sm:$0xf] }
  0x6c   : > { %v693_v22 = vsub.f32 1.0, %v692_v14  ;;  %v5633_v24 = vor.u32 %v5840_v18, %v5630_v21  ;;  %v599_v25 = vld [vmem:[#allocation10 + $0x20] sm:$0xff]  ;;  %v5839_v27 = vld [vmem:[%s6826_s17 + $0x54] sm:$0xf0]  ;;  %v5838_v28 = vld [vmem:[%s6826_s17 + $0x54] sm:$0xf] }
  0x6d   : > { %796 = vadd.xlane.f32.xlu1 %v747_v37  ;;  %5880 = vmatpush.bf16.msra.mxu2 %v5637_v12  ;;  %v5621_v29 = vor.u32 %v5839_v27, %v5620_v26  ;;  %v5622_v30 = vld [vmem:[%s6826_s17 + $0x58] sm:$0xf0]  ;;  %v5612_v37 = vld [vmem:[%s6826_s17 + $0x40] sm:$0xf]  ;;  %v5598_v9 = vld [vmem:[%s6826_s17 + $0x28] sm:$0xf0] }
  0x6e   : > { %5888 = vmatpush.bf16.msra.mxu3 %v5641_v15  ;;  %1555 = vmatpush.bf16.msra.mxu0 %v5637_v12  ;;  %v694_v31 = vmul.f32 %v6928_v7, %v693_v22  ;;  %v5625_v34 = vor.u32 %v5838_v28, %v5622_v30  ;;  %v5596_v4 = vld [vmem:[%s6826_s17 + $0x20] sm:$0xf]  ;;  %v5831_v16 = vld [vmem:[%s6826_s17 + $0x14] sm:$0xf0]  ;;  %v5830_v17 = vld [vmem:[%s6826_s17 + $0x14] sm:$0xf] }
  0x6f   : > { %1644 = vmatpush.bf16.msra.mxu1 %v5641_v15  ;;  %v5588_v15 = vld [vmem:[%s6826_s17 + $0x10] sm:$0xf]  ;;  %v5829_v30 = vld [vmem:[%s6826_s17 + $0x4] sm:$0xf0] }
  0x70   : > { %v5589_v18 = vor.u32 %v5831_v16, %v5588_v15 }
  0x71   : > { %5881 = vmatpush.bf16.msra.mxu2 %v5629_v20 }
  0x72   : > { %5889 = vmatpush.bf16.msra.mxu3 %v5633_v24  ;;  %1556 = vmatpush.bf16.msra.mxu0 %v5629_v20 }
  0x73   : > { %798 = vadd.xlane.f32.xlu0 %v748_v38  ;;  %667 = vadd.xlane.f32.xlu2 %v6881_v39  ;;  %v5837_v38 = vld [vmem:[%s6826_s17 + $0x44] sm:$0xf0] }
  0x74   : > { %1645 = vmatpush.bf16.msra.mxu1 %v5633_v24 }
  0x75   : > { %800 = vadd.xlane.f32.xlu1 %v749_v40  ;;  %5882 = vmatpush.bf16.msra.mxu2 %v5621_v29  ;;  %v5836_v40 = vld [vmem:[%s6826_s17 + $0x44] sm:$0xf] }
  0x76   : > { %5890 = vmatpush.bf16.msra.mxu3 %v5625_v34  ;;  %1557 = vmatpush.bf16.msra.mxu0 %v5621_v29  ;;  %v5580_v29 = vld [vmem:[%s6826_s17] sm:$0xf] }
  0x78   : > { %1646 = vmatpush.bf16.msra.mxu1 %v5625_v34 }
  0x7b   : > { %669 = vadd.xlane.f32.xlu0 %v6886_v41  ;;  %804 = vadd.xlane.f32.xlu2 %v751_v42  ;;  %v734_v42 = vmul.f32 %v599_v25, %v599_v25 }
  0x7d   : > { %802 = vadd.xlane.f32.xlu1 %v750_v43  ;;  %v5613_v43 = vor.u32 %v5837_v38, %v5612_v37  ;;  %v5828_v37 = vld [vmem:[%s6826_s17 + $0x4] sm:$0xf]  ;;  %v5582_v38 = vld [vmem:[%s6826_s17 + $0x8] sm:$0xf0] }
  0x7f   : > { %5883 = vmatpush.bf16.msra.mxu2 %v5613_v43  ;;  %1558 = vmatpush.bf16.msra.mxu0 %v5613_v43  ;;  %v5581_v43 = vor.u32 %v5829_v30, %v5580_v29 }
  0x83   : > { %671 = vadd.xlane.f32.xlu0 %v6893_v44  ;;  %806 = vadd.xlane.f32.xlu2 %v752_v45  ;;  %v5614_v45 = vld [vmem:[%s6826_s17 + $0x48] sm:$0xf0] }
  0x85   : > { %673 = vadd.xlane.f32.xlu1 %v6897_v46 }
  0x8b   : > { %808 = vadd.xlane.f32.xlu0 %v753_v47  ;;  %677 = vadd.xlane.f32.xlu2 %v6903_v48  ;;  %v695_v47 = vadd.f32 %v6928_v7, %v694_v31 }
  0x8d   : > { %675 = vadd.xlane.f32.xlu1 %v6905_v49 }
  0x93   : > { %810 = vadd.xlane.f32.xlu0 %v754_v50  ;;  %679 = vadd.xlane.f32.xlu2 %v6911_v51  ;;  %v601_v50 = vld [vmem:[#allocation10 + $0x30] sm:$0xff] }
  0x94   : > { %v736_v11 = vmul.f32 %v601_v50, %v601_v50 }
  0x95   : > { %812 = vadd.xlane.f32.xlu1 %v755_v52  ;;  %v5617_v52 = vor.u32 %v5836_v40, %v5614_v45  ;;  %v5585_v45 = vor.u32 %v5828_v37, %v5582_v38 }
  0x97   : > { %5891 = vmatpush.bf16.msra.mxu3 %v5617_v52  ;;  %1647 = vmatpush.bf16.msra.mxu1 %v5617_v52 }
  0x9b   : > { %681 = vadd.xlane.f32.xlu0 %v6916_v53  ;;  %816 = vadd.xlane.f32.xlu2 %v757_v54  ;;  %v735_v54 = vmul.f32 %v600_v23, %v600_v23 }
  0x9d   : > { %814 = vadd.xlane.f32.xlu1 %v756_v55  ;;  %v5604_v55 = vld [vmem:[%s6826_s17 + $0x30] sm:$0xf] }
  0xa3   : > { %683 = vadd.xlane.f32.xlu0 %v6923_v56  ;;  %818 = vadd.xlane.f32.xlu2 %v758_v57  ;;  %v5835_v57 = vld [vmem:[%s6826_s17 + $0x34] sm:$0xf0] }
  0xa5   : > { %685 = vadd.xlane.f32.xlu1 %v624_v58  ;;  %v5834_v58 = vld [vmem:[%s6826_s17 + $0x34] sm:$0xf] }
  0xab   : > { %820 = vadd.xlane.f32.xlu0 %v759_v59  ;;  %689 = vadd.xlane.f32.xlu2 %v626_v60  ;;  %v5605_v59 = vor.u32 %v5835_v57, %v5604_v55  ;;  %v5606_v60 = vld [vmem:[%s6826_s17 + $0x38] sm:$0xf0] }
  0xad   : > { %687 = vadd.xlane.f32.xlu1 %v625_v61  ;;  %v6955_v61 = vsel %vm696_vm0, %v6928_v7, %v695_v47  ;;  %5884 = vmatpush.bf16.msra.mxu2 %v5605_v59 }
  0xae   : > { %1559 = vmatpush.bf16.msra.mxu0 %v5605_v59 }
  0xb3   : > { %822 = vadd.xlane.f32.xlu0 %v760_v62  ;;  %627 = vadd.xlane.f32.xlu2 %v595_v63  ;;  %v602_v62 = vld [vmem:[#allocation10 + $0x38] sm:$0xff]  ;;  %v5609_v63 = vor.u32 %v5834_v58, %v5606_v60 }
  0xb5   : > { %824 = vadd.xlane.f32.xlu1 %v761_v0  ;;  %5892 = vmatpush.bf16.msra.mxu3 %v5609_v63 }
  0xb6   : > { %1648 = vmatpush.bf16.msra.mxu1 %v5609_v63 }
  0xbb   : > { %629 = vadd.xlane.f32.xlu0 %v596_v1  ;;  %764 = vadd.xlane.f32.xlu2 %v731_v2 }
  0xbd   : > { %762 = vadd.xlane.f32.xlu1 %v730_v3  ;;  %v737_v3 = vmul.f32 %v602_v62, %v602_v62 }
  0xc3   : > { %631 = vadd.xlane.f32.xlu0 %v597_v5  ;;  %766 = vadd.xlane.f32.xlu2 %v732_v6  ;;  %v5833_v5 = vld [vmem:[%s6826_s17 + $0x24] sm:$0xf0]  ;;  %v5832_v6 = vld [vmem:[%s6826_s17 + $0x24] sm:$0xf] }
  0xc4   : > { %v5601_v13 = vor.u32 %v5832_v6, %v5598_v9 }
  0xc5   : > { %633 = vadd.xlane.f32.xlu1 %v598_v8  ;;  %v5597_v8 = vor.u32 %v5833_v5, %v5596_v4  ;;  %v605_v5 = vld [vmem:[#allocation10 + $0x50] sm:$0xff] }
  0xc6   : > { %5893 = vmatpush.bf16.msra.mxu3 %v5601_v13  ;;  %1649 = vmatpush.bf16.msra.mxu1 %v5601_v13 }
  0xc7   : > { %5885 = vmatpush.bf16.msra.mxu2 %v5597_v8  ;;  %1560 = vmatpush.bf16.msra.mxu0 %v5597_v8 }
  0xcb   : > { %768 = vadd.xlane.f32.xlu0 %v733_v19  ;;  %637 = vadd.xlane.f32.xlu2 %v600_v23  ;;  %v5590_v19 = vld [vmem:[%s6826_s17 + $0x18] sm:$0xf0]  ;;  %v603_v23 = vld [vmem:[#allocation10 + $0x40] sm:$0xff] }
  0xcc   : > { %v5593_v24 = vor.u32 %v5830_v17, %v5590_v19  ;;  %5886 = vmatpush.bf16.msra.mxu2 %v5589_v18  ;;  %v738_v26 = vmul.f32 %v603_v23, %v603_v23  ;;  %1561 = vmatpush.bf16.msra.mxu0 %v5589_v18  ;;  %v606_v17 = vld [vmem:[#allocation10 + $0x58] sm:$0xff] }
  0xcd   : > { %635 = vadd.xlane.f32.xlu1 %v599_v25 }
  0xce   : > { %5894 = vmatpush.bf16.msra.mxu3 %v5593_v24  ;;  %1650 = vmatpush.bf16.msra.mxu1 %v5593_v24 }
  0xd0   : > { %5887 = vmatpush.bf16.msra.mxu2 %v5581_v43  ;;  %1562 = vmatpush.bf16.msra.mxu0 %v5581_v43 }
  0xd2   : > { %5895 = vmatpush.bf16.msra.mxu3 %v5585_v45  ;;  %1651 = vmatpush.bf16.msra.mxu1 %v5585_v45 }
  0xd3   : > { %770 = vadd.xlane.f32.xlu0 %v734_v42  ;;  %639 = vadd.xlane.f32.xlu2 %v601_v50  ;;  %v604_v42 = vld [vmem:[#allocation10 + $0x48] sm:$0xff] }
  0xd4   : > { %v739_v59 = vmul.f32 %v604_v42, %v604_v42 }
  0xd5   : > { %772 = vadd.xlane.f32.xlu1 %v735_v54 }
  0xd6   : > { %v660_v0 = vpop.xlane.xlu0 %659  ;;  %v664_v1 = vpop.xlane.xlu2 %663 }
  0xd7   : > { %v6958_v2 = vmul.f32 %v6955_v61, %v660_v0  ;;  %v6979_v31 = vmul.f32 %v6955_v61, %v664_v1 }
  0xd8   : > { %v795_v7 = vpop.xlane.xlu1 %794 }
  0xd9   : > { %v874_v10 = vmul.f32 %v6958_v2, %v6958_v2  ;;  %v842_v12 = vmul.f32 %v795_v7, %v6955_v61  ;;  %v876_v52 = vmul.f32 %v6979_v31, %v6979_v31 }
  0xdb   : > { %641 = vadd.xlane.f32.xlu0 %v602_v62  ;;  %776 = vadd.xlane.f32.xlu2 %v737_v3  ;;  %v906_v14 = vsub.f32 %v842_v12, %v874_v10 }
  0xdd   : > { %774 = vadd.xlane.f32.xlu1 %v736_v11  ;;  %v938_v20 = vmax.f32 %v906_v14, 0.0 }
  0xde   : > { %v662_v21 = vpop.xlane.xlu0 %661  ;;  %v666_v22 = vpop.xlane.xlu2 %665 }
  0xdf   : > { %v6972_v25 = vmul.f32 %v6955_v61, %v662_v21  ;;  %v6974_v27 = vadd.f32 1e-05, %v938_v20  ;;  %v6988_v47 = vmul.f32 %v6955_v61, %v666_v22 }
  0xe0   : > { %v797_v28 = vpop.xlane.xlu1 %796 }
  0xe1   : > { %v875_v34 = vmul.f32 %v6972_v25, %v6972_v25  ;;  %5993 = vrsqrt.f32 %v6974_v27  ;;  %v843_v40 = vmul.f32 %v797_v28, %v6955_v61  ;;  %v877_v62 = vmul.f32 %v6988_v47, %v6988_v47 }
  0xe2   : > { %v741_v28 = vmul.f32 %v606_v17, %v606_v17  ;;  %vm1184_vm2 = vweird.f32 %v6974_v27 }
  0xe3   : > { %643 = vadd.xlane.f32.xlu0 %v603_v23  ;;  %778 = vadd.xlane.f32.xlu2 %v738_v26  ;;  %v907_v50 = vsub.f32 %v843_v40, %v875_v34  ;;  %v740_v23 = vmul.f32 %v605_v5, %v605_v5 }
  0xe5   : > { %645 = vadd.xlane.f32.xlu1 %v604_v42  ;;  %v939_v54 = vmax.f32 %v907_v50, 0.0 }
  0xe6   : > { %v799_v55 = vpop.xlane.xlu0 %798  ;;  %v668_v57 = vpop.xlane.xlu2 %667 }
  0xe7   : > { %v844_v58 = vmul.f32 %v799_v55, %v6955_v61  ;;  %v6993_v60 = vpop.eup %5993  ;;  %v6997_v63 = vadd.f32 1e-05, %v939_v54  ;;  %v7005_v8 = vmul.f32 %v6955_v61, %v668_v57 }
  0xe8   : > { %v801_v0 = vpop.xlane.xlu1 %800  ;;  %v1179_v1 = vmul.f32 %v6993_v60, %v6974_v27  ;;  %vm1185_vm1 = vweird.f32 %v6993_v60 }
  0xe9   : > { %v908_v3 = vsub.f32 %v844_v58, %v876_v52  ;;  %5995 = vrsqrt.f32 %v6997_v63  ;;  %v845_v4 = vmul.f32 %v801_v0, %v6955_v61  ;;  %v878_v15 = vmul.f32 %v7005_v8, %v7005_v8  ;;  %vm7030_vm3 = vmor %vm1184_vm2, %vm1185_vm1 }
  0xea   : > { %v1180_v6 = vmul.f32 %v6993_v60, %v1179_v1  ;;  %vm1194_vm5 = vweird.f32 %v6997_v63 }
  0xeb   : > { %v940_v7 = vmax.f32 %v908_v3, 0.0  ;;  %780 = vadd.xlane.f32.xlu0 %v739_v59  ;;  %v909_v9 = vsub.f32 %v845_v4, %v877_v62  ;;  %649 = vadd.xlane.f32.xlu2 %v606_v17  ;;  %v585_v4 = vld [vmem:[%s6845_s15] sm:$0x7] }
  0xec   : > { %v1181_v10 = vmul.f32 0.5, %v1180_v6 }
  0xed   : > { %v7007_v11 = vadd.f32 1e-05, %v940_v7  ;;  %647 = vadd.xlane.f32.xlu1 %v605_v5  ;;  %v941_v12 = vmax.f32 %v909_v9, 0.0  ;;  %v7053_v9 = vld [vmem:[#allocation10 + $0x60] sm:$0xff] }
  0xee   : > { %v670_v13 = vpop.xlane.xlu0 %669  ;;  %v805_v14 = vpop.xlane.xlu2 %804  ;;  %v1182_v19 = vsub.f32 1.5, %v1181_v10 }
  0xef   : > { %5997 = vrsqrt.f32 %v7007_v11  ;;  %v7013_v16 = vmul.f32 %v6955_v61, %v670_v13  ;;  %v5996_v18 = vpop.eup %5995  ;;  %v7015_v20 = vadd.f32 1e-05, %v941_v12  ;;  %v847_v21 = vmul.f32 %v805_v14, %v6955_v61 }
  0xf0   : > { %v803_v22 = vpop.xlane.xlu1 %802  ;;  %v1189_v24 = vmul.f32 %v5996_v18, %v6997_v63  ;;  %v1183_v37 = vmul.f32 %v6993_v60, %v1182_v19  ;;  %vm1195_vm4 = vweird.f32 %v5996_v18  ;;  %v971_v63 = vsub.f32 %v6871_v35, %v6972_v25 }
  0xf1   : > { %v879_v26 = vmul.f32 %v7013_v16, %v7013_v16  ;;  %5999 = vrsqrt.f32 %v7015_v20  ;;  %v846_v29 = vmul.f32 %v803_v22, %v6955_v61  ;;  %vm1196_vm6 = vmor %vm1194_vm5, %vm1195_vm4  ;;  %v7065_v14 = vperm.slane %v585_v4, 0 }
  0xf2   : > { %v1190_v30 = vmul.f32 %v5996_v18, %v1189_v24  ;;  %v1187_v27 = vsel %vm7030_vm3, %v6993_v60, %v1183_v37  ;;  %v970_v60 = vsub.f32 %v6863_v32, %v6958_v2  ;;  %vm1214_vm7 = vweird.f32 %v7015_v20 }
  0xf3   : > { %v911_v34 = vsub.f32 %v847_v21, %v879_v26  ;;  %782 = vadd.xlane.f32.xlu0 %v740_v23  ;;  %v910_v38 = vsub.f32 %v846_v29, %v878_v15  ;;  %651 = vadd.xlane.f32.xlu2 %v7053_v9  ;;  %v7076_v29 = vperm.slane %v585_v4, 1  ;;  %vm1204_vm11 = vweird.f32 %v7007_v11 }
  0xf4   : > { %v1191_v42 = vmul.f32 0.5, %v1190_v30  ;;  %v1354_v15 = vmul.f32 %v1187_v27, %v970_v60  ;;  %v608_v30 = vld [vmem:[#allocation10 + $0x68] sm:$0xff] }
  0xf5   : > { %v7025_v40 = vpop.eup %5997  ;;  %v943_v43 = vmax.f32 %v911_v34, 0.0  ;;  %784 = vadd.xlane.f32.xlu1 %v741_v28  ;;  %v942_v50 = vmax.f32 %v910_v38, 0.0 }
  0xf6   : > { %v1199_v45 = vmul.f32 %v7025_v40, %v7007_v11  ;;  %v672_v52 = vpop.xlane.xlu0 %671  ;;  %v807_v54 = vpop.xlane.xlu2 %806  ;;  %v1192_v57 = vsub.f32 1.5, %v1191_v42  ;;  %vm1205_vm9 = vweird.f32 %v7025_v40 }
  0xf7   : > { %v7034_v58 = vadd.f32 1e-05, %v943_v43  ;;  %v7037_v59 = vmul.f32 %v6955_v61, %v672_v52  ;;  %v7039_v62 = vpop.eup %5999  ;;  %v7046_v1 = vadd.f32 1e-05, %v942_v50  ;;  %v848_v7 = vmul.f32 %v807_v54, %v6955_v61  ;;  %vm7119_vm12 = vmor %vm1204_vm11, %vm1205_vm9 }
  0xf8   : > { %v1200_v0 = vmul.f32 %v7025_v40, %v1199_v45  ;;  %v674_v3 = vpop.xlane.xlu1 %673  ;;  %v1193_v5 = vmul.f32 %v5996_v18, %v1192_v57  ;;  %v1209_v6 = vmul.f32 %v7039_v62, %v7015_v20  ;;  %v1387_v43 = vmul.f32 %v7065_v14, %v1354_v15 }
  0xf9   : > { %6001 = vrsqrt.f32 %v7034_v58  ;;  %v880_v13 = vmul.f32 %v7037_v59, %v7037_v59  ;;  %v7068_v2 = vmul.f32 %v6955_v61, %v674_v3  ;;  %vm1215_vm8 = vweird.f32 %v7039_v62 }
  0xfa   : > { %6003 = vrsqrt.f32 %v7046_v1  ;;  %v1197_v10 = vsel %vm1196_vm6, %v5996_v18, %v1193_v5  ;;  %v1210_v12 = vmul.f32 %v7039_v62, %v1209_v6  ;;  %v1201_v32 = vmul.f32 0.5, %v1200_v0  ;;  %vm7102_vm10 = vmor %vm1214_vm7, %vm1215_vm8 }
  0xfb   : > { %v1355_v17 = vmul.f32 %v1197_v10, %v971_v63  ;;  %v912_v25 = vsub.f32 %v848_v7, %v880_v13  ;;  %v881_v19 = vmul.f32 %v7068_v2, %v7068_v2  ;;  %653 = vadd.xlane.f32.xlu0 %v608_v30  ;;  %v1420_v3 = vadd.f32 %v7076_v29, %v1387_v43 }
  0xfc   : > { %v1211_v35 = vmul.f32 0.5, %v1210_v12  ;;  %v1202_v37 = vsub.f32 1.5, %v1201_v32  ;;  %v973_v13 = vsub.f32 %v6873_v36, %v6988_v47  ;;  %v972_v47 = vsub.f32 %v6865_v33, %v6979_v31 }
  0xfd   : > { %v1388_v22 = vmul.f32 %v7065_v14, %v1355_v17  ;;  %v944_v26 = vmax.f32 %v912_v25, 0.0  ;;  %vm1234_vm13 = vweird.f32 %v7034_v58  ;;  %vm1224_vm14 = vweird.f32 %v7046_v1 }
  0xfe   : > { %v809_v21 = vpop.xlane.xlu0 %808  ;;  %v678_v18 = vpop.xlane.xlu2 %677  ;;  %v1212_v24 = vsub.f32 1.5, %v1211_v35  ;;  %v1203_v20 = vmul.f32 %v7025_v40, %v1202_v37  ;;  %v742_v43 = vmul.f32 %v7053_v9, %v7053_v9  ;;  %v610_v9 = vld [vmem:[#allocation10 + $0x78] sm:$0xff] }
  0xff   : > { %v7073_v23 = vpop.eup %6001  ;;  %v849_v28 = vmul.f32 %v809_v21, %v6955_v61  ;;  %v1421_v45 = vadd.f32 %v7076_v29, %v1388_v22  ;;  %v7089_v54 = vadd.f32 1e-05, %v944_v26  ;;  %v7099_v0 = vmul.f32 %v6955_v61, %v678_v18  ;;  %v609_v21 = vld [vmem:[#allocation10 + $0x70] sm:$0xff] }
 0x100   : > { %v7078_v34 = vpop.eup %6003  ;;  %v1229_v38 = vmul.f32 %v7073_v23, %v7034_v58  ;;  %v676_v42 = vpop.xlane.xlu1 %675  ;;  %v1213_v50 = vmul.f32 %v7039_v62, %v1212_v24  ;;  %v1207_v32 = vsel %vm7119_vm12, %v7025_v40, %v1203_v20  ;;  %vm1235_vm15 = vweird.f32 %v7073_v23  ;;  %786 = vadd.xlane.f32.xlu1 %v742_v43 }
 0x101   : > { %v1219_v52 = vmul.f32 %v7078_v34, %v7046_v1  ;;  %v913_v55 = vsub.f32 %v849_v28, %v881_v19  ;;  %v7094_v27 = vmul.f32 %v6955_v61, %v676_v42  ;;  %6005 = vrsqrt.f32 %v7089_v54  ;;  %vm7176_vm1 = vmor %vm1234_vm13, %vm1235_vm15 }
 0x102   : > { %v1230_v57 = vmul.f32 %v7073_v23, %v1229_v38  ;;  %v1217_v7 = vsel %vm7102_vm10, %v7039_v62, %v1213_v50  ;;  %v7113_v63 = vpack.c.bf16 %v1421_v45, %v1420_v3  ;;  %v883_v35 = vmul.f32 %v7099_v0, %v7099_v0 }
 0x103   : > { %v945_v5 = vmax.f32 %v913_v55, 0.0  ;;  %v882_v6 = vmul.f32 %v7094_v27, %v7094_v27  ;;  %v1220_v60 = vmul.f32 %v7078_v34, %v1219_v52  ;;  %v1357_v25 = vmul.f32 %v1217_v7, %v973_v13  ;;  %655 = vadd.xlane.f32.xlu0 %v609_v21 }
 0x104   : > { %v1231_v11 = vmul.f32 0.5, %v1230_v57  ;;  %1603 = vmatmul.bf16.vlgmr.msra.gmra.mxu2 %v7113_v63  ;;  %1692 = vmatmul.bf16.vlgmr.msra.gmra.mxu3 %v7113_v63  ;;  %v1356_v24 = vmul.f32 %v1207_v32, %v972_v47  ;;  %v743_v42 = vmul.f32 %v608_v30, %v608_v30  ;;  %vm1225_vm0 = vweird.f32 %v7078_v34 }
 0x105   : > { %v7123_v17 = vadd.f32 1e-05, %v945_v5  ;;  %v1221_v22 = vmul.f32 0.5, %v1220_v60  ;;  %v1390_v38 = vmul.f32 %v7065_v14, %v1357_v25  ;;  %v744_v58 = vmul.f32 %v609_v21, %v609_v21  ;;  %vm7192_vm2 = vmor %vm1224_vm14, %vm1225_vm0 }
 0x106   : > { %v811_v10 = vpop.xlane.xlu0 %810  ;;  %v680_v12 = vpop.xlane.xlu2 %679  ;;  %v1232_v26 = vsub.f32 1.5, %v1231_v11  ;;  %v1389_v4 = vmul.f32 %v7065_v14, %v1356_v24  ;;  %788 = vadd.xlane.f32.xlu2 %v743_v42  ;;  %v974_v1 = vsub.f32 %v6881_v39, %v7005_v8  ;;  %vm1244_vm3 = vweird.f32 %v7089_v54 }
 0x107   : > { %v850_v62 = vmul.f32 %v811_v10, %v6955_v61  ;;  %6007 = vrsqrt.f32 %v7123_v17  ;;  %v7136_v18 = vpop.eup %6005  ;;  %v7143_v33 = vmul.f32 %v6955_v61, %v680_v12  ;;  %v1222_v45 = vsub.f32 1.5, %v1221_v22 }
 0x108   : > { %v813_v36 = vpop.xlane.xlu1 %812  ;;  %v1239_v28 = vmul.f32 %v7136_v18, %v7089_v54  ;;  %v1233_v5 = vmul.f32 %v7073_v23, %v1232_v26  ;;  %v1423_v15 = vadd.f32 %v7076_v29, %v1390_v38  ;;  %v1422_v22 = vadd.f32 %v7076_v29, %v1389_v4  ;;  %657 = vadd.xlane.f32.xlu1 %v610_v9 }
 0x109   : > { %v914_v19 = vsub.f32 %v850_v62, %v882_v6  ;;  %v851_v40 = vmul.f32 %v813_v36, %v6955_v61  ;;  %v884_v60 = vmul.f32 %v7143_v33, %v7143_v33  ;;  %v1223_v62 = vmul.f32 %v7078_v34, %v1222_v45 }
 0x10a   : > { %v1240_v6 = vmul.f32 %v7136_v18, %v1239_v28  ;;  %v745_v36 = vmul.f32 %v610_v9, %v610_v9  ;;  %v7201_v38 = vpack.c.bf16 %v1423_v15, %v1422_v22  ;;  %vm1245_vm4 = vweird.f32 %v7136_v18 }
 0x10b   : > { %v946_v37 = vmax.f32 %v914_v19, 0.0  ;;  %v915_v31 = vsub.f32 %v851_v40, %v883_v35  ;;  %v1237_v40 = vsel %vm7176_vm1, %v7073_v23, %v1233_v5  ;;  %v1227_v21 = vsel %vm7192_vm2, %v7078_v34, %v1223_v62  ;;  %vm7238_vm7 = vmor %vm1244_vm3, %vm1245_vm4 }
 0x10c   : > { %v1241_v25 = vmul.f32 0.5, %v1240_v6  ;;  %792 = vadd.xlane.f32.xlu0 %v745_v36  ;;  %vm1254_vm5 = vweird.f32 %v7123_v17  ;;  %v977_v24 = vsub.f32 %v6897_v46, %v7068_v2  ;;  %v979_v2 = vsub.f32 %v6903_v48, %v7099_v0 }
 0x10d   : > { %v7150_v50 = vadd.f32 1e-05, %v946_v37  ;;  %v947_v52 = vmax.f32 %v915_v31, 0.0  ;;  %v7152_v20 = vpop.eup %6007  ;;  %v975_v37 = vsub.f32 %v6886_v41, %v7013_v16 }
 0x10e   : > { %v682_v55 = vpop.xlane.xlu0 %681  ;;  %v817_v57 = vpop.xlane.xlu2 %816  ;;  %v1249_v7 = vmul.f32 %v7152_v20, %v7123_v17  ;;  %790 = vadd.xlane.f32.xlu2 %v744_v58  ;;  %v1242_v34 = vsub.f32 1.5, %v1241_v25  ;;  %vm1255_vm6 = vweird.f32 %v7152_v20 }
 0x10f   : > { %v7156_v3 = vmul.f32 %v6955_v61, %v682_v55  ;;  %v853_v30 = vmul.f32 %v817_v57, %v6955_v61  ;;  %6009 = vrsqrt.f32 %v7150_v50  ;;  %v7167_v12 = vadd.f32 1e-05, %v947_v52  ;;  %vm7244_vm8 = vmor %vm1254_vm5, %vm1255_vm6 }
 0x110   : > { %v815_v10 = vpop.xlane.xlu1 %814  ;;  %v1250_v32 = vmul.f32 %v7152_v20, %v1249_v7  ;;  %v1359_v16 = vmul.f32 %v1237_v40, %v975_v37  ;;  %v1358_v57 = vmul.f32 %v1227_v21, %v974_v1  ;;  %v1243_v6 = vmul.f32 %v7136_v18, %v1242_v34 }
 0x111   : > { %v885_v13 = vmul.f32 %v7156_v3, %v7156_v3  ;;  %v852_v35 = vmul.f32 %v815_v10, %v6955_v61  ;;  %6011 = vrsqrt.f32 %v7167_v12  ;;  %vm1264_vm9 = vweird.f32 %v7150_v50 }
 0x112   : > { %v1251_v26 = vmul.f32 0.5, %v1250_v32  ;;  %v1392_v10 = vmul.f32 %v7065_v14, %v1359_v16  ;;  %v1391_v17 = vmul.f32 %v7065_v14, %v1358_v57  ;;  %v1247_v40 = vsel %vm7238_vm7, %v7136_v18, %v1243_v6 }
 0x113   : > { %v917_v47 = vsub.f32 %v853_v30, %v885_v13  ;;  %v916_v19 = vsub.f32 %v852_v35, %v884_v60  ;;  %v980_v57 = vsub.f32 %v6911_v51, %v7143_v33  ;;  %vm1274_vm10 = vweird.f32 %v7167_v12 }
 0x114   : > { %1608 = vmatmul.bf16.gmra.mxu2 %v7201_v38  ;;  %1697 = vmatmul.bf16.gmra.mxu3 %v7201_v38  ;;  %v1252_v30 = vsub.f32 1.5, %v1251_v26  ;;  %v1425_v37 = vadd.f32 %v7076_v29, %v1392_v10  ;;  %v1424_v46 = vadd.f32 %v7076_v29, %v1391_v17 }
 0x115   : > { %v949_v28 = vmax.f32 %v917_v47, 0.0  ;;  %v948_v31 = vmax.f32 %v916_v19, 0.0  ;;  %v7203_v43 = vpop.eup %6009  ;;  %v976_v19 = vsub.f32 %v6893_v44, %v7037_v59 }
 0x116   : > { %v684_v23 = vpop.xlane.xlu0 %683  ;;  %v819_v42 = vpop.xlane.xlu2 %818  ;;  %v1259_v9 = vmul.f32 %v7203_v43, %v7150_v50  ;;  %v1253_v15 = vmul.f32 %v7152_v20, %v1252_v30  ;;  %vm1265_vm11 = vweird.f32 %v7203_v43 }
 0x117   : > { %v7208_v45 = vadd.f32 1e-05, %v949_v28  ;;  %v7211_v41 = vmul.f32 %v6955_v61, %v684_v23  ;;  %v7213_v52 = vadd.f32 1e-05, %v948_v31  ;;  %v854_v55 = vmul.f32 %v819_v42, %v6955_v61  ;;  %v7218_v8 = vpop.eup %6011  ;;  %vm7320_vm14 = vmor %vm1264_vm9, %vm1265_vm11 }
 0x118   : > { %v686_v39 = vpop.xlane.xlu1 %685  ;;  %v1269_v5 = vmul.f32 %v7218_v8, %v7167_v12  ;;  %v1260_v62 = vmul.f32 %v7203_v43, %v1259_v9  ;;  %v1257_v44 = vsel %vm7244_vm8, %v7152_v20, %v1253_v15  ;;  %v978_v42 = vsub.f32 %v6905_v49, %v7094_v27 }
 0x119   : > { %6013 = vrsqrt.f32 %v7208_v45  ;;  %v886_v4 = vmul.f32 %v7211_v41, %v7211_v41  ;;  %v7233_v60 = vmul.f32 %v6955_v61, %v686_v39  ;;  %v1360_v16 = vmul.f32 %v1247_v40, %v976_v19 }
 0x11a   : > { %6015 = vrsqrt.f32 %v7213_v52  ;;  %v1270_v32 = vmul.f32 %v7218_v8, %v1269_v5  ;;  %v1261_v18 = vmul.f32 0.5, %v1260_v62  ;;  %v1361_v34 = vmul.f32 %v1257_v44, %v977_v24 }
 0x11b   : > { %v918_v7 = vsub.f32 %v854_v55, %v886_v4  ;;  %v887_v54 = vmul.f32 %v7233_v60, %v7233_v60  ;;  %vm1275_vm12 = vweird.f32 %v7218_v8  ;;  %vm1294_vm13 = vweird.f32 %v7208_v45 }
 0x11c   : > { %v1271_v23 = vmul.f32 0.5, %v1270_v32  ;;  %v1262_v9 = vsub.f32 1.5, %v1261_v18  ;;  %vm7330_vm15 = vmor %vm1274_vm10, %vm1275_vm12  ;;  %vm1284_vm0 = vweird.f32 %v7213_v52 }
 0x11d   : > { %v950_v35 = vmax.f32 %v918_v7, 0.0  ;;  %v7295_v7 = vpack.c.bf16 %v1425_v37, %v1424_v46 }
 0x11e   : > { %v821_v36 = vpop.xlane.xlu0 %820  ;;  %v690_v47 = vpop.xlane.xlu2 %689  ;;  %v1272_v5 = vsub.f32 1.5, %v1271_v23 }
 0x11f   : > { %v7252_v25 = vpop.eup %6013  ;;  %v855_v22 = vmul.f32 %v821_v36, %v6955_v61  ;;  %v7264_v26 = vadd.f32 1e-05, %v950_v35  ;;  %v7282_v55 = vmul.f32 %v6955_v61, %v690_v47  ;;  %v1393_v35 = vmul.f32 %v7065_v14, %v1360_v16 }
 0x120   : > { %v7257_v58 = vpop.eup %6015  ;;  %v688_v28 = vpop.xlane.xlu1 %687  ;;  %v1289_v59 = vmul.f32 %v7252_v25, %v7208_v45  ;;  %v1273_v40 = vmul.f32 %v7218_v8, %v1272_v5  ;;  %vm1295_vm2 = vweird.f32 %v7252_v25 }
 0x121   : > { %v1279_v21 = vmul.f32 %v7257_v58, %v7213_v52  ;;  %v919_v31 = vsub.f32 %v855_v22, %v887_v54  ;;  %6017 = vrsqrt.f32 %v7264_v26  ;;  %v7285_v39 = vmul.f32 %v6955_v61, %v688_v28  ;;  %vm7378_vm5 = vmor %vm1294_vm13, %vm1295_vm2 }
 0x122   : > { %v1290_v30 = vmul.f32 %v7252_v25, %v1289_v59  ;;  %v889_v62 = vmul.f32 %v7282_v55, %v7282_v55  ;;  %v1394_v54 = vmul.f32 %v7065_v14, %v1361_v34  ;;  %v1263_v22 = vmul.f32 %v7203_v43, %v1262_v9 }
 0x123   : > { %v1280_v20 = vmul.f32 %v7257_v58, %v1279_v21  ;;  %v951_v1 = vmax.f32 %v919_v31, 0.0  ;;  %v888_v6 = vmul.f32 %v7285_v39, %v7285_v39  ;;  %v1426_v18 = vadd.f32 %v7076_v29, %v1393_v35 }
 0x124   : > { %1613 = vmatmul.bf16.gmra.mxu2 %v7295_v7  ;;  %1702 = vmatmul.bf16.gmra.mxu3 %v7295_v7  ;;  %v1291_v36 = vmul.f32 0.5, %v1290_v30  ;;  %v1427_v23 = vadd.f32 %v7076_v29, %v1394_v54  ;;  %vm1285_vm1 = vweird.f32 %v7257_v58  ;;  %v1267_v12 = vsel %vm7320_vm14, %v7203_v43, %v1263_v22 }
 0x125   : > { %v7291_v4 = vadd.f32 1e-05, %v951_v1  ;;  %v1281_v15 = vmul.f32 0.5, %v1280_v20  ;;  %vm7359_vm3 = vmor %vm1284_vm0, %vm1285_vm1  ;;  %vm1304_vm4 = vweird.f32 %v7264_v26  ;;  %v1362_v45 = vmul.f32 %v1267_v12, %v978_v42 }
 0x126   : > { %v823_v10 = vpop.xlane.xlu0 %822  ;;  %v628_v13 = vpop.xlane.xlu2 %627  ;;  %v1292_v20 = vsub.f32 1.5, %v1291_v36 }
 0x127   : > { %6019 = vrsqrt.f32 %v7291_v4  ;;  %v856_v17 = vmul.f32 %v823_v10, %v6955_v61  ;;  %v7300_v11 = vpop.eup %6017  ;;  %v1282_v37 = vsub.f32 1.5, %v1281_v15  ;;  %v7326_v21 = vmul.f32 %v6955_v61, %v628_v13 }
 0x128   : > { %v825_v32 = vpop.xlane.xlu1 %824  ;;  %v1299_v47 = vmul.f32 %v7300_v11, %v7264_v26  ;;  %v1293_v35 = vmul.f32 %v7252_v25, %v1292_v20  ;;  %vm1305_vm6 = vweird.f32 %v7300_v11  ;;  %vm1314_vm8 = vweird.f32 %v7291_v4 }
 0x129   : > { %v920_v19 = vsub.f32 %v856_v17, %v888_v6  ;;  %v857_v24 = vmul.f32 %v825_v32, %v6955_v61  ;;  %v1277_v6 = vsel %vm7330_vm15, %v7218_v8, %v1273_v40  ;;  %v1283_v10 = vmul.f32 %v7257_v58, %v1282_v37  ;;  %vm7403_vm7 = vmor %vm1304_vm4, %vm1305_vm6 }
 0x12a   : > { %v1300_v44 = vmul.f32 %v7300_v11, %v1299_v47  ;;  %v858_v13 = vmul.f32 %v7326_v21, %v7326_v21  ;;  %v1363_v36 = vmul.f32 %v1277_v6, %v979_v2  ;;  %v981_v40 = vsub.f32 %v6916_v53, %v7156_v3 }
 0x12b   : > { %v952_v59 = vmax.f32 %v920_v19, 0.0  ;;  %v921_v50 = vsub.f32 %v857_v24, %v889_v62  ;;  %v1287_v48 = vsel %vm7359_vm3, %v7257_v58, %v1283_v10  ;;  %v982_v24 = vsub.f32 %v6923_v56, %v7211_v41 }
 0x12c   : > { %v1301_v1 = vmul.f32 0.5, %v1300_v44  ;;  %v7396_v37 = vpack.c.bf16 %v1427_v23, %v1426_v18  ;;  %v1297_v53 = vsel %vm7378_vm5, %v7252_v25, %v1293_v35  ;;  %v1364_v56 = vmul.f32 %v1287_v48, %v980_v57  ;;  %v7461_v35 = vld [vmem:[#allocation10 + $0xf0] sm:$0xff] }
 0x12d   : > { %v7337_v46 = vpop.eup %6019  ;;  %v7340_v16 = vadd.f32 1e-05, %v952_v59  ;;  %v953_v30 = vmax.f32 %v921_v50, 0.0  ;;  %v1396_v26 = vmul.f32 %v7065_v14, %v1363_v36  ;;  %v1365_v50 = vmul.f32 %v1297_v53, %v981_v40 }
 0x12e   : > { %v1309_v34 = vmul.f32 %v7337_v46, %v7291_v4  ;;  %v630_v9 = vpop.xlane.xlu0 %629  ;;  %v765_v5 = vpop.xlane.xlu2 %764  ;;  %v1302_v17 = vsub.f32 1.5, %v1301_v1  ;;  %vm1315_vm9 = vweird.f32 %v7337_v46  ;;  %v1395_v57 = vmul.f32 %v7065_v14, %v1362_v45  ;;  %v6379_v4 = vld [vmem:[#allocation10 + $0xe8] sm:$0xff] }
 0x12f   : > { %v7355_v15 = vmul.f32 %v6955_v61, %v630_v9  ;;  %6021 = vrsqrt.f32 %v7340_v16  ;;  %v827_v8 = vmul.f32 %v765_v5, %v6955_v61  ;;  %v7383_v22 = vadd.f32 1e-05, %v953_v30  ;;  %vm7436_vm10 = vmor %vm1314_vm8, %vm1315_vm9 }
 0x130   : > { %v1310_v62 = vmul.f32 %v7337_v46, %v1309_v34  ;;  %v763_v32 = vpop.xlane.xlu1 %762  ;;  %v1303_v28 = vmul.f32 %v7300_v11, %v1302_v17  ;;  %v1429_v1 = vadd.f32 %v7076_v29, %v1396_v26  ;;  %v1397_v30 = vmul.f32 %v7065_v14, %v1364_v56  ;;  %v7456_v17 = vld [vmem:[#allocation10 + $0xf8] sm:$0xff] }
 0x131   : > { %v859_v54 = vmul.f32 %v7355_v15, %v7355_v15  ;;  %v826_v52 = vmul.f32 %v763_v32, %v6955_v61  ;;  %6023 = vrsqrt.f32 %v7383_v22  ;;  %v983_v6 = vsub.f32 %v6379_v4, %v7233_v60 }
 0x132   : > { %v1311_v19 = vmul.f32 0.5, %v1310_v62  ;;  %v1307_v51 = vsel %vm7403_vm7, %v7300_v11, %v1303_v28  ;;  %v1428_v10 = vadd.f32 %v7076_v29, %v1395_v57  ;;  %v985_v62 = vsub.f32 %v7456_v17, %v7282_v55 }
 0x133   : > { %v891_v0 = vsub.f32 %v827_v8, %v859_v54  ;;  %v890_v2 = vsub.f32 %v826_v52, %v858_v13  ;;  %v1366_v5 = vmul.f32 %v1307_v51, %v982_v24  ;;  %v1398_v13 = vmul.f32 %v7065_v14, %v1365_v50  ;;  %v7465_v54 = vld [vmem:[#allocation10] sm:$0xff] }
 0x134   : > { %v1312_v58 = vsub.f32 1.5, %v1311_v19  ;;  %1618 = vmatmul.bf16.gmra.mxu2 %v7396_v37  ;;  %1707 = vmatmul.bf16.gmra.mxu3 %v7396_v37  ;;  %v984_v60 = vsub.f32 %v7461_v35, %v7285_v39  ;;  %v954_v52 = vsub.f32 %v7465_v54, %v7326_v21  ;;  %v7471_v47 = vpack.c.bf16 %v1429_v1, %v1428_v10 }
 0x135   : > { %v923_v49 = vmax.f32 %v891_v0, 0.0  ;;  %v922_v27 = vmax.f32 %v890_v2, 0.0  ;;  %v7407_v42 = vpop.eup %6021  ;;  %v1430_v45 = vadd.f32 %v7076_v29, %v1397_v30  ;;  %vm1324_vm3 = vweird.f32 %v7340_v16 }
 0x136   : > { %v632_v41 = vpop.xlane.xlu0 %631  ;;  %v767_v25 = vpop.xlane.xlu2 %766  ;;  %v1313_v18 = vmul.f32 %v7337_v46, %v1312_v58  ;;  %v1319_v23 = vmul.f32 %v7407_v42, %v7340_v16  ;;  %v1431_v58 = vadd.f32 %v7076_v29, %v1398_v13  ;;  %vm1325_vm4 = vweird.f32 %v7407_v42  ;;  %v5654_v16 = vld [vmem:[%s6832_s5 + $0x18] sm:$0xf0] }
 0x137   : > { %v7416_v44 = vadd.f32 1e-05, %v923_v49  ;;  %v7418_v59 = vadd.f32 1e-05, %v922_v27  ;;  %v7421_v31 = vmul.f32 %v6955_v61, %v632_v41  ;;  %v828_v20 = vmul.f32 %v767_v25, %v6955_v61  ;;  %v7448_v9 = vpop.eup %6023 }
 0x138   : > { %v634_v33 = vpop.xlane.xlu1 %633  ;;  %v1317_v43 = vsel %vm7436_vm10, %v7337_v46, %v1313_v18  ;;  %v1320_v8 = vmul.f32 %v7407_v42, %v1319_v23  ;;  %v1329_v48 = vmul.f32 %v7448_v9, %v7383_v22  ;;  %v1399_v49 = vmul.f32 %v7065_v14, %v1366_v5 }
 0x139   : > { %6025 = vrsqrt.f32 %v7416_v44  ;;  %v860_v12 = vmul.f32 %v7421_v31, %v7421_v31  ;;  %v7445_v34 = vmul.f32 %v6955_v61, %v634_v33  ;;  %v1367_v28 = vmul.f32 %v1317_v43, %v983_v6 }
 0x13a   : > { %6027 = vrsqrt.f32 %v7418_v59  ;;  %v1321_v27 = vmul.f32 0.5, %v1320_v8  ;;  %vm1034_vm11 = vweird.f32 %v7416_v44  ;;  %vm1024_vm12 = vweird.f32 %v7418_v59 }
 0x13b   : > { %v892_v32 = vsub.f32 %v828_v20, %v860_v12  ;;  %v861_v46 = vmul.f32 %v7445_v34, %v7445_v34  ;;  %v1330_v51 = vmul.f32 %v7448_v9, %v1329_v48  ;;  %v6383_v20 = vld [vmem:[#allocation10 + $0x8] sm:$0xff]  ;;  %v7506_v30 = vpack.c.bf16 %v1431_v58, %v1430_v45  ;;  %v5700_v45 = vld [vmem:[%s6832_s5 + $0x70] sm:$0xf] }
 0x13c   : > { %v955_v11 = vsub.f32 %v6383_v20, %v7355_v15  ;;  %v1322_v5 = vsub.f32 1.5, %v1321_v27  ;;  %v7517_v15 = vadd.f32 %v7076_v29, %v1399_v49  ;;  %v7547_v49 = vld [vmem:[#allocation10 + $0x18] sm:$0xff]  ;;  %vm1334_vm8 = vweird.f32 %v7383_v22 }
 0x13d   : > { %v924_v2 = vmax.f32 %v892_v32, 0.0  ;;  %11744 = vst [vmem:[#allocation19_spill] sm:$0xff] %v7506_v30  ;;  %v7519_v8 = vmul.f32 0.5, %v1330_v51  ;;  %v957_v27 = vsub.f32 %v7547_v49, %v7445_v34  ;;  %vm1335_vm9 = vweird.f32 %v7448_v9  ;;  %v5850_v49 = vld [vmem:[%s6832_s5 + $0x34] sm:$0xf] }
 0x13e   : > { %v769_v36 = vpop.xlane.xlu0 %768  ;;  %v638_v19 = vpop.xlane.xlu2 %637 }
 0x13f   : > { %v7473_v40 = vpop.eup %6025  ;;  %v829_v0 = vmul.f32 %v769_v36, %v6955_v61  ;;  %v7490_v26 = vadd.f32 1e-05, %v924_v2  ;;  %v7499_v57 = vmul.f32 %v6955_v61, %v638_v19  ;;  %v7541_v2 = vmul.f32 %v7065_v14, %v1367_v28 }
 0x140   : > { %v7479_v24 = vpop.eup %6027  ;;  %v1029_v53 = vmul.f32 %v7473_v40, %v7416_v44  ;;  %v636_v3 = vpop.xlane.xlu1 %635  ;;  %vm1035_vm13 = vweird.f32 %v7473_v40  ;;  %v7556_v28 = vmul.f32 %v7407_v42, %v1322_v5  ;;  %v1332_v20 = vsub.f32 1.5, %v7519_v8 }
 0x141   : > { %v1019_v56 = vmul.f32 %v7479_v24, %v7418_v59  ;;  %v893_v25 = vsub.f32 %v829_v0, %v861_v46  ;;  %v7493_v50 = vmul.f32 %v6955_v61, %v636_v3  ;;  %vm1025_vm14 = vweird.f32 %v7479_v24  ;;  %vm7510_vm15 = vmor %vm1034_vm11, %vm1035_vm13  ;;  %v7529_v46 = vld [vmem:[#allocation10 + $0x10] sm:$0xff] }
 0x142   : > { %v1030_v41 = vmul.f32 %v7473_v40, %v1029_v53  ;;  %6029 = vrsqrt.f32 %v7490_v26  ;;  %vm7525_vm0 = vmor %vm1024_vm12, %vm1025_vm14  ;;  %v956_v36 = vsub.f32 %v7529_v46, %v7421_v31  ;;  %v863_v59 = vmul.f32 %v7499_v57, %v7499_v57  ;;  %v5859_v53 = vld [vmem:[%s6832_s5 + $0x74] sm:$0xf0]  ;;  %v5858_v3 = vld [vmem:[%s6832_s5 + $0x74] sm:$0xf] }
 0x143   : > { %v1020_v33 = vmul.f32 %v7479_v24, %v1019_v56  ;;  %v925_v23 = vmax.f32 %v893_v25, 0.0  ;;  %v862_v12 = vmul.f32 %v7493_v50, %v7493_v50  ;;  %v5702_v25 = vld [vmem:[%s6832_s5 + $0x78] sm:$0xf0]  ;;  %vm1044_vm1 = vweird.f32 %v7490_v26 }
 0x144   : > { %v1031_v18 = vmul.f32 0.5, %v1030_v41  ;;  %1623 = vmatmul.bf16.gmra.mxu2 %v7471_v47  ;;  %1712 = vmatmul.bf16.gmra.mxu3 %v7471_v47 }
 0x145   : > { %v1021_v1 = vmul.f32 0.5, %v1020_v33  ;;  %v7514_v10 = vadd.f32 1e-05, %v925_v23  ;;  %v5705_v23 = vor.u32 %v5858_v3, %v5702_v25 }
 0x146   : > { %v1032_v4 = vsub.f32 1.5, %v1031_v18  ;;  %v771_v13 = vpop.xlane.xlu0 %770  ;;  %v640_v43 = vpop.xlane.xlu2 %639  ;;  %v5701_v18 = vor.u32 %v5859_v53, %v5700_v45 }
 0x147   : > { %v1022_v32 = vsub.f32 1.5, %v1021_v1  ;;  %v830_v19 = vmul.f32 %v771_v13, %v6955_v61  ;;  %6031 = vrsqrt.f32 %v7514_v10  ;;  %v7571_v13 = vmul.f32 %v6955_v61, %v640_v43  ;;  %2500 = vmatpush.bf16.msrb.mxu3 %v5705_v23  ;;  %v5684_v23 = vld [vmem:[%s6832_s5 + $0x50] sm:$0xf] }
 0x148   : > { %v1033_v48 = vmul.f32 %v7473_v40, %v1032_v4  ;;  %v773_v0 = vpop.xlane.xlu1 %772  ;;  %v7553_v51 = vpop.eup %6029  ;;  %2411 = vmatpush.bf16.msrb.mxu2 %v5701_v18  ;;  %vm1054_vm5 = vweird.f32 %v7514_v10 }
 0x149   : > { %v1023_v58 = vmul.f32 %v7479_v24, %v1022_v32  ;;  %v894_v56 = vsub.f32 %v830_v19, %v862_v12  ;;  %v831_v41 = vmul.f32 %v773_v0, %v6955_v61  ;;  %v1039_v4 = vmul.f32 %v7553_v51, %v7490_v26  ;;  %v5857_v32 = vld [vmem:[%s6832_s5 + $0x64] sm:$0xf0]  ;;  %v5694_v0 = vld [vmem:[%s6832_s5 + $0x68] sm:$0xf0] }
 0x14a   : > { %v1037_v33 = vsel %vm7510_vm15, %v7473_v40, %v1033_v48  ;;  %v5856_v48 = vld [vmem:[%s6832_s5 + $0x64] sm:$0xf]  ;;  %vm1045_vm2 = vweird.f32 %v7553_v51  ;;  %vm7700_vm15 = vmor %vm1324_vm3, %vm1325_vm4 }
 0x14b   : > { %v1339_v1 = vmul.f32 %v1037_v33, %v955_v11  ;;  %v1027_v12 = vsel %vm7525_vm0, %v7479_v24, %v1023_v58  ;;  %v926_v6 = vmax.f32 %v894_v56, 0.0  ;;  %v895_v40 = vsub.f32 %v831_v41, %v863_v59  ;;  %v5692_v11 = vld [vmem:[%s6832_s5 + $0x60] sm:$0xf]  ;;  %vm7611_vm6 = vmor %vm1044_vm1, %vm1045_vm2 }
 0x14c   : > { %v1338_v5 = vmul.f32 %v1027_v12, %v954_v52  ;;  %v1040_v44 = vmul.f32 %v7553_v51, %v1039_v4  ;;  %v5693_v19 = vor.u32 %v5857_v32, %v5692_v11  ;;  %v5697_v53 = vor.u32 %v5856_v48, %v5694_v0  ;;  %v5686_v11 = vld [vmem:[%s6832_s5 + $0x58] sm:$0xf0]  ;;  %v5853_v48 = vld [vmem:[%s6832_s5 + $0x44] sm:$0xf0]  ;;  %vm7725_vm1 = vmor %vm1334_vm8, %vm1335_vm9 }
 0x14d   : > { %v1372_v24 = vmul.f32 %v7065_v14, %v1339_v1  ;;  %v7580_v21 = vpop.eup %6031  ;;  %v7582_v54 = vadd.f32 1e-05, %v926_v6  ;;  %v927_v52 = vmax.f32 %v895_v40, 0.0  ;;  %v864_v33 = vmul.f32 %v7571_v13, %v7571_v13  ;;  %v5855_v1 = vld [vmem:[%s6832_s5 + $0x54] sm:$0xf0] }
 0x14e   : > { %v1371_v43 = vmul.f32 %v7065_v14, %v1338_v5  ;;  %v642_v59 = vpop.xlane.xlu0 %641  ;;  %v777_v45 = vpop.xlane.xlu2 %776  ;;  %v1049_v3 = vmul.f32 %v7580_v21, %v7514_v10  ;;  %v1041_v58 = vmul.f32 0.5, %v1040_v44  ;;  %2412 = vmatpush.bf16.msrb.mxu2 %v5693_v19  ;;  %2501 = vmatpush.bf16.msrb.mxu3 %v5697_v53  ;;  %v5854_v40 = vld [vmem:[%s6832_s5 + $0x54] sm:$0xf]  ;;  %v5676_v19 = vld [vmem:[%s6832_s5 + $0x40] sm:$0xf]  ;;  %vm1055_vm7 = vweird.f32 %v7580_v21 }
 0x14f   : > { %v1405_v56 = vadd.f32 %v7076_v29, %v1372_v24  ;;  %6033 = vrsqrt.f32 %v7582_v54  ;;  %v7590_v41 = vadd.f32 1e-05, %v927_v52  ;;  %v7599_v5 = vmul.f32 %v6955_v61, %v642_v59  ;;  %v5678_v59 = vld [vmem:[%s6832_s5 + $0x48] sm:$0xf0]  ;;  %vm7644_vm10 = vmor %vm1054_vm5, %vm1055_vm7 }
 0x150   : > { %v1404_v25 = vadd.f32 %v7076_v29, %v1371_v43  ;;  %v775_v18 = vpop.xlane.xlu1 %774  ;;  %v1050_v12 = vmul.f32 %v7580_v21, %v1049_v3  ;;  %v1042_v4 = vsub.f32 1.5, %v1041_v58  ;;  %v833_v6 = vmul.f32 %v777_v45, %v6955_v61  ;;  %v5852_v43 = vld [vmem:[%s6832_s5 + $0x44] sm:$0xf] }
 0x151   : > { %6035 = vrsqrt.f32 %v7590_v41  ;;  %v832_v24 = vmul.f32 %v775_v18, %v6955_v61  ;;  %v865_v26 = vmul.f32 %v7599_v5, %v7599_v5  ;;  %v5685_v53 = vor.u32 %v5855_v1, %v5684_v23 }
 0x152   : > { %v7616_v44 = vpack.c.bf16 %v1405_v56, %v1404_v25  ;;  %v1051_v0 = vmul.f32 0.5, %v1050_v12  ;;  %v1043_v52 = vmul.f32 %v7553_v51, %v1042_v4  ;;  %v5689_v3 = vor.u32 %v5854_v40, %v5686_v11 }
 0x153   : > { %v896_v45 = vsub.f32 %v832_v24, %v864_v33  ;;  %v897_v25 = vsub.f32 %v833_v6, %v865_v26  ;;  %v7636_v18 = vadd.f32 %v7076_v29, %v7541_v2  ;;  %2413 = vmatpush.bf16.msrb.mxu2 %v5685_v53  ;;  %v5677_v2 = vor.u32 %v5853_v48, %v5676_v19 }
 0x154   : > { %1563 = vmatmul.bf16.vlgmr.msra.gmra.mxu0 %v7616_v44  ;;  %1652 = vmatmul.bf16.vlgmr.msra.gmra.mxu1 %v7616_v44  ;;  %v1052_v58 = vsub.f32 1.5, %v1051_v0  ;;  %v1047_v56 = vsel %vm7611_vm6, %v7553_v51, %v1043_v52  ;;  %v5681_v4 = vor.u32 %v5852_v43, %v5678_v59  ;;  %v7654_v6 = vmul.f32 %v7448_v9, %v1332_v20  ;;  %v5851_v43 = vld [vmem:[%s6832_s5 + $0x34] sm:$0xf0] }
 0x155   : > { %v7638_v12 = vpop.eup %6033  ;;  %v1340_v23 = vmul.f32 %v1047_v56, %v956_v36  ;;  %v928_v51 = vmax.f32 %v896_v45, 0.0  ;;  %2502 = vmatpush.bf16.msrb.mxu3 %v5689_v3  ;;  %v929_v11 = vmax.f32 %v897_v25, 0.0  ;;  %vm1064_vm11 = vweird.f32 %v7582_v54  ;;  %1628 = vmatmul.bf16.gmra.mxu2 %v7506_v30 }
 0x156   : > { %v644_v1 = vpop.xlane.xlu0 %643  ;;  %v1053_v10 = vmul.f32 %v7580_v21, %v1052_v58  ;;  %v1059_v40 = vmul.f32 %v7638_v12, %v7582_v54  ;;  %v779_v32 = vpop.xlane.xlu2 %778  ;;  %1717 = vmatmul.bf16.gmra.mxu3 %v7506_v30  ;;  %vm1074_vm12 = vweird.f32 %v7590_v41  ;;  %vm1065_vm13 = vweird.f32 %v7638_v12  ;;  %v6387_v54 = vld [vmem:[#allocation10 + $0x20] sm:$0xff]  ;;  %v5847_v58 = vld [vmem:[%s6832_s5 + $0x14] sm:$0xf0] }
 0x157   : > { %v7659_v31 = vpop.eup %6035  ;;  %v7664_v8 = vadd.f32 1e-05, %v928_v51  ;;  %v1373_v46 = vmul.f32 %v7065_v14, %v1340_v23  ;;  %v7668_v36 = vmul.f32 %v6955_v61, %v644_v1  ;;  %v834_v0 = vmul.f32 %v779_v32, %v6955_v61  ;;  %2414 = vmatpush.bf16.msrb.mxu2 %v5677_v2  ;;  %v5660_v51 = vld [vmem:[%s6832_s5 + $0x20] sm:$0xf]  ;;  %v5849_v1 = vld [vmem:[%s6832_s5 + $0x24] sm:$0xf0]  ;;  %vm7714_vm0 = vmor %vm1064_vm11, %vm1065_vm13 }
 0x158   : > { %v646_v20 = vpop.xlane.xlu1 %645  ;;  %v1057_v24 = vsel %vm7644_vm10, %v7580_v21, %v1053_v10  ;;  %v1060_v19 = vmul.f32 %v7638_v12, %v1059_v40  ;;  %v1069_v48 = vmul.f32 %v7659_v31, %v7590_v41  ;;  %v7681_v26 = vadd.f32 1e-05, %v929_v11  ;;  %v5668_v21 = vld [vmem:[%s6832_s5 + $0x30] sm:$0xf]  ;;  %v6386_v2 = vld [vmem:[#allocation10 + $0x28] sm:$0xff] }
 0x159   : > { %v1341_v52 = vmul.f32 %v1057_v24, %v957_v27  ;;  %6037 = vrsqrt.f32 %v7664_v8  ;;  %2503 = vmatpush.bf16.msrb.mxu3 %v5681_v4  ;;  %v866_v34 = vmul.f32 %v7668_v36, %v7668_v36  ;;  %v5670_v27 = vld [vmem:[%s6832_s5 + $0x38] sm:$0xf0]  ;;  %vm1075_vm14 = vweird.f32 %v7659_v31 }
 0x15a   : > { %v1061_v59 = vmul.f32 0.5, %v1060_v19  ;;  %v1070_v45 = vmul.f32 %v7659_v31, %v1069_v48  ;;  %6039 = vrsqrt.f32 %v7681_v26  ;;  %v1406_v3 = vadd.f32 %v7076_v29, %v1373_v46  ;;  %v5848_v46 = vld [vmem:[%s6832_s5 + $0x24] sm:$0xf]  ;;  %vm7739_vm2 = vmor %vm1074_vm12, %vm1075_vm14 }
 0x15b   : > { %v1374_v53 = vmul.f32 %v7065_v14, %v1341_v52  ;;  %v7705_v33 = vmul.f32 %v6955_v61, %v646_v20  ;;  %v898_v23 = vsub.f32 %v834_v0, %v866_v34  ;;  %v959_v4 = vsub.f32 %v6386_v2, %v7499_v57  ;;  %v5662_v20 = vld [vmem:[%s6832_s5 + $0x28] sm:$0xf0] }
 0x15c   : > { %v1062_v56 = vsub.f32 1.5, %v1061_v59  ;;  %v1071_v25 = vmul.f32 0.5, %v1070_v45  ;;  %v5669_v11 = vor.u32 %v5851_v43, %v5668_v21  ;;  %v5673_v32 = vor.u32 %v5850_v49, %v5670_v27 }
 0x15d   : > { %v1407_v10 = vadd.f32 %v7076_v29, %v1374_v53  ;;  %v958_v24 = vsub.f32 %v6387_v54, %v7493_v50  ;;  %v867_v0 = vmul.f32 %v7705_v33, %v7705_v33  ;;  %v930_v43 = vmax.f32 %v898_v23, 0.0 }
 0x15e   : > { %v781_v40 = vpop.xlane.xlu0 %780  ;;  %v1063_v19 = vmul.f32 %v7638_v12, %v1062_v56  ;;  %v1072_v48 = vsub.f32 1.5, %v1071_v25  ;;  %2415 = vmatpush.bf16.msrb.mxu2 %v5669_v11  ;;  %2504 = vmatpush.bf16.msrb.mxu3 %v5673_v32  ;;  %v5661_v59 = vor.u32 %v5849_v1, %v5660_v51  ;;  %v5665_v27 = vor.u32 %v5848_v46, %v5662_v20  ;;  %v5644_v11 = vld [vmem:[%s6832_s5] sm:$0xf]  ;;  %v5845_v32 = vld [vmem:[%s6832_s5 + $0x4] sm:$0xf0] }
 0x15f   : > { %v7733_v52 = vpop.eup %6037  ;;  %v7743_v21 = vpack.c.bf16 %v1407_v10, %v1406_v3  ;;  %v835_v50 = vmul.f32 %v781_v40, %v6955_v61  ;;  %v1327_v3 = vsel %vm7700_vm15, %v7407_v42, %v7556_v28  ;;  %v1337_v56 = vsel %vm7725_vm1, %v7448_v9, %v7654_v6  ;;  %v5652_v28 = vld [vmem:[%s6832_s5 + $0x10] sm:$0xf] }
 0x160   : > { %v648_v45 = vpop.xlane.xlu1 %647  ;;  %v1067_v34 = vsel %vm7714_vm0, %v7638_v12, %v1063_v19  ;;  %v1073_v41 = vmul.f32 %v7659_v31, %v1072_v48  ;;  %v1079_v49 = vmul.f32 %v7733_v52, %v7664_v8  ;;  %v7752_v53 = vpop.eup %6039  ;;  %v7762_v25 = vadd.f32 1e-05, %v930_v43  ;;  %v5646_v19 = vld [vmem:[%s6832_s5 + $0x8] sm:$0xf0] }
 0x161   : > { %v899_v12 = vsub.f32 %v835_v50, %v867_v0  ;;  %v1342_v23 = vmul.f32 %v1067_v34, %v958_v24  ;;  %v1089_v1 = vmul.f32 %v7752_v53, %v7681_v26  ;;  %v7776_v6 = vmul.f32 %v6955_v61, %v648_v45  ;;  %v5844_v24 = vld [vmem:[%s6832_s5 + $0x4] sm:$0xf] }
 0x162   : > { %v1077_v51 = vsel %vm7739_vm2, %v7659_v31, %v1073_v41  ;;  %v1080_v42 = vmul.f32 %v7733_v52, %v1079_v49  ;;  %6041 = vrsqrt.f32 %v7762_v25  ;;  %v5846_v31 = vld [vmem:[%s6832_s5 + $0x14] sm:$0xf]  ;;  %2416 = vmatpush.bf16.msrb.mxu2 %v5661_v59  ;;  %2505 = vmatpush.bf16.msrb.mxu3 %v5665_v27  ;;  %v1368_v46 = vmul.f32 %v1327_v3, %v984_v60 }
 0x163   : > { %v1343_v2 = vmul.f32 %v1077_v51, %v959_v4  ;;  %v931_v9 = vmax.f32 %v899_v12, 0.0  ;;  %v1090_v10 = vmul.f32 %v7752_v53, %v1089_v1  ;;  %v650_v4 = vpop.xlane.xlu2 %649  ;;  %v7788_v20 = vpack.c.bf16 %v7636_v18, %v7517_v15  ;;  %v6391_v51 = vld [vmem:[#allocation10 + $0x48] sm:$0xff] }
 0x164   : > { %1568 = vmatmul.bf16.gmra.mxu0 %v7743_v21  ;;  %1657 = vmatmul.bf16.gmra.mxu1 %v7743_v21  ;;  %v1081_v40 = vmul.f32 0.5, %v1080_v42  ;;  %v5653_v54 = vor.u32 %v5847_v58, %v5652_v28  ;;  %v1369_v48 = vmul.f32 %v1337_v56, %v985_v62  ;;  %v1375_v22 = vmul.f32 %v7065_v14, %v1342_v23 }
 0x165   : > { %11761 = vst [vmem:[#allocation20_spill] sm:$0xff] %v7788_v20  ;;  %v7790_v57 = vadd.f32 1e-05, %v931_v9  ;;  %v1091_v0 = vmul.f32 0.5, %v1090_v10  ;;  %v5657_v50 = vor.u32 %v5846_v31, %v5654_v16  ;;  %1633 = vmatmul.bf16.gmra.mxu2 %v7788_v20  ;;  %v1376_v39 = vmul.f32 %v7065_v14, %v1343_v2  ;;  %v6388_v2 = vld [vmem:[#allocation10 + $0x30] sm:$0xff]  ;;  %v6389_v31 = vld [vmem:[#allocation10 + $0x38] sm:$0xff] }
 0x166   : > { %v783_v43 = vpop.xlane.xlu0 %782  ;;  %1722 = vmatmul.bf16.gmra.mxu3 %v7788_v20  ;;  %v868_v35 = vmul.f32 %v7776_v6, %v7776_v6  ;;  %v7805_v60 = vmul.f32 %v6955_v61, %v650_v4  ;;  %v1082_v17 = vsub.f32 1.5, %v1081_v40  ;;  %2417 = vmatpush.bf16.msrb.mxu2 %v5653_v54  ;;  %v5645_v62 = vor.u32 %v5845_v32, %v5644_v11 }
 0x167   : > { %6043 = vrsqrt.f32 %v7790_v57  ;;  %v1092_v55 = vsub.f32 1.5, %v1091_v0  ;;  %2506 = vmatpush.bf16.msrb.mxu3 %v5657_v50  ;;  %v5649_v15 = vor.u32 %v5844_v24, %v5646_v19  ;;  %vm1084_vm3 = vweird.f32 %v7664_v8 }
 0x168   : > { %v785_v18 = vpop.xlane.xlu1 %784  ;;  %v7807_v59 = vpop.eup %6041  ;;  %vm1085_vm4 = vweird.f32 %v7733_v52  ;;  %v869_v45 = vmul.f32 %v7805_v60, %v7805_v60  ;;  %v836_v34 = vmul.f32 %v783_v43, %v6955_v61  ;;  %vm1094_vm5 = vweird.f32 %v7681_v26 }
 0x169   : > { %vm1095_vm6 = vweird.f32 %v7752_v53  ;;  %v1408_v41 = vadd.f32 %v7076_v29, %v1375_v22  ;;  %v1099_v49 = vmul.f32 %v7807_v59, %v7762_v25  ;;  %v1409_v27 = vadd.f32 %v7076_v29, %v1376_v39  ;;  %vm7823_vm7 = vmor %vm1084_vm3, %vm1085_vm4 }
 0x16a   : > { %v900_v3 = vsub.f32 %v836_v34, %v868_v35  ;;  %v837_v8 = vmul.f32 %v785_v18, %v6955_v61  ;;  %v1093_v56 = vmul.f32 %v7752_v53, %v1092_v55  ;;  %v1083_v12 = vmul.f32 %v7733_v52, %v1082_v17  ;;  %2418 = vmatpush.bf16.msrb.mxu2 %v5645_v62  ;;  %vm7829_vm8 = vmor %vm1094_vm5, %vm1095_vm6 }
 0x16b   : > { %2507 = vmatpush.bf16.msrb.mxu3 %v5649_v15  ;;  %v1401_v1 = vmul.f32 %v7065_v14, %v1368_v46  ;;  %v1402_v42 = vmul.f32 %v7065_v14, %v1369_v48  ;;  %v960_v9 = vsub.f32 %v6388_v2, %v7571_v13  ;;  %v961_v16 = vsub.f32 %v6389_v31, %v7599_v5  ;;  %v652_v55 = vpop.xlane.xlu2 %651 }
 0x16c   : > { %v932_v28 = vmax.f32 %v900_v3, 0.0  ;;  %v901_v58 = vsub.f32 %v837_v8, %v869_v45  ;;  %v1100_v40 = vmul.f32 %v7807_v59, %v1099_v49  ;;  %v7840_v4 = vpack.c.bf16 %v1409_v27, %v1408_v41 }
 0x16d   : > { %v7827_v26 = vpop.eup %6043  ;;  %v1097_v46 = vsel %vm7829_vm8, %v7752_v53, %v1093_v56  ;;  %v1087_v13 = vsel %vm7823_vm7, %v7733_v52, %v1083_v12  ;;  %v1434_v54 = vadd.f32 %v7076_v29, %v1401_v1  ;;  %v1435_v24 = vadd.f32 %v7076_v29, %v1402_v42  ;;  %v6390_v56 = vld [vmem:[#allocation10 + $0x40] sm:$0xff] }
 0x16e   : > { %v1109_v10 = vmul.f32 %v7827_v26, %v7790_v57  ;;  %v7842_v11 = vadd.f32 1e-05, %v932_v28  ;;  %v933_v32 = vmax.f32 %v901_v58, 0.0  ;;  %v1345_v48 = vmul.f32 %v1097_v46, %v961_v16  ;;  %v654_v50 = vpop.xlane.xlu0 %653 }
 0x16f   : > { %v1344_v0 = vmul.f32 %v1087_v13, %v960_v9  ;;  %v1101_v22 = vmul.f32 0.5, %v1100_v40  ;;  %v7859_v53 = vpack.c.bf16 %v1435_v24, %v1434_v54  ;;  %vm1104_vm9 = vweird.f32 %v7762_v25 }
 0x170   : > { %v1110_v5 = vmul.f32 %v7827_v26, %v1109_v10  ;;  %v7853_v19 = vadd.f32 1e-05, %v933_v32  ;;  %6045 = vrsqrt.f32 %v7842_v11  ;;  %v1378_v35 = vmul.f32 %v7065_v14, %v1345_v48 }
 0x171   : > { %11766 = vst [vmem:[#allocation21_spill] sm:$0xff] %v7859_v53  ;;  %v1102_v43 = vsub.f32 1.5, %v1101_v22  ;;  %v1377_v39 = vmul.f32 %v7065_v14, %v1344_v0  ;;  %vm1105_vm10 = vweird.f32 %v7807_v59  ;;  %vm1114_vm11 = vweird.f32 %v7790_v57 }
 0x172   : > { %6047 = vrsqrt.f32 %v7853_v19  ;;  %v1111_v52 = vmul.f32 0.5, %v1110_v5  ;;  %vm1115_vm12 = vweird.f32 %v7827_v26  ;;  %v1411_v41 = vadd.f32 %v7076_v29, %v1378_v35  ;;  %vm7879_vm13 = vmor %vm1104_vm9, %vm1105_vm10 }
 0x173   : > { %v1103_v18 = vmul.f32 %v7807_v59, %v1102_v43  ;;  %v1410_v34 = vadd.f32 %v7076_v29, %v1377_v39  ;;  %v7886_v57 = vmul.f32 %v6955_v61, %v652_v55  ;;  %v7889_v3 = vmul.f32 %v6955_v61, %v654_v50  ;;  %vm7891_vm14 = vmor %vm1114_vm11, %vm1115_vm12  ;;  %v787_v16 = vpop.xlane.xlu1 %786 }
 0x174   : > { %1573 = vmatmul.bf16.gmra.mxu0 %v7840_v4  ;;  %1662 = vmatmul.bf16.gmra.mxu1 %v7840_v4  ;;  %v1112_v62 = vsub.f32 1.5, %v1111_v52  ;;  %v962_v12 = vsub.f32 %v6390_v56, %v7668_v36  ;;  %v963_v1 = vsub.f32 %v6391_v51, %v7705_v33  ;;  %v838_v10 = vmul.f32 %v787_v16, %v6955_v61  ;;  %v6395_v56 = vld [vmem:[#allocation10 + $0x68] sm:$0xff] }
 0x175   : > { %1638 = vmatmul.bf16.gmra.mxu2 %v7859_v53  ;;  %v1107_v42 = vsel %vm7879_vm13, %v7807_v59, %v1103_v18  ;;  %v7901_v58 = vpack.c.bf16 %v1411_v41, %v1410_v34  ;;  %v870_v36 = vmul.f32 %v7886_v57, %v7886_v57  ;;  %v871_v33 = vmul.f32 %v7889_v3, %v7889_v3 }
 0x176   : > { %1727 = vmatmul.bf16.gmra.mxu3 %v7859_v53  ;;  %v7865_v17 = vpop.eup %6045  ;;  %v1113_v49 = vmul.f32 %v7827_v26, %v1112_v62  ;;  %v656_v23 = vpop.xlane.xlu0 %655  ;;  %v1346_v32 = vmul.f32 %v1107_v42, %v962_v12  ;;  %vm1124_vm15 = vweird.f32 %v7842_v11  ;;  %vm1134_vm1 = vweird.f32 %v7853_v19  ;;  %v6392_v42 = vld [vmem:[#allocation10 + $0x50] sm:$0xff] }
 0x177   : > { %v1119_v45 = vmul.f32 %v7865_v17, %v7842_v11  ;;  %v902_v5 = vsub.f32 %v838_v10, %v870_v36  ;;  %v7916_v54 = vmul.f32 %v6955_v61, %v656_v23  ;;  %vm1125_vm0 = vweird.f32 %v7865_v17 }
 0x178   : > { %v7867_v15 = vpop.eup %6047  ;;  %v1117_v2 = vsel %vm7891_vm14, %v7827_v26, %v1113_v49  ;;  %v1379_v22 = vmul.f32 %v7065_v14, %v1346_v32  ;;  %vm7950_vm3 = vmor %vm1124_vm15, %vm1125_vm0 }
 0x179   : > { %v1129_v25 = vmul.f32 %v7867_v15, %v7853_v19  ;;  %v1120_v28 = vmul.f32 %v7865_v17, %v1119_v45  ;;  %v789_v31 = vpop.xlane.xlu2 %788  ;;  %v1347_v40 = vmul.f32 %v1117_v2, %v963_v1  ;;  %v934_v48 = vmax.f32 %v902_v5, 0.0  ;;  %v6393_v2 = vld [vmem:[#allocation10 + $0x58] sm:$0xff] }
 0x17a   : > { %v839_v59 = vmul.f32 %v789_v31, %v6955_v61  ;;  %v872_v55 = vmul.f32 %v7916_v54, %v7916_v54  ;;  %vm1135_vm2 = vweird.f32 %v7867_v15  ;;  %v1412_v27 = vadd.f32 %v7076_v29, %v1379_v22 }
 0x17b   : > { %v1130_v9 = vmul.f32 %v7867_v15, %v1129_v25  ;;  %v1121_v46 = vmul.f32 0.5, %v1120_v28  ;;  %v1380_v52 = vmul.f32 %v7065_v14, %v1347_v40  ;;  %v7924_v35 = vadd.f32 1e-05, %v934_v48  ;;  %vm7961_vm4 = vmor %vm1134_vm1, %vm1135_vm2 }
 0x17c   : > { %v903_v13 = vsub.f32 %v839_v59, %v871_v33  ;;  %v964_v28 = vsub.f32 %v6392_v42, %v7776_v6 }
 0x17d   : > { %v1131_v26 = vmul.f32 0.5, %v1130_v9  ;;  %v1122_v0 = vsub.f32 1.5, %v1121_v46  ;;  %v1413_v25 = vadd.f32 %v7076_v29, %v1380_v52  ;;  %v965_v9 = vsub.f32 %v6393_v2, %v7805_v60 }
 0x17e   : > { %v935_v24 = vmax.f32 %v903_v13, 0.0  ;;  %vm1144_vm7 = vweird.f32 %v7924_v35 }
 0x17f   : > { %v793_v50 = vpop.xlane.xlu0 %792  ;;  %v1132_v43 = vsub.f32 1.5, %v1131_v26  ;;  %v1123_v8 = vmul.f32 %v7865_v17, %v1122_v0  ;;  %v7967_v36 = vpack.c.bf16 %v1413_v25, %v1412_v27  ;;  %v6394_v25 = vld [vmem:[#allocation10 + $0x60] sm:$0xff] }
 0x180   : > { %v7922_v39 = vadd.f32 1e-05, %v935_v24  ;;  %v841_v41 = vmul.f32 %v793_v50, %v6955_v61 }
 0x181   : > { %v791_v62 = vpop.xlane.xlu2 %790  ;;  %v1133_v12 = vmul.f32 %v7867_v15, %v1132_v43  ;;  %v1127_v31 = vsel %vm7950_vm3, %v7865_v17, %v1123_v8  ;;  %v966_v8 = vsub.f32 %v6394_v25, %v7886_v57 }
 0x182   : > { %6049 = vrsqrt.f32 %v7922_v39  ;;  %v840_v49 = vmul.f32 %v791_v62, %v6955_v61  ;;  %v1348_v26 = vmul.f32 %v1127_v31, %v964_v28  ;;  %vm1154_vm5 = vweird.f32 %v7922_v39 }
 0x183   : > { %6051 = vrsqrt.f32 %v7924_v35  ;;  %v1137_v19 = vsel %vm7961_vm4, %v7867_v15, %v1133_v12  ;;  %v967_v12 = vsub.f32 %v6395_v56, %v7889_v3 }
 0x184   : > { %1578 = vmatmul.bf16.gmra.mxu0 %v7901_v58  ;;  %1667 = vmatmul.bf16.gmra.mxu1 %v7901_v58  ;;  %v904_v23 = vsub.f32 %v840_v49, %v872_v55  ;;  %v1349_v17 = vmul.f32 %v1137_v19, %v965_v9  ;;  %v1381_v48 = vmul.f32 %v7065_v14, %v1348_v26 }
 0x185   : > { %2419 = vmatmul.bf16.vlgmr.msrb.gmra.mxu2 %v7616_v44 }
 0x186   : > { %2508 = vmatmul.bf16.vlgmr.msrb.gmra.mxu3 %v7616_v44  ;;  %v658_v44 = vpop.xlane.xlu1 %657  ;;  %v936_v11 = vmax.f32 %v904_v23, 0.0  ;;  %v1382_v0 = vmul.f32 %v7065_v14, %v1349_v17 }
 0x187   : > { %v7932_v18 = vpop.f32.mrf.mxu2  ;;  %v7934_v45 = vpop.f32.mrf.mxu3  ;;  %v7938_v34 = vmul.f32 %v6955_v61, %v658_v44  ;;  %v1414_v44 = vadd.f32 %v7076_v29, %v1381_v48 }
 0x188   : > { %v6050_v33 = vpop.eup %6049  ;;  %v7975_v59 = vadd.f32 1e-05, %v936_v11 }
 0x189   : > { %v873_v61 = vmul.f32 %v7938_v34, %v7938_v34  ;;  %v6052_v10 = vpop.eup %6051  ;;  %v1149_v6 = vmul.f32 %v6050_v33, %v7922_v39  ;;  %vm1155_vm6 = vweird.f32 %v6050_v33 }
 0x18a   : > { %v1139_v32 = vmul.f32 %v6052_v10, %v7924_v35  ;;  %6053 = vrsqrt.f32 %v7975_v59  ;;  %vm1145_vm8 = vweird.f32 %v6052_v10  ;;  %vm8001_vm9 = vmor %vm1154_vm5, %vm1155_vm6  ;;  %vm1164_vm13 = vweird.f32 %v7975_v59 }
 0x18b   : > { %v905_v1 = vsub.f32 %v841_v41, %v873_v61  ;;  %v1150_v15 = vmul.f32 %v6050_v33, %v1149_v6  ;;  %vm1146_vm10 = vmor %vm1144_vm7, %vm1145_vm8 }
 0x18c   : > { %v1140_v13 = vmul.f32 %v6052_v10, %v1139_v32 }
 0x18d   : > { %v937_v16 = vmax.f32 %v905_v1, 0.0  ;;  %v1151_v5 = vmul.f32 0.5, %v1150_v15  ;;  %v6396_v15 = vld [vmem:[#allocation10 + $0x70] sm:$0xff] }
 0x18e   : > { %v1141_v24 = vmul.f32 0.5, %v1140_v13  ;;  %v968_v13 = vsub.f32 %v6396_v15, %v7916_v54 }
 0x18f   : > { %v7978_v40 = vpop.f32.mrf.mxu2  ;;  %v7980_v60 = vpop.f32.mrf.mxu3  ;;  %v7983_v46 = vadd.f32 1e-05, %v937_v16  ;;  %v1152_v22 = vsub.f32 1.5, %v1151_v5 }
 0x190   : > { %v1142_v52 = vsub.f32 1.5, %v1141_v24  ;;  %v6054_v50 = vpop.eup %6053 }
 0x191   : > { %6055 = vrsqrt.f32 %v7983_v46  ;;  %v1153_v41 = vmul.f32 %v6050_v33, %v1152_v22  ;;  %v1159_v39 = vmul.f32 %v6054_v50, %v7975_v59  ;;  %vm1174_vm11 = vweird.f32 %v7983_v46 }
 0x192   : > { %v1143_v27 = vmul.f32 %v6052_v10, %v1142_v52  ;;  %vm1165_vm14 = vweird.f32 %v6054_v50 }
 0x193   : > { %v1157_v23 = vsel %vm8001_vm9, %v6050_v33, %v1153_v41  ;;  %v1160_v1 = vmul.f32 %v6054_v50, %v1159_v39  ;;  %vm1166_vm0 = vmor %vm1164_vm13, %vm1165_vm14 }
 0x194   : > { %1583 = vmatmul.bf16.gmra.mxu0 %v7967_v36  ;;  %1672 = vmatmul.bf16.gmra.mxu1 %v7967_v36  ;;  %v1147_v51 = vsel %vm1146_vm10, %v6052_v10, %v1143_v27  ;;  %v1351_v2 = vmul.f32 %v1157_v23, %v967_v12 }
 0x195   : > { %2424 = vmatmul.bf16.gmra.mxu2 %v7743_v21  ;;  %v1350_v9 = vmul.f32 %v1147_v51, %v966_v8  ;;  %v1161_v31 = vmul.f32 0.5, %v1160_v1 }
 0x196   : > { %2513 = vmatmul.bf16.gmra.mxu3 %v7743_v21  ;;  %v1415_v21 = vadd.f32 %v7076_v29, %v1382_v0  ;;  %v1384_v33 = vmul.f32 %v7065_v14, %v1351_v2 }
 0x197   : > { %v7995_v43 = vpop.f32.mrf.mxu2  ;;  %v7997_v55 = vpop.f32.mrf.mxu3  ;;  %v1383_v3 = vmul.f32 %v7065_v14, %v1350_v9  ;;  %v1162_v16 = vsub.f32 1.5, %v1161_v31 }
 0x198   : > { %v6056_v62 = vpop.eup %6055  ;;  %v8009_v61 = vpack.c.bf16 %v1415_v21, %v1414_v44 }
 0x199   : > { %v1169_v35 = vmul.f32 %v6056_v62, %v7983_v46  ;;  %vm1175_vm12 = vweird.f32 %v6056_v62  ;;  %v1416_v32 = vadd.f32 %v7076_v29, %v1383_v3  ;;  %v1163_v17 = vmul.f32 %v6054_v50, %v1162_v16  ;;  %v6397_v46 = vld [vmem:[#allocation10 + $0x78] sm:$0xff] }
 0x19a   : > { %vm1176_vm15 = vmor %vm1174_vm11, %vm1175_vm12  ;;  %v969_v5 = vsub.f32 %v6397_v46, %v7938_v34 }
 0x19b   : > { %v1170_v11 = vmul.f32 %v6056_v62, %v1169_v35  ;;  %v1167_v48 = vsel %vm1166_vm0, %v6054_v50, %v1163_v17 }
 0x19c   : > { %v1352_v44 = vmul.f32 %v1167_v48, %v968_v13 }
 0x19d   : > { %v1171_v57 = vmul.f32 0.5, %v1170_v11 }
 0x19e   : > { %v1385_v54 = vmul.f32 %v7065_v14, %v1352_v44 }
 0x19f   : > { %v8013_v42 = vpop.f32.mrf.mxu2  ;;  %v8015_v28 = vpop.f32.mrf.mxu3  ;;  %v1172_v19 = vsub.f32 1.5, %v1171_v57 }
 0x1a0   : > { %v1418_v50 = vadd.f32 %v7076_v29, %v1385_v54 }
 0x1a1   : > { %v1173_v26 = vmul.f32 %v6056_v62, %v1172_v19 }
 0x1a3   : > { %v1177_v24 = vsel %vm1176_vm15, %v6056_v62, %v1173_v26 }
 0x1a4   : > { %1588 = vmatmul.bf16.gmra.mxu0 %v8009_v61  ;;  %1677 = vmatmul.bf16.gmra.mxu1 %v8009_v61  ;;  %v1353_v52 = vmul.f32 %v1177_v24, %v969_v5 }
 0x1a5   : > { %2429 = vmatmul.bf16.gmra.mxu2 %v7840_v4 }
 0x1a6   : > { %2518 = vmatmul.bf16.gmra.mxu3 %v7840_v4  ;;  %v1417_v4 = vadd.f32 %v7076_v29, %v1384_v33  ;;  %v1386_v21 = vmul.f32 %v7065_v14, %v1353_v52 }
 0x1a7   : > { %v8025_v10 = vpop.f32.mrf.mxu2  ;;  %v8027_v6 = vpop.f32.mrf.mxu3 }
 0x1a8   : > { %v1442_v59 = vpack.c.bf16 %v1417_v4, %v1416_v32  ;;  %v1419_v41 = vadd.f32 %v7076_v29, %v1386_v21 }
 0x1aa   : > { %v1443_v49 = vpack.c.bf16 %v1419_v41, %v1418_v50 }
 0x1af   : > { %v8033_v0 = vpop.f32.mrf.mxu2  ;;  %v8035_v22 = vpop.f32.mrf.mxu3 }
 0x1b4   : > { %1593 = vmatmul.bf16.gmra.mxu0 %v1442_v59  ;;  %1682 = vmatmul.bf16.gmra.mxu1 %v1442_v59 }
 0x1b5   : > { %2434 = vmatmul.bf16.gmra.mxu2 %v7901_v58 }
 0x1b6   : > { %2523 = vmatmul.bf16.gmra.mxu3 %v7901_v58 }
 0x1b7   : > { %v8041_v34 = vpop.f32.mrf.mxu2  ;;  %v8043_v62 = vpop.f32.mrf.mxu3 }
 0x1bf   : > { %v8047_v27 = vpop.f32.mrf.mxu2  ;;  %v8049_v39 = vpop.f32.mrf.mxu3 }
 0x1c4   : > { %1598 = vmatmul.bf16.gmra.mxu0 %v1443_v49  ;;  %1687 = vmatmul.bf16.gmra.mxu1 %v1443_v49 }
 0x1c5   : > { %2439 = vmatmul.bf16.gmra.mxu2 %v7967_v36 }
 0x1c6   : > { %2528 = vmatmul.bf16.gmra.mxu3 %v7967_v36  ;;  %v8072_v36 = vld [vmem:[%s6850_s21] sm:$0xff] }
 0x1c7   : > { %v8053_v14 = vpop.f32.mrf.mxu2  ;;  %v8055_v58 = vpop.f32.mrf.mxu3  ;;  %v1469_v23 = vperm.slane %v8072_v36, 0 }
 0x1c9   : > { %v8080_v11 = vperm.slane %v1469_v23, 0 }
 0x1cb   : > { %11779 = vst [vmem:[#allocation24_spill] sm:$0xff] %v8080_v11  ;;  %v8086_v9 = vadd.f32 %v7932_v18, %v8080_v11  ;;  %v8102_v18 = vadd.f32 %v7978_v40, %v8080_v11  ;;  %v8118_v15 = vadd.f32 %v7995_v43, %v8080_v11  ;;  %v8141_v50 = vadd.f32 %v8013_v42, %v8080_v11 }
 0x1cd   : > { %v1765_v33 = vmul.f32 %v8086_v9, %v8086_v9  ;;  %v1767_v17 = vmul.f32 %v8102_v18, %v8102_v18 }
 0x1cf   : > { %v8057_v35 = vpop.f32.mrf.mxu2  ;;  %v8059_v25 = vpop.f32.mrf.mxu3  ;;  %v1829_v16 = vmul.f32 %v1765_v33, %v8086_v9 }
 0x1d1   : > { %v1893_v40 = vmul.f32 0.044715, %v1829_v16 }
 0x1d3   : > { %v1957_v24 = vadd.f32 %v1893_v40, %v8086_v9 }
 0x1d5   : > { %2444 = vmatmul.bf16.gmra.mxu2 %v8009_v61  ;;  %v2021_v41 = vmul.f32 0.7978846, %v1957_v24 }
 0x1d6   : > { %2533 = vmatmul.bf16.gmra.mxu3 %v8009_v61  ;;  %v1470_v61 = vperm.slane %v8072_v36, 4 }
 0x1d7   : > { %6057 = vtanh.f32 %v2021_v41 }
 0x1d8   : > { %v8063_v29 = vpop.f32.mrf.mxu2  ;;  %v8082_v2 = vperm.slane %v1470_v61, 0 }
 0x1d9   : > { %v8065_v8 = vpop.f32.mrf.mxu3 }
 0x1da   : > { %11780 = vst [vmem:[#allocation25_spill] sm:$0xff] %v8082_v2  ;;  %v8094_v3 = vadd.f32 %v7934_v45, %v8082_v2  ;;  %v8112_v26 = vadd.f32 %v7980_v60, %v8082_v2  ;;  %v8124_v5 = vadd.f32 %v7997_v55, %v8082_v2  ;;  %v1769_v60 = vmul.f32 %v8118_v15, %v8118_v15 }
 0x1dc   : > { %v1766_v19 = vmul.f32 %v8094_v3, %v8094_v3  ;;  %v1768_v46 = vmul.f32 %v8112_v26, %v8112_v26  ;;  %v1770_v54 = vmul.f32 %v8124_v5, %v8124_v5  ;;  %v1833_v21 = vmul.f32 %v1769_v60, %v8118_v15 }
 0x1dd   : > { %v6058_v41 = vpop.eup %6057 }
 0x1de   : > { %v1830_v45 = vmul.f32 %v1766_v19, %v8094_v3  ;;  %v1832_v44 = vmul.f32 %v1768_v46, %v8112_v26  ;;  %v1834_v33 = vmul.f32 %v1770_v54, %v8124_v5  ;;  %v8152_v19 = vadd.f32 %v8025_v10, %v8080_v11 }
 0x1df   : > { %v1897_v16 = vmul.f32 0.044715, %v1833_v21  ;;  %v8169_v10 = vadd.f32 %v8035_v22, %v8082_v2  ;;  %v8187_v21 = vadd.f32 %v8041_v34, %v8080_v11 }
 0x1e0   : > { %v8067_v56 = vpop.f32.mrf.mxu2  ;;  %v1894_v13 = vmul.f32 0.044715, %v1830_v45  ;;  %v1896_v61 = vmul.f32 0.044715, %v1832_v44  ;;  %v1771_v45 = vmul.f32 %v8141_v50, %v8141_v50 }
 0x1e1   : > { %v8069_v12 = vpop.f32.mrf.mxu3  ;;  %v1961_v24 = vadd.f32 %v1897_v16, %v8118_v15  ;;  %v1776_v54 = vmul.f32 %v8169_v10, %v8169_v10 }
 0x1e2   : > { %v1958_v52 = vadd.f32 %v1894_v13, %v8094_v3  ;;  %v1960_v46 = vadd.f32 %v1896_v61, %v8112_v26 }
 0x1e3   : > { %v2025_v16 = vmul.f32 0.7978846, %v1961_v24  ;;  %v1840_v34 = vmul.f32 %v1776_v54, %v8169_v10 }
 0x1e4   : > { %v2022_v23 = vmul.f32 0.7978846, %v1958_v52 }
 0x1e5   : > { %2449 = vmatmul.bf16.gmra.mxu2 %v1442_v59 }
 0x1e6   : > { %2538 = vmatmul.bf16.gmra.mxu3 %v1442_v59  ;;  %v1831_v59 = vmul.f32 %v1767_v17, %v8102_v18  ;;  %v8165_v17 = vadd.f32 %v8033_v0, %v8080_v11  ;;  %6059 = vtanh.f32 %v2022_v23  ;;  %v1835_v0 = vmul.f32 %v1771_v45, %v8141_v50 }
 0x1e8   : > { %v8075_v51 = vpop.f32.mrf.mxu2  ;;  %v1895_v55 = vmul.f32 0.044715, %v1831_v59  ;;  %v1773_v59 = vmul.f32 %v8152_v19, %v8152_v19  ;;  %v1775_v44 = vmul.f32 %v8165_v17, %v8165_v17  ;;  %v1899_v45 = vmul.f32 0.044715, %v1835_v0 }
 0x1e9   : > { %11777 = vst [vmem:[#allocation22_spill] sm:$0xff] %v8075_v51  ;;  %v8077_v1 = vpop.f32.mrf.mxu3 }
 0x1ea   : > { %11778 = vst [vmem:[#allocation23_spill] sm:$0xff] %v8077_v1  ;;  %v1959_v42 = vadd.f32 %v1895_v55, %v8102_v18  ;;  %v2024_v55 = vmul.f32 0.7978846, %v1960_v46  ;;  %v1837_v61 = vmul.f32 %v1773_v59, %v8152_v19  ;;  %v2149_v59 = vadd.f32 1.0, %v6058_v41 }
 0x1eb   : > { %v2325_v41 = vperm.slane %v8072_v36, 1 }
 0x1ec   : > { %v2023_v60 = vmul.f32 0.7978846, %v1959_v42  ;;  %v6060_v42 = vpop.eup %6059 }
 0x1ed   : > { %v2150_v24 = vadd.f32 1.0, %v6060_v42  ;;  %v8219_v42 = vperm.slane %v2325_v41, 1 }
 0x1ee   : > { %6061 = vtanh.f32 %v2023_v60  ;;  %v8206_v60 = vadd.f32 %v8047_v27, %v8080_v11 }
 0x1ef   : > { %6063 = vtanh.f32 %v2024_v55  ;;  %v2214_v30 = vmul.f32 0.5, %v2150_v24 }
 0x1f0   : > { %v8088_v57 = vpop.f32.mrf.mxu2  ;;  %6065 = vtanh.f32 %v2025_v16 }
 0x1f1   : > { %11781 = vst [vmem:[#allocation26_spill] sm:$0xff] %v8088_v57  ;;  %v8090_v31 = vpop.f32.mrf.mxu3  ;;  %v8214_v57 = vmul.f32 0.5, %v2149_v59 }
 0x1f2   : > { %11782 = vst [vmem:[#allocation27_spill] sm:$0xff] %v8090_v31  ;;  %v2326_v31 = vperm.slane %v8072_v36, 5  ;;  %v8227_v36 = vadd.f32 %v8049_v39, %v8082_v2 }
 0x1f4   : > { %v6062_v27 = vpop.eup %6061  ;;  %v8233_v59 = vperm.slane %v2326_v31, 1 }
 0x1f5   : > { %2454 = vmatmul.bf16.gmra.mxu2 %v1443_v49 }
 0x1f6   : > { %2543 = vmatmul.bf16.gmra.mxu3 %v1443_v49  ;;  %v8145_v49 = vadd.f32 %v8015_v28, %v8082_v2  ;;  %v8159_v28 = vadd.f32 %v8027_v6, %v8082_v2  ;;  %v1898_v6 = vmul.f32 0.044715, %v1834_v33  ;;  %v8193_v33 = vadd.f32 %v8043_v62, %v8082_v2 }
 0x1f7   : > { %v1777_v62 = vmul.f32 %v8187_v21, %v8187_v21 }
 0x1f8   : > { %v8105_v32 = vpop.f32.mrf.mxu2  ;;  %v1774_v52 = vmul.f32 %v8159_v28, %v8159_v28  ;;  %v1962_v23 = vadd.f32 %v1898_v6, %v8124_v5 }
 0x1f9   : > { %11783 = vst [vmem:[#allocation28_spill] sm:$0xff] %v8105_v32  ;;  %v8107_v4 = vpop.f32.mrf.mxu3  ;;  %v1904_v32 = vmul.f32 0.044715, %v1840_v34 }
 0x1fa   : > { %11784 = vst [vmem:[#allocation29_spill] sm:$0xff] %v8107_v4  ;;  %v2026_v0 = vmul.f32 0.7978846, %v1962_v23  ;;  %v1841_v23 = vmul.f32 %v1777_v62, %v8187_v21  ;;  %v2151_v62 = vadd.f32 1.0, %v6062_v27 }
 0x1fc   : > { %6067 = vtanh.f32 %v2026_v0  ;;  %v1905_v1 = vmul.f32 0.044715, %v1841_v23 }
 0x200   : > { %v8130_v48 = vpop.f32.mrf.mxu2 }
 0x201   : > { %11785 = vst [vmem:[#allocation30_spill] sm:$0xff] %v8130_v48  ;;  %v8132_v43 = vpop.f32.mrf.mxu3 }
 0x202   : > { %11786 = vst [vmem:[#allocation31_spill] sm:$0xff] %v8132_v43  ;;  %v1839_v43 = vmul.f32 %v1775_v44, %v8165_v17  ;;  %v1963_v44 = vadd.f32 %v1899_v45, %v8141_v50  ;;  %v6064_v45 = vpop.eup %6063 }
 0x203   : > { %v6066_v39 = vpop.eup %6065 }
 0x204   : > { %v1903_v4 = vmul.f32 0.044715, %v1839_v43  ;;  %v2153_v53 = vadd.f32 1.0, %v6066_v39 }
 0x205   : > { %2459 = vmatmul.bf16.gmra.mxu2 %v7113_v63 }
 0x206   : > { %2548 = vmatmul.bf16.gmra.mxu3 %v7113_v63  ;;  %v1772_v63 = vmul.f32 %v8145_v49, %v8145_v49  ;;  %v1967_v0 = vadd.f32 %v1903_v4, %v8165_v17 }
 0x208   : > { %v2420_v40 = vpop.f32.mrf.mxu2  ;;  %v1836_v22 = vmul.f32 %v1772_v63, %v8145_v49  ;;  %v1838_v63 = vmul.f32 %v1774_v52, %v8159_v28  ;;  %v1901_v52 = vmul.f32 0.044715, %v1837_v61  ;;  %v1779_v61 = vmul.f32 %v8206_v60, %v8206_v60 }
 0x209   : > { %v8171_v13 = vpop.f32.mrf.mxu3  ;;  %v8231_v34 = vadd.f32 %v2420_v40, %v8219_v42  ;;  %v2031_v20 = vmul.f32 0.7978846, %v1967_v0  ;;  %v2215_v0 = vmul.f32 0.5, %v2151_v62  ;;  %v2217_v62 = vmul.f32 0.5, %v2153_v53 }
 0x20a   : > { %v1900_v46 = vmul.f32 0.044715, %v1836_v22  ;;  %v1778_v22 = vmul.f32 %v8193_v33, %v8193_v33  ;;  %v1902_v54 = vmul.f32 0.044715, %v1838_v63  ;;  %v1965_v43 = vadd.f32 %v1901_v52, %v8152_v19 }
 0x20b   : > { %v2027_v63 = vmul.f32 0.7978846, %v1963_v44  ;;  %v1968_v52 = vadd.f32 %v1904_v32, %v8169_v10  ;;  %v1843_v44 = vmul.f32 %v1779_v61, %v8206_v60  ;;  %v2589_v40 = vmul.f32 %v8231_v34, %v8231_v34  ;;  %v6068_v61 = vpop.eup %6067 }
 0x20c   : > { %v1964_v55 = vadd.f32 %v1900_v46, %v8145_v49  ;;  %v1842_v16 = vmul.f32 %v1778_v22, %v8193_v33  ;;  %v1966_v46 = vadd.f32 %v1902_v54, %v8159_v28  ;;  %v8246_v31 = vadd.f32 %v8171_v13, %v8233_v59 }
 0x20d   : > { %v2152_v54 = vadd.f32 1.0, %v6064_v45  ;;  %v1780_v32 = vmul.f32 %v8227_v36, %v8227_v36  ;;  %6069 = vtanh.f32 %v2027_v63  ;;  %v2653_v51 = vmul.f32 %v2589_v40, %v8231_v34 }
 0x20e   : > { %v1906_v4 = vmul.f32 0.044715, %v1842_v16  ;;  %v2030_v27 = vmul.f32 0.7978846, %v1966_v46  ;;  %v2590_v23 = vmul.f32 %v8246_v31, %v8246_v31  ;;  %v1969_v13 = vadd.f32 %v1905_v1, %v8187_v21 }
 0x20f   : > { %v1907_v45 = vmul.f32 0.044715, %v1843_v44  ;;  %v1844_v46 = vmul.f32 %v1780_v32, %v8227_v36  ;;  %v2717_v40 = vmul.f32 0.044715, %v2653_v51  ;;  %v2154_v39 = vadd.f32 1.0, %v6068_v61 }
 0x210   : > { %v8198_v48 = vpop.f32.mrf.mxu2  ;;  %v2654_v16 = vmul.f32 %v2590_v23, %v8246_v31  ;;  %v1970_v63 = vadd.f32 %v1906_v4, %v8193_v33  ;;  %v8263_v1 = vadd.f32 %v8055_v58, %v8082_v2  ;;  %v2033_v4 = vmul.f32 0.7978846, %v1969_v13 }
 0x211   : > { %v8200_v6 = vpop.f32.mrf.mxu3  ;;  %v1971_v51 = vadd.f32 %v1907_v45, %v8206_v60  ;;  %v2218_v58 = vmul.f32 0.5, %v2154_v39  ;;  %v8282_v13 = vmul.f32 %v2215_v0, %v8102_v18  ;;  %v1564_v45 = vpop.f32.mrf.mxu0 }
 0x212   : > { %11787 = vst [vmem:[#allocation32_spill] sm:$0xff] %v8200_v6  ;;  %v2032_v6 = vmul.f32 0.7978846, %v1968_v52  ;;  %v2216_v52 = vmul.f32 0.5, %v2152_v54  ;;  %v2034_v54 = vmul.f32 0.7978846, %v1970_v63  ;;  %v1782_v53 = vmul.f32 %v8263_v1, %v8263_v1 }
 0x213   : > { %11790 = vst [vmem:[#allocation35_spill] sm:$0xff] %v8282_v13  ;;  %v8300_v0 = vadd.f32 %v1564_v45, %v8080_v11 }
 0x215   : > { %2464 = vmatmul.bf16.gmra.mxu2 %v7201_v38 }
 0x216   : > { %2553 = vmatmul.bf16.gmra.mxu3 %v7201_v38  ;;  %v2028_v38 = vmul.f32 0.7978846, %v1964_v55  ;;  %v2029_v55 = vmul.f32 0.7978846, %v1965_v43  ;;  %v8256_v43 = vadd.f32 %v8053_v14, %v8080_v11 }
 0x218   : > { %v8237_v22 = vpop.f32.mrf.mxu2  ;;  %6071 = vtanh.f32 %v2028_v38  ;;  %v2718_v38 = vmul.f32 0.044715, %v2654_v16  ;;  %v1781_v24 = vmul.f32 %v8256_v43, %v8256_v43  ;;  %v8276_v16 = vmul.f32 %v8214_v57, %v8086_v9 }
 0x219   : > { %v8239_v41 = vpop.f32.mrf.mxu3  ;;  %6073 = vtanh.f32 %v2029_v55  ;;  %v6070_v55 = vpop.eup %6069  ;;  %v8293_v9 = vmul.f32 %v2217_v62, %v8118_v15 }
 0x21a   : > { %6075 = vtanh.f32 %v2030_v27  ;;  %v2781_v27 = vadd.f32 %v2717_v40, %v8231_v34  ;;  %v2782_v23 = vadd.f32 %v2718_v38, %v8246_v31  ;;  %11788 = vst [vmem:[#allocation33_spill] sm:$0xff] %v8276_v16  ;;  %v2035_v40 = vmul.f32 0.7978846, %v1971_v51 }
 0x21b   : > { %6077 = vtanh.f32 %v2031_v20  ;;  %v1908_v20 = vmul.f32 0.044715, %v1844_v46  ;;  %v8287_v46 = vmul.f32 %v2216_v52, %v8112_v26  ;;  %v1845_v39 = vmul.f32 %v1781_v24, %v8256_v43  ;;  %11792 = vst [vmem:[#allocation37_spill] sm:$0xff] %v8293_v9 }
 0x21c   : > { %6079 = vtanh.f32 %v2032_v6  ;;  %v8279_v6 = vmul.f32 %v2214_v30, %v8094_v3  ;;  %v2845_v3 = vmul.f32 0.7978846, %v2781_v27  ;;  %v8297_v26 = vmul.f32 %v2218_v58, %v8124_v5 }
 0x21d   : > { %11791 = vst [vmem:[#allocation36_spill] sm:$0xff] %v8287_v46  ;;  %6081 = vtanh.f32 %v2033_v4  ;;  %v1972_v57 = vadd.f32 %v1908_v20, %v8227_v36  ;;  %v2155_v38 = vadd.f32 1.0, %v6070_v55  ;;  %v2846_v52 = vmul.f32 0.7978846, %v2782_v23 }
 0x21e   : > { %v6072_v32 = vpop.eup %6071  ;;  %11789 = vst [vmem:[#allocation34_spill] sm:$0xff] %v8279_v6  ;;  %6083 = vtanh.f32 %v2034_v54  ;;  %v1846_v24 = vmul.f32 %v1782_v53, %v8263_v1  ;;  %v1909_v62 = vmul.f32 0.044715, %v1845_v39  ;;  %v1653_v54 = vpop.f32.mrf.mxu1  ;;  %v8305_v20 = vadd.f32 %v8237_v22, %v8219_v42 }
 0x21f   : > { %v6074_v61 = vpop.eup %6073  ;;  %11793 = vst [vmem:[#allocation38_spill] sm:$0xff] %v8297_v26  ;;  %v2156_v4 = vadd.f32 1.0, %v6072_v32  ;;  %6085 = vtanh.f32 %v2035_v40  ;;  %v2036_v27 = vmul.f32 0.7978846, %v1972_v57  ;;  %v8309_v55 = vadd.f32 %v8239_v41, %v8233_v59 }
 0x220   : > { %v8265_v14 = vpop.f32.mrf.mxu2  ;;  %v6076_v63 = vpop.eup %6075  ;;  %v2157_v51 = vadd.f32 1.0, %v6074_v61  ;;  %6087 = vtanh.f32 %v2845_v3  ;;  %v2219_v61 = vmul.f32 0.5, %v2155_v38  ;;  %v8317_v53 = vadd.f32 %v8057_v35, %v8080_v11 }
 0x221   : > { %v8267_v44 = vpop.f32.mrf.mxu3  ;;  %v6078_v30 = vpop.eup %6077  ;;  %v1733_v22 = vmul.f32 %v8300_v0, %v8300_v0  ;;  %6089 = vtanh.f32 %v2846_v52  ;;  %v1910_v41 = vmul.f32 0.044715, %v1846_v24  ;;  %v1973_v57 = vadd.f32 %v1909_v62, %v8256_v43 }
 0x222   : > { %v6080_v18 = vpop.eup %6079  ;;  %v2159_v15 = vadd.f32 1.0, %v6078_v30  ;;  %v2221_v40 = vmul.f32 0.5, %v2157_v51  ;;  %v8323_v3 = vadd.f32 %v1653_v54, %v8082_v2  ;;  %6091 = vtanh.f32 %v2036_v27 }
 0x223   : > { %v2160_v5 = vadd.f32 1.0, %v6080_v18  ;;  %v6082_v23 = vpop.eup %6081  ;;  %v2593_v18 = vmul.f32 %v8305_v20, %v8305_v20  ;;  %v8329_v38 = vadd.f32 %v8059_v25, %v8082_v2  ;;  %v2594_v52 = vmul.f32 %v8309_v55, %v8309_v55 }
 0x224   : > { %v6084_v45 = vpop.eup %6083  ;;  %v2223_v30 = vmul.f32 0.5, %v2159_v15  ;;  %v2161_v51 = vadd.f32 1.0, %v6082_v23  ;;  %v1783_v24 = vmul.f32 %v8317_v53, %v8317_v53  ;;  %v1797_v15 = vmul.f32 %v1733_v22, %v8300_v0 }
 0x225   : > { %2469 = vmatmul.bf16.gmra.mxu2 %v7295_v7  ;;  %v2224_v35 = vmul.f32 0.5, %v2160_v5  ;;  %v8337_v54 = vmul.f32 %v2219_v61, %v8141_v50  ;;  %v8343_v25 = vmul.f32 %v2221_v40, %v8152_v19  ;;  %v1974_v27 = vadd.f32 %v1910_v41, %v8263_v1  ;;  %v1566_v61 = vpop.f32.mrf.mxu0 }
 0x226   : > { %2558 = vmatmul.bf16.gmra.mxu3 %v7295_v7  ;;  %v2158_v7 = vadd.f32 1.0, %v6076_v63  ;;  %v2220_v63 = vmul.f32 0.5, %v2156_v4  ;;  %v6086_v4 = vpop.eup %6085  ;;  %v1734_v22 = vmul.f32 %v8323_v3, %v8323_v3  ;;  %v2657_v9 = vmul.f32 %v2593_v18, %v8305_v20 }
 0x227   : > { %v6088_v62 = vpop.eup %6087  ;;  %11794 = vst [vmem:[#allocation39_spill] sm:$0xff] %v8337_v54  ;;  %v8353_v50 = vmul.f32 %v2223_v30, %v8165_v17  ;;  %v1784_v19 = vmul.f32 %v8329_v38, %v8329_v38  ;;  %v1861_v41 = vmul.f32 0.044715, %v1797_v15  ;;  %v2163_v18 = vadd.f32 1.0, %v6086_v4 }
 0x228   : > { %v8311_v32 = vpop.f32.mrf.mxu2  ;;  %v2222_v39 = vmul.f32 0.5, %v2158_v7  ;;  %v2162_v7 = vadd.f32 1.0, %v6084_v45  ;;  %v8340_v5 = vmul.f32 %v2220_v63, %v8145_v49  ;;  %11796 = vst [vmem:[#allocation41_spill] sm:$0xff] %v8343_v25  ;;  %v6090_v26 = vpop.eup %6089  ;;  %v2037_v45 = vmul.f32 0.7978846, %v1973_v57 }
 0x229   : > { %v8313_v58 = vpop.f32.mrf.mxu3  ;;  %11798 = vst [vmem:[#allocation43_spill] sm:$0xff] %v8353_v50  ;;  %v8356_v49 = vmul.f32 %v2224_v35, %v8169_v10  ;;  %v2658_v63 = vmul.f32 %v2594_v52, %v8309_v55  ;;  %v6092_v57 = vpop.eup %6091  ;;  %v2973_v17 = vadd.f32 1.0, %v6088_v62  ;;  %v2974_v30 = vadd.f32 1.0, %v6090_v26 }
 0x22a   : > { %11795 = vst [vmem:[#allocation40_spill] sm:$0xff] %v8340_v5  ;;  %v8347_v23 = vmul.f32 %v2222_v39, %v8159_v28  ;;  %v2225_v28 = vmul.f32 0.5, %v2161_v51  ;;  %v8361_v40 = vmul.f32 0.5, %v2162_v7  ;;  %v1847_v39 = vmul.f32 %v1783_v24, %v8317_v53  ;;  %v1655_v51 = vpop.f32.mrf.mxu1 }
 0x22b   : > { %11799 = vst [vmem:[#allocation44_spill] sm:$0xff] %v8356_v49  ;;  %6093 = vtanh.f32 %v2037_v45  ;;  %v1798_v35 = vmul.f32 %v1734_v22, %v8323_v3  ;;  %v8370_v52 = vadd.f32 %v1566_v61, %v8080_v11  ;;  %v2721_v7 = vmul.f32 0.044715, %v2657_v9 }
 0x22c   : > { %11797 = vst [vmem:[#allocation42_spill] sm:$0xff] %v8347_v23  ;;  %v2038_v23 = vmul.f32 0.7978846, %v1974_v27  ;;  %v1848_v4 = vmul.f32 %v1784_v19, %v8329_v38  ;;  %v2722_v24 = vmul.f32 0.044715, %v2658_v63  ;;  %v3037_v26 = vmul.f32 0.5, %v2973_v17 }
 0x22d   : > { %11800 = vst [vmem:[#allocation45_spill] sm:$0xff] %v8370_v52  ;;  %v3038_v15 = vmul.f32 0.5, %v2974_v30  ;;  %v8376_v62 = vmul.f32 %v2225_v28, %v8187_v21  ;;  %v2164_v27 = vadd.f32 1.0, %v6092_v57  ;;  %v1911_v45 = vmul.f32 0.044715, %v1847_v39 }
 0x22e   : > { %v1925_v22 = vadd.f32 %v1861_v41, %v8300_v0  ;;  %6095 = vtanh.f32 %v2038_v23  ;;  %v8381_v9 = vadd.f32 %v8063_v29, %v8080_v11  ;;  %v8384_v61 = vadd.f32 %v1655_v51, %v8082_v2 }
 0x22f   : > { %11801 = vst [vmem:[#allocation46_spill] sm:$0xff] %v8376_v62  ;;  %v8391_v19 = vadd.f32 %v8065_v8, %v8082_v2  ;;  %v1735_v21 = vmul.f32 %v8370_v52, %v8370_v52  ;;  %v2785_v63 = vadd.f32 %v2721_v7, %v8305_v20  ;;  %v8397_v23 = vmul.f32 %v3038_v15, %v8246_v31 }
 0x230   : > { %v8364_v50 = vpop.f32.mrf.mxu2  ;;  %11802 = vst [vmem:[#allocation47_spill] sm:$0xff] %v8381_v9  ;;  %v2227_v29 = vmul.f32 0.5, %v2163_v18  ;;  %v1912_v28 = vmul.f32 0.044715, %v1848_v4  ;;  %v1862_v39 = vmul.f32 0.044715, %v1798_v35  ;;  %v2786_v41 = vadd.f32 %v2722_v24, %v8309_v55 }
 0x231   : > { %v8366_v10 = vpop.f32.mrf.mxu3  ;;  %11803 = vst [vmem:[#allocation48_spill] sm:$0xff] %v8384_v61  ;;  %v6094_v57 = vpop.eup %6093  ;;  %v1989_v17 = vmul.f32 0.7978846, %v1925_v22  ;;  %v8405_v30 = vadd.f32 %v8311_v32, %v8219_v42  ;;  %v1785_v31 = vmul.f32 %v8381_v9, %v8381_v9  ;;  %v1736_v18 = vmul.f32 %v8384_v61, %v8384_v61 }
 0x232   : > { %11805 = vst [vmem:[#allocation50_spill] sm:$0xff] %v8391_v19  ;;  %v8413_v35 = vadd.f32 %v8265_v14, %v8219_v42  ;;  %v8417_v51 = vadd.f32 %v8313_v58, %v8233_v59  ;;  %v2228_v7 = vmul.f32 0.5, %v2164_v27  ;;  %v1786_v4 = vmul.f32 %v8391_v19, %v8391_v19 }
 0x233   : > { %11806 = vst [vmem:[#allocation51_spill] sm:$0xff] %v8397_v23  ;;  %v1799_v32 = vmul.f32 %v1735_v21, %v8370_v52  ;;  %v2849_v24 = vmul.f32 0.7978846, %v2785_v63  ;;  %v1976_v15 = vadd.f32 %v1912_v28, %v8329_v38  ;;  %v2850_v22 = vmul.f32 0.7978846, %v2786_v41  ;;  %v1569_v21 = vpop.f32.mrf.mxu0 }
 0x234   : > { %v8426_v14 = vadd.f32 %v8267_v44, %v8233_v59  ;;  %v2165_v62 = vadd.f32 1.0, %v6094_v57  ;;  %6097 = vtanh.f32 %v1989_v17  ;;  %v2597_v63 = vmul.f32 %v8405_v30, %v8405_v30 }
 0x235   : > { %2474 = vmatmul.bf16.gmra.mxu2 %v7396_v37  ;;  %v1849_v28 = vmul.f32 %v1785_v31, %v8381_v9  ;;  %v2595_v41 = vmul.f32 %v8413_v35, %v8413_v35  ;;  %v2598_v44 = vmul.f32 %v8417_v51, %v8417_v51  ;;  %v1850_v25 = vmul.f32 %v1786_v4, %v8391_v19 }
 0x236   : > { %2563 = vmatmul.bf16.gmra.mxu3 %v7396_v37  ;;  %v8387_v37 = vmul.f32 %v3037_v26, %v8231_v34  ;;  %v1975_v34 = vadd.f32 %v1911_v45, %v8317_v53  ;;  %v6096_v26 = vpop.eup %6095  ;;  %v1926_v45 = vadd.f32 %v1862_v39, %v8323_v3  ;;  %v1800_v39 = vmul.f32 %v1736_v18, %v8384_v61 }
 0x237   : > { %v1863_v57 = vmul.f32 0.044715, %v1799_v32  ;;  %6099 = vtanh.f32 %v2849_v24  ;;  %v8442_v17 = vadd.f32 %v1569_v21, %v8080_v11  ;;  %v2596_v31 = vmul.f32 %v8426_v14, %v8426_v14 }
 0x238   : > { %11804 = vst [vmem:[#allocation49_spill] sm:$0xff] %v8387_v37  ;;  %v3197_v8 = vadd.f32 %v8397_v23, %v8387_v37  ;;  %v8428_v58 = vpop.f32.mrf.mxu2  ;;  %v2039_v49 = vmul.f32 0.7978846, %v1975_v34  ;;  %v2040_v34 = vmul.f32 0.7978846, %v1976_v15  ;;  %6101 = vtanh.f32 %v2850_v22 }
 0x239   : > { %v8430_v27 = vpop.f32.mrf.mxu3  ;;  %v2229_v18 = vmul.f32 0.5, %v2165_v62  ;;  %v1990_v5 = vmul.f32 0.7978846, %v1926_v45  ;;  %v2661_v54 = vmul.f32 %v2597_v63, %v8405_v30  ;;  %v1913_v46 = vmul.f32 0.044715, %v1849_v28 }
 0x23a   : > { %3198 = vadd.xlane.f32.xlu1 %v3197_v8  ;;  %v2166_v8 = vadd.f32 1.0, %v6096_v26  ;;  %6103 = vtanh.f32 %v2039_v49  ;;  %v1864_v13 = vmul.f32 0.044715, %v1800_v39  ;;  %v2659_v26 = vmul.f32 %v2595_v41, %v8413_v35  ;;  %v6098_v32 = vpop.eup %6097 }
 0x23b   : > { %v2662_v4 = vmul.f32 %v2598_v44, %v8417_v51  ;;  %v8451_v24 = vmul.f32 %v8361_v40, %v8193_v33  ;;  %v1914_v22 = vmul.f32 0.044715, %v1850_v25  ;;  %v1927_v21 = vadd.f32 %v1863_v57, %v8370_v52  ;;  %v1658_v40 = vpop.f32.mrf.mxu1 }
 0x23c   : > { %v2230_v15 = vmul.f32 0.5, %v2166_v8  ;;  %v8457_v49 = vmul.f32 %v2227_v29, %v8206_v60  ;;  %6105 = vtanh.f32 %v2040_v34  ;;  %v1737_v62 = vmul.f32 %v8442_v17, %v8442_v17 }
 0x23d   : > { %11807 = vst [vmem:[#allocation52_spill] sm:$0xff] %v8451_v24  ;;  %v2660_v45 = vmul.f32 %v2596_v31, %v8426_v14  ;;  %v6100_v63 = vpop.eup %6099  ;;  %v8463_v33 = vmul.f32 %v2228_v7, %v8227_v36  ;;  %v8466_v25 = vmul.f32 %v2229_v18, %v8256_v43  ;;  %6107 = vtanh.f32 %v1990_v5 }
 0x23e   : > { %11808 = vst [vmem:[#allocation53_spill] sm:$0xff] %v8457_v49  ;;  %v2725_v28 = vmul.f32 0.044715, %v2661_v54  ;;  %v1977_v60 = vadd.f32 %v1913_v46, %v8381_v9  ;;  %v1928_v29 = vadd.f32 %v1864_v13, %v8384_v61  ;;  %v2723_v39 = vmul.f32 0.044715, %v2659_v26 }
 0x23f   : > { %11809 = vst [vmem:[#allocation54_spill] sm:$0xff] %v8463_v33  ;;  %v2726_v41 = vmul.f32 0.044715, %v2662_v4  ;;  %v8475_v36 = vmul.f32 %v2230_v15, %v8263_v1  ;;  %v1978_v43 = vadd.f32 %v1914_v22, %v8391_v19  ;;  %v1991_v5 = vmul.f32 0.7978846, %v1927_v21 }
 0x240   : > { %11810 = vst [vmem:[#allocation55_spill] sm:$0xff] %v8466_v25  ;;  %v8470_v44 = vpop.f32.mrf.mxu2  ;;  %v8480_v54 = vadd.f32 %v8067_v56, %v8080_v11  ;;  %v2117_v46 = vadd.f32 1.0, %v6098_v32  ;;  %v8484_v13 = vadd.f32 %v8069_v12, %v8082_v2  ;;  %v1801_v7 = vmul.f32 %v1737_v62, %v8442_v17  ;;  %v8493_v56 = vpop.f32.mrf.mxu0 }
 0x241   : > { %v8472_v8 = vpop.f32.mrf.mxu3  ;;  %11811 = vst [vmem:[#allocation56_spill] sm:$0xff] %v8475_v36  ;;  %v2724_v34 = vmul.f32 0.044715, %v2660_v45  ;;  %v8488_v31 = vadd.f32 %v1658_v40, %v8082_v2  ;;  %v2789_v1 = vadd.f32 %v2725_v28, %v8405_v30  ;;  %v2977_v18 = vadd.f32 1.0, %v6100_v63 }
 0x242   : > { %11812 = vst [vmem:[#allocation57_spill] sm:$0xff] %v8480_v54  ;;  %v2041_v15 = vmul.f32 0.7978846, %v1977_v60  ;;  %v8491_v22 = vmul.f32 0.7978846, %v1928_v29  ;;  %v2787_v32 = vadd.f32 %v2723_v39, %v8413_v35  ;;  %v2790_v12 = vadd.f32 %v2726_v41, %v8417_v51 }
 0x243   : > { %11813 = vst [vmem:[#allocation58_spill] sm:$0xff] %v8484_v13  ;;  %v1787_v45 = vmul.f32 %v8480_v54, %v8480_v54  ;;  %v3041_v40 = vmul.f32 0.5, %v2977_v18  ;;  %6109 = vtanh.f32 %v1991_v5  ;;  %v1865_v63 = vmul.f32 0.044715, %v1801_v7  ;;  %v8520_v7 = vpop.f32.mrf.mxu1 }
 0x244   : > { %11814 = vst [vmem:[#allocation59_spill] sm:$0xff] %v8493_v56  ;;  %v2788_v28 = vadd.f32 %v2724_v34, %v8426_v14  ;;  %v1738_v60 = vmul.f32 %v8488_v31, %v8488_v31  ;;  %v2853_v29 = vmul.f32 0.7978846, %v2789_v1  ;;  %v2854_v18 = vmul.f32 0.7978846, %v2790_v12 }
 0x245   : > { %2479 = vmatmul.bf16.gmra.mxu2 %v7471_v47  ;;  %v8507_v39 = vmul.f32 %v3041_v40, %v8305_v20  ;;  %v8514_v5 = vadd.f32 %v8364_v50, %v8219_v42  ;;  %11817 = vst [vmem:[#allocation62_spill] sm:$0xff] %v8520_v7  ;;  %6111 = vtanh.f32 %v2041_v15  ;;  %v8534_v50 = vadd.f32 %v8198_v48, %v8219_v42 }
 0x246   : > { %2568 = vmatmul.bf16.gmra.mxu3 %v7471_v47  ;;  %v6102_v47 = vpop.eup %6101  ;;  %v1929_v12 = vadd.f32 %v1865_v63, %v8442_v17  ;;  %v1802_v40 = vmul.f32 %v1738_v60, %v8488_v31  ;;  %6113 = vtanh.f32 %v2853_v29  ;;  %v2042_v52 = vmul.f32 0.7978846, %v1978_v43  ;;  %v11819_v60 = vld [vmem:[#allocation19_spill] sm:$0xff] }
 0x247   : > { %v6104_v57 = vpop.eup %6103  ;;  %v2978_v26 = vadd.f32 1.0, %v6102_v47  ;;  %v8502_v47 = vadd.f32 %v8428_v58, %v8219_v42  ;;  %11815 = vst [vmem:[#allocation60_spill] sm:$0xff] %v8507_v39  ;;  %v8518_v58 = vadd.f32 %v8366_v10, %v8233_v59  ;;  %v3336_v20 = vmul.f32 %v8507_v39, %v8507_v39 }
 0x248   : > { %v6106_v4 = vpop.eup %6105  ;;  %v2167_v62 = vadd.f32 1.0, %v6104_v57  ;;  %v2851_v57 = vmul.f32 0.7978846, %v2787_v32  ;;  %v2852_v10 = vmul.f32 0.7978846, %v2788_v28  ;;  %6115 = vtanh.f32 %v2854_v18  ;;  %v1574_v43 = vpop.f32.mrf.mxu0 }
 0x249   : > { %v6108_v21 = vpop.eup %6107  ;;  %v3042_v61 = vmul.f32 0.5, %v2978_v26  ;;  %v2601_v1 = vmul.f32 %v8502_v47, %v8502_v47  ;;  %v8538_v26 = vpop.f32.mrf.mxu2  ;;  %v2599_v48 = vmul.f32 %v8514_v5, %v8514_v5  ;;  %v2600_v28 = vmul.f32 %v8518_v58, %v8518_v58 }
 0x24a   : > { %v8540_v32 = vpop.f32.mrf.mxu3  ;;  %v8544_v15 = vpop.eup %6109  ;;  %v2168_v19 = vadd.f32 1.0, %v6106_v4  ;;  %v1788_v9 = vmul.f32 %v8484_v13, %v8484_v13  ;;  %6117 = vtanh.f32 %v2851_v57  ;;  %v2181_v29 = vmul.f32 0.5, %v2117_v46  ;;  %v11821_v46 = vld [vmem:[#allocation32_spill] sm:$0xff] }
 0x24b   : > { %v8510_v41 = vmul.f32 %v3042_v61, %v8309_v55  ;;  %v8530_v61 = vadd.f32 %v8430_v27, %v8233_v59  ;;  %11818 = vst [vmem:[#allocation63_spill] sm:$0xff] %v8544_v15  ;;  %v2591_v18 = vmul.f32 %v8534_v50, %v8534_v50  ;;  %6119 = vtanh.f32 %v2852_v10  ;;  %v8562_v36 = vpop.eup %6111 }
 0x24c   : > { %v2118_v4 = vadd.f32 1.0, %v6108_v21  ;;  %11820 = vst [vmem:[#allocation19_spill] sm:$0xff] %v8562_v36  ;;  %v8564_v57 = vmul.f32 0.5, %v2167_v62  ;;  %v8568_v25 = vadd.f32 %v11821_v46, %v8233_v59  ;;  %v2663_v33 = vmul.f32 %v2599_v48, %v8514_v5 }
 0x24d   : > { %11816 = vst [vmem:[#allocation61_spill] sm:$0xff] %v8510_v41  ;;  %v3203_v34 = vadd.f32 %v8510_v41, %v8507_v39  ;;  %v3337_v55 = vmul.f32 %v8510_v41, %v8510_v41  ;;  %v2602_v63 = vmul.f32 %v8530_v61, %v8530_v61  ;;  %v2664_v10 = vmul.f32 %v2600_v28, %v8518_v58 }
 0x24e   : > { %6121 = vtanh.f32 %v2042_v52  ;;  %v8573_v21 = vmul.f32 %v1788_v9, %v8484_v13  ;;  %v8584_v28 = vmul.f32 %v2181_v29, %v8300_v0  ;;  %v8586_v52 = vmul.f32 0.5, %v2118_v4 }
 0x24f   : > { %3204 = vadd.xlane.f32.xlu0 %v3203_v34  ;;  %v3402_v27 = vadd.f32 %v3337_v55, %v3336_v20  ;;  %v2665_v34 = vmul.f32 %v2601_v1, %v8502_v47  ;;  %v8560_v20 = vmul.f32 %v1787_v45, %v8480_v54  ;;  %v1993_v55 = vmul.f32 0.7978846, %v1929_v12  ;;  %v6114_v1 = vpop.eup %6113 }
 0x250   : > { %v8576_v45 = vadd.f32 %v1574_v43, %v8080_v11  ;;  %v2666_v12 = vmul.f32 %v2602_v63, %v8530_v61  ;;  %v6116_v62 = vpop.eup %6115  ;;  %6123 = vtanh.f32 %v8491_v22  ;;  %v1663_v43 = vpop.f32.mrf.mxu1  ;;  %v2727_v36 = vmul.f32 0.044715, %v2663_v33 }
 0x251   : > { %3403 = vadd.xlane.f32.xlu2 %v3402_v27  ;;  %v1866_v27 = vmul.f32 0.044715, %v1802_v40  ;;  %v8579_v40 = vmul.f32 0.5, %v2168_v19  ;;  %v2729_v48 = vmul.f32 0.044715, %v2665_v34  ;;  %v6118_v46 = vpop.eup %6117  ;;  %6125 = vtanh.f32 %v1993_v55 }
 0x252   : > { %v6120_v63 = vpop.eup %6119  ;;  %v2592_v19 = vmul.f32 %v8568_v25, %v8568_v25  ;;  %v2728_v22 = vmul.f32 0.044715, %v2664_v10  ;;  %v2979_v49 = vadd.f32 1.0, %v6118_v46  ;;  %v8595_v34 = vpop.f32.mrf.mxu3  ;;  %v1741_v0 = vmul.f32 %v8576_v45, %v8576_v45 }
 0x253   : > { %v8589_v9 = vadd.f32 %v1866_v27, %v8488_v31  ;;  %v2730_v29 = vmul.f32 0.044715, %v2666_v12  ;;  %v2980_v4 = vadd.f32 1.0, %v6120_v63  ;;  %v2981_v55 = vadd.f32 1.0, %v6114_v1 }
 0x254   : > { %v2793_v24 = vadd.f32 %v2729_v48, %v8502_v47  ;;  %v3043_v7 = vmul.f32 0.5, %v2979_v49  ;;  %v8602_v56 = vadd.f32 %v8470_v44, %v8219_v42  ;;  %v8604_v33 = vpop.eup %6121  ;;  %v8607_v10 = vadd.f32 %v1663_v43, %v8082_v2 }
 0x255   : > { %2484 = vmatmul.bf16.gmra.mxu2 %v11819_v60  ;;  %11822 = vst [vmem:[#allocation32_spill] sm:$0xff] %v8604_v33  ;;  %v3044_v46 = vmul.f32 0.5, %v2980_v4  ;;  %v8611_v6 = vadd.f32 %v8472_v8, %v8233_v59  ;;  %v2982_v12 = vadd.f32 1.0, %v6116_v62  ;;  %v2791_v49 = vadd.f32 %v2727_v36, %v8514_v5 }
 0x256   : > { %2573 = vmatmul.bf16.gmra.mxu3 %v11819_v60  ;;  %v2655_v60 = vmul.f32 %v2591_v18, %v8534_v50  ;;  %v8593_v18 = vpop.f32.mrf.mxu2  ;;  %v8613_v1 = vpop.eup %6123  ;;  %v2792_v44 = vadd.f32 %v2728_v22, %v8518_v58  ;;  %v8619_v48 = vmul.f32 %v3043_v7, %v8413_v35  ;;  %v1805_v43 = vmul.f32 %v1741_v0, %v8576_v45 }
 0x257   : > { %11823 = vst [vmem:[#allocation64_spill] sm:$0xff] %v8613_v1  ;;  %v6126_v63 = vpop.eup %6125  ;;  %v2794_v4 = vadd.f32 %v2730_v29, %v8530_v61  ;;  %v8624_v8 = vmul.f32 %v3044_v46, %v8426_v14  ;;  %v3045_v62 = vmul.f32 0.5, %v2981_v55  ;;  %v2857_v33 = vmul.f32 0.7978846, %v2793_v24  ;;  %v8631_v35 = vpop.f32.mrf.mxu0 }
 0x258   : > { %v2719_v27 = vmul.f32 0.044715, %v2655_v60  ;;  %v2656_v60 = vmul.f32 %v2592_v19, %v8568_v25  ;;  %11824 = vst [vmem:[#allocation65_spill] sm:$0xff] %v8619_v48  ;;  %v3338_v36 = vmul.f32 %v8619_v48, %v8619_v48  ;;  %v2603_v19 = vmul.f32 %v8602_v56, %v8602_v56 }
 0x259   : > { %11825 = vst [vmem:[#allocation66_spill] sm:$0xff] %v8624_v8  ;;  %v3206_v7 = vadd.f32 %v8624_v8, %v8619_v48  ;;  %v3339_v22 = vmul.f32 %v8624_v8, %v8624_v8  ;;  %v2604_v14 = vmul.f32 %v8611_v6, %v8611_v6  ;;  %v3046_v0 = vmul.f32 0.5, %v2982_v12 }
 0x25a   : > { %v2783_v1 = vadd.f32 %v2719_v27, %v8534_v50  ;;  %11826 = vst [vmem:[#allocation67_spill] sm:$0xff] %v8631_v35  ;;  %v2720_v29 = vmul.f32 0.044715, %v2656_v60  ;;  %v2855_v24 = vmul.f32 0.7978846, %v2791_v49  ;;  %v8640_v27 = vmul.f32 %v3045_v62, %v8405_v30  ;;  %v8644_v16 = vpop.f32.mrf.mxu3  ;;  %v11829_v49 = vld [vmem:[#allocation20_spill] sm:$0xff] }
 0x25b   : > { %v2856_v55 = vmul.f32 0.7978846, %v2792_v44  ;;  %v2858_v35 = vmul.f32 0.7978846, %v2794_v4  ;;  %3207 = vadd.xlane.f32.xlu1 %v3206_v7  ;;  %v3405_v48 = vadd.f32 %v3339_v22, %v3338_v36  ;;  %v8647_v41 = vmul.f32 %v3046_v0, %v8417_v51  ;;  %v8662_v51 = vpop.f32.mrf.mxu1 }
 0x25c   : > { %11827 = vst [vmem:[#allocation68_spill] sm:$0xff] %v8640_v27  ;;  %v8651_v8 = vadd.f32 %v8538_v26, %v8219_v42  ;;  %6127 = vtanh.f32 %v2857_v33  ;;  %v2667_v12 = vmul.f32 %v2603_v19, %v8602_v56  ;;  %v3340_v30 = vmul.f32 %v8640_v27, %v8640_v27 }
 0x25d   : > { %11828 = vst [vmem:[#allocation69_spill] sm:$0xff] %v8647_v41  ;;  %v8658_v60 = vadd.f32 %v8540_v32, %v8233_v59  ;;  %3406 = vadd.xlane.f32.xlu0 %v3405_v48  ;;  %v2668_v26 = vmul.f32 %v2604_v14, %v8611_v6  ;;  %v3209_v33 = vadd.f32 %v8647_v41, %v8640_v27  ;;  %v1994_v32 = vmul.f32 0.7978846, %v8589_v9 }
 0x25e   : > { %v8642_v46 = vpop.f32.mrf.mxu2  ;;  %11830 = vst [vmem:[#allocation20_spill] sm:$0xff] %v8662_v51  ;;  %v3341_v44 = vmul.f32 %v8647_v41, %v8647_v41  ;;  %v2605_v4 = vmul.f32 %v8651_v8, %v8651_v8  ;;  %v1742_v62 = vmul.f32 %v8607_v10, %v8607_v10  ;;  %6129 = vtanh.f32 %v2855_v24 }
 0x25f   : > { %v2606_v36 = vmul.f32 %v8658_v60, %v8658_v60  ;;  %v2784_v48 = vadd.f32 %v2720_v29, %v8568_v25  ;;  %3210 = vadd.xlane.f32.xlu2 %v3209_v33  ;;  %6131 = vtanh.f32 %v2856_v55  ;;  %v1869_v22 = vmul.f32 0.044715, %v1805_v43 }
 0x260   : > { %v3408_v19 = vadd.f32 %v3341_v44, %v3340_v30  ;;  %v2669_v7 = vmul.f32 %v2605_v4, %v8651_v8  ;;  %6133 = vtanh.f32 %v2858_v35  ;;  %v8681_v9 = vadd.f32 %v8593_v18, %v8219_v42 }
 0x261   : > { %v2670_v14 = vmul.f32 %v2606_v36, %v8658_v60  ;;  %v2847_v0 = vmul.f32 0.7978846, %v2783_v1  ;;  %v2732_v51 = vmul.f32 0.044715, %v2668_v26  ;;  %v8685_v24 = vadd.f32 %v8595_v34, %v8233_v59  ;;  %v8701_v26 = vpop.f32.mrf.mxu0 }
 0x262   : > { %v6128_v29 = vpop.eup %6127  ;;  %v8689_v30 = vmul.f32 %v8564_v57, %v8317_v53  ;;  %v8692_v43 = vmul.f32 0.044715, %v8560_v20  ;;  %v8695_v35 = vmul.f32 0.044715, %v8573_v21  ;;  %v2733_v18 = vmul.f32 0.044715, %v2669_v7  ;;  %v8699_v1 = vpop.f32.mrf.mxu3 }
 0x263   : > { %v2848_v34 = vmul.f32 0.7978846, %v2784_v48  ;;  %3409 = vadd.xlane.f32.xlu1 %v3408_v19  ;;  %v2734_v33 = vmul.f32 0.044715, %v2670_v14  ;;  %v2607_v53 = vmul.f32 %v8681_v9, %v8681_v9  ;;  %v8707_v20 = vmul.f32 %v8586_v52, %v8323_v3 }
 0x264   : > { %11831 = vst [vmem:[#allocation70_spill] sm:$0xff] %v8689_v30  ;;  %v6130_v57 = vpop.eup %6129  ;;  %6135 = vtanh.f32 %v1994_v32  ;;  %v1933_v21 = vadd.f32 %v1869_v22, %v8576_v45  ;;  %v1806_v44 = vmul.f32 %v1742_v62, %v8607_v10  ;;  %v2796_v36 = vadd.f32 %v2732_v51, %v8611_v6  ;;  %v8718_v22 = vpop.f32.mrf.mxu1 }
 0x265   : > { %2489 = vmatmul.bf16.gmra.mxu2 %v11829_v49  ;;  %11832 = vst [vmem:[#allocation71_spill] sm:$0xff] %v8695_v35  ;;  %v6132_v4 = vpop.eup %6131  ;;  %6137 = vtanh.f32 %v2847_v0  ;;  %v2608_v48 = vmul.f32 %v8685_v24, %v8685_v24  ;;  %v2797_v7 = vadd.f32 %v2733_v18, %v8651_v8  ;;  %v2983_v14 = vadd.f32 1.0, %v6130_v57 }
 0x266   : > { %2578 = vmatmul.bf16.gmra.mxu3 %v11829_v49  ;;  %v2731_v49 = vmul.f32 0.044715, %v2667_v12  ;;  %v8697_v55 = vpop.f32.mrf.mxu2  ;;  %v2121_v12 = vadd.f32 1.0, %v6126_v63  ;;  %v6134_v19 = vpop.eup %6133  ;;  %v2984_v3 = vadd.f32 1.0, %v6132_v4  ;;  %v2985_v52 = vadd.f32 1.0, %v6128_v29 }
 0x267   : > { %6139 = vtanh.f32 %v2848_v34  ;;  %v2798_v62 = vadd.f32 %v2734_v33, %v8658_v60  ;;  %v2671_v0 = vmul.f32 %v2607_v53, %v8681_v9  ;;  %v1870_v51 = vmul.f32 0.044715, %v1806_v44 }
 0x268   : > { %v2795_v63 = vadd.f32 %v2731_v49, %v8602_v56  ;;  %v8716_v32 = vmul.f32 0.5, %v2121_v12  ;;  %v1997_v49 = vmul.f32 0.7978846, %v1933_v21  ;;  %v3047_v30 = vmul.f32 0.5, %v2983_v14 }
 0x269   : > { %v3048_v41 = vmul.f32 0.5, %v2984_v3  ;;  %v2860_v39 = vmul.f32 0.7978846, %v2796_v36  ;;  %v2672_v18 = vmul.f32 %v2608_v48, %v8685_v24  ;;  %v2986_v57 = vadd.f32 1.0, %v6134_v19  ;;  %v11836_v19 = vld [vmem:[#allocation21_spill] sm:$0xff]  ;;  %v8749_v3 = vpop.f32.mrf.mxu0 }
 0x26a   : > { %v2859_v27 = vmul.f32 0.7978846, %v2795_v63  ;;  %v8723_v4 = vpop.eup %6135  ;;  %v2861_v29 = vmul.f32 0.7978846, %v2797_v7  ;;  %v8726_v12 = vmul.f32 %v3047_v30, %v8514_v5  ;;  %v3049_v33 = vmul.f32 0.5, %v2985_v52  ;;  %v8733_v21 = vpop.f32.mrf.mxu3  ;;  %11837 = vst [vmem:[#allocation21_spill] sm:$0xff] %v8749_v3 }
 0x26b   : > { %v8729_v34 = vmul.f32 %v3048_v41, %v8518_v58  ;;  %v6138_v44 = vpop.eup %6137  ;;  %v2862_v63 = vmul.f32 0.7978846, %v2798_v62  ;;  %v2735_v36 = vmul.f32 0.044715, %v2671_v0  ;;  %v3050_v14 = vmul.f32 0.5, %v2986_v57 }
 0x26c   : > { %11833 = vst [vmem:[#allocation72_spill] sm:$0xff] %v8726_v12  ;;  %v8737_v48 = vadd.f32 %v8642_v46, %v8219_v42  ;;  %v3342_v41 = vmul.f32 %v8726_v12, %v8726_v12  ;;  %v8746_v30 = vmul.f32 %v3049_v33, %v8502_v47  ;;  %v2736_v52 = vmul.f32 0.044715, %v2672_v18 }
 0x26d   : > { %11834 = vst [vmem:[#allocation73_spill] sm:$0xff] %v8729_v34  ;;  %v3212_v5 = vadd.f32 %v8729_v34, %v8726_v12  ;;  %v3343_v58 = vmul.f32 %v8729_v34, %v8729_v34  ;;  %v6140_v7 = vpop.eup %6139  ;;  %v8752_v46 = vmul.f32 %v3050_v14, %v8530_v61  ;;  %v8758_v0 = vadd.f32 %v8644_v16, %v8233_v59 }
 0x26e   : > { %v8731_v53 = vpop.f32.mrf.mxu2  ;;  %11835 = vst [vmem:[#allocation74_spill] sm:$0xff] %v8746_v30  ;;  %v2609_v62 = vmul.f32 %v8737_v48, %v8737_v48  ;;  %v3344_v57 = vmul.f32 %v8746_v30, %v8746_v30  ;;  %6141 = vtanh.f32 %v2859_v27  ;;  %v2975_v33 = vadd.f32 1.0, %v6138_v44  ;;  %v8774_v44 = vpop.f32.mrf.mxu1 }
 0x26f   : > { %11838 = vst [vmem:[#allocation75_spill] sm:$0xff] %v8752_v46  ;;  %3213 = vadd.xlane.f32.xlu0 %v3212_v5  ;;  %v3411_v47 = vadd.f32 %v3343_v58, %v3342_v41  ;;  %v3215_v61 = vadd.f32 %v8752_v46, %v8746_v30  ;;  %v3345_v18 = vmul.f32 %v8752_v46, %v8752_v46  ;;  %6143 = vtanh.f32 %v2860_v39 }
 0x270   : > { %v2673_v14 = vmul.f32 %v2609_v62, %v8737_v48  ;;  %v2610_v16 = vmul.f32 %v8758_v0, %v8758_v0  ;;  %v2799_v5 = vadd.f32 %v2735_v36, %v8681_v9  ;;  %v2976_v41 = vadd.f32 1.0, %v6140_v7  ;;  %11839 = vst [vmem:[#allocation76_spill] sm:$0xff] %v8774_v44 }
 0x271   : > { %3412 = vadd.xlane.f32.xlu2 %v3411_v47  ;;  %v3039_v58 = vmul.f32 0.5, %v2975_v33  ;;  %v8772_v27 = vadd.f32 %v1870_v51, %v8607_v10  ;;  %6145 = vtanh.f32 %v2861_v29  ;;  %3216 = vadd.xlane.f32.xlu1 %v3215_v61  ;;  %v3414_v62 = vadd.f32 %v3345_v18, %v3344_v57 }
 0x272   : > { %v2674_v3 = vmul.f32 %v2610_v16, %v8758_v0  ;;  %6147 = vtanh.f32 %v2862_v63  ;;  %v3040_v46 = vmul.f32 0.5, %v2976_v41  ;;  %v8782_v39 = vpop.f32.mrf.mxu3  ;;  %v2800_v51 = vadd.f32 %v2736_v52, %v8685_v24  ;;  %v8808_v41 = vpop.f32.mrf.mxu0 }
 0x273   : > { %v8778_v47 = vmul.f32 %v3039_v58, %v8534_v50  ;;  %6149 = vtanh.f32 %v1997_v49  ;;  %v2863_v61 = vmul.f32 0.7978846, %v2799_v5  ;;  %v8793_v50 = vadd.f32 %v8697_v55, %v8219_v42 }
 0x274   : > { %v2738_v29 = vmul.f32 0.044715, %v2674_v3  ;;  %v6142_v33 = vpop.eup %6141  ;;  %v3332_v52 = vmul.f32 %v8387_v37, %v8387_v37  ;;  %v8806_v55 = vadd.f32 %v8699_v1, %v8233_v59  ;;  %v2864_v58 = vmul.f32 0.7978846, %v2800_v51 }
 0x275   : > { %2494 = vmatmul.bf16.gmra.mxu2 %v11836_v19  ;;  %11840 = vst [vmem:[#allocation77_spill] sm:$0xff] %v8778_v47  ;;  %v3334_v63 = vmul.f32 %v8778_v47, %v8778_v47  ;;  %v2987_v18 = vadd.f32 1.0, %v6142_v33  ;;  %v6144_v3 = vpop.eup %6143  ;;  %v2611_v16 = vmul.f32 %v8793_v50, %v8793_v50  ;;  %v8820_v51 = vadd.f32 %v8731_v53, %v8219_v42 }
 0x276   : > { %2583 = vmatmul.bf16.gmra.mxu3 %v11836_v19  ;;  %v2737_v19 = vmul.f32 0.044715, %v2673_v14  ;;  %v8780_v36 = vpop.f32.mrf.mxu2  ;;  %v8787_v14 = vmul.f32 %v3040_v46, %v8568_v25  ;;  %v2802_v49 = vadd.f32 %v2738_v29, %v8758_v0  ;;  %v3333_v46 = vmul.f32 %v8397_v23, %v8397_v23  ;;  %v8832_v53 = vpop.f32.mrf.mxu1 }
 0x277   : > { %3415 = vadd.xlane.f32.xlu0 %v3414_v62  ;;  %v6146_v5 = vpop.eup %6145  ;;  %v3051_v62 = vmul.f32 0.5, %v2987_v18  ;;  %v2675_v44 = vmul.f32 %v2611_v16, %v8793_v50  ;;  %v2612_v30 = vmul.f32 %v8806_v55, %v8806_v55 }
 0x278   : > { %v2801_v7 = vadd.f32 %v2737_v19, %v8737_v48  ;;  %11841 = vst [vmem:[#allocation78_spill] sm:$0xff] %v8787_v14  ;;  %v3335_v25 = vmul.f32 %v8787_v14, %v8787_v14  ;;  %v2866_v19 = vmul.f32 0.7978846, %v2802_v49  ;;  %v6148_v29 = vpop.eup %6147  ;;  %v3396_v49 = vadd.f32 %v3333_v46, %v3332_v52 }
 0x279   : > { %v8813_v34 = vpop.eup %6149  ;;  %v8816_v12 = vmul.f32 %v3051_v62, %v8602_v56  ;;  %v2989_v18 = vadd.f32 1.0, %v6146_v5  ;;  %v2613_v56 = vmul.f32 %v8820_v51, %v8820_v51  ;;  %v2990_v16 = vadd.f32 1.0, %v6148_v29 }
 0x27a   : > { %v2865_v57 = vmul.f32 0.7978846, %v2801_v7  ;;  %v2988_v7 = vadd.f32 1.0, %v6144_v3  ;;  %v3399_v33 = vadd.f32 %v3335_v25, %v3334_v63  ;;  %v2676_v63 = vmul.f32 %v2612_v30, %v8806_v55  ;;  %v2544_v46 = vpop.f32.mrf.mxu3 }
 0x27b   : > { %11842 = vst [vmem:[#allocation79_spill] sm:$0xff] %v8816_v12  ;;  %v2739_v25 = vmul.f32 0.044715, %v2675_v44  ;;  %v3346_v30 = vmul.f32 %v8816_v12, %v8816_v12  ;;  %v3053_v52 = vmul.f32 0.5, %v2989_v18  ;;  %v2677_v5 = vmul.f32 %v2613_v56, %v8820_v51 }
 0x27c   : > { %6151 = vtanh.f32 %v2865_v57  ;;  %v3052_v1 = vmul.f32 0.5, %v2988_v7  ;;  %3400 = vadd.xlane.f32.xlu1 %v3399_v33  ;;  %v8825_v57 = vadd.f32 %v8733_v21, %v8233_v59  ;;  %v2740_v7 = vmul.f32 0.044715, %v2676_v63 }
 0x27d   : > { %6153 = vtanh.f32 %v2866_v19  ;;  %v3054_v62 = vmul.f32 0.5, %v2990_v16  ;;  %v8845_v33 = vadd.f32 %v8701_v26, %v8080_v11  ;;  %v8853_v18 = vmul.f32 %v3053_v52, %v8651_v8 }
 0x27e   : > { %v8828_v3 = vmul.f32 %v3052_v1, %v8611_v6  ;;  %v2455_v19 = vpop.f32.mrf.mxu2  ;;  %v2614_v21 = vmul.f32 %v8825_v57, %v8825_v57  ;;  %v8849_v1 = vadd.f32 %v8718_v22, %v8082_v2  ;;  %v3200_v56 = vadd.f32 %v8787_v14, %v8778_v47 }
 0x27f   : > { %3397 = vadd.xlane.f32.xlu0 %v3396_v49  ;;  %11844 = vst [vmem:[#allocation81_spill] sm:$0xff] %v8853_v18  ;;  %v2741_v16 = vmul.f32 0.044715, %v2677_v5  ;;  %6155 = vtanh.f32 %v2863_v61  ;;  %v2803_v26 = vadd.f32 %v2739_v25, %v8793_v50  ;;  %v8861_v49 = vpop.f32.mrf.mxu0  ;;  %v2804_v8 = vadd.f32 %v2740_v7, %v8806_v55 }
 0x280   : > { %11843 = vst [vmem:[#allocation80_spill] sm:$0xff] %v8828_v3  ;;  %v3218_v6 = vadd.f32 %v8828_v3, %v8816_v12  ;;  %v3347_v44 = vmul.f32 %v8828_v3, %v8828_v3  ;;  %v2678_v63 = vmul.f32 %v2614_v21, %v8825_v57  ;;  %v8858_v3 = vmul.f32 %v3054_v62, %v8658_v60 }
 0x281   : > { %6157 = vtanh.f32 %v2864_v58  ;;  %11846 = vst [vmem:[#allocation83_spill] sm:$0xff] %v8861_v49  ;;  %v2805_v21 = vadd.f32 %v2741_v16, %v8820_v51  ;;  %v3348_v52 = vmul.f32 %v8853_v18, %v8853_v18  ;;  %v8874_v61 = vadd.f32 %v8782_v39, %v8233_v59 }
 0x282   : > { %v6152_v29 = vpop.eup %6151  ;;  %3219 = vadd.xlane.f32.xlu2 %v3218_v6  ;;  %11845 = vst [vmem:[#allocation82_spill] sm:$0xff] %v8858_v3  ;;  %v3417_v22 = vadd.f32 %v3347_v44, %v3346_v30  ;;  %v2742_v23 = vmul.f32 0.044715, %v2678_v63  ;;  %v8869_v6 = vadd.f32 %v8780_v36, %v8219_v42  ;;  %v3349_v7 = vmul.f32 %v8858_v3, %v8858_v3 }
 0x283   : > { %v6154_v12 = vpop.eup %6153  ;;  %v2993_v58 = vadd.f32 1.0, %v6152_v29  ;;  %v2869_v30 = vmul.f32 0.7978846, %v2805_v21  ;;  %v8881_v5 = vadd.f32 %v2455_v19, %v8219_v42  ;;  %v8889_v16 = vadd.f32 %v2544_v46, %v8233_v59 }
 0x284   : > { %3418 = vadd.xlane.f32.xlu1 %v3417_v22  ;;  %v2806_v60 = vadd.f32 %v2742_v23, %v8825_v57  ;;  %v2994_v25 = vadd.f32 1.0, %v6154_v12  ;;  %v2615_v44 = vmul.f32 %v8869_v6, %v8869_v6  ;;  %v2616_v23 = vmul.f32 %v8874_v61, %v8874_v61 }
 0x285   : > { %v3057_v62 = vmul.f32 0.5, %v2993_v58  ;;  %v6156_v39 = vpop.eup %6155  ;;  %6159 = vtanh.f32 %v2869_v30  ;;  %v2617_v29 = vmul.f32 %v8881_v5, %v8881_v5  ;;  %v1745_v19 = vmul.f32 %v8845_v33, %v8845_v33 }
 0x286   : > { %v2870_v36 = vmul.f32 0.7978846, %v2806_v60  ;;  %v3058_v63 = vmul.f32 0.5, %v2994_v25  ;;  %v2679_v12 = vmul.f32 %v2615_v44, %v8869_v6  ;;  %v2457_v22 = vpop.f32.mrf.mxu2  ;;  %v8893_v60 = vpop.f32.mrf.mxu1  ;;  %v2867_v49 = vmul.f32 0.7978846, %v2803_v26 }
 0x287   : > { %v6158_v21 = vpop.eup %6157  ;;  %11847 = vst [vmem:[#allocation84_spill] sm:$0xff] %v8893_v60  ;;  %v2991_v58 = vadd.f32 1.0, %v6156_v39  ;;  %v2546_v25 = vpop.f32.mrf.mxu3  ;;  %v3420_v44 = vadd.f32 %v3349_v7, %v3348_v52  ;;  %v2680_v14 = vmul.f32 %v2616_v23, %v8874_v61  ;;  %v2681_v47 = vmul.f32 %v2617_v29, %v8881_v5 }
 0x288   : > { %6161 = vtanh.f32 %v2870_v36  ;;  %v2992_v30 = vadd.f32 1.0, %v6158_v21  ;;  %v2743_v37 = vmul.f32 0.044715, %v2679_v12  ;;  %v8898_v15 = vmul.f32 %v3057_v62, %v8737_v48  ;;  %v8912_v12 = vpop.f32.mrf.mxu0 }
 0x289   : > { %v3055_v46 = vmul.f32 0.5, %v2991_v58  ;;  %v2618_v35 = vmul.f32 %v8889_v16, %v8889_v16  ;;  %v1746_v26 = vmul.f32 %v8849_v1, %v8849_v1  ;;  %v2868_v36 = vmul.f32 0.7978846, %v2804_v8 }
 0x28a   : > { %3201 = vadd.xlane.f32.xlu2 %v3200_v56  ;;  %11848 = vst [vmem:[#allocation85_spill] sm:$0xff] %v8898_v15  ;;  %v3056_v39 = vmul.f32 0.5, %v2992_v30  ;;  %v8905_v56 = vmul.f32 %v3058_v63, %v8758_v0  ;;  %v1809_v52 = vmul.f32 %v1745_v19, %v8845_v33  ;;  %v2745_v23 = vmul.f32 0.044715, %v2681_v47 }
 0x28b   : > { %v8909_v7 = vmul.f32 %v3055_v46, %v8681_v9  ;;  %v2682_v48 = vmul.f32 %v2618_v35, %v8889_v16  ;;  %v6160_v62 = vpop.eup %6159  ;;  %v3221_v29 = vadd.f32 %v8858_v3, %v8853_v18  ;;  %v2744_v0 = vmul.f32 0.044715, %v2680_v14 }
 0x28c   : > { %11849 = vst [vmem:[#allocation86_spill] sm:$0xff] %v8905_v56  ;;  %3421 = vadd.xlane.f32.xlu1 %v3420_v44  ;;  %v8917_v8 = vmul.f32 %v3056_v39, %v8685_v24  ;;  %6163 = vtanh.f32 %v2867_v49  ;;  %v2807_v21 = vadd.f32 %v2743_v37, %v8869_v6  ;;  %v3352_v9 = vmul.f32 %v8898_v15, %v8898_v15 }
 0x28d   : > { %11850 = vst [vmem:[#allocation87_spill] sm:$0xff] %v8909_v7  ;;  %v2809_v47 = vadd.f32 %v2745_v23, %v8881_v5  ;;  %v2746_v35 = vmul.f32 0.044715, %v2682_v48  ;;  %v3227_v58 = vadd.f32 %v8905_v56, %v8898_v15  ;;  %6165 = vtanh.f32 %v2868_v36 }
 0x28e   : > { %11851 = vst [vmem:[#allocation88_spill] sm:$0xff] %v8917_v8  ;;  %v6162_v63 = vpop.eup %6161  ;;  %v3224_v19 = vadd.f32 %v8917_v8, %v8909_v7  ;;  %v8928_v24 = vadd.f32 %v2457_v22, %v8219_v42  ;;  %v3353_v14 = vmul.f32 %v8905_v56, %v8905_v56  ;;  %v8934_v30 = vadd.f32 %v2546_v25, %v8233_v59  ;;  %v8939_v22 = vpop.f32.mrf.mxu2 }
 0x28f   : > { %v2873_v37 = vmul.f32 0.7978846, %v2809_v47  ;;  %v2810_v49 = vadd.f32 %v2746_v35, %v8889_v16  ;;  %v1810_v44 = vmul.f32 %v1746_v26, %v8849_v1  ;;  %v2997_v36 = vadd.f32 1.0, %v6160_v62  ;;  %11852 = vst [vmem:[#allocation89_spill] sm:$0xff] %v8939_v22  ;;  %v8949_v47 = vpop.f32.mrf.mxu1 }
 0x290   : > { %3225 = vadd.xlane.f32.xlu0 %v3224_v19  ;;  %v2619_v46 = vmul.f32 %v8928_v24, %v8928_v24  ;;  %v2998_v39 = vadd.f32 1.0, %v6162_v63  ;;  %v1873_v23 = vmul.f32 0.044715, %v1809_v52  ;;  %v8943_v48 = vadd.f32 %v8808_v41, %v8080_v11  ;;  %v8964_v22 = vpop.f32.mrf.mxu0 }
 0x291   : > { %v8947_v25 = vadd.f32 %v8832_v53, %v8082_v2  ;;  %v2874_v26 = vmul.f32 0.7978846, %v2810_v49  ;;  %v2808_v62 = vadd.f32 %v2744_v0, %v8874_v61  ;;  %v3350_v63 = vmul.f32 %v8909_v7, %v8909_v7  ;;  %11854 = vst [vmem:[#allocation91_spill] sm:$0xff] %v8964_v22 }
 0x292   : > { %3222 = vadd.xlane.f32.xlu2 %v3221_v29  ;;  %v8951_v29 = vpop.f32.mrf.mxu3  ;;  %v6164_v35 = vpop.eup %6163  ;;  %v3351_v52 = vmul.f32 %v8917_v8, %v8917_v8  ;;  %v2620_v41 = vmul.f32 %v8934_v30, %v8934_v30  ;;  %v2871_v19 = vmul.f32 0.7978846, %v2807_v21  ;;  %v3426_v53 = vadd.f32 %v3353_v14, %v3352_v9 }
 0x293   : > { %11853 = vst [vmem:[#allocation90_spill] sm:$0xff] %v8951_v29  ;;  %6167 = vtanh.f32 %v2873_v37  ;;  %v2995_v60 = vadd.f32 1.0, %v6164_v35  ;;  %v6166_v49 = vpop.eup %6165  ;;  %v2683_v56 = vmul.f32 %v2619_v46, %v8928_v24  ;;  %v3061_v15 = vmul.f32 0.5, %v2997_v36 }
 0x294   : > { %3228 = vadd.xlane.f32.xlu1 %v3227_v58  ;;  %6169 = vtanh.f32 %v2874_v26  ;;  %v3062_v0 = vmul.f32 0.5, %v2998_v39  ;;  %v1998_v3 = vmul.f32 0.7978846, %v8772_v27  ;;  %v1874_v7 = vmul.f32 0.044715, %v1810_v44 }
 0x295   : > { %v2996_v18 = vadd.f32 1.0, %v6166_v49  ;;  %v3059_v29 = vmul.f32 0.5, %v2995_v60  ;;  %v1749_v8 = vmul.f32 %v8943_v48, %v8943_v48  ;;  %v2872_v21 = vmul.f32 0.7978846, %v2808_v62 }
 0x296   : > { %v3423_v9 = vadd.f32 %v3351_v52, %v3350_v63  ;;  %v2684_v58 = vmul.f32 %v2620_v41, %v8934_v30  ;;  %v1937_v14 = vadd.f32 %v1873_v23, %v8845_v33  ;;  %v1750_v37 = vmul.f32 %v8947_v25, %v8947_v25 }
 0x297   : > { %v3060_v46 = vmul.f32 0.5, %v2996_v18  ;;  %v8971_v27 = vmul.f32 %v3059_v29, %v8793_v50  ;;  %v2747_v60 = vmul.f32 0.044715, %v2683_v56  ;;  %v8974_v44 = vmul.f32 %v3061_v15, %v8820_v51  ;;  %v8993_v29 = vpop.f32.mrf.mxu2 }
 0x298   : > { %3427 = vadd.xlane.f32.xlu0 %v3426_v53  ;;  %v8977_v36 = vmul.f32 %v3062_v0, %v8825_v57  ;;  %6171 = vtanh.f32 %v2871_v19  ;;  %v8981_v23 = vmul.f32 %v8716_v32, %v8442_v17  ;;  %v8984_v18 = vadd.f32 1.0, %v8723_v4 }
 0x299   : > { %11855 = vst [vmem:[#allocation92_spill] sm:$0xff] %v8971_v27  ;;  %v6168_v39 = vpop.eup %6167  ;;  %v8987_v50 = vmul.f32 %v3060_v46, %v8806_v55  ;;  %v3354_v56 = vmul.f32 %v8971_v27, %v8971_v27  ;;  %v1938_v51 = vadd.f32 %v1874_v7, %v8849_v1  ;;  %v1813_v57 = vmul.f32 %v1749_v8, %v8943_v48  ;;  %v9000_v55 = vpop.f32.mrf.mxu1 }
 0x29a   : > { %3424 = vadd.xlane.f32.xlu2 %v3423_v9  ;;  %11856 = vst [vmem:[#allocation93_spill] sm:$0xff] %v8974_v44  ;;  %v6170_v15 = vpop.eup %6169  ;;  %v2748_v26 = vmul.f32 0.044715, %v2684_v58  ;;  %6173 = vtanh.f32 %v2872_v21  ;;  %v2001_v17 = vmul.f32 0.7978846, %v1937_v14  ;;  %v1814_v32 = vmul.f32 %v1750_v37, %v8947_v25  ;;  %v9004_v62 = vpop.f32.mrf.mxu3 }
 0x29b   : > { %11857 = vst [vmem:[#allocation94_spill] sm:$0xff] %v8977_v36  ;;  %v8998_v4 = vadd.f32 %v8912_v12, %v8080_v11  ;;  %v3355_v35 = vmul.f32 %v8987_v50, %v8987_v50  ;;  %6175 = vtanh.f32 %v1998_v3  ;;  %v3230_v7 = vadd.f32 %v8987_v50, %v8971_v27  ;;  %v1594_v37 = vpop.f32.mrf.mxu0 }
 0x29c   : > { %11858 = vst [vmem:[#allocation95_spill] sm:$0xff] %v8987_v50  ;;  %v2811_v8 = vadd.f32 %v2747_v60, %v8928_v24  ;;  %v3233_v63 = vadd.f32 %v8977_v36, %v8974_v44  ;;  %v2125_v52 = vadd.f32 1.0, %v8813_v34  ;;  %v3001_v41 = vadd.f32 1.0, %v6168_v39 }
 0x29d   : > { %11859 = vst [vmem:[#allocation96_spill] sm:$0xff] %v9000_v55  ;;  %v3429_v12 = vadd.f32 %v3355_v35, %v3354_v56  ;;  %v3002_v19 = vadd.f32 1.0, %v6170_v15  ;;  %v2002_v49 = vmul.f32 0.7978846, %v1938_v51  ;;  %v1877_v0 = vmul.f32 0.044715, %v1813_v57 }
 0x29e   : > { %v6172_v53 = vpop.eup %6171  ;;  %v9014_v21 = vadd.f32 %v8949_v47, %v8082_v2  ;;  %v2812_v3 = vadd.f32 %v2748_v26, %v8934_v30  ;;  %6177 = vtanh.f32 %v2001_v17  ;;  %v1878_v9 = vmul.f32 0.044715, %v1814_v32 }
 0x29f   : > { %v1753_v58 = vmul.f32 %v8998_v4, %v8998_v4  ;;  %3430 = vadd.xlane.f32.xlu1 %v3429_v12  ;;  %v2999_v14 = vadd.f32 1.0, %v6172_v53  ;;  %v2875_v46 = vmul.f32 0.7978846, %v2811_v8  ;;  %v3356_v60 = vmul.f32 %v8974_v44, %v8974_v44  ;;  %v2465_v53 = vpop.f32.mrf.mxu2 }
 0x2a0   : > { %v6174_v34 = vpop.eup %6173  ;;  %3234 = vadd.xlane.f32.xlu0 %v3233_v63  ;;  %v3357_v47 = vmul.f32 %v8977_v36, %v8977_v36  ;;  %v3065_v15 = vmul.f32 0.5, %v3001_v41  ;;  %v3066_v51 = vmul.f32 0.5, %v3002_v19  ;;  %6179 = vtanh.f32 %v2002_v49 }
 0x2a1   : > { %v3000_v39 = vadd.f32 1.0, %v6174_v34  ;;  %v3063_v56 = vmul.f32 0.5, %v2999_v14  ;;  %v6176_v57 = vpop.eup %6175  ;;  %v1941_v26 = vadd.f32 %v1877_v0, %v8943_v48  ;;  %v1754_v17 = vmul.f32 %v9014_v21, %v9014_v21  ;;  %v1683_v0 = vpop.f32.mrf.mxu1 }
 0x2a2   : > { %3231 = vadd.xlane.f32.xlu2 %v3230_v7  ;;  %v2876_v32 = vmul.f32 0.7978846, %v2812_v3  ;;  %v9027_v35 = vadd.f32 %v1594_v37, %v8080_v11  ;;  %v6654_v63 = vmov 256.0   ;;  %v1942_v12 = vadd.f32 %v1878_v9, %v8947_v25  ;;  %v2554_v9 = vpop.f32.mrf.mxu3 }
 0x2a3   : > { %v3064_v7 = vmul.f32 0.5, %v3000_v39  ;;  %v9030_v8 = vmul.f32 %v3063_v56, %v8869_v6  ;;  %6181 = vrcp.f32 %v6654_v63  ;;  %v1817_v41 = vmul.f32 %v1753_v58, %v8998_v4 }
 0x2a4   : > { %v3432_v19 = vadd.f32 %v3357_v47, %v3356_v60  ;;  %6183 = vtanh.f32 %v2875_v46  ;;  %v6178_v49 = vpop.eup %6177  ;;  %v9040_v6 = vmul.f32 %v3065_v15, %v8881_v5  ;;  %v9043_v34 = vmul.f32 %v3066_v51, %v8889_v16 }
 0x2a5   : > { %11860 = vst [vmem:[#allocation97_spill] sm:$0xff] %v9030_v8  ;;  %v9035_v3 = vmul.f32 %v3064_v7, %v8874_v61  ;;  %v3358_v14 = vmul.f32 %v9030_v8, %v9030_v8  ;;  %v2186_v58 = vmul.f32 0.5, %v8984_v18  ;;  %v2126_v37 = vadd.f32 1.0, %v6176_v57 }
 0x2a6   : > { %11862 = vst [vmem:[#allocation99_spill] sm:$0xff] %v9040_v6  ;;  %v1818_v46 = vmul.f32 %v1754_v17, %v9014_v21  ;;  %6185 = vtanh.f32 %v2876_v32  ;;  %v2005_v60 = vmul.f32 0.7978846, %v1941_v26  ;;  %v1757_v61 = vmul.f32 %v9027_v35, %v9027_v35  ;;  %v6180_v39 = vpop.eup %6179 }
 0x2a7   : > { %11861 = vst [vmem:[#allocation98_spill] sm:$0xff] %v9035_v3  ;;  %v3236_v47 = vadd.f32 %v9035_v3, %v9030_v8  ;;  %v3359_v5 = vmul.f32 %v9035_v3, %v9035_v3  ;;  %v2006_v16 = vmul.f32 0.7978846, %v1942_v12  ;;  %v1881_v56 = vmul.f32 0.044715, %v1817_v41 }
 0x2a8   : > { %11863 = vst [vmem:[#allocation100_spill] sm:$0xff] %v9043_v34  ;;  %v9054_v18 = vadd.f32 %v2465_v53, %v8219_v42  ;;  %v9058_v15 = vpack.c.bf16 %v8707_v20, %v8584_v28  ;;  %v2189_v57 = vmul.f32 0.5, %v2125_v52  ;;  %v3360_v17 = vmul.f32 %v9040_v6, %v9040_v6  ;;  %v9070_v52 = vpop.f32.mrf.mxu0 }
 0x2a9   : > { %v9060_v51 = vpop.eup %6181  ;;  %3237 = vadd.xlane.f32.xlu1 %v3236_v47  ;;  %v3435_v26 = vadd.f32 %v3359_v5, %v3358_v14  ;;  %v3361_v32 = vmul.f32 %v9043_v34, %v9043_v34  ;;  %v2190_v63 = vmul.f32 0.5, %v2126_v37  ;;  %v2129_v12 = vadd.f32 1.0, %v6178_v49  ;;  %11865 = vst [vmem:[#allocation102_spill] sm:$0xff] %v9070_v52 }
 0x2aa   : > { %3433 = vadd.xlane.f32.xlu2 %v3432_v19  ;;  %11864 = vst [vmem:[#allocation101_spill] sm:$0xff] %v9058_v15  ;;  %v6184_v7 = vpop.eup %6183  ;;  %v1882_v41 = vmul.f32 0.044715, %v1818_v46  ;;  %v9067_v19 = vadd.f32 %v2554_v9, %v8233_v59  ;;  %v2130_v28 = vadd.f32 1.0, %v6180_v39  ;;  %6187 = vtanh.f32 %v2005_v60 }
 0x2ab   : > { %v1821_v20 = vmul.f32 %v1757_v61, %v9027_v35  ;;  %3436 = vadd.xlane.f32.xlu0 %v3435_v26  ;;  %v3003_v53 = vadd.f32 1.0, %v6184_v7  ;;  %6189 = vtanh.f32 %v2006_v16  ;;  %v1945_v47 = vadd.f32 %v1881_v56, %v8998_v4  ;;  %v9083_v56 = vpop.f32.mrf.mxu2 }
 0x2ac   : > { %v6186_v14 = vpop.eup %6185  ;;  %v3239_v37 = vadd.f32 %v9043_v34, %v9040_v6  ;;  %v2625_v49 = vmul.f32 %v9054_v18, %v9054_v18  ;;  %v3438_v9 = vadd.f32 %v3361_v32, %v3360_v17  ;;  %v3294_v46 = vmul.f32 256.0, %v9060_v51  ;;  %v9088_v17 = vpop.f32.mrf.mxu1 }
 0x2ad   : > { %v3004_v60 = vadd.f32 1.0, %v6186_v14  ;;  %v3067_v5 = vmul.f32 0.5, %v3003_v53  ;;  %v2250_v61 = vmul.f32 %v2186_v58, %v8488_v31  ;;  %v2253_v39 = vmul.f32 %v2189_v57, %v8576_v45  ;;  %11867 = vst [vmem:[#allocation104_spill] sm:$0xff] %v9088_v17  ;;  %v9093_v31 = vpop.f32.mrf.mxu3 }
 0x2ae   : > { %v1946_v26 = vadd.f32 %v1882_v41, %v9014_v21  ;;  %v2626_v16 = vmul.f32 %v9067_v19, %v9067_v19  ;;  %v1885_v7 = vmul.f32 0.044715, %v1821_v20  ;;  %v9086_v52 = vadd.f32 %v1683_v0, %v8082_v2 }
 0x2af   : > { %v3068_v32 = vmul.f32 0.5, %v3004_v60  ;;  %v9091_v53 = vmul.f32 %v3067_v5, %v8928_v24  ;;  %v2254_v45 = vmul.f32 %v2190_v63, %v8607_v10  ;;  %v2193_v58 = vmul.f32 0.5, %v2129_v12 }
 0x2b0   : > { %11866 = vst [vmem:[#allocation103_spill] sm:$0xff] %v9086_v52  ;;  %v2194_v57 = vmul.f32 0.5, %v2130_v28  ;;  %v2009_v41 = vmul.f32 0.7978846, %v1945_v47  ;;  %v6188_v14 = vpop.eup %6187  ;;  %v3295_v20 = vsub.f32 1.0, %v3294_v46  ;;  %v2689_v0 = vmul.f32 %v2625_v49, %v9054_v18 }
 0x2b1   : > { %11868 = vst [vmem:[#allocation105_spill] sm:$0xff] %v9091_v53  ;;  %3439 = vadd.xlane.f32.xlu1 %v3438_v9  ;;  %v9098_v55 = vmul.f32 %v3068_v32, %v8934_v30  ;;  %v3362_v24 = vmul.f32 %v9091_v53, %v9091_v53  ;;  %v6190_v60 = vpop.eup %6189  ;;  %v1979_v5 = vadd.f32 %v8692_v43, %v8480_v54  ;;  %v2010_v10 = vmul.f32 0.7978846, %v1946_v26 }
 0x2b2   : > { %3240 = vadd.xlane.f32.xlu2 %v3239_v37  ;;  %v2690_v63 = vmul.f32 %v2626_v16, %v9067_v19  ;;  %v9106_v12 = vpack.c.bf16 %v2250_v61, %v8981_v23  ;;  %v1949_v28 = vadd.f32 %v1885_v7, %v9027_v35  ;;  %v1758_v47 = vmul.f32 %v9086_v52, %v9086_v52  ;;  %v1599_v23 = vpop.f32.mrf.mxu0  ;;  %v11872_v7 = vld [vmem:[#allocation22_spill] sm:$0xff] }
 0x2b3   : > { %11869 = vst [vmem:[#allocation106_spill] sm:$0xff] %v9098_v55  ;;  %v3242_v30 = vadd.f32 %v9098_v55, %v9091_v53  ;;  %v3363_v37 = vmul.f32 %v9098_v55, %v9098_v55  ;;  %v2257_v49 = vmul.f32 %v2193_v58, %v8845_v33  ;;  %v2258_v43 = vmul.f32 %v2194_v57, %v8849_v1  ;;  %v11875_v1 = vld [vmem:[#allocation71_spill] sm:$0xff] }
 0x2b4   : > { %11870 = vst [vmem:[#allocation107_spill] sm:$0xff] %v9106_v12  ;;  %v2133_v9 = vadd.f32 1.0, %v6188_v14  ;;  %v9117_v46 = vpack.c.bf16 %v2254_v45, %v2253_v39  ;;  %6191 = vtanh.f32 %v2009_v41  ;;  %v3296_v61 = vmul.f32 %v9060_v51, %v3295_v20  ;;  %v11877_v57 = vld [vmem:[#allocation63_spill] sm:$0xff] }
 0x2b5   : > { %v2753_v26 = vmul.f32 0.044715, %v2689_v0  ;;  %3243 = vadd.xlane.f32.xlu0 %v3242_v30  ;;  %v3441_v16 = vadd.f32 %v3363_v37, %v3362_v24  ;;  %v9122_v32 = vadd.f32 %v11872_v7, %v8080_v11  ;;  %v2134_v17 = vadd.f32 1.0, %v6190_v60  ;;  %v11880_v20 = vld [vmem:[#allocation23_spill] sm:$0xff]  ;;  %v1688_v60 = vpop.f32.mrf.mxu1 }
 0x2b6   : > { %11871 = vst [vmem:[#allocation108_spill] sm:$0xff] %v9117_v46  ;;  %6193 = vtanh.f32 %v2010_v10  ;;  %v2754_v22 = vmul.f32 0.044715, %v2690_v63  ;;  %v9126_v33 = vmul.f32 %v8579_v40, %v8329_v38  ;;  %v9130_v39 = vadd.f32 %v11875_v1, %v8484_v13  ;;  %v2470_v38 = vpop.f32.mrf.mxu2  ;;  %v11887_v1 = vld [vmem:[#allocation90_spill] sm:$0xff] }
 0x2b7   : > { %11873 = vst [vmem:[#allocation22_spill] sm:$0xff] %v9122_v32  ;;  %v2013_v45 = vmul.f32 0.7978846, %v1949_v28  ;;  %v1822_v58 = vmul.f32 %v1758_v47, %v9086_v52  ;;  %v9134_v41 = vadd.f32 1.0, %v11877_v57  ;;  %v9136_v14 = vmul.f32 0.7978846, %v1979_v5  ;;  %v2559_v28 = vpop.f32.mrf.mxu3 }
 0x2b8   : > { %11874 = vst [vmem:[#allocation109_spill] sm:$0xff] %v9126_v33  ;;  %v9140_v0 = vadd.f32 %v11880_v20, %v8082_v2  ;;  %v9143_v24 = vadd.f32 %v1599_v23, %v8080_v11  ;;  %v2197_v40 = vmul.f32 0.5, %v2133_v9  ;;  %v3297_v10 = vadd.f32 %v9060_v51, %v3296_v61 }
 0x2b9   : > { %11876 = vst [vmem:[#allocation71_spill] sm:$0xff] %v9130_v39  ;;  %v2817_v63 = vadd.f32 %v2753_v26, %v9054_v18  ;;  %v9147_v47 = vpack.c.bf16 %v2258_v43, %v2257_v49  ;;  %v9151_v5 = vmul.f32 %v9122_v32, %v9122_v32  ;;  %v2198_v30 = vmul.f32 0.5, %v2134_v17 }
 0x2ba   : > { %11878 = vst [vmem:[#allocation63_spill] sm:$0xff] %v9134_v41  ;;  %3442 = vadd.xlane.f32.xlu2 %v3441_v16  ;;  %vm3298_vm1 = vweird.f32 %v9060_v51  ;;  %v2818_v37 = vadd.f32 %v2754_v22, %v9067_v19  ;;  %v6192_v23 = vpop.eup %6191  ;;  %6195 = vtanh.f32 %v2013_v45  ;;  %v1886_v9 = vmul.f32 0.044715, %v1822_v58  ;;  %v11886_v16 = vld [vmem:[#allocation89_spill] sm:$0xff] }
 0x2bb   : > { %11879 = vst [vmem:[#allocation110_spill] sm:$0xff] %v9136_v14  ;;  %v9157_v61 = vadd.f32 %v9083_v56, %v8219_v42  ;;  %v9160_v26 = vadd.f32 %v2470_v38, %v8219_v42  ;;  %v1761_v43 = vmul.f32 %v9143_v24, %v9143_v24  ;;  %v9165_v17 = vadd.f32 %v1688_v60, %v8082_v2 }
 0x2bc   : > { %11881 = vst [vmem:[#allocation23_spill] sm:$0xff] %v9140_v0  ;;  %v6194_v49 = vpop.eup %6193  ;;  %v9169_v22 = vadd.f32 %v11886_v16, %v8219_v42  ;;  %v9173_v7 = vadd.f32 %v9093_v31, %v8233_v59  ;;  %v2261_v56 = vmul.f32 %v2197_v40, %v8943_v48  ;;  %v9178_v45 = vadd.f32 %v11887_v1, %v8233_v59 }
 0x2bd   : > { %11882 = vst [vmem:[#allocation111_spill] sm:$0xff] %v9143_v24  ;;  %v9181_v58 = vsel %vm3298_vm1, %v9060_v51, %v3297_v10  ;;  %v2881_v57 = vmul.f32 0.7978846, %v2817_v63  ;;  %v2137_v38 = vadd.f32 1.0, %v6192_v23  ;;  %v2882_v60 = vmul.f32 0.7978846, %v2818_v37 }
 0x2be   : > { %11883 = vst [vmem:[#allocation112_spill] sm:$0xff] %v9147_v47  ;;  %v9187_v47 = vadd.f32 %v2559_v28, %v8233_v59  ;;  %v2138_v31 = vadd.f32 1.0, %v6194_v49  ;;  %v1950_v48 = vadd.f32 %v1886_v9, %v9086_v52  ;;  %v2627_v40 = vmul.f32 %v9157_v61, %v9157_v61  ;;  %v2472_v33 = vpop.f32.mrf.mxu2 }
 0x2bf   : > { %11884 = vst [vmem:[#allocation113_spill] sm:$0xff] %v9151_v5  ;;  %v2629_v51 = vmul.f32 %v9160_v26, %v9160_v26  ;;  %v1825_v63 = vmul.f32 %v1761_v43, %v9143_v24  ;;  %v1762_v37 = vmul.f32 %v9165_v17, %v9165_v17  ;;  %v2621_v23 = vmul.f32 %v9169_v22, %v9169_v22 }
 0x2c0   : > { %11885 = vst [vmem:[#allocation114_spill] sm:$0xff] %v9165_v17  ;;  %v2628_v28 = vmul.f32 %v9173_v7, %v9173_v7  ;;  %v6196_v49 = vpop.eup %6195  ;;  %v2622_v9 = vmul.f32 %v9178_v45, %v9178_v45  ;;  %6197 = vtanh.f32 %v2881_v57  ;;  %v2201_v43 = vmul.f32 0.5, %v2137_v38 }
 0x2c1   : > { %v9208_v46 = vadd.f32 %v8993_v29, %v8219_v42  ;;  %6199 = vtanh.f32 %v2882_v60  ;;  %v2630_v12 = vmul.f32 %v9187_v47, %v9187_v47  ;;  %v2202_v15 = vmul.f32 0.5, %v2138_v31 }
 0x2c2   : > { %v3205_v20 = vpop.xlane.xlu0 %3204  ;;  %v2014_v13 = vmul.f32 0.7978846, %v1950_v48  ;;  %v2691_v54 = vmul.f32 %v2627_v40, %v9157_v61  ;;  %v2693_v57 = vmul.f32 %v2629_v51, %v9160_v26  ;;  %v1889_v41 = vmul.f32 0.044715, %v1825_v63 }
 0x2c3   : > { %v9184_v16 = vmul.f32 %v9181_v58, %v3205_v20  ;;  %v1826_v38 = vmul.f32 %v1762_v37, %v9165_v17  ;;  %v2685_v2 = vmul.f32 %v2621_v23, %v9169_v22  ;;  %v2692_v29 = vmul.f32 %v2628_v28, %v9173_v7 }
 0x2c4   : > { %v3404_v10 = vpop.xlane.xlu2 %3403  ;;  %v2262_v60 = vmul.f32 %v2198_v30, %v8947_v25  ;;  %v2141_v11 = vadd.f32 1.0, %v6196_v49  ;;  %v2686_v31 = vmul.f32 %v2622_v9, %v9178_v45  ;;  %v9222_v40 = vmul.f32 %v2201_v43, %v8998_v4  ;;  %v9234_v25 = vpop.xlane.xlu1 %3198 }
 0x2c5   : > { %11888 = vst [vmem:[#allocation89_spill] sm:$0xff] %v9184_v16  ;;  %v3494_v1 = vmul.f32 %v3404_v10, %v9181_v58  ;;  %v3526_v20 = vmul.f32 %v9184_v16, %v9184_v16  ;;  %v9214_v10 = vpop.f32.mrf.mxu3  ;;  %v2623_v51 = vmul.f32 %v9208_v46, %v9208_v46  ;;  %v9228_v63 = vadd.f32 %v9004_v62, %v8233_v59 }
 0x2c6   : > { %11889 = vst [vmem:[#allocation90_spill] sm:$0xff] %v9222_v40  ;;  %v2694_v37 = vmul.f32 %v2630_v12, %v9187_v47  ;;  %v6198_v23 = vpop.eup %6197  ;;  %v9232_v28 = vmul.f32 %v2202_v15, %v9014_v21  ;;  %6201 = vtanh.f32 %v2014_v13  ;;  %v2755_v30 = vmul.f32 0.044715, %v2691_v54 }
 0x2c7   : > { %v3558_v48 = vsub.f32 %v3494_v1, %v3526_v20  ;;  %v2757_v49 = vmul.f32 0.044715, %v2693_v57  ;;  %v6200_v4 = vpop.eup %6199  ;;  %v1953_v9 = vadd.f32 %v1889_v41, %v9143_v24  ;;  %v1890_v1 = vmul.f32 0.044715, %v1826_v38 }
 0x2c8   : > { %11890 = vst [vmem:[#allocation115_spill] sm:$0xff] %v9232_v28  ;;  %v2749_v20 = vmul.f32 0.044715, %v2685_v2  ;;  %v2756_v43 = vmul.f32 0.044715, %v2692_v29  ;;  %v2205_v5 = vmul.f32 0.5, %v2141_v11  ;;  %v9237_v14 = vpack.c.bf16 %v2262_v60, %v2261_v56 }
 0x2c9   : > { %v2750_v62 = vmul.f32 0.044715, %v2686_v31  ;;  %v3590_v32 = vmax.f32 %v3558_v48, 0.0  ;;  %v2687_v12 = vmul.f32 %v2623_v51, %v9208_v46  ;;  %v2624_v13 = vmul.f32 %v9228_v63, %v9228_v63 }
 0x2ca   : > { %11891 = vst [vmem:[#allocation116_spill] sm:$0xff] %v9237_v14  ;;  %v2758_v21 = vmul.f32 0.044715, %v2694_v37  ;;  %v9243_v54 = vadd.f32 %v2472_v33, %v8219_v42  ;;  %v2819_v15 = vadd.f32 %v2755_v30, %v9157_v61  ;;  %v2821_v41 = vadd.f32 %v2757_v49, %v9160_v26  ;;  %v2475_v37 = vpop.f32.mrf.mxu2 }
 0x2cb   : > { %v3009_v2 = vadd.f32 1.0, %v6198_v23  ;;  %v3010_v57 = vadd.f32 1.0, %v6200_v4  ;;  %v2017_v11 = vmul.f32 0.7978846, %v1953_v9  ;;  %v1954_v38 = vadd.f32 %v1890_v1, %v9165_v17 }
 0x2cc   : > { %v2813_v56 = vadd.f32 %v2749_v20, %v9169_v22  ;;  %v2820_v29 = vadd.f32 %v2756_v43, %v9173_v7  ;;  %v6202_v60 = vpop.eup %6201  ;;  %v2814_v31 = vadd.f32 %v2750_v62, %v9178_v45  ;;  %v9251_v48 = vadd.f32 1e-05, %v3590_v32 }
 0x2cd   : > { %v3073_v33 = vmul.f32 0.5, %v3009_v2  ;;  %v3074_v51 = vmul.f32 0.5, %v3010_v57  ;;  %v2564_v30 = vpop.f32.mrf.mxu3  ;;  %v2751_v14 = vmul.f32 0.044715, %v2687_v12  ;;  %v2688_v23 = vmul.f32 %v2624_v13, %v9228_v63 }
 0x2ce   : > { %v2822_v49 = vadd.f32 %v2758_v21, %v9187_v47  ;;  %v2631_v4 = vmul.f32 %v9243_v54, %v9243_v54  ;;  %v2883_v9 = vmul.f32 0.7978846, %v2819_v15  ;;  %v2885_v1 = vmul.f32 0.7978846, %v2821_v41  ;;  %v3208_v20 = vpop.xlane.xlu1 %3207 }
 0x2cf   : > { %v9258_v43 = vmul.f32 %v3073_v33, %v9054_v18  ;;  %v9261_v32 = vmul.f32 %v3074_v51, %v9067_v19  ;;  %v2884_v62 = vmul.f32 0.7978846, %v2820_v29  ;;  %v9264_v2 = vmul.f32 %v9181_v58, %v3208_v20 }
 0x2d0   : > { %v9267_v12 = vadd.f32 %v2475_v37, %v8219_v42  ;;  %v9270_v13 = vadd.f32 %v2564_v30, %v8233_v59  ;;  %6203 = vrsqrt.f32 %v9251_v48  ;;  %v3407_v21 = vpop.xlane.xlu0 %3406  ;;  %v2752_v41 = vmul.f32 0.044715, %v2688_v23 }
 0x2d1   : > { %11892 = vst [vmem:[#allocation117_spill] sm:$0xff] %v9258_v43  ;;  %v3251_v18 = vadd.f32 %v9261_v32, %v9258_v43  ;;  %v3368_v19 = vmul.f32 %v9258_v43, %v9258_v43  ;;  %v3369_v15 = vmul.f32 %v9261_v32, %v9261_v32  ;;  %v2886_v57 = vmul.f32 0.7978846, %v2822_v49 }
 0x2d2   : > { %11893 = vst [vmem:[#allocation118_spill] sm:$0xff] %v9261_v32  ;;  %v2695_v29 = vmul.f32 %v2631_v4, %v9243_v54  ;;  %v9282_v33 = vadd.f32 %v9214_v10, %v8233_v59  ;;  %6205 = vtanh.f32 %v2885_v1  ;;  %v3495_v51 = vmul.f32 %v3407_v21, %v9181_v58  ;;  %v3211_v20 = vpop.xlane.xlu2 %3210 }
 0x2d3   : > { %11894 = vst [vmem:[#allocation119_spill] sm:$0xff] %v9264_v2  ;;  %v3527_v37 = vmul.f32 %v9264_v2, %v9264_v2  ;;  %3252 = vadd.xlane.f32.xlu2 %v3251_v18  ;;  %v3450_v30 = vadd.f32 %v3369_v15, %v3368_v19  ;;  %v2018_v43 = vmul.f32 0.7978846, %v1954_v38  ;;  %v2633_v23 = vmul.f32 %v9267_v12, %v9267_v12 }
 0x2d4   : > { %v2634_v49 = vmul.f32 %v9270_v13, %v9270_v13  ;;  %6207 = vtanh.f32 %v2883_v9  ;;  %v9292_v10 = vmul.f32 %v2205_v5, %v9027_v35  ;;  %v2877_v4 = vmul.f32 0.7978846, %v2813_v56 }
 0x2d5   : > { %3451 = vadd.xlane.f32.xlu1 %v3450_v30  ;;  %v9295_v1 = vmul.f32 %v9181_v58, %v3211_v20  ;;  %6209 = vtanh.f32 %v2884_v62  ;;  %v2878_v21 = vmul.f32 0.7978846, %v2814_v31  ;;  %v2759_v18 = vmul.f32 0.044715, %v2695_v29 }
 0x2d6   : > { %11895 = vst [vmem:[#allocation120_spill] sm:$0xff] %v9292_v10  ;;  %6211 = vtanh.f32 %v2886_v57  ;;  %v2632_v38 = vmul.f32 %v9282_v33, %v9282_v33  ;;  %v9299_v19 = vpop.eup %6203  ;;  %v2815_v9 = vadd.f32 %v2751_v14, %v9208_v46  ;;  %v2816_v35 = vadd.f32 %v2752_v41, %v9228_v63  ;;  %v3410_v56 = vpop.xlane.xlu1 %3409 }
 0x2d7   : > { %11896 = vst [vmem:[#allocation121_spill] sm:$0xff] %v9295_v1  ;;  %6213 = vtanh.f32 %v2017_v11  ;;  %v3559_v5 = vsub.f32 %v3495_v51, %v3527_v37  ;;  %v9305_v15 = vmul.f32 %v9181_v58, %v9234_v25  ;;  %v2697_v31 = vmul.f32 %v2633_v23, %v9267_v12  ;;  %v2477_v37 = vpop.f32.mrf.mxu2 }
 0x2d8   : > { %6215 = vtanh.f32 %v2018_v43  ;;  %v2698_v62 = vmul.f32 %v2634_v49, %v9270_v13  ;;  %v6206_v57 = vpop.eup %6205  ;;  %v9309_v29 = vadd.f32 1.0, %v6202_v60  ;;  %v3528_v14 = vmul.f32 %v9295_v1, %v9295_v1 }
 0x2d9   : > { %11897 = vst [vmem:[#allocation122_spill] sm:$0xff] %v9305_v15  ;;  %6217 = vtanh.f32 %v2877_v4  ;;  %v3496_v11 = vmul.f32 %v3410_v56, %v9181_v58  ;;  %v3737_v43 = vmul.f32 %v9299_v19, %v9251_v48  ;;  %v2823_v25 = vadd.f32 %v2759_v18, %v9243_v54 }
 0x2da   : > { %11898 = vst [vmem:[#allocation123_spill] sm:$0xff] %v9309_v29  ;;  %v6208_v41 = vpop.eup %6207  ;;  %6219 = vtanh.f32 %v2878_v21  ;;  %v2696_v51 = vmul.f32 %v2632_v38, %v9282_v33  ;;  %v2879_v20 = vmul.f32 0.7978846, %v2815_v9  ;;  %v2880_v60 = vmul.f32 0.7978846, %v2816_v35  ;;  %v2566_v9 = vpop.f32.mrf.mxu3 }
 0x2db   : > { %v6210_v30 = vpop.eup %6209  ;;  %v3591_v23 = vmax.f32 %v3559_v5, 0.0  ;;  %v3011_v49 = vadd.f32 1.0, %v6208_v41  ;;  %v2761_v56 = vmul.f32 0.044715, %v2697_v31  ;;  %v2762_v24 = vmul.f32 0.044715, %v2698_v62 }
 0x2dc   : > { %v6212_v4 = vpop.eup %6211  ;;  %v3012_v21 = vadd.f32 1.0, %v6210_v30  ;;  %v3560_v40 = vsub.f32 %v3496_v11, %v3528_v14  ;;  %v9325_v0 = vadd.f32 %v2477_v37, %v8219_v42  ;;  %v3738_v5 = vmul.f32 %v9299_v19, %v3737_v43 }
 0x2dd   : > { %v9320_v10 = vpop.eup %6213  ;;  %v3075_v38 = vmul.f32 0.5, %v3011_v49  ;;  %v2887_v41 = vmul.f32 0.7978846, %v2823_v25  ;;  %v2760_v17 = vmul.f32 0.044715, %v2696_v51  ;;  %v3013_v14 = vadd.f32 1.0, %v6206_v57 }
 0x2de   : > { %11900 = vst [vmem:[#allocation124_spill] sm:$0xff] %v9320_v10  ;;  %v9327_v35 = vpop.eup %6215  ;;  %v3076_v31 = vmul.f32 0.5, %v3012_v21  ;;  %v9332_v30 = vadd.f32 1e-05, %v3591_v23  ;;  %v3014_v11 = vadd.f32 1.0, %v6212_v4  ;;  %v2825_v37 = vadd.f32 %v2761_v56, %v9267_v12 }
 0x2df   : > { %11902 = vst [vmem:[#allocation125_spill] sm:$0xff] %v9327_v35  ;;  %v9330_v62 = vpop.eup %6217  ;;  %v9335_v10 = vmul.f32 %v3075_v38, %v9157_v61  ;;  %v2826_v18 = vadd.f32 %v2762_v24, %v9270_v13  ;;  %v9345_v25 = vadd.f32 %v2566_v9, %v8233_v59  ;;  %v3592_v51 = vmax.f32 %v3560_v40, 0.0 }
 0x2e0   : > { %v9337_v49 = vpop.eup %6219  ;;  %v9342_v43 = vmul.f32 %v3076_v31, %v9173_v7  ;;  %v2635_v23 = vmul.f32 %v9325_v0, %v9325_v0  ;;  %v3077_v61 = vmul.f32 0.5, %v3013_v14  ;;  %v3078_v21 = vmul.f32 0.5, %v3014_v11 }
 0x2e1   : > { %11903 = vst [vmem:[#allocation126_spill] sm:$0xff] %v9335_v10  ;;  %v3739_v57 = vmul.f32 0.5, %v3738_v5  ;;  %v2824_v4 = vadd.f32 %v2760_v17, %v9282_v33  ;;  %6221 = vtanh.f32 %v2879_v20  ;;  %v2889_v17 = vmul.f32 0.7978846, %v2825_v37 }
 0x2e2   : > { %11904 = vst [vmem:[#allocation127_spill] sm:$0xff] %v9342_v43  ;;  %v3254_v56 = vadd.f32 %v9342_v43, %v9335_v10  ;;  %v3214_v38 = vpop.xlane.xlu0 %3213  ;;  %6223 = vrsqrt.f32 %v9332_v30  ;;  %v9357_v7 = vmul.f32 %v3077_v61, %v9160_v26  ;;  %v9360_v40 = vmul.f32 %v3078_v21, %v9187_v47  ;;  %v2569_v52 = vpop.f32.mrf.mxu3 }
 0x2e3   : > { %v9354_v24 = vmul.f32 %v9181_v58, %v3214_v38  ;;  %v2636_v31 = vmul.f32 %v9345_v25, %v9345_v25  ;;  %6225 = vtanh.f32 %v2887_v41  ;;  %v2890_v14 = vmul.f32 0.7978846, %v2826_v18  ;;  %v2480_v18 = vpop.f32.mrf.mxu2 }
 0x2e4   : > { %11906 = vst [vmem:[#allocation129_spill] sm:$0xff] %v9357_v7  ;;  %3255 = vadd.xlane.f32.xlu0 %v3254_v56  ;;  %v3413_v20 = vpop.xlane.xlu2 %3412  ;;  %v9366_v11 = vadd.f32 1e-05, %v3592_v51  ;;  %v2699_v38 = vmul.f32 %v2635_v23, %v9325_v0  ;;  %v3217_v61 = vpop.xlane.xlu1 %3216  ;;  %v3257_v37 = vadd.f32 %v9360_v40, %v9357_v7  ;;  %v3372_v21 = vmul.f32 %v9357_v7, %v9357_v7 }
 0x2e5   : > { %11905 = vst [vmem:[#allocation128_spill] sm:$0xff] %v9354_v24  ;;  %v3497_v26 = vmul.f32 %v3413_v20, %v9181_v58  ;;  %v3529_v47 = vmul.f32 %v9354_v24, %v9354_v24  ;;  %v3373_v41 = vmul.f32 %v9360_v40, %v9360_v40  ;;  %v3740_v51 = vsub.f32 1.5, %v3739_v57 }
 0x2e6   : > { %11907 = vst [vmem:[#allocation130_spill] sm:$0xff] %v9360_v40  ;;  %v2888_v56 = vmul.f32 0.7978846, %v2824_v4  ;;  %v9379_v23 = vmul.f32 %v9181_v58, %v3217_v61  ;;  %6227 = vtanh.f32 %v2880_v60  ;;  %v2700_v5 = vmul.f32 %v2636_v31, %v9345_v25  ;;  %3258 = vadd.xlane.f32.xlu1 %v3257_v37 }
 0x2e7   : > { %v6222_v20 = vpop.eup %6221  ;;  %6229 = vtanh.f32 %v2889_v17  ;;  %v3561_v35 = vsub.f32 %v3497_v26, %v3529_v47  ;;  %v3456_v39 = vadd.f32 %v3373_v41, %v3372_v21  ;;  %vm3742_vm2 = vweird.f32 %v9251_v48 }
 0x2e8   : > { %v9382_v29 = vpop.eup %6223  ;;  %6231 = vrsqrt.f32 %v9366_v11  ;;  %v2763_v57 = vmul.f32 0.044715, %v2699_v38  ;;  %vm3743_vm3 = vweird.f32 %v9299_v19  ;;  %v3530_v31 = vmul.f32 %v9379_v23, %v9379_v23 }
 0x2e9   : > { %v6226_v4 = vpop.eup %6225  ;;  %6233 = vtanh.f32 %v2890_v14  ;;  %v3593_v60 = vmax.f32 %v3561_v35, 0.0  ;;  %v3741_v26 = vmul.f32 %v9299_v19, %v3740_v51  ;;  %v9393_v61 = vadd.f32 %v2480_v18, %v8219_v42  ;;  %vm3744_vm4 = vmor %vm3742_vm2, %vm3743_vm3 }
 0x2ea   : > { %v3416_v17 = vpop.xlane.xlu0 %3415  ;;  %6235 = vtanh.f32 %v2888_v56  ;;  %v3747_v38 = vmul.f32 %v9382_v29, %v9332_v30  ;;  %v2764_v37 = vmul.f32 0.044715, %v2700_v5  ;;  %v3015_v35 = vadd.f32 1.0, %v6226_v4 }
 0x2eb   : > { %v3498_v47 = vmul.f32 %v3416_v17, %v9181_v58  ;;  %v9398_v21 = vadd.f32 1e-05, %v3593_v60  ;;  %v2827_v41 = vadd.f32 %v2763_v57, %v9325_v0  ;;  %v9402_v40 = vadd.f32 %v2569_v52, %v8233_v59  ;;  %v2482_v48 = vpop.f32.mrf.mxu2 }
 0x2ec   : > { %3457 = vadd.xlane.f32.xlu0 %v3456_v39  ;;  %v6228_v14 = vpop.eup %6227  ;;  %v3007_v18 = vadd.f32 1.0, %v6222_v20  ;;  %v3524_v39 = vmul.f32 %v9305_v15, %v9305_v15  ;;  %v2637_v57 = vmul.f32 %v9393_v61, %v9393_v61  ;;  %v9423_v56 = vsel %vm3744_vm4, %v9299_v19, %v3741_v26  ;;  %v2571_v15 = vpop.f32.mrf.mxu3 }
 0x2ed   : > { %v3562_v51 = vsub.f32 %v3498_v47, %v3530_v31  ;;  %v6230_v55 = vpop.eup %6229  ;;  %v3079_v47 = vmul.f32 0.5, %v3015_v35  ;;  %11914 = vst [vmem:[#allocation131_spill] sm:$0xff] %v9423_v56  ;;  %v3748_v60 = vmul.f32 %v9382_v29, %v3747_v38  ;;  %v2828_v6 = vadd.f32 %v2764_v37, %v9345_v25 }
 0x2ee   : > { %v9412_v4 = vpop.eup %6231  ;;  %6237 = vrsqrt.f32 %v9398_v21  ;;  %v9428_v8 = vmul.f32 0.7978846, %v2827_v41  ;;  %v2638_v20 = vmul.f32 %v9402_v40, %v9402_v40  ;;  %v3017_v35 = vadd.f32 1.0, %v6230_v55 }
 0x2ef   : > { %v3594_v31 = vmax.f32 %v3562_v51, 0.0  ;;  %v6234_v34 = vpop.eup %6233  ;;  %v9432_v28 = vpop.xlane.xlu1 %3400  ;;  %v9434_v51 = vmul.f32 0.5, %v3007_v18  ;;  %v3757_v19 = vmul.f32 %v9412_v4, %v9366_v11  ;;  %v9441_v37 = vmul.f32 %v3079_v47, %v9243_v54 }
 0x2f0   : > { %v6236_v3 = vpop.eup %6235  ;;  %v2701_v32 = vmul.f32 %v2637_v57, %v9393_v61  ;;  %v9445_v2 = vadd.f32 %v2482_v48, %v8219_v42  ;;  %v3018_v18 = vadd.f32 1.0, %v6234_v34  ;;  %v3749_v17 = vmul.f32 0.5, %v3748_v60 }
 0x2f1   : > { %v9438_v26 = vadd.f32 1e-05, %v3594_v31  ;;  %v3016_v38 = vadd.f32 1.0, %v6236_v3  ;;  %11915 = vst [vmem:[#allocation132_spill] sm:$0xff] %v9441_v37  ;;  %v9448_v7 = vmul.f32 0.7978846, %v2828_v6  ;;  %v2702_v3 = vmul.f32 %v2638_v20, %v9402_v40 }
 0x2f2   : > { %v3398_v41 = vpop.xlane.xlu0 %3397  ;;  %11916 = vst [vmem:[#allocation133_spill] sm:$0xff] %v9445_v2  ;;  %v9450_v56 = vadd.f32 1.0, %v6228_v14  ;;  %v9454_v54 = vadd.f32 %v2571_v15, %v8233_v59  ;;  %v3081_v57 = vmul.f32 0.5, %v3017_v35  ;;  %v3758_v48 = vmul.f32 %v9412_v4, %v3757_v19  ;;  %v11940_v14 = vld [vmem:[#allocation78_spill] sm:$0xff] }
 0x2f3   : > { %v3492_v55 = vmul.f32 %v3398_v41, %v9181_v58  ;;  %v3080_v31 = vmul.f32 0.5, %v3016_v38  ;;  %6239 = vrsqrt.f32 %v9438_v26  ;;  %v3374_v6 = vmul.f32 %v9441_v37, %v9441_v37 }
 0x2f4   : > { %11917 = vst [vmem:[#allocation134_spill] sm:$0xff] %v9454_v54  ;;  %v9456_v16 = vpop.eup %6237  ;;  %vm3753_vm5 = vweird.f32 %v9382_v29  ;;  %v2765_v60 = vmul.f32 0.044715, %v2701_v32  ;;  %v3082_v20 = vmul.f32 0.5, %v3018_v18  ;;  %v9475_v38 = vmul.f32 %v3081_v57, %v9267_v12 }
 0x2f5   : > { %v3220_v53 = vpop.xlane.xlu2 %3219  ;;  %v3556_v47 = vsub.f32 %v3492_v55, %v3524_v39  ;;  %v9461_v34 = vmul.f32 %v3080_v31, %v9282_v33  ;;  %v2639_v39 = vmul.f32 %v9445_v2, %v9445_v2  ;;  %vm3752_vm6 = vweird.f32 %v9332_v30  ;;  %v2485_v30 = vpop.f32.mrf.mxu2 }
 0x2f6   : > { %11920 = vst [vmem:[#allocation136_spill] sm:$0xff] %v9475_v38  ;;  %v3767_v41 = vmul.f32 %v9456_v16, %v9398_v21  ;;  %v2766_v32 = vmul.f32 0.044715, %v2702_v3  ;;  %v2640_v55 = vmul.f32 %v9454_v54, %v9454_v54  ;;  %v9483_v18 = vmul.f32 %v3082_v20, %v9270_v13  ;;  %vm3754_vm9 = vmor %vm3752_vm6, %vm3753_vm5 }
 0x2f7   : > { %11918 = vst [vmem:[#allocation135_spill] sm:$0xff] %v9461_v34  ;;  %v3260_v35 = vadd.f32 %v9461_v34, %v9441_v37  ;;  %v3375_v33 = vmul.f32 %v9461_v34, %v9461_v34  ;;  %v3588_v19 = vmax.f32 %v3556_v47, 0.0  ;;  %v3759_v31 = vmul.f32 0.5, %v3758_v48  ;;  %v3419_v13 = vpop.xlane.xlu1 %3418 }
 0x2f8   : > { %11921 = vst [vmem:[#allocation137_spill] sm:$0xff] %v9483_v18  ;;  %v9488_v12 = vmul.f32 %v9181_v58, %v3220_v53  ;;  %v3750_v57 = vsub.f32 1.5, %v3749_v17  ;;  %vm3763_vm7 = vweird.f32 %v9412_v4  ;;  %v2829_v3 = vadd.f32 %v2765_v60, %v9393_v61 }
 0x2f9   : > { %3261 = vadd.xlane.f32.xlu2 %v3260_v35  ;;  %v3459_v47 = vadd.f32 %v3375_v33, %v3374_v6  ;;  %v3263_v37 = vadd.f32 %v9483_v18, %v9475_v38  ;;  %v9494_v20 = vpop.eup %6239  ;;  %vm3762_vm8 = vweird.f32 %v9366_v11  ;;  %v2703_v48 = vmul.f32 %v2639_v39, %v9445_v2 }
 0x2fa   : > { %11923 = vst [vmem:[#allocation138_spill] sm:$0xff] %v9488_v12  ;;  %v9498_v6 = vadd.f32 1e-05, %v3588_v19  ;;  %v3376_v53 = vmul.f32 %v9475_v38, %v9475_v38  ;;  %v3377_v17 = vmul.f32 %v9483_v18, %v9483_v18  ;;  %v3768_v60 = vmul.f32 %v9456_v16, %v3767_v41  ;;  %vm3764_vm10 = vmor %vm3762_vm8, %vm3763_vm7 }
 0x2fb   : > { %3460 = vadd.xlane.f32.xlu1 %v3459_v47  ;;  %v2830_v35 = vadd.f32 %v2766_v32, %v9402_v40  ;;  %v2704_v33 = vmul.f32 %v2640_v55, %v9454_v54  ;;  %3264 = vadd.xlane.f32.xlu0 %v3263_v37  ;;  %v3760_v47 = vsub.f32 1.5, %v3759_v31  ;;  %v3531_v19 = vmul.f32 %v9488_v12, %v9488_v12 }
 0x2fc   : > { %v3462_v39 = vadd.f32 %v3377_v17, %v3376_v53  ;;  %v3499_v38 = vmul.f32 %v3419_v13, %v9181_v58  ;;  %v3751_v15 = vmul.f32 %v9382_v29, %v3750_v57  ;;  %v3777_v41 = vmul.f32 %v9494_v20, %v9438_v26  ;;  %v11924_v57 = vld [vmem:[#allocation74_spill] sm:$0xff] }
 0x2fd   : > { %v3202_v9 = vpop.xlane.xlu2 %3201  ;;  %v3493_v32 = vmul.f32 %v9432_v28, %v9181_v58  ;;  %v2767_v55 = vmul.f32 0.044715, %v2703_v48  ;;  %6241 = vrsqrt.f32 %v9498_v6  ;;  %v3769_v53 = vmul.f32 0.5, %v3768_v60  ;;  %v11926_v48 = vld [vmem:[#allocation75_spill] sm:$0xff] }
 0x2fe   : > { %v9508_v34 = vmul.f32 %v9181_v58, %v3202_v9  ;;  %v2893_v9 = vmul.f32 0.7978846, %v2829_v3  ;;  %v3563_v31 = vsub.f32 %v3499_v38, %v3531_v19  ;;  %v2768_v17 = vmul.f32 0.044715, %v2704_v33 }
 0x2ff   : > { %6243 = vtanh.f32 %v9428_v8  ;;  %v3761_v28 = vmul.f32 %v9412_v4, %v3760_v47  ;;  %v2894_v3 = vmul.f32 0.7978846, %v2830_v35  ;;  %v9531_v38 = vsel %vm3754_vm9, %v9382_v29, %v3751_v15 }
 0x300   : > { %v3525_v37 = vmul.f32 %v9508_v34, %v9508_v34  ;;  %6245 = vtanh.f32 %v9448_v7  ;;  %11925 = vst [vmem:[#allocation74_spill] sm:$0xff] %v9531_v38  ;;  %v3778_v60 = vmul.f32 %v9494_v20, %v3777_v41  ;;  %v3595_v47 = vmax.f32 %v3563_v31, 0.0 }
 0x301   : > { %3463 = vadd.xlane.f32.xlu2 %v3462_v39  ;;  %6247 = vtanh.f32 %v2893_v9  ;;  %v3371_v35 = vmul.f32 %v9342_v43, %v9342_v43  ;;  %v3770_v29 = vsub.f32 1.5, %v3769_v53  ;;  %v2831_v7 = vadd.f32 %v2767_v55, %v9445_v2 }
 0x302   : > { %v3557_v18 = vsub.f32 %v3493_v32, %v3525_v37  ;;  %v3370_v32 = vmul.f32 %v9335_v10, %v9335_v10  ;;  %v2832_v15 = vadd.f32 %v2768_v17, %v9454_v54  ;;  %v9551_v41 = vsel %vm3764_vm10, %v9412_v4, %v3761_v28  ;;  %v2574_v17 = vpop.f32.mrf.mxu3  ;;  %v2487_v54 = vpop.f32.mrf.mxu2 }
 0x303   : > { %v9548_v39 = vpop.eup %6241  ;;  %11927 = vst [vmem:[#allocation75_spill] sm:$0xff] %v9551_v41  ;;  %vm3772_vm11 = vweird.f32 %v9398_v21  ;;  %6249 = vtanh.f32 %v2894_v3  ;;  %vm3773_vm12 = vweird.f32 %v9456_v16  ;;  %v3779_v9 = vmul.f32 0.5, %v3778_v60  ;;  %v3226_v52 = vpop.xlane.xlu0 %3225 }
 0x304   : > { %v3589_v33 = vmax.f32 %v3557_v18, 0.0  ;;  %v9561_v53 = vadd.f32 %v2485_v30, %v8219_v42  ;;  %v9564_v28 = vadd.f32 1e-05, %v3595_v47  ;;  %v3771_v8 = vmul.f32 %v9456_v16, %v3770_v29  ;;  %v9579_v29 = vld [vmem:[%s6850_s21] sm:$0xff]  ;;  %vm3774_vm14 = vmor %vm3772_vm11, %vm3773_vm12 }
 0x305   : > { %v3223_v19 = vpop.xlane.xlu2 %3222  ;;  %v6244_v11 = vpop.eup %6243  ;;  %vm3782_vm13 = vweird.f32 %v9438_v26  ;;  %v2895_v60 = vmul.f32 0.7978846, %v2831_v7  ;;  %v2896_v13 = vmul.f32 0.7978846, %v2832_v15  ;;  %v9571_v30 = vadd.f32 %v2574_v17, %v8233_v59  ;;  %11931 = vst [vmem:[#allocation141_spill] sm:$0xff] %v9579_v29 }
 0x306   : > { %v9546_v18 = vadd.f32 1e-05, %v3589_v33  ;;  %v9555_v37 = vmul.f32 %v9181_v58, %v3223_v19  ;;  %11929 = vst [vmem:[#allocation139_spill] sm:$0xff] %v9561_v53  ;;  %v3422_v33 = vpop.xlane.xlu1 %3421  ;;  %v6246_v4 = vpop.eup %6245  ;;  %v3019_v3 = vadd.f32 1.0, %v6244_v11  ;;  %v3453_v19 = vadd.f32 %v3371_v35, %v3370_v32 }
 0x307   : > { %v3020_v31 = vadd.f32 1.0, %v6246_v4  ;;  %v9568_v43 = vpop.eup %6247  ;;  %11930 = vst [vmem:[#allocation140_spill] sm:$0xff] %v9571_v30  ;;  %v3500_v11 = vmul.f32 %v3422_v33, %v9181_v58  ;;  %v3780_v32 = vsub.f32 1.5, %v3779_v9  ;;  %v3717_v35 = vmul.f32 %v9548_v39, %v9498_v6 }
 0x308   : > { %6251 = vrsqrt.f32 %v9546_v18  ;;  %v3083_v10 = vmul.f32 0.5, %v3019_v3  ;;  %v3532_v47 = vmul.f32 %v9555_v37, %v9555_v37  ;;  %v4100_v7 = vperm.slane %v9579_v29, 2 }
 0x309   : > { %3454 = vadd.xlane.f32.xlu2 %v3453_v19  ;;  %v3084_v15 = vmul.f32 0.5, %v3020_v31  ;;  %v9582_v4 = vpop.eup %6249  ;;  %6253 = vrsqrt.f32 %v9564_v28  ;;  %v2641_v17 = vmul.f32 %v9561_v53, %v9561_v53  ;;  %vm3783_vm15 = vweird.f32 %v9494_v20 }
 0x30a   : > { %v9588_v3 = vmul.f32 %v3083_v10, %v9325_v0  ;;  %v3564_v33 = vsub.f32 %v3500_v11, %v3532_v47  ;;  %6255 = vtanh.f32 %v2895_v60  ;;  %v4101_v19 = vperm.slane %v9579_v29, 6  ;;  %vm3784_vm0 = vmor %vm3782_vm13, %vm3783_vm15 }
 0x30b   : > { %v9601_v0 = vsel %vm3774_vm14, %v9456_v16, %v3771_v8  ;;  %6257 = vtanh.f32 %v2896_v13  ;;  %v2642_v10 = vmul.f32 %v9571_v30, %v9571_v30  ;;  %v9606_v21 = vmul.f32 %v3084_v15, %v9345_v25  ;;  %v2576_v15 = vpop.f32.mrf.mxu3 }
 0x30c   : > { %11932 = vst [vmem:[#allocation142_spill] sm:$0xff] %v9588_v3  ;;  %v3781_v47 = vmul.f32 %v9494_v20, %v3780_v32  ;;  %v3718_v11 = vmul.f32 %v9548_v39, %v3717_v35  ;;  %v3378_v60 = vmul.f32 %v9588_v3, %v9588_v3  ;;  %v3596_v31 = vmax.f32 %v3564_v33, 0.0 }
 0x30d   : > { %11934 = vst [vmem:[#allocation143_spill] sm:$0xff] %v9601_v0  ;;  %v9612_v2 = vperm.slane %v4100_v7, 2  ;;  %v2705_v16 = vmul.f32 %v2641_v17, %v9561_v53  ;;  %v3266_v13 = vadd.f32 %v9606_v21, %v9588_v3  ;;  %v3379_v8 = vmul.f32 %v9606_v21, %v9606_v21  ;;  %v11938_v17 = vld [vmem:[#allocation77_spill] sm:$0xff] }
 0x30e   : > { %v9598_v38 = vpop.eup %6251  ;;  %11935 = vst [vmem:[#allocation144_spill] sm:$0xff] %v9606_v21  ;;  %v9619_v25 = vperm.slane %v4101_v19, 2  ;;  %v9623_v35 = vadd.f32 1e-05, %v3596_v31  ;;  %v3072_v33 = vmul.f32 0.5, %v9450_v56  ;;  %v2706_v19 = vmul.f32 %v2642_v10, %v9571_v30 }
 0x30f   : > { %11936 = vst [vmem:[#allocation145_spill] sm:$0xff] %v9612_v2  ;;  %v3727_v32 = vmul.f32 %v9598_v38, %v9546_v18  ;;  %v9626_v7 = vpop.eup %6253  ;;  %3267 = vadd.xlane.f32.xlu1 %v3266_v13  ;;  %v3465_v3 = vadd.f32 %v3379_v8, %v3378_v60  ;;  %v9636_v31 = vadd.f32 %v2487_v54, %v8219_v42  ;;  %v3719_v24 = vmul.f32 0.5, %v3718_v11 }
 0x310   : > { %11937 = vst [vmem:[#allocation146_spill] sm:$0xff] %v9619_v25  ;;  %v9638_v0 = vpop.eup %6255  ;;  %v9641_v56 = vsel %vm3784_vm0, %v9494_v20, %v3781_v47  ;;  %6259 = vrsqrt.f32 %v9623_v35  ;;  %vm3723_vm1 = vweird.f32 %v9548_v39  ;;  %v2769_v10 = vmul.f32 0.044715, %v2705_v16 }
 0x311   : > { %11939 = vst [vmem:[#allocation77_spill] sm:$0xff] %v9638_v0  ;;  %v9646_v21 = vpop.eup %6257  ;;  %3466 = vadd.xlane.f32.xlu0 %v3465_v3  ;;  %v9651_v54 = vmul.f32 %v9434_v51, %v9208_v46  ;;  %v9654_v20 = vmul.f32 %v3072_v33, %v9228_v63  ;;  %v3005_v47 = vadd.f32 1.0, %v9330_v62  ;;  %v3728_v11 = vmul.f32 %v9598_v38, %v3727_v32  ;;  %v3425_v3 = vpop.xlane.xlu2 %3424  ;;  %v11945_v32 = vld [vmem:[#allocation81_spill] sm:$0xff] }
 0x312   : > { %11941 = vst [vmem:[#allocation78_spill] sm:$0xff] %v9646_v21  ;;  %v3787_v60 = vmul.f32 %v9626_v7, %v9564_v28  ;;  %v9661_v13 = vadd.f32 %v2576_v15, %v8233_v59  ;;  %v3006_v16 = vadd.f32 1.0, %v9337_v49  ;;  %vm3722_vm2 = vweird.f32 %v9498_v6  ;;  %v11946_v15 = vld [vmem:[#allocation82_spill] sm:$0xff]  ;;  %v2490_v49 = vpop.f32.mrf.mxu2 }
 0x313   : > { %11942 = vst [vmem:[#allocation147_spill] sm:$0xff] %v9651_v54  ;;  %v2770_v46 = vmul.f32 0.044715, %v2706_v19  ;;  %v9666_v51 = vmul.f32 %v9181_v58, %v3226_v52  ;;  %v2643_v63 = vmul.f32 %v9636_v31, %v9636_v31  ;;  %v3069_v62 = vmul.f32 0.5, %v3005_v47  ;;  %v3229_v47 = vpop.xlane.xlu1 %3228  ;;  %vm3724_vm4 = vmor %vm3722_vm2, %vm3723_vm1 }
 0x314   : > { %11943 = vst [vmem:[#allocation148_spill] sm:$0xff] %v9654_v20  ;;  %v3720_v8 = vsub.f32 1.5, %v3719_v24  ;;  %v3070_v21 = vmul.f32 0.5, %v3006_v16  ;;  %v2833_v0 = vadd.f32 %v2769_v10, %v9561_v53  ;;  %v3248_v19 = vadd.f32 %v9654_v20, %v9651_v54  ;;  %v11986_v50 = vld [vmem:[#allocation143_spill] sm:$0xff] }
 0x315   : > { %11944 = vst [vmem:[#allocation149_spill] sm:$0xff] %v9666_v51  ;;  %v9678_v52 = vmul.f32 %v3069_v62, %v9169_v22  ;;  %v3501_v41 = vmul.f32 %v3425_v3, %v9181_v58  ;;  %v3729_v1 = vmul.f32 0.5, %v3728_v11  ;;  %v3788_v33 = vmul.f32 %v9626_v7, %v3787_v60 }
 0x316   : > { %v9681_v24 = vpop.eup %6259  ;;  %v2644_v16 = vmul.f32 %v9661_v13, %v9661_v13  ;;  %v9687_v26 = vmul.f32 %v3070_v21, %v9178_v45  ;;  %v2834_v10 = vadd.f32 %v2770_v46, %v9571_v30  ;;  %v2707_v53 = vmul.f32 %v2643_v63, %v9636_v31  ;;  %v2579_v46 = vpop.f32.mrf.mxu3 }
 0x317   : > { %11947 = vst [vmem:[#allocation81_spill] sm:$0xff] %v9678_v52  ;;  %3249 = vadd.xlane.f32.xlu1 %v3248_v19  ;;  %v3364_v22 = vmul.f32 %v9678_v52, %v9678_v52  ;;  %v3533_v3 = vmul.f32 %v9666_v51, %v9666_v51  ;;  %v3721_v11 = vmul.f32 %v9548_v39, %v3720_v8  ;;  %v3428_v63 = vpop.xlane.xlu0 %3427  ;;  %vm3732_vm3 = vweird.f32 %v9546_v18  ;;  %v11978_v51 = vld [vmem:[#allocation121_spill] sm:$0xff]  ;;  %v11984_v19 = vld [vmem:[#allocation128_spill] sm:$0xff] }
 0x318   : > { %11948 = vst [vmem:[#allocation82_spill] sm:$0xff] %v9687_v26  ;;  %v3797_v60 = vmul.f32 %v9681_v24, %v9623_v35  ;;  %v3365_v45 = vmul.f32 %v9687_v26, %v9687_v26  ;;  %v9701_v21 = vmul.f32 %v9181_v58, %v3229_v47  ;;  %v2897_v62 = vmul.f32 0.7978846, %v2833_v0 }
 0x319   : > { %v3245_v8 = vadd.f32 %v9687_v26, %v9678_v52  ;;  %v3565_v5 = vsub.f32 %v3501_v41, %v3533_v3  ;;  %v3730_v36 = vsub.f32 1.5, %v3729_v1  ;;  %v3789_v9 = vmul.f32 0.5, %v3788_v33 }
 0x31a   : > { %v2708_v44 = vmul.f32 %v2644_v16, %v9661_v13  ;;  %v3444_v29 = vadd.f32 %v3365_v45, %v3364_v22  ;;  %v2771_v12 = vmul.f32 0.044715, %v2707_v53  ;;  %v9710_v55 = vadd.f32 %v2490_v49, %v8219_v42 }
 0x31b   : > { %3246 = vadd.xlane.f32.xlu0 %v3245_v8  ;;  %v3597_v47 = vmax.f32 %v3565_v5, 0.0  ;;  %v3502_v0 = vmul.f32 %v3428_v63, %v9181_v58  ;;  %v2898_v30 = vmul.f32 0.7978846, %v2834_v10  ;;  %v3798_v33 = vmul.f32 %v9681_v24, %v3797_v60  ;;  %v3232_v10 = vpop.xlane.xlu2 %3231 }
 0x31c   : > { %3445 = vadd.xlane.f32.xlu2 %v3444_v29  ;;  %v3534_v5 = vmul.f32 %v9701_v21, %v9701_v21  ;;  %v9723_v53 = vsel %vm3724_vm4, %v9548_v39, %v3721_v11  ;;  %vm3792_vm5 = vweird.f32 %v9564_v28  ;;  %v9727_v49 = vadd.f32 %v2579_v46, %v8233_v59  ;;  %v2492_v39 = vpop.f32.mrf.mxu2 }
 0x31d   : > { %v3366_v6 = vmul.f32 %v9651_v54, %v9651_v54  ;;  %v3367_v16 = vmul.f32 %v9654_v20, %v9654_v20  ;;  %vm3733_vm6 = vweird.f32 %v9598_v38  ;;  %v2772_v29 = vmul.f32 0.044715, %v2708_v44 }
 0x31e   : > { %v9734_v22 = vadd.f32 1e-05, %v3597_v47  ;;  %v3566_v3 = vsub.f32 %v3502_v0, %v3534_v5  ;;  %v3731_v11 = vmul.f32 %v9598_v38, %v3730_v36  ;;  %v3790_v60 = vsub.f32 1.5, %v3789_v9  ;;  %v3431_v36 = vpop.xlane.xlu1 %3430  ;;  %vm3734_vm7 = vmor %vm3732_vm3, %vm3733_vm6  ;;  %v2581_v9 = vpop.f32.mrf.mxu3 }
 0x31f   : > { %v2835_v45 = vadd.f32 %v2771_v12, %v9636_v31  ;;  %v2645_v46 = vmul.f32 %v9710_v55, %v9710_v55  ;;  %6261 = vtanh.f32 %v2897_v62  ;;  %v3799_v63 = vmul.f32 0.5, %v3798_v33 }
 0x320   : > { %v3598_v8 = vmax.f32 %v3566_v3, 0.0  ;;  %v9741_v41 = vmul.f32 %v9181_v58, %v3232_v10  ;;  %6263 = vtanh.f32 %v2898_v30  ;;  %v2646_v44 = vmul.f32 %v9727_v49, %v9727_v49 }
 0x321   : > { %v3447_v47 = vadd.f32 %v3367_v16, %v3366_v6  ;;  %v9746_v0 = vadd.f32 %v2492_v39, %v8219_v42  ;;  %vm3793_vm8 = vweird.f32 %v9626_v7  ;;  %v2836_v12 = vadd.f32 %v2772_v29, %v9661_v13 }
 0x322   : > { %11951 = vst [vmem:[#allocation150_spill] sm:$0xff] %v9741_v41  ;;  %6265 = vrsqrt.f32 %v9734_v22  ;;  %v9755_v30 = vadd.f32 1e-05, %v3598_v8  ;;  %v3735_v62 = vsel %vm3734_vm7, %v9598_v38, %v3731_v11  ;;  %v3791_v33 = vmul.f32 %v9626_v7, %v3790_v60  ;;  %vm3794_vm9 = vmor %vm3792_vm5, %vm3793_vm8 }
 0x323   : > { %11952 = vst [vmem:[#allocation151_spill] sm:$0xff] %v9746_v0  ;;  %v2899_v5 = vmul.f32 0.7978846, %v2835_v45  ;;  %v2709_v6 = vmul.f32 %v2645_v46, %v9710_v55  ;;  %3448 = vadd.xlane.f32.xlu0 %v3447_v47  ;;  %v3800_v16 = vsub.f32 1.5, %v3799_v63  ;;  %v3535_v18 = vmul.f32 %v9741_v41, %v9741_v41 }
 0x324   : > { %6267 = vrsqrt.f32 %v9755_v30  ;;  %v3503_v10 = vmul.f32 %v3431_v36, %v9181_v58  ;;  %v2710_v29 = vmul.f32 %v2646_v44, %v9727_v49  ;;  %v2647_v3 = vmul.f32 %v9746_v0, %v9746_v0 }
 0x325   : > { %v9768_v38 = vadd.f32 %v2581_v9, %v8233_v59  ;;  %v3021_v39 = vadd.f32 1.0, %v9568_v43  ;;  %v9771_v11 = vpop.eup %6261  ;;  %v11954_v60 = vsub.f32 %v11938_v17, %v9508_v34  ;;  %v11955_v46 = vsub.f32 %v11940_v14, %v9508_v34  ;;  %v3235_v9 = vpop.xlane.xlu0 %3234 }
 0x326   : > { %vm3802_vm10 = vweird.f32 %v9623_v35  ;;  %v2900_v8 = vmul.f32 0.7978846, %v2836_v12  ;;  %v9784_v44 = vpop.eup %6263  ;;  %v9787_v43 = vsel %vm3794_vm9, %v9626_v7, %v3791_v33  ;;  %vm3803_vm11 = vweird.f32 %v9681_v24 }
 0x327   : > { %11953 = vst [vmem:[#allocation152_spill] sm:$0xff] %v9768_v38  ;;  %v4038_v45 = vmul.f32 %v3735_v62, %v11954_v60  ;;  %v4039_v63 = vmul.f32 %v3735_v62, %v11955_v46  ;;  %v2773_v17 = vmul.f32 0.044715, %v2709_v6  ;;  %v3022_v47 = vadd.f32 1.0, %v9582_v4  ;;  %vm3804_vm12 = vmor %vm3802_vm10, %vm3803_vm11 }
 0x328   : > { %v9791_v34 = vpop.eup %6265  ;;  %v3801_v14 = vmul.f32 %v9681_v24, %v3800_v16  ;;  %6269 = vtanh.f32 %v2899_v5  ;;  %v3567_v28 = vsub.f32 %v3503_v10, %v3535_v18  ;;  %v3085_v36 = vmul.f32 0.5, %v3021_v39  ;;  %v11957_v18 = vld [vmem:[#allocation85_spill] sm:$0xff]  ;;  %v2495_v39 = vpop.f32.mrf.mxu2 }
 0x329   : > { %v2774_v62 = vmul.f32 0.044715, %v2710_v29  ;;  %v2711_v12 = vmul.f32 %v2647_v3, %v9746_v0  ;;  %v2648_v7 = vmul.f32 %v9768_v38, %v9768_v38  ;;  %v3086_v33 = vmul.f32 0.5, %v3022_v47 }
 0x32a   : > { %v9797_v60 = vpop.eup %6267  ;;  %v9800_v6 = vmul.f32 %v9612_v2, %v4038_v45  ;;  %v9803_v4 = vmul.f32 %v9619_v25, %v4039_v63  ;;  %6271 = vtanh.f32 %v2900_v8  ;;  %v9806_v5 = vmul.f32 %v3085_v36, %v9393_v61  ;;  %v3434_v45 = vpop.xlane.xlu2 %3433  ;;  %v11958_v61 = vld [vmem:[#allocation86_spill] sm:$0xff] }
 0x32b   : > { %v3807_v16 = vmul.f32 %v9791_v34, %v9734_v22  ;;  %v2837_v29 = vadd.f32 %v2773_v17, %v9710_v55  ;;  %v9814_v3 = vmul.f32 %v9181_v58, %v3235_v9  ;;  %v3817_v63 = vmul.f32 %v9797_v60, %v9755_v30 }
 0x32c   : > { %11956 = vst [vmem:[#allocation153_spill] sm:$0xff] %v9806_v5  ;;  %v3599_v8 = vmax.f32 %v3567_v28, 0.0  ;;  %v9825_v17 = vmul.f32 %v3086_v33, %v9402_v40  ;;  %v3805_v47 = vsel %vm3804_vm12, %v9681_v24, %v3801_v14  ;;  %v2838_v36 = vadd.f32 %v2774_v62, %v9727_v49  ;;  %v587_v33 = vld [vmem:[%s6855_s25] sm:$0xff] }
 0x32d   : > { %v2775_v9 = vmul.f32 0.044715, %v2711_v12  ;;  %v2712_v10 = vmul.f32 %v2648_v7, %v9768_v38  ;;  %v9837_v28 = vadd.f32 %v2495_v39, %v8219_v42  ;;  %v3504_v40 = vmul.f32 %v3434_v45, %v9181_v58 }
 0x32e   : > { %11959 = vst [vmem:[#allocation85_spill] sm:$0xff] %v9825_v17  ;;  %v9830_v20 = vpop.eup %6269  ;;  %v3269_v46 = vadd.f32 %v9825_v17, %v9806_v5  ;;  %v3808_v24 = vmul.f32 %v9791_v34, %v3807_v16  ;;  %v2901_v14 = vmul.f32 0.7978846, %v2837_v29  ;;  %v3536_v62 = vmul.f32 %v9814_v3, %v9814_v3  ;;  %v2584_v16 = vpop.f32.mrf.mxu3 }
 0x32f   : > { %v11960_v7 = vsub.f32 %v11945_v32, %v9555_v37  ;;  %v3818_v39 = vmul.f32 %v9797_v60, %v3817_v63  ;;  %v9854_v54 = vadd.f32 1e-05, %v3599_v8  ;;  %v6655_v29 = vmov 0   ;;  %v588_v63 = vld [vmem:[%s6855_s25 + $0x8] sm:$0xff] }
 0x330   : > { %v9844_v12 = vpop.eup %6271  ;;  %3270 = vadd.xlane.f32.xlu0 %v3269_v46  ;;  %5988 = vset.pattern.permute.xlu1 %v6655_v29  ;;  %v11962_v26 = vsub.f32 %v11946_v15, %v9555_v37  ;;  %v2902_v1 = vmul.f32 0.7978846, %v2838_v36  ;;  %v2839_v32 = vadd.f32 %v2775_v9, %v9746_v0  ;;  %v2649_v8 = vmul.f32 %v9837_v28, %v9837_v28 }
 0x331   : > { %v9849_v35 = vmul.f32 %v3805_v47, %v11960_v7  ;;  %v2776_v7 = vmul.f32 0.044715, %v2712_v10  ;;  %5989 = vset.pattern.permute.xlu2 %v6655_v29  ;;  %4282 = vperm.xlu1 %5988, %v587_v33   ;;  %v3568_v45 = vsub.f32 %v3504_v40, %v3536_v62  ;;  %v3380_v46 = vmul.f32 %v9806_v5, %v9806_v5 }
 0x332   : > { %v9859_v52 = vmul.f32 %v3805_v47, %v11962_v26  ;;  %5990 = vset.pattern.permute.xlu0 %v6655_v29  ;;  %v3809_v37 = vmul.f32 0.5, %v3808_v24  ;;  %vm3813_vm13 = vweird.f32 %v9791_v34  ;;  %6273 = vtanh.f32 %v2901_v14  ;;  %v11966_v24 = vld [vmem:[#allocation79_spill] sm:$0xff]  ;;  %v11967_v14 = vld [vmem:[#allocation138_spill] sm:$0xff]  ;;  %v11969_v29 = vld [vmem:[#allocation141_spill] sm:$0xff] }
 0x333   : > { %11961 = vst [vmem:[#allocation86_spill] sm:$0xff] %v9849_v35  ;;  %v3381_v35 = vmul.f32 %v9825_v17, %v9825_v17  ;;  %v9871_v26 = vadd.f32 %v2584_v16, %v8233_v59  ;;  %v3819_v15 = vmul.f32 0.5, %v3818_v39  ;;  %6275 = vrsqrt.f32 %v9854_v54 }
 0x334   : > { %11963 = vst [vmem:[#allocation154_spill] sm:$0xff] %v9859_v52  ;;  %v3600_v10 = vmax.f32 %v3568_v45, 0.0  ;;  %4287 = vperm.xlu2 %5989, %v588_v63   ;;  %v11964_v47 = vsub.f32 %v11924_v57, %v9379_v23  ;;  %vm3812_vm14 = vweird.f32 %v9734_v22  ;;  %6277 = vtanh.f32 %v2902_v1  ;;  %v11970_v63 = vld [vmem:[#allocation93_spill] sm:$0xff] }
 0x335   : > { %v2903_v9 = vmul.f32 0.7978846, %v2839_v32  ;;  %v11965_v40 = vsub.f32 %v11926_v48, %v9379_v23  ;;  %v11968_v62 = vsub.f32 %v11966_v24, %v11967_v14  ;;  %vm3822_vm15 = vweird.f32 %v9755_v30  ;;  %v3238_v24 = vpop.xlane.xlu1 %3237  ;;  %vm3814_vm1 = vmor %vm3812_vm14, %vm3813_vm13  ;;  %v11977_v30 = vld [vmem:[#allocation68_spill] sm:$0xff] }
 0x336   : > { %v4048_v36 = vmul.f32 %v9641_v56, %v11964_v47  ;;  %v2840_v57 = vadd.f32 %v2776_v7, %v9768_v38  ;;  %v2713_v45 = vmul.f32 %v2649_v8, %v9837_v28  ;;  %v3468_v16 = vadd.f32 %v3381_v35, %v3380_v46  ;;  %v12006_v38 = vld [vmem:[#allocation134_spill] sm:$0xff] }
 0x337   : > { %v4049_v33 = vmul.f32 %v9641_v56, %v11965_v40  ;;  %v4050_v39 = vmul.f32 %v9787_v43, %v11968_v62  ;;  %v4170_v1 = vperm.slane %v11969_v29, 3  ;;  %v3810_v32 = vsub.f32 1.5, %v3809_v37  ;;  %v11971_v56 = vld [vmem:[#allocation80_spill] sm:$0xff] }
 0x338   : > { %v2650_v48 = vmul.f32 %v9871_v26, %v9871_v26  ;;  %v11972_v47 = vsub.f32 %v11971_v56, %v11967_v14  ;;  %v3820_v7 = vsub.f32 1.5, %v3819_v15  ;;  %vm3823_vm0 = vweird.f32 %v9797_v60  ;;  %3469 = vadd.xlane.f32.xlu0 %v3468_v16  ;;  %v9903_v46 = vpop.eup %6273  ;;  %v589_v56 = vld [vmem:[%s6855_s25 + $0x10] sm:$0xff] }
 0x339   : > { %v9900_v35 = vadd.f32 1e-05, %v3600_v10  ;;  %v4118_v8 = vmul.f32 %v9612_v2, %v4048_v36  ;;  %v4119_v37 = vmul.f32 %v9619_v25, %v4049_v33  ;;  %v4120_v62 = vmul.f32 %v9612_v2, %v4050_v39  ;;  %v9910_v15 = vpop.eup %6275  ;;  %vm3824_vm2 = vmor %vm3822_vm15, %vm3823_vm0 }
 0x33a   : > { %v4051_v40 = vmul.f32 %v9787_v43, %v11972_v47  ;;  %v4171_v14 = vperm.slane %v11969_v29, 7  ;;  %v3437_v43 = vpop.xlane.xlu0 %3436  ;;  %v2904_v47 = vmul.f32 0.7978846, %v2840_v57  ;;  %v2777_v10 = vmul.f32 0.044715, %v2713_v45  ;;  %v9917_v16 = vpop.eup %6277 }
 0x33b   : > { %v9912_v17 = vperm.slane %v4170_v1, 3  ;;  %v9915_v36 = vmul.f32 %v9181_v58, %v3238_v24  ;;  %v3811_v33 = vmul.f32 %v9791_v34, %v3810_v32  ;;  %6279 = vtanh.f32 %v2903_v9  ;;  %v2497_v45 = vpop.f32.mrf.mxu2 }
 0x33c   : > { %v4121_v23 = vmul.f32 %v9619_v25, %v4051_v40  ;;  %v2714_v39 = vmul.f32 %v2650_v48, %v9871_v26  ;;  %v9921_v40 = vperm.slane %v4171_v14, 3  ;;  %v3821_v29 = vmul.f32 %v9797_v60, %v3820_v7  ;;  %4292 = vperm.xlu2 %5989, %v589_v56   ;;  %v2586_v48 = vpop.f32.mrf.mxu3  ;;  %v11975_v7 = vld [vmem:[#allocation94_spill] sm:$0xff] }
 0x33d   : > { %11973 = vst [vmem:[#allocation79_spill] sm:$0xff] %v9912_v17  ;;  %v4188_v5 = vadd.f32 %v9912_v17, %v4118_v8  ;;  %v4190_v57 = vadd.f32 %v9912_v17, %v4120_v62  ;;  %v3505_v1 = vmul.f32 %v3437_v43, %v9181_v58  ;;  %v3827_v24 = vmul.f32 %v9910_v15, %v9854_v54 }
 0x33e   : > { %11974 = vst [vmem:[#allocation138_spill] sm:$0xff] %v9921_v40  ;;  %6281 = vrsqrt.f32 %v9900_v35  ;;  %v4189_v9 = vadd.f32 %v9921_v40, %v4119_v37  ;;  %v4191_v32 = vadd.f32 %v9921_v40, %v4121_v23  ;;  %v2841_v62 = vadd.f32 %v2777_v10, %v9837_v28 }
 0x33f   : > { %6283 = vtanh.f32 %v2904_v47  ;;  %v3537_v14 = vmul.f32 %v9915_v36, %v9915_v36  ;;  %v9942_v43 = vsel %vm3814_vm1, %v9791_v34, %v3811_v33  ;;  %v9949_v37 = vadd.f32 %v2497_v45, %v8219_v42 }
 0x340   : > { %11976 = vst [vmem:[#allocation141_spill] sm:$0xff] %v9942_v43  ;;  %v4246_v23 = vpack.c.bf16 %v4189_v9, %v4188_v5  ;;  %v4247_v22 = vpack.c.bf16 %v4191_v32, %v4190_v57  ;;  %v3825_v56 = vsel %vm3824_vm2, %v9797_v60, %v3821_v29  ;;  %v2778_v47 = vmul.f32 0.044715, %v2714_v39  ;;  %v11980_v57 = vld [vmem:[#allocation75_spill] sm:$0xff] }
 0x341   : > { %v9953_v10 = vadd.f32 %v2586_v48, %v8233_v59  ;;  %v3569_v8 = vsub.f32 %v3505_v1, %v3537_v14  ;;  %v9955_v52 = vpop.eup %6279  ;;  %v3828_v34 = vmul.f32 %v9910_v15, %v3827_v24  ;;  %v11979_v5 = vsub.f32 %v11977_v30, %v11978_v51  ;;  %v11981_v1 = vld [vmem:[#allocation69_spill] sm:$0xff]  ;;  %v11983_v14 = vld [vmem:[#allocation72_spill] sm:$0xff] }
 0x342   : > { %v4360_v33 = vunpack.c.l.b16 %v4246_v23  ;;  %v4362_v43 = vunpack.c.l.b16 %v4247_v22  ;;  %v2905_v42 = vmul.f32 0.7978846, %v2841_v62  ;;  %v4361_v45 = vunpack.c.h.b16 %v4246_v23 }
 0x343   : > { %v4044_v9 = vmul.f32 %v11980_v57, %v11979_v5  ;;  %v4363_v32 = vunpack.c.h.b16 %v4247_v22  ;;  %v3601_v60 = vmax.f32 %v3569_v8, 0.0  ;;  %v2651_v29 = vmul.f32 %v9949_v37, %v9949_v37 }
 0x344   : > { %v9962_v39 = vpop.eup %6281  ;;  %v4370_v59 = vpack.c.b16 %v4362_v43, %v4360_v33  ;;  %v11982_v24 = vsub.f32 %v11981_v1, %v11978_v51  ;;  %v11985_v30 = vsub.f32 %v11983_v14, %v11984_v19  ;;  %v11987_v8 = vsub.f32 %v11957_v18, %v9701_v21 }
 0x345   : > { %v9974_v62 = vpop.eup %6283  ;;  %v2842_v43 = vadd.f32 %v2778_v47, %v9871_v26  ;;  %v4371_v22 = vpack.c.b16 %v4363_v32, %v4361_v45  ;;  %v2652_v51 = vmul.f32 %v9953_v10, %v9953_v10  ;;  %v9984_v33 = vmul.f32 0.5, %v3828_v34 }
 0x346   : > { %v4045_v48 = vmul.f32 %v11980_v57, %v11982_v24  ;;  %v4046_v5 = vmul.f32 %v11986_v50, %v11985_v30  ;;  %v9979_v23 = vmul.f32 %v3825_v56, %v11987_v8  ;;  %4397 = vmatpush.bf16.msrb.mxu0 %v4370_v59  ;;  %v11989_v57 = vld [vmem:[#allocation73_spill] sm:$0xff]  ;;  %v4114_v14 = vmul.f32 %v9612_v2, %v4044_v9 }
 0x347   : > { %v11990_v1 = vsub.f32 %v11989_v57, %v11984_v19  ;;  %v11991_v30 = vsub.f32 %v11958_v61, %v9701_v21  ;;  %6285 = vtanh.f32 %v2905_v42  ;;  %v3837_v34 = vmul.f32 %v9962_v39, %v9900_v35  ;;  %4426 = vmatpush.bf16.msrb.mxu1 %v4371_v22  ;;  %v11993_v61 = vld [vmem:[#allocation77_spill] sm:$0xff]  ;;  %v11994_v42 = vld [vmem:[#allocation78_spill] sm:$0xff] }
 0x348   : > { %11988 = vst [vmem:[#allocation93_spill] sm:$0xff] %v9979_v23  ;;  %v4115_v18 = vmul.f32 %v9619_v25, %v4045_v48  ;;  %v9999_v45 = vadd.f32 1e-05, %v3601_v60  ;;  %v2715_v19 = vmul.f32 %v2651_v29, %v9949_v37  ;;  %v4184_v32 = vadd.f32 %v9912_v17, %v4114_v14  ;;  %v11995_v14 = vld [vmem:[#allocation60_spill] sm:$0xff]  ;;  %v12001_v23 = vld [vmem:[#allocation133_spill] sm:$0xff] }
 0x349   : > { %v4047_v24 = vmul.f32 %v11986_v50, %v11990_v1  ;;  %v9995_v47 = vmul.f32 %v3825_v56, %v11991_v30  ;;  %v4116_v50 = vmul.f32 %v9612_v2, %v4046_v5  ;;  %v2716_v59 = vmul.f32 %v2652_v51, %v9953_v10 }
 0x34a   : > { %v4185_v21 = vadd.f32 %v9921_v40, %v4115_v18  ;;  %v3023_v56 = vadd.f32 1.0, %v11993_v61  ;;  %v3024_v48 = vadd.f32 1.0, %v11994_v42  ;;  %v2906_v60 = vmul.f32 0.7978846, %v2842_v43  ;;  %v11996_v18 = vld [vmem:[#allocation89_spill] sm:$0xff]  ;;  %v11998_v61 = vld [vmem:[#allocation131_spill] sm:$0xff] }
 0x34b   : > { %11992 = vst [vmem:[#allocation80_spill] sm:$0xff] %v9995_v47  ;;  %v4117_v9 = vmul.f32 %v9619_v25, %v4047_v24  ;;  %v4186_v22 = vadd.f32 %v9912_v17, %v4116_v50  ;;  %v3838_v5 = vmul.f32 %v9962_v39, %v3837_v34  ;;  %6287 = vrsqrt.f32 %v9999_v45  ;;  %v11999_v47 = vld [vmem:[#allocation61_spill] sm:$0xff] }
 0x34c   : > { %v4244_v57 = vpack.c.bf16 %v4185_v21, %v4184_v32  ;;  %v3087_v1 = vmul.f32 0.5, %v3023_v56  ;;  %v3088_v24 = vmul.f32 0.5, %v3024_v48  ;;  %v11997_v30 = vsub.f32 %v11995_v14, %v11996_v18  ;;  %v12002_v32 = vld [vmem:[#allocation65_spill] sm:$0xff]  ;;  %v12003_v21 = vld [vmem:[#allocation119_spill] sm:$0xff]  ;;  %v12005_v48 = vld [vmem:[#allocation74_spill] sm:$0xff] }
 0x34d   : > { %v4187_v29 = vadd.f32 %v9921_v40, %v4117_v9  ;;  %v12000_v43 = vsub.f32 %v11999_v47, %v11996_v18  ;;  %v10022_v8 = vpop.eup %6285  ;;  %v2779_v9 = vmul.f32 0.044715, %v2715_v19  ;;  %v2780_v34 = vmul.f32 0.044715, %v2716_v59  ;;  %v12007_v18 = vld [vmem:[#allocation66_spill] sm:$0xff] }
 0x34e   : > { %v4040_v42 = vmul.f32 %v11998_v61, %v11997_v30  ;;  %v10025_v41 = vmul.f32 %v3087_v1, %v12001_v23  ;;  %v12004_v56 = vsub.f32 %v12002_v32, %v12003_v21  ;;  %v4357_v30 = vunpack.c.h.b16 %v4244_v57  ;;  %v3241_v1 = vpop.xlane.xlu2 %3240 }
 0x34f   : > { %v4245_v51 = vpack.c.bf16 %v4187_v29, %v4186_v22  ;;  %v4041_v50 = vmul.f32 %v11998_v61, %v12000_v43  ;;  %v4356_v29 = vunpack.c.l.b16 %v4244_v57  ;;  %v10032_v47 = vmul.f32 %v3088_v24, %v12006_v38  ;;  %v3440_v43 = vpop.xlane.xlu1 %3439 }
 0x350   : > { %v4042_v22 = vmul.f32 %v12005_v48, %v12004_v56  ;;  %v12008_v61 = vsub.f32 %v12007_v18, %v12003_v21  ;;  %v4110_v23 = vmul.f32 %v9612_v2, %v4040_v42  ;;  %v3839_v32 = vmul.f32 0.5, %v3838_v5 }
 0x351   : > { %v4358_v14 = vunpack.c.l.b16 %v4245_v51  ;;  %v4359_v27 = vunpack.c.h.b16 %v4245_v51  ;;  %v4111_v59 = vmul.f32 %v9619_v25, %v4041_v50  ;;  %v10041_v51 = vpop.eup %6287  ;;  %v3272_v38 = vadd.f32 %v10032_v47, %v10025_v41 }
 0x352   : > { %v4043_v19 = vmul.f32 %v12005_v48, %v12008_v61  ;;  %v4112_v57 = vmul.f32 %v9612_v2, %v4042_v22  ;;  %v4180_v21 = vadd.f32 %v9912_v17, %v4110_v23  ;;  %6289 = vtanh.f32 %v2906_v60  ;;  %v12012_v61 = vld [vmem:[#allocation51_spill] sm:$0xff] }
 0x353   : > { %v4368_v56 = vpack.c.b16 %v4358_v14, %v4356_v29  ;;  %v4369_v0 = vpack.c.b16 %v4359_v27, %v4357_v30  ;;  %v4181_v42 = vadd.f32 %v9921_v40, %v4111_v59  ;;  %v10050_v27 = vmul.f32 %v9181_v58, %v3241_v1  ;;  %3273 = vadd.xlane.f32.xlu0 %v3272_v38  ;;  %v12009_v29 = vld [vmem:[#allocation49_spill] sm:$0xff]  ;;  %v12010_v14 = vld [vmem:[#allocation122_spill] sm:$0xff] }
 0x354   : > { %v4113_v24 = vmul.f32 %v9619_v25, %v4043_v19  ;;  %v4182_v5 = vadd.f32 %v9912_v17, %v4112_v57  ;;  %v3506_v50 = vmul.f32 %v3440_v43, %v9181_v58  ;;  %v12011_v30 = vsub.f32 %v12009_v29, %v12010_v14 }
 0x355   : > { %4398 = vmatpush.bf16.msrb.mxu0 %v4368_v56  ;;  %4427 = vmatpush.bf16.msrb.mxu1 %v4369_v0  ;;  %v4242_v22 = vpack.c.bf16 %v4181_v42, %v4180_v21  ;;  %v12013_v60 = vsub.f32 %v12012_v61, %v12010_v14  ;;  %v3840_v19 = vsub.f32 1.5, %v3839_v32  ;;  %v2843_v23 = vadd.f32 %v2779_v9, %v9949_v37 }
 0x356   : > { %v4183_v48 = vadd.f32 %v9921_v40, %v4113_v24  ;;  %v4036_v18 = vmul.f32 %v9723_v53, %v12011_v30  ;;  %v2844_v59 = vadd.f32 %v2780_v34, %v9953_v10  ;;  %v3538_v1 = vmul.f32 %v10050_v27, %v10050_v27 }
 0x357   : > { %v4037_v0 = vmul.f32 %v9723_v53, %v12013_v60  ;;  %v3847_v43 = vmul.f32 %v10041_v51, %v9999_v45  ;;  %v4352_v57 = vunpack.c.l.b16 %v4242_v22  ;;  %v4353_v24 = vunpack.c.h.b16 %v4242_v22  ;;  %v3244_v22 = vpop.xlane.xlu0 %3243  ;;  %v3443_v60 = vpop.xlane.xlu2 %3442 }
 0x358   : > { %v4243_v56 = vpack.c.bf16 %v4183_v48, %v4182_v5  ;;  %v4106_v38 = vmul.f32 %v9612_v2, %v4036_v18  ;;  %v3570_v21 = vsub.f32 %v3506_v50, %v3538_v1  ;;  %v4178_v53 = vadd.f32 %v9912_v17, %v9800_v6  ;;  %v10075_v14 = vpop.eup %6289 }
 0x359   : > { %v4107_v42 = vmul.f32 %v9619_v25, %v4037_v0  ;;  %v4179_v29 = vadd.f32 %v9921_v40, %v9803_v4  ;;  %vm3843_vm3 = vweird.f32 %v9962_v39  ;;  %v2907_v5 = vmul.f32 0.7978846, %v2843_v23 }
 0x35a   : > { %v4354_v9 = vunpack.c.l.b16 %v4243_v56  ;;  %v4355_v32 = vunpack.c.h.b16 %v4243_v56  ;;  %v4176_v34 = vadd.f32 %v9912_v17, %v4106_v38  ;;  %v3602_v48 = vmax.f32 %v3570_v21, 0.0 }
 0x35b   : > { %v4177_v50 = vadd.f32 %v9921_v40, %v4107_v42  ;;  %vm3842_vm4 = vweird.f32 %v9900_v35  ;;  %v2908_v30 = vmul.f32 0.7978846, %v2844_v59  ;;  %v3848_v6 = vmul.f32 %v10041_v51, %v3847_v43 }
 0x35c   : > { %v4366_v18 = vpack.c.b16 %v4354_v9, %v4352_v57  ;;  %v4367_v61 = vpack.c.b16 %v4355_v32, %v4353_v24  ;;  %v10081_v0 = vadd.f32 1e-05, %v3602_v48  ;;  %v4241_v1 = vpack.c.bf16 %v4179_v29, %v4178_v53  ;;  %vm3844_vm6 = vmor %vm3842_vm4, %vm3843_vm3 }
 0x35d   : > { %v4240_v4 = vpack.c.bf16 %v4177_v50, %v4176_v34  ;;  %v3382_v56 = vmul.f32 %v10025_v41, %v10025_v41  ;;  %v3841_v23 = vmul.f32 %v9962_v39, %v3840_v19  ;;  %v3383_v38 = vmul.f32 %v10032_v47, %v10032_v47  ;;  %v10098_v50 = vld [vmem:[%s6860_s9] sm:$0xff] }
 0x35e   : > { %4399 = vmatpush.bf16.msrb.mxu0 %v4366_v18  ;;  %4428 = vmatpush.bf16.msrb.mxu1 %v4367_v61  ;;  %v10089_v59 = vmul.f32 %v9181_v58, %v3244_v22  ;;  %v3025_v43 = vadd.f32 1.0, %v9771_v11  ;;  %6291 = vrsqrt.f32 %v10081_v0  ;;  %v4350_v24 = vunpack.c.l.b16 %v4241_v1 }
 0x35f   : > { %v4348_v57 = vunpack.c.l.b16 %v4240_v4  ;;  %v3507_v21 = vmul.f32 %v3443_v60, %v9181_v58  ;;  %v3849_v42 = vmul.f32 0.5, %v3848_v6  ;;  %v4349_v53 = vunpack.c.h.b16 %v4240_v4 }
 0x360   : > { %v4351_v19 = vunpack.c.h.b16 %v4241_v1  ;;  %v3471_v9 = vadd.f32 %v3383_v38, %v3382_v56  ;;  %vm4380_vm5 = vcmask 523264   ;;  %v3539_v34 = vmul.f32 %v10089_v59, %v10089_v59  ;;  %v12015_v56 = vld [vmem:[#allocation139_spill] sm:$0xff] }
 0x361   : > { %v4364_v32 = vpack.c.b16 %v4350_v24, %v4348_v57  ;;  %v3026_v29 = vadd.f32 1.0, %v9784_v44  ;;  %v3089_v11 = vmul.f32 0.5, %v3025_v43  ;;  %v3027_v22 = vadd.f32 1.0, %v9830_v20  ;;  %v12017_v24 = vld [vmem:[#allocation140_spill] sm:$0xff] }
 0x362   : > { %v4365_v48 = vpack.c.b16 %v4351_v19, %v4349_v53  ;;  %3472 = vadd.xlane.f32.xlu0 %v3471_v9  ;;  %v3028_v18 = vadd.f32 1.0, %v9844_v12  ;;  %v3571_v6 = vsub.f32 %v3507_v21, %v3539_v34  ;;  %v3029_v60 = vadd.f32 1.0, %v9903_v46  ;;  %v12016_v12 = vld [vmem:[#allocation97_spill] sm:$0xff]  ;;  %v12018_v19 = vld [vmem:[#allocation98_spill] sm:$0xff] }
 0x363   : > { %4400 = vmatpush.bf16.msrb.mxu0 %v4364_v32  ;;  %v3090_v61 = vmul.f32 0.5, %v3026_v29  ;;  %v3030_v4 = vadd.f32 1.0, %v9917_v16  ;;  %v12014_v1 = vsub.f32 1.5, %v9984_v33  ;;  %v10110_v38 = vmul.f32 %v3089_v11, %v12015_v56  ;;  %v12024_v56 = vld [vmem:[#allocation99_spill] sm:$0xff] }
 0x364   : > { %4429 = vmatpush.bf16.msrb.mxu1 %v4365_v48  ;;  %v3091_v43 = vmul.f32 0.5, %v3027_v22  ;;  %v3092_v20 = vmul.f32 0.5, %v3028_v18  ;;  %v6292_v57 = vpop.eup %6291  ;;  %v3646_v46 = vsub.f32 %v12016_v12, %v9915_v36  ;;  %v3850_v16 = vsub.f32 1.5, %v3849_v42  ;;  %v10172_v12 = vpop.xlane.xlu0 %3255 }
 0x365   : > { %v10107_v44 = vmul.f32 %v9910_v15, %v12014_v1  ;;  %v3603_v33 = vmax.f32 %v3571_v6, 0.0  ;;  %v10119_v21 = vmul.f32 %v3090_v61, %v12017_v24  ;;  %v3845_v53 = vsel %vm3844_vm6, %v9962_v39, %v3841_v23 }
 0x366   : > { %v3647_v9 = vsub.f32 %v12018_v19, %v9915_v36  ;;  %6293 = vtanh.f32 %v2907_v5  ;;  %v3857_v32 = vmul.f32 %v6292_v57, %v10081_v0  ;;  %5722 = vmatmul.msk.bf16.vlgmr.msrb.gmra.mxu0 %vm4380_vm5, %v10098_v50  ;;  %v3093_v42 = vmul.f32 0.5, %v3029_v60 }
 0x367   : > { %6295 = vtanh.f32 %v2908_v30  ;;  %5726 = vmatmul.msk.bf16.vlgmr.msrb.gmra.mxu1 %vm4380_vm5, %v10098_v50  ;;  %v10129_v35 = vadd.f32 1e-05, %v3603_v33  ;;  %v3094_v34 = vmul.f32 0.5, %v3030_v4  ;;  %v3275_v39 = vadd.f32 %v10119_v21, %v10110_v38  ;;  %v3253_v4 = vpop.xlane.xlu2 %3252  ;;  %v12025_v33 = vld [vmem:[#allocation100_spill] sm:$0xff] }
 0x368   : > { %v3858_v29 = vmul.f32 %v6292_v57, %v3857_v32  ;;  %v10134_v36 = vmul.f32 %v3091_v43, %v9636_v31  ;;  %v10137_v5 = vmul.f32 %v3092_v20, %v9661_v13  ;;  %v3851_v23 = vmul.f32 %v10041_v51, %v3850_v16 }
 0x369   : > { %vm3852_vm7 = vweird.f32 %v9999_v45  ;;  %vm3853_vm8 = vweird.f32 %v10041_v51  ;;  %6297 = vrsqrt.f32 %v10129_v35  ;;  %v12020_v30 = vsub.f32 %v11970_v63, %v9814_v3  ;;  %v3452_v45 = vpop.xlane.xlu1 %3451 }
 0x36a   : > { %12019 = vst [vmem:[#allocation94_spill] sm:$0xff] %v10137_v5  ;;  %v12021_v31 = vsub.f32 %v11975_v7, %v9814_v3  ;;  %v3859_v13 = vmul.f32 0.5, %v3858_v29  ;;  %3276 = vadd.xlane.f32.xlu0 %v3275_v39  ;;  %v3384_v22 = vmul.f32 %v10110_v38, %v10110_v38  ;;  %vm3863_vm9 = vweird.f32 %v6292_v57  ;;  %vm3854_vm10 = vmor %vm3852_vm7, %vm3853_vm8 }
 0x36b   : > { %v10146_v48 = vmul.f32 %v3845_v53, %v12020_v30  ;;  %v10156_v18 = vmul.f32 %v3093_v42, %v9710_v55  ;;  %v10159_v6 = vmul.f32 %v3094_v34, %v9727_v49  ;;  %v3385_v63 = vmul.f32 %v10119_v21, %v10119_v21  ;;  %v12026_v30 = vld [vmem:[#allocation105_spill] sm:$0xff] }
 0x36c   : > { %v10151_v11 = vmul.f32 %v3845_v53, %v12021_v31  ;;  %v6294_v61 = vpop.eup %6293  ;;  %v3860_v3 = vsub.f32 1.5, %v3859_v13  ;;  %v3386_v7 = vmul.f32 %v10134_v36, %v10134_v36  ;;  %v3387_v60 = vmul.f32 %v10137_v5, %v10137_v5 }
 0x36d   : > { %12022 = vst [vmem:[#allocation68_spill] sm:$0xff] %v10156_v18  ;;  %v3278_v55 = vadd.f32 %v10137_v5, %v10134_v36  ;;  %v6296_v1 = vpop.eup %6295  ;;  %v3855_v49 = vsel %vm3854_vm10, %v10041_v51, %v3851_v23  ;;  %v3648_v43 = vsub.f32 %v12024_v56, %v10050_v27  ;;  %v3474_v20 = vadd.f32 %v3385_v63, %v3384_v22  ;;  %v10197_v63 = vld [vmem:[%s6860_s9 + $0x8] sm:$0xff] }
 0x36e   : > { %12023 = vst [vmem:[#allocation121_spill] sm:$0xff] %v10159_v6  ;;  %v3033_v16 = vadd.f32 1.0, %v10022_v8  ;;  %v3649_v24 = vsub.f32 %v12025_v33, %v10050_v27  ;;  %v3861_v53 = vmul.f32 %v6292_v57, %v3860_v3  ;;  %vm3862_vm11 = vweird.f32 %v10081_v0 }
 0x36f   : > { %3279 = vadd.xlane.f32.xlu2 %v3278_v55  ;;  %v3034_v19 = vadd.f32 1.0, %v10075_v14  ;;  %v6298_v32 = vpop.eup %6297  ;;  %vm3864_vm12 = vmor %vm3862_vm11, %vm3863_vm9  ;;  %v3388_v51 = vmul.f32 %v10156_v18, %v10156_v18  ;;  %v3389_v42 = vmul.f32 %v10159_v6, %v10159_v6  ;;  %v10185_v8 = vmul.f32 %v9181_v58, %v3253_v4  ;;  %3475 = vadd.xlane.f32.xlu1 %v3474_v20 }
 0x370   : > { %v3097_v27 = vmul.f32 0.5, %v3033_v16  ;;  %v10187_v34 = vmul.f32 %v3855_v49, %v3646_v46  ;;  %v3865_v0 = vsel %vm3864_vm12, %v6292_v57, %v3861_v53  ;;  %v3867_v14 = vmul.f32 %v6298_v32, %v10129_v35 }
 0x371   : > { %v3477_v29 = vadd.f32 %v3387_v60, %v3386_v7  ;;  %vm3833_vm13 = vweird.f32 %v9910_v15  ;;  %v10191_v39 = vmul.f32 %v3855_v49, %v3647_v9  ;;  %v4064_v23 = vmul.f32 %v3865_v0, %v3648_v43  ;;  %v3259_v3 = vpop.xlane.xlu1 %3258 }
 0x372   : > { %v3650_v31 = vsub.f32 %v12026_v30, %v10089_v59  ;;  %vm3872_vm14 = vweird.f32 %v10129_v35  ;;  %v4065_v13 = vmul.f32 %v3865_v0, %v3649_v24  ;;  %v3868_v22 = vmul.f32 %v6298_v32, %v3867_v14  ;;  %v3458_v24 = vpop.xlane.xlu0 %3457  ;;  %v12029_v0 = vld [vmem:[#allocation106_spill] sm:$0xff] }
 0x373   : > { %3478 = vadd.xlane.f32.xlu0 %v3477_v29  ;;  %v3098_v46 = vmul.f32 0.5, %v3034_v19  ;;  %v10200_v57 = vmul.f32 %v3097_v27, %v9837_v28  ;;  %vm3832_vm15 = vweird.f32 %v9854_v54  ;;  %v3480_v9 = vadd.f32 %v3389_v42, %v3388_v51  ;;  %v3262_v54 = vpop.xlane.xlu2 %3261 }
 0x374   : > { %v3542_v7 = vmul.f32 %v10185_v8, %v10185_v8  ;;  %v3510_v60 = vmul.f32 %v3452_v45, %v9181_v58  ;;  %v3031_v4 = vadd.f32 1.0, %v9955_v52  ;;  %v4134_v55 = vmul.f32 %v9612_v2, %v4064_v23  ;;  %vm3834_vm2 = vmor %vm3832_vm15, %vm3833_vm13 }
 0x375   : > { %12027 = vst [vmem:[#allocation75_spill] sm:$0xff] %v10200_v57  ;;  %v3869_v49 = vmul.f32 0.5, %v3868_v22  ;;  %v3032_v56 = vadd.f32 1.0, %v9974_v62  ;;  %v10210_v43 = vmul.f32 %v3098_v46, %v9871_v26  ;;  %v3281_v28 = vadd.f32 %v10159_v6, %v10156_v18 }
 0x376   : > { %v3035_v20 = vadd.f32 1.0, %v6294_v61  ;;  %v3036_v16 = vadd.f32 1.0, %v6296_v1  ;;  %v10215_v33 = vmul.f32 %v9181_v58, %v3259_v3  ;;  %v4135_v45 = vmul.f32 %v9619_v25, %v4065_v13  ;;  %5723 = vmatmul.msk.bf16.gmra.mxu0 %vm4380_vm5, %v10197_v63 }
 0x377   : > { %12028 = vst [vmem:[#allocation69_spill] sm:$0xff] %v10210_v43  ;;  %v3870_v52 = vsub.f32 1.5, %v3869_v49  ;;  %vm3873_vm0 = vweird.f32 %v6298_v32  ;;  %v3287_v26 = vadd.f32 %v10210_v43, %v10200_v57  ;;  %5727 = vmatmul.msk.bf16.gmra.mxu1 %vm4380_vm5, %v10197_v63  ;;  %v3574_v62 = vsub.f32 %v3510_v60, %v3542_v7  ;;  %3282 = vadd.xlane.f32.xlu2 %v3281_v28 }
 0x378   : > { %v3095_v61 = vmul.f32 0.5, %v3031_v4  ;;  %v3099_v1 = vmul.f32 0.5, %v3035_v20  ;;  %v3100_v53 = vmul.f32 0.5, %v3036_v16  ;;  %v3096_v51 = vmul.f32 0.5, %v3032_v56  ;;  %vm3874_vm1 = vmor %vm3872_vm14, %vm3873_vm0 }
 0x379   : > { %v3871_v19 = vmul.f32 %v6298_v32, %v3870_v52  ;;  %3288 = vadd.xlane.f32.xlu1 %v3287_v26  ;;  %v3512_v42 = vmul.f32 %v3458_v24, %v9181_v58  ;;  %v3544_v27 = vmul.f32 %v10215_v33, %v10215_v33  ;;  %v3651_v14 = vsub.f32 %v12029_v0, %v10089_v59 }
 0x37a   : > { %v10233_v29 = vmul.f32 %v3099_v1, %v9949_v37  ;;  %v10236_v23 = vmul.f32 %v3100_v53, %v9953_v10  ;;  %v4204_v30 = vadd.f32 %v9912_v17, %v4134_v55  ;;  %v4205_v22 = vadd.f32 %v9921_v40, %v4135_v45 }
 0x37b   : > { %v3875_v13 = vsel %vm3874_vm1, %v6298_v32, %v3871_v19  ;;  %3481 = vadd.xlane.f32.xlu0 %v3480_v9  ;;  %v4130_v46 = vmul.f32 %v9612_v2, %v10146_v48  ;;  %v4131_v59 = vmul.f32 %v9619_v25, %v10151_v11  ;;  %v3606_v32 = vmax.f32 %v3574_v62, 0.0  ;;  %v12032_v9 = vld [vmem:[#allocation151_spill] sm:$0xff]  ;;  %v12034_v48 = vld [vmem:[#allocation152_spill] sm:$0xff] }
 0x37c   : > { %12030 = vst [vmem:[#allocation72_spill] sm:$0xff] %v10233_v29  ;;  %v4066_v35 = vmul.f32 %v3875_v13, %v3650_v31  ;;  %v4067_v3 = vmul.f32 %v3875_v13, %v3651_v14  ;;  %v3394_v37 = vmul.f32 %v10233_v29, %v10233_v29  ;;  %v3395_v10 = vmul.f32 %v10236_v23, %v10236_v23  ;;  %v12039_v19 = vld [vmem:[#allocation95_spill] sm:$0xff]  ;;  %v10285_v14 = vld [vmem:[%s6860_s9 + $0x10] sm:$0xff] }
 0x37d   : > { %12031 = vst [vmem:[#allocation128_spill] sm:$0xff] %v10236_v23  ;;  %v10253_v7 = vmul.f32 %v3095_v61, %v12032_v9  ;;  %v10256_v60 = vmul.f32 %v3096_v51, %v12034_v48  ;;  %v3576_v11 = vsub.f32 %v3512_v42, %v3544_v27  ;;  %v3835_v31 = vsel %vm3834_vm2, %v9910_v15, %v10107_v44  ;;  %v12037_v61 = vld [vmem:[#allocation150_spill] sm:$0xff]  ;;  %v12044_v48 = vld [vmem:[#allocation141_spill] sm:$0xff] }
 0x37e   : > { %v4136_v4 = vmul.f32 %v9612_v2, %v4066_v35  ;;  %v4137_v55 = vmul.f32 %v9619_v25, %v4067_v3  ;;  %v4132_v49 = vmul.f32 %v9612_v2, %v10187_v34  ;;  %v3489_v56 = vadd.f32 %v3395_v10, %v3394_v37  ;;  %v12041_v10 = vld [vmem:[#allocation87_spill] sm:$0xff] }
 0x37f   : > { %12033 = vst [vmem:[#allocation143_spill] sm:$0xff] %v10253_v7  ;;  %v4254_v28 = vpack.c.bf16 %v4205_v22, %v4204_v30  ;;  %v4133_v20 = vmul.f32 %v9619_v25, %v10191_v39  ;;  %v4200_v16 = vadd.f32 %v9912_v17, %v4130_v46  ;;  %v4201_v44 = vadd.f32 %v9921_v40, %v4131_v59  ;;  %v12036_v39 = vld [vmem:[#allocation92_spill] sm:$0xff] }
 0x380   : > { %12035 = vst [vmem:[#allocation73_spill] sm:$0xff] %v10256_v60  ;;  %v4206_v24 = vadd.f32 %v9912_v17, %v4136_v4  ;;  %v4207_v15 = vadd.f32 %v9921_v40, %v4137_v55  ;;  %v4202_v45 = vadd.f32 %v9912_v17, %v4132_v49  ;;  %v10271_v52 = vadd.f32 1e-05, %v3606_v32  ;;  %v12042_v32 = vld [vmem:[#allocation149_spill] sm:$0xff] }
 0x381   : > { %v3284_v34 = vadd.f32 %v10256_v60, %v10253_v7  ;;  %3490 = vadd.xlane.f32.xlu1 %v3489_v56  ;;  %v3608_v26 = vmax.f32 %v3576_v11, 0.0  ;;  %v4203_v62 = vadd.f32 %v9921_v40, %v4133_v20  ;;  %v12038_v1 = vsub.f32 %v12036_v39, %v12037_v61  ;;  %v12048_v39 = vld [vmem:[#allocation80_spill] sm:$0xff] }
 0x382   : > { %v12040_v51 = vsub.f32 %v12039_v19, %v12037_v61  ;;  %v4255_v27 = vpack.c.bf16 %v4207_v15, %v4206_v24  ;;  %v3290_v0 = vadd.f32 %v10236_v23, %v10233_v29  ;;  %v3390_v30 = vmul.f32 %v10253_v7, %v10253_v7  ;;  %v3464_v24 = vpop.xlane.xlu2 %3463 }
 0x383   : > { %v4058_v53 = vmul.f32 %v3835_v31, %v12038_v1  ;;  %3285 = vadd.xlane.f32.xlu0 %v3284_v34  ;;  %v3391_v13 = vmul.f32 %v10256_v60, %v10256_v60  ;;  %v4252_v22 = vpack.c.bf16 %v4201_v44, %v4200_v16  ;;  %v4253_v46 = vpack.c.bf16 %v4203_v62, %v4202_v45  ;;  %v12047_v34 = vld [vmem:[#allocation93_spill] sm:$0xff] }
 0x384   : > { %v4059_v42 = vmul.f32 %v3835_v31, %v12040_v51  ;;  %v4471_v59 = vunpack.c.l.b16 %v4254_v28  ;;  %v4473_v35 = vunpack.c.l.b16 %v4255_v27  ;;  %v4472_v3 = vunpack.c.h.b16 %v4254_v28  ;;  %3291 = vadd.xlane.f32.xlu2 %v3290_v0  ;;  %v12045_v31 = vld [vmem:[#allocation88_spill] sm:$0xff]  ;;  %v3461_v51 = vpop.xlane.xlu1 %3460  ;;  %v12076_v60 = vld [vmem:[#allocation33_spill] sm:$0xff] }
 0x385   : > { %v4474_v37 = vunpack.c.h.b16 %v4255_v27  ;;  %v12043_v9 = vsub.f32 %v12041_v10, %v12042_v32  ;;  %v12046_v4 = vsub.f32 %v12045_v31, %v12042_v32  ;;  %6299 = vrsqrt.f32 %v10271_v52  ;;  %v12050_v10 = vld [vmem:[#allocation154_spill] sm:$0xff] }
 0x386   : > { %v10300_v49 = vadd.f32 1e-05, %v3608_v26  ;;  %v4481_v56 = vpack.c.b16 %v4473_v35, %v4471_v59  ;;  %v4469_v16 = vunpack.c.l.b16 %v4253_v46  ;;  %v4470_v28 = vunpack.c.h.b16 %v4253_v46  ;;  %5724 = vmatmul.msk.bf16.gmra.mxu0 %vm4380_vm5, %v10285_v14 }
 0x387   : > { %v4054_v11 = vmul.f32 %v12044_v48, %v12043_v9  ;;  %v4055_v55 = vmul.f32 %v12044_v48, %v12046_v4  ;;  %v4482_v20 = vpack.c.b16 %v4474_v37, %v4472_v3  ;;  %v3483_v15 = vadd.f32 %v3391_v13, %v3390_v30  ;;  %5728 = vmatmul.msk.bf16.gmra.mxu1 %vm4380_vm5, %v10285_v14  ;;  %v3265_v30 = vpop.xlane.xlu0 %3264  ;;  %v12049_v3 = vld [vmem:[#allocation86_spill] sm:$0xff] }
 0x388   : > { %v4467_v44 = vunpack.c.l.b16 %v4252_v22  ;;  %v10305_v45 = vmul.f32 %v9181_v58, %v3262_v54  ;;  %v4126_v62 = vmul.f32 %v9612_v2, %v12047_v34  ;;  %4495 = vmatpush.bf16.msra.mxu2 %v4481_v56  ;;  %v4468_v26 = vunpack.c.h.b16 %v4252_v22 }
 0x389   : > { %v4127_v61 = vmul.f32 %v9619_v25, %v12048_v39  ;;  %v4128_v1 = vmul.f32 %v9612_v2, %v4058_v53  ;;  %v4129_v19 = vmul.f32 %v9619_v25, %v4059_v42  ;;  %4524 = vmatpush.bf16.msra.mxu3 %v4482_v20  ;;  %6301 = vrsqrt.f32 %v10300_v49 }
 0x38a   : > { %v3392_v54 = vmul.f32 %v10200_v57, %v10200_v57  ;;  %v4196_v27 = vadd.f32 %v9912_v17, %v4126_v62  ;;  %v3545_v0 = vmul.f32 %v10305_v45, %v10305_v45  ;;  %v4479_v13 = vpack.c.b16 %v4469_v16, %v4467_v44 }
 0x38b   : > { %v4480_v22 = vpack.c.b16 %v4470_v28, %v4468_v26  ;;  %v4197_v46 = vadd.f32 %v9921_v40, %v4127_v61  ;;  %v4198_v53 = vadd.f32 %v9912_v17, %v4128_v1  ;;  %v10323_v42 = vpop.eup %6299  ;;  %3484 = vadd.xlane.f32.xlu0 %v3483_v15  ;;  %v4199_v59 = vadd.f32 %v9921_v40, %v4129_v19  ;;  %v12051_v15 = vld [vmem:[#allocation123_spill] sm:$0xff] }
 0x38c   : > { %v3513_v35 = vmul.f32 %v3461_v51, %v9181_v58  ;;  %v4122_v37 = vmul.f32 %v9612_v2, %v12049_v3  ;;  %v4123_v32 = vmul.f32 %v9619_v25, %v12050_v10  ;;  %4496 = vmatpush.bf16.msra.mxu2 %v4479_v13  ;;  %v3393_v9 = vmul.f32 %v10210_v43, %v10210_v43  ;;  %v3268_v13 = vpop.xlane.xlu1 %3267 }
 0x38d   : > { %v4250_v48 = vpack.c.bf16 %v4197_v46, %v4196_v27  ;;  %v4124_v31 = vmul.f32 %v9612_v2, %v4054_v11  ;;  %v4125_v4 = vmul.f32 %v9619_v25, %v4055_v55  ;;  %4525 = vmatpush.bf16.msra.mxu3 %v4480_v22  ;;  %v4251_v56 = vpack.c.bf16 %v4199_v59, %v4198_v53  ;;  %v3455_v22 = vpop.xlane.xlu2 %3454 }
 0x38e   : > { %v3577_v20 = vsub.f32 %v3513_v35, %v3545_v0  ;;  %v4192_v16 = vadd.f32 %v9912_v17, %v4122_v37  ;;  %v4193_v28 = vadd.f32 %v9921_v40, %v4123_v32  ;;  %v2206_v44 = vmul.f32 0.5, %v12051_v15  ;;  %v12054_v15 = vld [vmem:[#allocation124_spill] sm:$0xff] }
 0x38f   : > { %v3897_v34 = vmul.f32 %v10323_v42, %v10271_v52  ;;  %v4463_v62 = vunpack.c.l.b16 %v4250_v48  ;;  %v4194_v26 = vadd.f32 %v9912_v17, %v4124_v31  ;;  %v10341_v39 = vpop.eup %6301  ;;  %v4465_v11 = vunpack.c.l.b16 %v4251_v56  ;;  %v3467_v3 = vpop.xlane.xlu0 %3466  ;;  %v12052_v31 = vld [vmem:[#allocation103_spill] sm:$0xff] }
 0x390   : > { %v4466_v61 = vunpack.c.h.b16 %v4251_v56  ;;  %v3609_v55 = vmax.f32 %v3577_v20, 0.0  ;;  %v4195_v1 = vadd.f32 %v9921_v40, %v4125_v4  ;;  %v10346_v19 = vmul.f32 %v9181_v58, %v10172_v12 }
 0x391   : > { %v4464_v51 = vunpack.c.h.b16 %v4250_v48  ;;  %v4248_v27 = vpack.c.bf16 %v4193_v28, %v4192_v16  ;;  %v10349_v0 = vmul.f32 %v9181_v58, %v3265_v30  ;;  %v3486_v46 = vadd.f32 %v3393_v9, %v3392_v54  ;;  %v10358_v48 = vld [vmem:[%s6860_s9 + $0x18] sm:$0xff] }
 0x392   : > { %v4477_v53 = vpack.c.b16 %v4465_v11, %v4463_v62  ;;  %v10351_v59 = vadd.f32 1e-05, %v3609_v55  ;;  %v4249_v35 = vpack.c.bf16 %v4195_v1, %v4194_v26  ;;  %v3898_v37 = vmul.f32 %v10323_v42, %v3897_v34  ;;  %v12055_v62 = vld [vmem:[#allocation125_spill] sm:$0xff] }
 0x393   : > { %v3917_v10 = vmul.f32 %v10341_v39, %v10300_v49  ;;  %v4478_v12 = vpack.c.b16 %v4466_v61, %v4464_v51  ;;  %v3514_v32 = vmul.f32 %v3464_v24, %v9181_v58  ;;  %3487 = vadd.xlane.f32.xlu0 %v3486_v46  ;;  %v4459_v54 = vunpack.c.l.b16 %v4248_v27  ;;  %v12053_v24 = vld [vmem:[#allocation71_spill] sm:$0xff] }
 0x394   : > { %4497 = vmatpush.bf16.msra.mxu2 %v4477_v53  ;;  %6303 = vrsqrt.f32 %v10351_v59  ;;  %v4461_v30 = vunpack.c.l.b16 %v4249_v35  ;;  %v4462_v9 = vunpack.c.h.b16 %v4249_v35  ;;  %v2270_v4 = vmul.f32 %v2206_v44, %v12052_v31  ;;  %v12056_v35 = vld [vmem:[#allocation23_spill] sm:$0xff] }
 0x395   : > { %4526 = vmatpush.bf16.msra.mxu3 %v4478_v12  ;;  %v4460_v56 = vunpack.c.h.b16 %v4248_v27  ;;  %v3546_v20 = vmul.f32 %v10349_v0, %v10349_v0  ;;  %v10365_v16 = vmul.f32 %v9181_v58, %v3268_v13  ;;  %v10368_v28 = vmul.f32 0.7978846, %v12053_v24  ;;  %v590_v27 = vld [vmem:[%s6855_s25 + $0x18] sm:$0xff]  ;;  %v12058_v12 = vld [vmem:[#allocation115_spill] sm:$0xff]  ;;  %v3446_v24 = vpop.xlane.xlu2 %3445 }
 0x396   : > { %v2145_v34 = vadd.f32 1.0, %v12054_v15  ;;  %v2146_v26 = vadd.f32 1.0, %v12055_v62  ;;  %v4475_v11 = vpack.c.b16 %v4461_v30, %v4459_v54  ;;  %v3918_v61 = vmul.f32 %v10341_v39, %v3917_v10  ;;  %5725 = vmatmul.msk.bf16.gmra.mxu0 %vm4380_vm5, %v10358_v48  ;;  %v12060_v54 = vld [vmem:[#allocation120_spill] sm:$0xff] }
 0x397   : > { %v4476_v44 = vpack.c.b16 %v4462_v9, %v4460_v56  ;;  %v3578_v55 = vsub.f32 %v3514_v32, %v3546_v20  ;;  %v3511_v1 = vmul.f32 %v3455_v22, %v9181_v58  ;;  %v3899_v51 = vmul.f32 0.5, %v3898_v37  ;;  %5729 = vmatmul.msk.bf16.gmra.mxu1 %vm4380_vm5, %v10358_v48  ;;  %v12057_v37 = vld [vmem:[#allocation90_spill] sm:$0xff]  ;;  %v3247_v15 = vpop.xlane.xlu0 %3246  ;;  %v592_v62 = vld [vmem:[%s6855_s25 + $0x28] sm:$0xff] }
 0x398   : > { %4498 = vmatpush.bf16.msra.mxu2 %v4475_v11  ;;  %v3543_v13 = vmul.f32 %v10346_v19, %v10346_v19  ;;  %v3515_v46 = vmul.f32 %v3467_v3, %v9181_v58  ;;  %v3547_v53 = vmul.f32 %v10365_v16, %v10365_v16  ;;  %v10384_v10 = vmul.f32 %v12056_v35, %v12056_v35  ;;  %v12062_v9 = vld [vmem:[#allocation110_spill] sm:$0xff] }
 0x399   : > { %4527 = vmatpush.bf16.msra.mxu3 %v4476_v44  ;;  %v3610_v22 = vmax.f32 %v3578_v55, 0.0  ;;  %v10390_v32 = vpack.c.bf16 %v12058_v12, %v12057_v37  ;;  %v10393_v30 = vpack.c.bf16 %v2270_v4, %v12060_v54  ;;  %6305 = vtanh.f32 %v12062_v9  ;;  %v3250_v4 = vpop.xlane.xlu1 %3249  ;;  %v12064_v54 = vld [vmem:[#allocation114_spill] sm:$0xff] }
 0x39a   : > { %v10395_v3 = vpop.eup %6303  ;;  %v2209_v31 = vmul.f32 0.5, %v2145_v34  ;;  %v3575_v56 = vsub.f32 %v3511_v1, %v3543_v13  ;;  %v3579_v20 = vsub.f32 %v3515_v46, %v3547_v53  ;;  %v2210_v11 = vmul.f32 0.5, %v2146_v26  ;;  %4297 = vperm.xlu1 %5988, %v590_v27  }
 0x39b   : > { %12059 = vst [vmem:[#allocation77_spill] sm:$0xff] %v10390_v32  ;;  %v3927_v44 = vmul.f32 %v10395_v3, %v10351_v59  ;;  %5730 = vmatmul.msk.bf16.vlgmr.msra.gmra.mxu2 %vm4380_vm5, %v10098_v50  ;;  %v10403_v55 = vadd.f32 1e-05, %v3610_v22  ;;  %v10406_v37 = vmul.f32 %v9181_v58, %v3247_v15  ;;  %v3900_v34 = vsub.f32 1.5, %v3899_v51  ;;  %v12063_v22 = vld [vmem:[#allocation111_spill] sm:$0xff] }
 0x39c   : > { %12061 = vst [vmem:[#allocation78_spill] sm:$0xff] %v10393_v30  ;;  %v3919_v1 = vmul.f32 0.5, %v3918_v61  ;;  %5734 = vmatmul.msk.bf16.vlgmr.msra.gmra.mxu3 %vm4380_vm5, %v10098_v50  ;;  %v3607_v13 = vmax.f32 %v3575_v56, 0.0  ;;  %v3611_v26 = vmax.f32 %v3579_v20, 0.0  ;;  %v3508_v53 = vmul.f32 %v3446_v24, %v9181_v58  ;;  %4307 = vperm.xlu2 %5989, %v592_v62   ;;  %v12065_v56 = vld [vmem:[#allocation117_spill] sm:$0xff]  ;;  %v12066_v62 = vld [vmem:[#allocation118_spill] sm:$0xff] }
 0x39d   : > { %v3928_v46 = vmul.f32 %v10395_v3, %v3927_v44  ;;  %6307 = vrsqrt.f32 %v10403_v55  ;;  %v3540_v27 = vmul.f32 %v10406_v37, %v10406_v37  ;;  %v2273_v12 = vmul.f32 %v2209_v31, %v12063_v22  ;;  %v594_v20 = vld [vmem:[%s6855_s25 + $0x38] sm:$0xff] }
 0x39e   : > { %v10416_v51 = vadd.f32 1e-05, %v3607_v13  ;;  %v10418_v61 = vadd.f32 1e-05, %v3611_v26  ;;  %v10421_v50 = vmul.f32 %v9181_v58, %v3250_v4  ;;  %v2274_v9 = vmul.f32 %v2210_v11, %v12064_v54  ;;  %v12067_v13 = vld [vmem:[#allocation126_spill] sm:$0xff]  ;;  %v593_v4 = vld [vmem:[%s6855_s25 + $0x30] sm:$0xff] }
 0x39f   : > { %v3929_v24 = vmul.f32 0.5, %v3928_v46  ;;  %v3572_v15 = vsub.f32 %v3508_v53, %v3540_v27  ;;  %v10426_v44 = vpop.eup %6305  ;;  %v3920_v22 = vsub.f32 1.5, %v3919_v1  ;;  %v3901_v11 = vmul.f32 %v10323_v42, %v3900_v34  ;;  %v12068_v53 = vld [vmem:[#allocation127_spill] sm:$0xff]  ;;  %v12069_v54 = vld [vmem:[#allocation129_spill] sm:$0xff]  ;;  %v3449_v26 = vpop.xlane.xlu0 %3448 }
 0x3a0   : > { %6309 = vrsqrt.f32 %v10416_v51  ;;  %vm3903_vm3 = vweird.f32 %v10323_v42  ;;  %vm3902_vm4 = vweird.f32 %v10271_v52  ;;  %v3660_v31 = vsub.f32 %v12069_v54, %v10215_v33  ;;  %v12071_v54 = vld [vmem:[#allocation130_spill] sm:$0xff] }
 0x3a1   : > { %6311 = vrsqrt.f32 %v10418_v61  ;;  %v3604_v46 = vmax.f32 %v3572_v15, 0.0  ;;  %v3541_v1 = vmul.f32 %v10421_v50, %v10421_v50  ;;  %v3930_v30 = vsub.f32 1.5, %v3929_v24  ;;  %vm3904_vm6 = vmor %vm3902_vm4, %vm3903_vm3 }
 0x3a2   : > { %4312 = vperm.xlu1 %5988, %v593_v4   ;;  %v3509_v15 = vmul.f32 %v3449_v26, %v9181_v58  ;;  %v10448_v52 = vpack.c.bf16 %v2274_v9, %v2273_v12  ;;  %v3661_v27 = vsub.f32 %v12071_v54, %v10215_v33  ;;  %v3921_v23 = vmul.f32 %v10341_v39, %v3920_v22  ;;  %v591_v26 = vld [vmem:[%s6855_s25 + $0x20] sm:$0xff]  ;;  %v12072_v33 = vld [vmem:[#allocation132_spill] sm:$0xff] }
 0x3a3   : > { %v6308_v34 = vpop.eup %6307  ;;  %v10445_v32 = vadd.f32 1e-05, %v3604_v46  ;;  %vm3923_vm7 = vweird.f32 %v10341_v39  ;;  %v10458_v24 = vsel %vm3904_vm6, %v10323_v42, %v3901_v11  ;;  %vm3922_vm8 = vweird.f32 %v10300_v49  ;;  %v12073_v22 = vld [vmem:[#allocation135_spill] sm:$0xff]  ;;  %v12074_v54 = vld [vmem:[#allocation136_spill] sm:$0xff] }
 0x3a4   : > { %12070 = vst [vmem:[#allocation60_spill] sm:$0xff] %v10448_v52  ;;  %v3937_v29 = vmul.f32 %v6308_v34, %v10403_v55  ;;  %v3573_v12 = vsub.f32 %v3509_v15, %v3541_v1  ;;  %4317 = vperm.xlu2 %5989, %v594_v20   ;;  %v3662_v4 = vsub.f32 %v12072_v33, %v10305_v45  ;;  %vm3924_vm9 = vmor %vm3922_vm8, %vm3923_vm7  ;;  %vm3933_vm10 = vweird.f32 %v10395_v3 }
 0x3a5   : > { %6313 = vrsqrt.f32 %v10445_v32  ;;  %v3663_v46 = vsub.f32 %v12073_v22, %v10305_v45  ;;  %v3664_v52 = vsub.f32 %v12074_v54, %v10349_v0  ;;  %v3931_v49 = vmul.f32 %v10395_v3, %v3930_v30 }
 0x3a6   : > { %v10463_v9 = vpop.eup %6309  ;;  %v3938_v42 = vmul.f32 %v6308_v34, %v3937_v29  ;;  %v3605_v1 = vmax.f32 %v3573_v12, 0.0  ;;  %v3925_v15 = vsel %vm3924_vm9, %v10341_v39, %v3921_v23  ;;  %vm3932_vm11 = vweird.f32 %v10351_v59  ;;  %v12075_v29 = vld [vmem:[#allocation137_spill] sm:$0xff]  ;;  %v12077_v23 = vld [vmem:[#allocation34_spill] sm:$0xff]  ;;  %v12079_v59 = vld [vmem:[#allocation35_spill] sm:$0xff] }
 0x3a7   : > { %v6312_v11 = vpop.eup %6311  ;;  %v3907_v20 = vmul.f32 %v10463_v9, %v10416_v51  ;;  %4302 = vperm.xlu0 %5990, %v591_v26   ;;  %v3665_v22 = vsub.f32 %v12075_v29, %v10349_v0  ;;  %vm3943_vm12 = vweird.f32 %v6308_v34  ;;  %vm3934_vm13 = vmor %vm3932_vm11, %vm3933_vm10  ;;  %v3271_v12 = vpop.xlane.xlu0 %3270  ;;  %v10485_v39 = vpack.c.bf16 %v12077_v23, %v12076_v60 }
 0x3a8   : > { %v3939_v33 = vmul.f32 0.5, %v3938_v42  ;;  %v3947_v45 = vmul.f32 %v6312_v11, %v10418_v61  ;;  %v10481_v54 = vadd.f32 1e-05, %v3605_v1  ;;  %v12080_v42 = vld [vmem:[#allocation36_spill] sm:$0xff]  ;;  %v4076_v0 = vmul.f32 %v3925_v15, %v3660_v31 }
 0x3a9   : > { %v3908_v30 = vmul.f32 %v10463_v9, %v3907_v20  ;;  %12078 = vst [vmem:[#allocation89_spill] sm:$0xff] %v10485_v39  ;;  %v10489_v7 = vpack.c.bf16 %v12080_v42, %v12079_v59  ;;  %v3935_v29 = vsel %vm3934_vm13, %v10395_v3, %v3931_v49  ;;  %vm3942_vm14 = vweird.f32 %v10403_v55  ;;  %v12082_v3 = vld [vmem:[#allocation142_spill] sm:$0xff]  ;;  %v12083_v31 = vld [vmem:[#allocation144_spill] sm:$0xff]  ;;  %v12129_v39 = vld [vmem:[#allocation19_spill] sm:$0xff] }
 0x3aa   : > { %v3940_v6 = vsub.f32 1.5, %v3939_v33  ;;  %v3948_v18 = vmul.f32 %v6312_v11, %v3947_v45  ;;  %6315 = vrsqrt.f32 %v10481_v54  ;;  %v4077_v45 = vmul.f32 %v3925_v15, %v3661_v27  ;;  %vm3944_vm15 = vmor %vm3942_vm14, %vm3943_vm12 }
 0x3ab   : > { %12081 = vst [vmem:[#allocation131_spill] sm:$0xff] %v10489_v7  ;;  %v10491_v26 = vpop.eup %6313  ;;  %v3909_v20 = vmul.f32 0.5, %v3908_v30  ;;  %5731 = vmatmul.msk.bf16.gmra.mxu2 %vm4380_vm5, %v10197_v63  ;;  %v3666_v55 = vsub.f32 %v12082_v3, %v10365_v16  ;;  %v3667_v49 = vsub.f32 %v12083_v31, %v10365_v16  ;;  %vm3953_vm0 = vweird.f32 %v6312_v11 }
 0x3ac   : > { %v3941_v1 = vmul.f32 %v6308_v34, %v3940_v6  ;;  %v3949_v33 = vmul.f32 0.5, %v3948_v18  ;;  %5735 = vmatmul.msk.bf16.gmra.mxu3 %vm4380_vm5, %v10197_v63  ;;  %v3877_v60 = vmul.f32 %v10491_v26, %v10445_v32  ;;  %v10508_v63 = vmul.f32 %v9181_v58, %v3271_v12 }
 0x3ad   : > { %v3910_v30 = vsub.f32 1.5, %v3909_v20  ;;  %v4078_v23 = vmul.f32 %v3935_v29, %v3662_v4  ;;  %v4079_v15 = vmul.f32 %v3935_v29, %v3663_v46  ;;  %vm3912_vm1 = vweird.f32 %v10416_v51 }
 0x3ae   : > { %v3945_v6 = vsel %vm3944_vm15, %v6308_v34, %v3941_v1  ;;  %v3950_v18 = vsub.f32 1.5, %v3949_v33  ;;  %v3878_v27 = vmul.f32 %v10491_v26, %v3877_v60  ;;  %vm3952_vm2 = vweird.f32 %v10418_v61 }
 0x3af   : > { %v4080_v59 = vmul.f32 %v3945_v6, %v3664_v52  ;;  %v4081_v42 = vmul.f32 %v3945_v6, %v3665_v22  ;;  %v3911_v20 = vmul.f32 %v10463_v9, %v3910_v30  ;;  %vm3913_vm3 = vweird.f32 %v10463_v9  ;;  %vm3954_vm4 = vmor %vm3952_vm2, %vm3953_vm0  ;;  %v3470_v22 = vpop.xlane.xlu0 %3469 }
 0x3b0   : > { %v3951_v7 = vmul.f32 %v6312_v11, %v3950_v18  ;;  %v10517_v4 = vpop.eup %6315  ;;  %v3548_v46 = vmul.f32 %v10508_v63, %v10508_v63  ;;  %v4146_v12 = vmul.f32 %v9612_v2, %v4076_v0  ;;  %v4147_v61 = vmul.f32 %v9619_v25, %v4077_v45  ;;  %vm3914_vm6 = vmor %vm3912_vm1, %vm3913_vm3 }
 0x3b1   : > { %v4150_v16 = vmul.f32 %v9612_v2, %v4080_v59  ;;  %v4151_v34 = vmul.f32 %v9619_v25, %v4081_v42  ;;  %v3879_v33 = vmul.f32 0.5, %v3878_v27  ;;  %v4148_v60 = vmul.f32 %v9612_v2, %v4078_v23 }
 0x3b2   : > { %v3955_v52 = vsel %vm3954_vm4, %v6312_v11, %v3951_v7  ;;  %v3516_v3 = vmul.f32 %v3470_v22, %v9181_v58  ;;  %v4149_v31 = vmul.f32 %v9619_v25, %v4079_v15  ;;  %v3915_v0 = vsel %vm3914_vm6, %v10463_v9, %v3911_v20 }
 0x3b3   : > { %v4082_v29 = vmul.f32 %v3955_v52, %v3666_v55  ;;  %v4083_v1 = vmul.f32 %v3955_v52, %v3667_v49  ;;  %v4220_v7 = vadd.f32 %v9912_v17, %v4150_v16  ;;  %v4221_v11 = vadd.f32 %v9921_v40, %v4151_v34  ;;  %v12086_v16 = vld [vmem:[#allocation22_spill] sm:$0xff]  ;;  %v12087_v34 = vld [vmem:[#allocation113_spill] sm:$0xff] }
 0x3b4   : > { %v3887_v49 = vmul.f32 %v10517_v4, %v10481_v54  ;;  %v3580_v30 = vsub.f32 %v3516_v3, %v3548_v46  ;;  %v4216_v6 = vadd.f32 %v9912_v17, %v4146_v12  ;;  %v4217_v18 = vadd.f32 %v9921_v40, %v4147_v61 }
 0x3b5   : > { %v4152_v45 = vmul.f32 %v9612_v2, %v4082_v29  ;;  %v4153_v55 = vmul.f32 %v9619_v25, %v4083_v1  ;;  %v4262_v51 = vpack.c.bf16 %v4221_v11, %v4220_v7  ;;  %v12084_v23 = vsub.f32 %v12065_v56, %v10185_v8 }
 0x3b6   : > { %v12085_v9 = vsub.f32 %v12066_v62, %v10185_v8  ;;  %v4218_v15 = vadd.f32 %v9912_v17, %v4148_v60  ;;  %v1853_v20 = vmul.f32 %v12087_v34, %v12086_v16  ;;  %v12088_v52 = vsub.f32 %v12067_v13, %v10346_v19 }
 0x3b7   : > { %v4072_v59 = vmul.f32 %v10458_v24, %v12084_v23  ;;  %v4222_v27 = vadd.f32 %v9912_v17, %v4152_v45  ;;  %v3612_v22 = vmax.f32 %v3580_v30, 0.0  ;;  %v4223_v56 = vadd.f32 %v9921_v40, %v4153_v55  ;;  %v12090_v30 = vld [vmem:[#allocation24_spill] sm:$0xff] }
 0x3b8   : > { %v4073_v42 = vmul.f32 %v10458_v24, %v12085_v9  ;;  %v4074_v46 = vmul.f32 %v3915_v0, %v12088_v52  ;;  %v12089_v12 = vsub.f32 %v12068_v53, %v10346_v19  ;;  %v3880_v62 = vsub.f32 1.5, %v3879_v33 }
 0x3b9   : > { %v3888_v24 = vmul.f32 %v10517_v4, %v3887_v49  ;;  %v4219_v61 = vadd.f32 %v9921_v40, %v4149_v31  ;;  %v10558_v29 = vadd.f32 1e-05, %v3612_v22  ;;  %v4263_v1 = vpack.c.bf16 %v4223_v56, %v4222_v27 }
 0x3ba   : > { %v4075_v8 = vmul.f32 %v3915_v0, %v12089_v12  ;;  %v4569_v60 = vunpack.c.l.b16 %v4262_v51  ;;  %v4260_v3 = vpack.c.bf16 %v4217_v18, %v4216_v6  ;;  %v4570_v13 = vunpack.c.h.b16 %v4262_v51  ;;  %v12091_v51 = vld [vmem:[#allocation59_spill] sm:$0xff] }
 0x3bb   : > { %5732 = vmatmul.msk.bf16.gmra.mxu2 %vm4380_vm5, %v10285_v14  ;;  %v4261_v7 = vpack.c.bf16 %v4219_v61, %v4218_v15  ;;  %v4142_v11 = vmul.f32 %v9612_v2, %v4072_v59  ;;  %v4143_v19 = vmul.f32 %v9619_v25, %v4073_v42  ;;  %6317 = vrsqrt.f32 %v10558_v29 }
 0x3bc   : > { %5736 = vmatmul.msk.bf16.gmra.mxu3 %vm4380_vm5, %v10285_v14  ;;  %v4571_v53 = vunpack.c.l.b16 %v4263_v1  ;;  %v4572_v33 = vunpack.c.h.b16 %v4263_v1  ;;  %v4144_v31 = vmul.f32 %v9612_v2, %v4074_v46  ;;  %v1917_v0 = vmul.f32 0.044715, %v1853_v20  ;;  %v12096_v1 = vld [vmem:[#allocation40_spill] sm:$0xff] }
 0x3bd   : > { %v1854_v45 = vmul.f32 %v10384_v10, %v12056_v35  ;;  %v3889_v55 = vmul.f32 0.5, %v3888_v24  ;;  %v4567_v49 = vunpack.c.l.b16 %v4261_v7  ;;  %v10572_v6 = vadd.f32 %v12091_v51, %v12090_v30  ;;  %v12093_v24 = vld [vmem:[#allocation38_spill] sm:$0xff] }
 0x3be   : > { %v4579_v18 = vpack.c.b16 %v4571_v53, %v4569_v60  ;;  %v4580_v23 = vpack.c.b16 %v4572_v33, %v4570_v13  ;;  %v4565_v59 = vunpack.c.l.b16 %v4260_v3  ;;  %v4566_v14 = vunpack.c.h.b16 %v4260_v3  ;;  %v12098_v3 = vld [vmem:[#allocation41_spill] sm:$0xff]  ;;  %v12099_v13 = vld [vmem:[#allocation42_spill] sm:$0xff] }
 0x3bf   : > { %v4568_v9 = vunpack.c.h.b16 %v4261_v7  ;;  %v4145_v42 = vmul.f32 %v9619_v25, %v4075_v8  ;;  %v4212_v27 = vadd.f32 %v9912_v17, %v4142_v11  ;;  %v3881_v15 = vmul.f32 %v10491_v26, %v3880_v62  ;;  %v12092_v8 = vld [vmem:[#allocation37_spill] sm:$0xff]  ;;  %v12095_v62 = vld [vmem:[#allocation39_spill] sm:$0xff]  ;;  %v12103_v33 = vld [vmem:[#allocation26_spill] sm:$0xff] }
 0x3c0   : > { %vm3883_vm7 = vweird.f32 %v10491_v26  ;;  %4593 = vmatpush.bf16.msra.mxu0 %v4579_v18  ;;  %4622 = vmatpush.bf16.msra.mxu1 %v4580_v23  ;;  %v4213_v10 = vadd.f32 %v9921_v40, %v4143_v19  ;;  %v4214_v34 = vadd.f32 %v9912_v17, %v4144_v31  ;;  %v3890_v20 = vsub.f32 1.5, %v3889_v55  ;;  %v12101_v11 = vld [vmem:[#allocation25_spill] sm:$0xff]  ;;  %v12102_v19 = vld [vmem:[#allocation62_spill] sm:$0xff] }
 0x3c1   : > { %v4577_v52 = vpack.c.b16 %v4567_v49, %v4565_v59  ;;  %v4578_v46 = vpack.c.b16 %v4568_v9, %v4566_v14  ;;  %v4215_v22 = vadd.f32 %v9921_v40, %v4145_v42  ;;  %v6318_v56 = vpop.eup %6317  ;;  %v10583_v61 = vpack.c.bf16 %v12093_v24, %v12092_v8  ;;  %v12104_v18 = vld [vmem:[#allocation81_spill] sm:$0xff]  ;;  %v12106_v24 = vld [vmem:[#allocation43_spill] sm:$0xff] }
 0x3c2   : > { %v4258_v12 = vpack.c.bf16 %v4213_v10, %v4212_v27  ;;  %v10587_v60 = vpack.c.bf16 %v12096_v1, %v12095_v62  ;;  %v10591_v7 = vpack.c.bf16 %v12099_v13, %v12098_v3  ;;  %v10595_v53 = vadd.f32 %v12102_v19, %v12101_v11  ;;  %v12105_v10 = vld [vmem:[#allocation82_spill] sm:$0xff]  ;;  %v12107_v62 = vld [vmem:[#allocation44_spill] sm:$0xff]  ;;  %v12109_v13 = vld [vmem:[#allocation27_spill] sm:$0xff] }
 0x3c3   : > { %12094 = vst [vmem:[#allocation61_spill] sm:$0xff] %v10583_v61  ;;  %v10599_v31 = vadd.f32 %v12103_v33, %v12090_v30  ;;  %v3957_v55 = vmul.f32 %v6318_v56, %v10558_v29  ;;  %v4259_v49 = vpack.c.bf16 %v4215_v22, %v4214_v34  ;;  %v1739_v51 = vmul.f32 %v10572_v6, %v10572_v6 }
 0x3c4   : > { %12097 = vst [vmem:[#allocation133_spill] sm:$0xff] %v10587_v60  ;;  %v3652_v23 = vsub.f32 %v12104_v18, %v10406_v37  ;;  %vm3882_vm8 = vweird.f32 %v10445_v32  ;;  %4594 = vmatpush.bf16.msra.mxu0 %v4577_v52  ;;  %4623 = vmatpush.bf16.msra.mxu1 %v4578_v46  ;;  %v4561_v59 = vunpack.c.l.b16 %v4258_v12  ;;  %v4562_v42 = vunpack.c.h.b16 %v4258_v12 }
 0x3c5   : > { %12100 = vst [vmem:[#allocation65_spill] sm:$0xff] %v10591_v7  ;;  %vm3884_vm9 = vmor %vm3882_vm8, %vm3883_vm7  ;;  %v3958_v14 = vmul.f32 %v6318_v56, %v3957_v55  ;;  %v4563_v9 = vunpack.c.l.b16 %v4259_v49  ;;  %v4564_v27 = vunpack.c.h.b16 %v4259_v49  ;;  %v3653_v34 = vsub.f32 %v12105_v10, %v10406_v37  ;;  %v12115_v10 = vld [vmem:[#allocation85_spill] sm:$0xff] }
 0x3c6   : > { %v3885_v22 = vsel %vm3884_vm9, %v10491_v26, %v3881_v15  ;;  %v3891_v8 = vmul.f32 %v10517_v4, %v3890_v20  ;;  %vm3893_vm10 = vweird.f32 %v10517_v4  ;;  %v10616_v1 = vpack.c.bf16 %v12107_v62, %v12106_v24 }
 0x3c7   : > { %v3959_v32 = vmul.f32 0.5, %v3958_v14  ;;  %v4575_v52 = vpack.c.b16 %v4563_v9, %v4561_v59  ;;  %v4576_v46 = vpack.c.b16 %v4564_v27, %v4562_v42  ;;  %v1981_v3 = vadd.f32 %v1917_v0, %v12086_v16  ;;  %v12113_v14 = vld [vmem:[#allocation148_spill] sm:$0xff]  ;;  %v12114_v42 = vld [vmem:[#allocation153_spill] sm:$0xff] }
 0x3c8   : > { %12108 = vst [vmem:[#allocation119_spill] sm:$0xff] %v10616_v1  ;;  %v1918_v12 = vmul.f32 0.044715, %v1854_v45  ;;  %v10621_v19 = vadd.f32 %v12109_v13, %v12101_v11  ;;  %vm3892_vm11 = vweird.f32 %v10481_v54  ;;  %v4068_v37 = vmul.f32 %v3885_v22, %v3652_v23  ;;  %v12110_v45 = vld [vmem:[#allocation28_spill] sm:$0xff]  ;;  %v12111_v54 = vld [vmem:[#allocation29_spill] sm:$0xff]  ;;  %v12112_v23 = vld [vmem:[#allocation147_spill] sm:$0xff] }
 0x3c9   : > { %v4069_v26 = vmul.f32 %v3885_v22, %v3653_v34  ;;  %v3960_v15 = vsub.f32 1.5, %v3959_v32  ;;  %vm3963_vm12 = vweird.f32 %v6318_v56  ;;  %4595 = vmatpush.bf16.msra.mxu0 %v4575_v52  ;;  %4624 = vmatpush.bf16.msra.mxu1 %v4576_v46  ;;  %v1803_v20 = vmul.f32 %v1739_v51, %v10572_v6  ;;  %vm3894_vm13 = vmor %vm3892_vm11, %vm3893_vm10  ;;  %v10660_v32 = vpop.xlane.xlu0 %3273  ;;  %v12119_v13 = vld [vmem:[#allocation20_spill] sm:$0xff] }
 0x3ca   : > { %v1740_v33 = vmul.f32 %v10595_v53, %v10595_v53  ;;  %v1791_v0 = vmul.f32 %v10599_v31, %v10599_v31  ;;  %v10631_v55 = vadd.f32 %v12110_v45, %v12090_v30  ;;  %v10637_v49 = vadd.f32 %v12111_v54, %v12101_v11 }
 0x3cb   : > { %v3895_v18 = vsel %vm3894_vm13, %v10517_v4, %v3891_v8  ;;  %v3961_v51 = vmul.f32 %v6318_v56, %v3960_v15  ;;  %vm3962_vm14 = vweird.f32 %v10558_v29  ;;  %5733 = vmatmul.msk.bf16.gmra.mxu2 %vm4380_vm5, %v10358_v48  ;;  %v3654_v59 = vsub.f32 %v12112_v23, %v10421_v50  ;;  %v12116_v4 = vld [vmem:[#allocation67_spill] sm:$0xff] }
 0x3cc   : > { %v3655_v9 = vsub.f32 %v12113_v14, %v10421_v50  ;;  %v3668_v27 = vsub.f32 %v12114_v42, %v10508_v63  ;;  %v3669_v34 = vsub.f32 %v12115_v10, %v10508_v63  ;;  %vm3964_vm15 = vmor %vm3962_vm14, %vm3963_vm12  ;;  %5737 = vmatmul.msk.bf16.gmra.mxu3 %vm4380_vm5, %v10358_v48  ;;  %v10656_v29 = vadd.f32 %v12116_v4, %v12090_v30  ;;  %v12123_v14 = vld [vmem:[#allocation30_spill] sm:$0xff]  ;;  %v12124_v42 = vld [vmem:[#allocation31_spill] sm:$0xff]  ;;  %v10697_v10 = vpop.permute.xlu2 %4287 }
 0x3cd   : > { %v4138_v22 = vmul.f32 %v9612_v2, %v4068_v37  ;;  %v4139_v8 = vmul.f32 %v9619_v25, %v4069_v26  ;;  %v3965_v50 = vsel %vm3964_vm15, %v6318_v56, %v3961_v51  ;;  %v4070_v52 = vmul.f32 %v3895_v18, %v3654_v59  ;;  %v12120_v26 = vld [vmem:[#allocation46_spill] sm:$0xff]  ;;  %v12121_v56 = vld [vmem:[#allocation52_spill] sm:$0xff]  ;;  %12125 = vst [vmem:[#allocation49_spill] sm:$0xff] %v10697_v10 }
 0x3ce   : > { %v4071_v46 = vmul.f32 %v3895_v18, %v3655_v9  ;;  %v10662_v24 = vmul.f32 %v3965_v50, %v3668_v27  ;;  %v10664_v63 = vmul.f32 %v3965_v50, %v3669_v34  ;;  %v1792_v48 = vmul.f32 %v10621_v19, %v10621_v19 }
 0x3cf   : > { %v1793_v62 = vmul.f32 %v10631_v55, %v10631_v55  ;;  %v10672_v37 = vadd.f32 %v12119_v13, %v12101_v11  ;;  %v10676_v15 = vpack.c.bf16 %v12121_v56, %v12120_v26  ;;  %v1982_v45 = vadd.f32 %v1918_v12, %v12056_v35 }
 0x3d0   : > { %12117 = vst [vmem:[#allocation74_spill] sm:$0xff] %v10662_v24  ;;  %v1867_v54 = vmul.f32 0.044715, %v1803_v20  ;;  %v1804_v18 = vmul.f32 %v1740_v33, %v10595_v53  ;;  %v1855_v51 = vmul.f32 %v1791_v0, %v10599_v31  ;;  %v1794_v23 = vmul.f32 %v10637_v49, %v10637_v49 }
 0x3d1   : > { %12118 = vst [vmem:[#allocation134_spill] sm:$0xff] %v10664_v63  ;;  %v1743_v59 = vmul.f32 %v10656_v29, %v10656_v29  ;;  %v10687_v9 = vadd.f32 %v12123_v14, %v12090_v30  ;;  %v10691_v27 = vadd.f32 %v12124_v42, %v12101_v11  ;;  %v4140_v12 = vmul.f32 %v9612_v2, %v4070_v52 }
 0x3d2   : > { %12122 = vst [vmem:[#allocation66_spill] sm:$0xff] %v10676_v15  ;;  %v4141_v20 = vmul.f32 %v9619_v25, %v4071_v46  ;;  %v4208_v33 = vadd.f32 %v9912_v17, %v4138_v22  ;;  %v4209_v0 = vadd.f32 %v9921_v40, %v4139_v8  ;;  %v2045_v34 = vmul.f32 0.7978846, %v1981_v3  ;;  %v12147_v25 = vld [vmem:[#allocation50_spill] sm:$0xff] }
 0x3d3   : > { %v1856_v4 = vmul.f32 %v1792_v48, %v10621_v19  ;;  %v1857_v50 = vmul.f32 %v1793_v62, %v10631_v55  ;;  %v1744_v13 = vmul.f32 %v10672_v37, %v10672_v37  ;;  %v2046_v26 = vmul.f32 0.7978846, %v1982_v45 }
 0x3d4   : > { %v4210_v56 = vadd.f32 %v9912_v17, %v4140_v12  ;;  %v4211_v52 = vadd.f32 %v9921_v40, %v4141_v20  ;;  %v4256_v46 = vpack.c.bf16 %v4209_v0, %v4208_v33  ;;  %v1868_v14 = vmul.f32 0.044715, %v1804_v18  ;;  %v12126_v18 = vld [vmem:[#allocation53_spill] sm:$0xff] }
 0x3d5   : > { %v1919_v22 = vmul.f32 0.044715, %v1855_v51  ;;  %v1858_v8 = vmul.f32 %v1794_v23, %v10637_v49  ;;  %v1795_v3 = vmul.f32 %v10687_v9, %v10687_v9  ;;  %v1931_v48 = vadd.f32 %v1867_v54, %v10572_v6  ;;  %v3473_v33 = vpop.xlane.xlu0 %3472  ;;  %v12127_v51 = vld [vmem:[#allocation54_spill] sm:$0xff] }
 0x3d6   : > { %v1807_v62 = vmul.f32 %v1743_v59, %v10656_v29  ;;  %v1796_v42 = vmul.f32 %v10691_v27, %v10691_v27  ;;  %v4257_v45 = vpack.c.bf16 %v4211_v52, %v4210_v56  ;;  %v1920_v15 = vmul.f32 0.044715, %v1856_v4 }
 0x3d7   : > { %v1921_v12 = vmul.f32 0.044715, %v1857_v50  ;;  %v1808_v20 = vmul.f32 %v1744_v13, %v10672_v37  ;;  %v10715_v0 = vpack.c.bf16 %v12127_v51, %v12126_v18  ;;  %v4557_v23 = vunpack.c.l.b16 %v4256_v46 }
 0x3d8   : > { %v4559_v1 = vunpack.c.l.b16 %v4257_v45  ;;  %v4558_v7 = vunpack.c.h.b16 %v4256_v46  ;;  %v4560_v60 = vunpack.c.h.b16 %v4257_v45  ;;  %v1932_v54 = vadd.f32 %v1868_v14, %v10595_v53  ;;  %v10724_v45 = vpop.permute.xlu2 %4292  ;;  %v12131_v14 = vld [vmem:[#allocation32_spill] sm:$0xff] }
 0x3d9   : > { %12128 = vst [vmem:[#allocation122_spill] sm:$0xff] %v10715_v0  ;;  %v1983_v59 = vadd.f32 %v1919_v22, %v10599_v31  ;;  %v1922_v61 = vmul.f32 0.044715, %v1858_v8  ;;  %v1859_v56 = vmul.f32 %v1795_v3, %v10687_v9  ;;  %v1871_v4 = vmul.f32 0.044715, %v1807_v62 }
 0x3da   : > { %v1860_v50 = vmul.f32 %v1796_v42, %v10691_v27  ;;  %v4573_v13 = vpack.c.b16 %v4559_v1, %v4557_v23  ;;  %v4574_v52 = vpack.c.b16 %v4560_v60, %v4558_v7  ;;  %v2169_v63 = vadd.f32 1.0, %v12129_v39  ;;  %12130 = vst [vmem:[#allocation51_spill] sm:$0xff] %v10724_v45 }
 0x3db   : > { %6319 = vtanh.f32 %v10368_v28  ;;  %v1984_v18 = vadd.f32 %v1920_v15, %v10621_v19  ;;  %v1872_v46 = vmul.f32 0.044715, %v1808_v20  ;;  %v2170_v51 = vadd.f32 1.0, %v12131_v14  ;;  %v10741_v20 = vld [vmem:[%s6860_s9] sm:$0xff] }
 0x3dc   : > { %6321 = vtanh.f32 %v2045_v34  ;;  %v1995_v22 = vmul.f32 0.7978846, %v1931_v48  ;;  %v1985_v8 = vadd.f32 %v1921_v12, %v10631_v55  ;;  %4596 = vmatpush.bf16.msra.mxu0 %v4573_v13  ;;  %4625 = vmatpush.bf16.msra.mxu1 %v4574_v52  ;;  %v1996_v60 = vmul.f32 0.7978846, %v1932_v54  ;;  %v12132_v34 = vld [vmem:[#allocation63_spill] sm:$0xff]  ;;  %12134 = vst [vmem:[#allocation97_spill] sm:$0xff] %v10741_v20 }
 0x3dd   : > { %6323 = vtanh.f32 %v2046_v26  ;;  %v1986_v39 = vadd.f32 %v1922_v61, %v10637_v49  ;;  %v1923_v7 = vmul.f32 0.044715, %v1859_v56  ;;  %v2047_v28 = vmul.f32 0.7978846, %v1983_v59  ;;  %v3277_v12 = vpop.xlane.xlu0 %3276  ;;  %v10738_v26 = vpop.permute.xlu1 %4282  ;;  %v12135_v61 = vld [vmem:[#allocation55_spill] sm:$0xff] }
 0x3de   : > { %v1935_v1 = vadd.f32 %v1871_v4, %v10656_v29  ;;  %v1924_v15 = vmul.f32 0.044715, %v1860_v50  ;;  %v10732_v3 = vmul.f32 %v9181_v58, %v10660_v32  ;;  %v10735_v48 = vmul.f32 0.5, %v12132_v34  ;;  %12133 = vst [vmem:[#allocation139_spill] sm:$0xff] %v10738_v26  ;;  %v12136_v32 = vld [vmem:[#allocation56_spill] sm:$0xff] }
 0x3df   : > { %v2048_v62 = vmul.f32 0.7978846, %v1984_v18  ;;  %v1936_v42 = vadd.f32 %v1872_v46, %v10672_v37  ;;  %5738 = vmatmul.msk.bf16.vlgmr.msra.gmra.mxu0 %vm4380_vm5, %v10741_v20  ;;  %5742 = vmatmul.msk.bf16.vlgmr.msra.gmra.mxu1 %vm4380_vm5, %v10741_v20  ;;  %v10749_v23 = vpack.c.bf16 %v12136_v32, %v12135_v61  ;;  %v2233_v54 = vmul.f32 0.5, %v2169_v63  ;;  %v12138_v50 = vld [vmem:[#allocation64_spill] sm:$0xff] }
 0x3e0   : > { %6325 = vtanh.f32 %v1995_v22  ;;  %v2049_v59 = vmul.f32 0.7978846, %v1985_v8  ;;  %v3517_v56 = vmul.f32 %v3473_v33, %v9181_v58  ;;  %v2120_v13 = vadd.f32 1.0, %v12138_v50  ;;  %v12139_v33 = vld [vmem:[#allocation21_spill] sm:$0xff] }
 0x3e1   : > { %12137 = vst [vmem:[#allocation140_spill] sm:$0xff] %v10749_v23  ;;  %v6320_v4 = vpop.eup %6319  ;;  %6327 = vtanh.f32 %v1996_v60  ;;  %v2050_v52 = vmul.f32 0.7978846, %v1986_v39  ;;  %v1987_v18 = vadd.f32 %v1923_v7, %v10687_v9  ;;  %v1999_v14 = vmul.f32 0.7978846, %v1935_v1  ;;  %v12141_v60 = vld [vmem:[#allocation76_spill] sm:$0xff] }
 0x3e2   : > { %v6322_v46 = vpop.eup %6321  ;;  %6329 = vtanh.f32 %v2047_v28  ;;  %v1988_v34 = vadd.f32 %v1924_v15, %v10691_v27  ;;  %v3549_v61 = vmul.f32 %v10732_v3, %v10732_v3  ;;  %v2000_v22 = vmul.f32 0.7978846, %v1936_v42  ;;  %v3280_v7 = vpop.xlane.xlu2 %3279  ;;  %v12143_v23 = vld [vmem:[#allocation47_spill] sm:$0xff] }
 0x3e3   : > { %v6324_v63 = vpop.eup %6323  ;;  %6331 = vtanh.f32 %v2048_v62  ;;  %v10759_v8 = vadd.f32 %v12139_v33, %v12090_v30  ;;  %v10763_v39 = vadd.f32 %v12141_v60, %v12101_v11  ;;  %v2234_v32 = vmul.f32 0.5, %v2170_v51 }
 0x3e4   : > { %6333 = vtanh.f32 %v2049_v59  ;;  %v3581_v28 = vsub.f32 %v3517_v56, %v3549_v61  ;;  %v10766_v1 = vmul.f32 %v9181_v58, %v3280_v7  ;;  %v2171_v15 = vadd.f32 1.0, %v10426_v44 }
 0x3e5   : > { %12140 = vst [vmem:[#allocation98_spill] sm:$0xff] %v10759_v8  ;;  %v2172_v50 = vadd.f32 1.0, %v6320_v4  ;;  %6335 = vtanh.f32 %v2050_v52  ;;  %v2051_v62 = vmul.f32 0.7978846, %v1987_v18  ;;  %v2297_v33 = vmul.f32 %v2233_v54, %v12143_v23  ;;  %v3476_v44 = vpop.xlane.xlu1 %3475  ;;  %v12144_v54 = vld [vmem:[#allocation70_spill] sm:$0xff] }
 0x3e6   : > { %12142 = vst [vmem:[#allocation99_spill] sm:$0xff] %v10763_v39  ;;  %v6326_v42 = vpop.eup %6325  ;;  %v2173_v0 = vadd.f32 1.0, %v6322_v46  ;;  %6337 = vtanh.f32 %v1999_v14  ;;  %v2052_v20 = vmul.f32 0.7978846, %v1988_v34  ;;  %v2174_v24 = vadd.f32 1.0, %v6324_v63  ;;  %v3479_v56 = vpop.xlane.xlu0 %3478  ;;  %v12145_v46 = vld [vmem:[#allocation109_spill] sm:$0xff] }
 0x3e7   : > { %v6328_v60 = vpop.eup %6327  ;;  %6339 = vtanh.f32 %v2000_v22  ;;  %v1747_v51 = vmul.f32 %v10759_v8, %v10759_v8  ;;  %v1748_v59 = vmul.f32 %v10763_v39, %v10763_v39  ;;  %v3613_v52 = vmax.f32 %v3581_v28, 0.0 }
 0x3e8   : > { %v6330_v4 = vpop.eup %6329  ;;  %v10775_v18 = vmul.f32 %v9181_v58, %v3277_v12  ;;  %v3551_v23 = vmul.f32 %v10766_v1, %v10766_v1  ;;  %v10781_v14 = vpack.c.bf16 %v12145_v46, %v12144_v54  ;;  %v2184_v61 = vmul.f32 0.5, %v2120_v13 }
 0x3e9   : > { %v6332_v34 = vpop.eup %6331  ;;  %v2235_v63 = vmul.f32 0.5, %v2171_v15  ;;  %v2236_v22 = vmul.f32 0.5, %v2172_v50  ;;  %6341 = vtanh.f32 %v2051_v62  ;;  %v2237_v40 = vmul.f32 0.5, %v2173_v0  ;;  %v10788_v15 = vpop.f32.mrf.mxu0 }
 0x3ea   : > { %12146 = vst [vmem:[#allocation100_spill] sm:$0xff] %v10781_v14  ;;  %v6334_v7 = vpop.eup %6333  ;;  %6343 = vtanh.f32 %v2052_v20  ;;  %v3519_v28 = vmul.f32 %v3479_v56, %v9181_v58  ;;  %v3518_v12 = vmul.f32 %v3476_v44, %v9181_v58  ;;  %v2298_v2 = vmul.f32 %v2234_v32, %v12147_v25  ;;  %v12149_v56 = vld [vmem:[#allocation45_spill] sm:$0xff]  ;;  %v10802_v44 = vpop.f32.mrf.mxu1 }
 0x3eb   : > { %v6336_v17 = vpop.eup %6335  ;;  %v2238_v43 = vmul.f32 0.5, %v2174_v24  ;;  %v2123_v45 = vadd.f32 1.0, %v6326_v42  ;;  %v1811_v54 = vmul.f32 %v1747_v51, %v10759_v8  ;;  %v1812_v13 = vmul.f32 %v1748_v59, %v10763_v39  ;;  %12148 = vst [vmem:[#allocation105_spill] sm:$0xff] %v10788_v15  ;;  %v12150_v24 = vld [vmem:[#allocation48_spill] sm:$0xff]  ;;  %v12151_v42 = vld [vmem:[#allocation57_spill] sm:$0xff] }
 0x3ec   : > { %v6338_v46 = vpop.eup %6337  ;;  %v10790_v50 = vadd.f32 1e-05, %v3613_v52  ;;  %v3550_v0 = vmul.f32 %v10775_v18, %v10775_v18  ;;  %v3583_v20 = vsub.f32 %v3519_v28, %v3551_v23  ;;  %v10796_v25 = vmul.f32 %v10735_v48, %v12149_v56  ;;  %12152 = vst [vmem:[#allocation106_spill] sm:$0xff] %v10802_v44  ;;  %v12153_v52 = vld [vmem:[#allocation58_spill] sm:$0xff] }
 0x3ed   : > { %v6340_v62 = vpop.eup %6339  ;;  %v10799_v32 = vmul.f32 %v2184_v61, %v12150_v24  ;;  %v2299_v51 = vmul.f32 %v2235_v63, %v12151_v42  ;;  %v2124_v59 = vadd.f32 1.0, %v6328_v60  ;;  %v2300_v14 = vmul.f32 %v2236_v22, %v12153_v52  ;;  %v10814_v24 = vld [vmem:[%s6860_s9 + $0x8] sm:$0xff] }
 0x3ee   : > { %v10806_v15 = vmul.f32 %v2237_v40, %v12086_v16  ;;  %v2175_v23 = vadd.f32 1.0, %v6330_v4  ;;  %v3582_v28 = vsub.f32 %v3518_v12, %v3550_v0  ;;  %v10809_v5 = vmul.f32 %v2238_v43, %v12056_v35  ;;  %v10811_v61 = vpop.xlane.xlu0 %3481  ;;  %12154 = vst [vmem:[#allocation151_spill] sm:$0xff] %v10814_v24 }
 0x3ef   : > { %v6342_v57 = vpop.eup %6341  ;;  %v2176_v48 = vadd.f32 1.0, %v6332_v34  ;;  %v1875_v56 = vmul.f32 0.044715, %v1811_v54  ;;  %5739 = vmatmul.msk.bf16.gmra.mxu0 %vm4380_vm5, %v10814_v24  ;;  %5743 = vmatmul.msk.bf16.gmra.mxu1 %vm4380_vm5, %v10814_v24  ;;  %v10820_v40 = vpack.c.bf16 %v2298_v2, %v2297_v33  ;;  %v2187_v60 = vmul.f32 0.5, %v2123_v45  ;;  %v12156_v2 = vld [vmem:[#allocation83_spill] sm:$0xff] }
 0x3f0   : > { %v6344_v16 = vpop.eup %6343  ;;  %v1876_v4 = vmul.f32 0.044715, %v1812_v13  ;;  %6345 = vrsqrt.f32 %v10790_v50  ;;  %v3615_v43 = vmax.f32 %v3583_v20, 0.0  ;;  %v2188_v35 = vmul.f32 0.5, %v2124_v59 }
 0x3f1   : > { %12155 = vst [vmem:[#allocation152_spill] sm:$0xff] %v10820_v40  ;;  %v2177_v34 = vadd.f32 1.0, %v6334_v7  ;;  %v2178_v63 = vadd.f32 1.0, %v6336_v17  ;;  %v2127_v22 = vadd.f32 1.0, %v6338_v46  ;;  %v2239_v12 = vmul.f32 0.5, %v2175_v23  ;;  %v12157_v7 = vld [vmem:[#allocation84_spill] sm:$0xff]  ;;  %v4402_v46 = vpop.f32.mrf.mxu0 }
 0x3f2   : > { %v2128_v54 = vadd.f32 1.0, %v6340_v62  ;;  %v2179_v0 = vadd.f32 1.0, %v6342_v57  ;;  %v3614_v42 = vmax.f32 %v3582_v28, 0.0  ;;  %v2240_v52 = vmul.f32 0.5, %v2176_v48  ;;  %v4431_v28 = vpop.f32.mrf.mxu1 }
 0x3f3   : > { %v2180_v44 = vadd.f32 1.0, %v6344_v16  ;;  %v1939_v24 = vadd.f32 %v1875_v56, %v10759_v8  ;;  %v10826_v33 = vadd.f32 %v12156_v2, %v12090_v30  ;;  %v2251_v45 = vmul.f32 %v2187_v60, %v10572_v6 }
 0x3f4   : > { %v1940_v13 = vadd.f32 %v1876_v4, %v10763_v39  ;;  %v10832_v17 = vadd.f32 %v12157_v7, %v12101_v11  ;;  %v10834_v20 = vadd.f32 1e-05, %v3615_v43  ;;  %v2252_v57 = vmul.f32 %v2188_v35, %v10595_v53 }
 0x3f5   : > { %v2241_v62 = vmul.f32 0.5, %v2177_v34  ;;  %v2242_v59 = vmul.f32 0.5, %v2178_v63  ;;  %v2191_v23 = vmul.f32 0.5, %v2127_v22  ;;  %v10840_v56 = vmul.f32 %v2239_v12, %v10599_v31 }
 0x3f6   : > { %v10837_v48 = vpop.eup %6345  ;;  %v2192_v6 = vmul.f32 0.5, %v2128_v54  ;;  %v2243_v16 = vmul.f32 0.5, %v2179_v0  ;;  %v10842_v60 = vadd.f32 1e-05, %v3614_v42  ;;  %v10845_v4 = vmul.f32 %v2240_v52, %v10621_v19  ;;  %v3286_v35 = vpop.xlane.xlu0 %3285  ;;  %v5870_v42 = vld [vmem:[%s6834_s10 + $0x30] sm:$0xff] }
 0x3f7   : > { %v2244_v43 = vmul.f32 0.5, %v2180_v44  ;;  %v2003_v2 = vmul.f32 0.7978846, %v1939_v24  ;;  %v1751_v53 = vmul.f32 %v10826_v33, %v10826_v33  ;;  %v2004_v34 = vmul.f32 0.7978846, %v1940_v13  ;;  %v12159_v13 = vld [vmem:[#allocation101_spill] sm:$0xff] }
 0x3f8   : > { %v1752_v31 = vmul.f32 %v10832_v17, %v10832_v17  ;;  %6347 = vrsqrt.f32 %v10834_v20  ;;  %v10852_v63 = vpack.c.bf16 %v2300_v14, %v2299_v51  ;;  %v10855_v22 = vmul.f32 %v2241_v62, %v10631_v55  ;;  %v3283_v14 = vpop.xlane.xlu2 %3282  ;;  %v5879_v51 = vld [vmem:[%s6834_s10 + $0x78] sm:$0xff] }
 0x3f9   : > { %v10858_v19 = vmul.f32 %v2242_v59, %v10637_v49  ;;  %v10861_v44 = vmul.f32 %v2191_v23, %v10656_v29  ;;  %v3967_v24 = vmul.f32 %v10837_v48, %v10790_v50  ;;  %v10866_v12 = vmul.f32 %v2192_v6, %v10672_v37  ;;  %v3289_v49 = vpop.xlane.xlu1 %3288  ;;  %v5871_v29 = vld [vmem:[%s6834_s10 + $0x38] sm:$0xff]  ;;  %5219 = vmatpush.bf16.msrb.mxu1 %v5879_v51  ;;  %v5878_v23 = vld [vmem:[%s6834_s10 + $0x70] sm:$0xff] }
 0x3fa   : > { %12158 = vst [vmem:[#allocation92_spill] sm:$0xff] %v10852_v63  ;;  %v10869_v54 = vmul.f32 %v2243_v16, %v10687_v9  ;;  %v10873_v55 = vpack.c.bf16 %v10799_v32, %v10796_v25  ;;  %6349 = vrsqrt.f32 %v10842_v60  ;;  %v10879_v0 = vmul.f32 %v2244_v43, %v10691_v27  ;;  %5130 = vmatpush.bf16.msrb.mxu0 %v5871_v29 }
 0x3fb   : > { %6351 = vtanh.f32 %v2003_v2  ;;  %v10882_v37 = vmul.f32 %v1751_v53, %v10826_v33  ;;  %v10885_v9 = vmul.f32 %v9181_v58, %v3283_v14  ;;  %v10888_v25 = vmul.f32 %v1752_v31, %v10832_v17  ;;  %v4433_v53 = vpop.f32.mrf.mxu1  ;;  %v10911_v31 = vld [vmem:[%s6860_s9 + $0x10] sm:$0xff] }
 0x3fc   : > { %6353 = vtanh.f32 %v2004_v34  ;;  %v10891_v32 = vmul.f32 %v9181_v58, %v3286_v35  ;;  %v10894_v52 = vpack.c.bf16 %v2252_v57, %v2251_v45  ;;  %v3968_v27 = vmul.f32 %v10837_v48, %v3967_v24  ;;  %v4404_v57 = vpop.f32.mrf.mxu0  ;;  %12160 = vst [vmem:[#allocation150_spill] sm:$0xff] %v10911_v31  ;;  %v12161_v24 = vld [vmem:[#allocation107_spill] sm:$0xff] }
 0x3fd   : > { %v3520_v62 = vmul.f32 %v10811_v61, %v9181_v58  ;;  %v3552_v59 = vmul.f32 %v10885_v9, %v10885_v9  ;;  %v4403_v16 = vadd.f32 %v4402_v46, %v10738_v26  ;;  %v4432_v43 = vadd.f32 %v4431_v28, %v10738_v26  ;;  %5220 = vmatpush.bf16.msrb.mxu1 %v5878_v23  ;;  %v5876_v26 = vld [vmem:[%s6834_s10 + $0x60] sm:$0xff] }
 0x3fe   : > { %v10903_v6 = vpop.eup %6347  ;;  %v3485_v34 = vpop.xlane.xlu0 %3484  ;;  %v3553_v29 = vmul.f32 %v10891_v32, %v10891_v32  ;;  %5131 = vmatpush.bf16.msrb.mxu0 %v5870_v42  ;;  %v3969_v46 = vmul.f32 0.5, %v3968_v27  ;;  %v4405_v42 = vadd.f32 %v4404_v57, %v10697_v10  ;;  %vm3972_vm0 = vweird.f32 %v10790_v50  ;;  %v5869_v27 = vld [vmem:[%s6834_s10 + $0x28] sm:$0xff] }
 0x3ff   : > { %v3584_v61 = vsub.f32 %v3520_v62, %v3552_v59  ;;  %5740 = vmatmul.msk.bf16.gmra.mxu0 %vm4380_vm5, %v10911_v31  ;;  %v3521_v51 = vmul.f32 %v3485_v34, %v9181_v58  ;;  %5744 = vmatmul.msk.bf16.gmra.mxu1 %vm4380_vm5, %v10911_v31  ;;  %v10927_v59 = vpack.c.bf16 %v10809_v5, %v10806_v15  ;;  %v5877_v15 = vld [vmem:[%s6834_s10 + $0x68] sm:$0xff]  ;;  %vm3973_vm1 = vweird.f32 %v10837_v48 }
 0x400   : > { %v10917_v28 = vpop.eup %6349  ;;  %v3987_v35 = vmul.f32 %v10903_v6, %v10834_v20  ;;  %v4745_v7 = vpack.c.bf16 %v4432_v43, %v4403_v16  ;;  %v4434_v62 = vadd.f32 %v4433_v53, %v10697_v10  ;;  %v10950_v43 = vmul.f32 %v9181_v58, %v3289_v49  ;;  %v12165_v10 = vld [vmem:[#allocation94_spill] sm:$0xff]  ;;  %vm3974_vm2 = vmor %vm3972_vm0, %vm3973_vm1 }
 0x401   : > { %12162 = vst [vmem:[#allocation95_spill] sm:$0xff] %v10927_v59  ;;  %v10929_v14 = vpop.eup %6351  ;;  %v3616_v2 = vmax.f32 %v3584_v61, 0.0  ;;  %v3585_v5 = vsub.f32 %v3521_v51, %v3553_v29  ;;  %v3977_v23 = vmul.f32 %v10917_v28, %v10842_v60  ;;  %v3491_v53 = vpop.xlane.xlu1 %3490  ;;  %v3970_v51 = vsub.f32 1.5, %v3969_v46  ;;  %5221 = vmatpush.bf16.msrb.mxu1 %v5877_v15 }
 0x402   : > { %v10934_v45 = vpop.eup %6353  ;;  %v3292_v29 = vpop.xlane.xlu2 %3291  ;;  %v3988_v34 = vmul.f32 %v10903_v6, %v3987_v35  ;;  %v4841_v49 = vunpack.c.l.bf16 %v4745_v7  ;;  %v4746_v59 = vpack.c.bf16 %v4434_v62, %v4405_v42  ;;  %v4842_v63 = vunpack.c.h.bf16 %v4745_v7  ;;  %5132 = vmatpush.bf16.msrb.mxu0 %v5869_v27 }
 0x403   : > { %v10944_v61 = vadd.f32 1e-05, %v3616_v2  ;;  %v3617_v57 = vmax.f32 %v3585_v5, 0.0  ;;  %v10955_v2 = vmul.f32 %v9181_v58, %v3292_v29  ;;  %v3978_v46 = vmul.f32 %v10917_v28, %v3977_v23  ;;  %v5868_v29 = vld [vmem:[%s6834_s10 + $0x20] sm:$0xff] }
 0x404   : > { %v3523_v35 = vmul.f32 %v3491_v53, %v9181_v58  ;;  %v3554_v62 = vmul.f32 %v10950_v43, %v10950_v43  ;;  %v10975_v7 = vpack.c.bf16 %v10845_v4, %v10840_v56  ;;  %v3971_v42 = vmul.f32 %v10837_v48, %v3970_v51  ;;  %v4407_v53 = vpop.f32.mrf.mxu0 }
 0x405   : > { %6355 = vrsqrt.f32 %v10944_v61  ;;  %v10961_v5 = vadd.f32 1e-05, %v3617_v57  ;;  %v3555_v31 = vmul.f32 %v10955_v2, %v10955_v2  ;;  %v3989_v27 = vmul.f32 0.5, %v3988_v34  ;;  %5222 = vmatpush.bf16.msrb.mxu1 %v5876_v26  ;;  %v12167_v26 = vld [vmem:[#allocation75_spill] sm:$0xff] }
 0x406   : > { %v3488_v40 = vpop.xlane.xlu0 %3487  ;;  %12163 = vst [vmem:[#allocation87_spill] sm:$0xff] %v10975_v7  ;;  %v12164_v23 = vunpack.c.l.bf16 %v12159_v13  ;;  %v12166_v7 = vunpack.c.h.bf16 %v12159_v13  ;;  %5133 = vmatpush.bf16.msrb.mxu0 %v5868_v29  ;;  %vm3992_vm3 = vweird.f32 %v10834_v20  ;;  %vm3982_vm4 = vweird.f32 %v10842_v60  ;;  %v12180_v60 = vld [vmem:[#allocation121_spill] sm:$0xff] }
 0x407   : > { %6357 = vrsqrt.f32 %v10961_v5  ;;  %v3522_v16 = vmul.f32 %v3488_v40, %v9181_v58  ;;  %v3587_v15 = vsub.f32 %v3523_v35, %v3555_v31  ;;  %v4436_v58 = vpop.f32.mrf.mxu1  ;;  %v4843_v31 = vunpack.c.l.bf16 %v4746_v59 }
 0x408   : > { %v10981_v57 = vmul.f32 %v4841_v49, %v12164_v23  ;;  %v10991_v34 = vmul.f32 %v4842_v63, %v12166_v7  ;;  %v4844_v35 = vunpack.c.h.bf16 %v4746_v59  ;;  %v5875_v23 = vld [vmem:[%s6834_s10 + $0x58] sm:$0xff]  ;;  %v3979_v40 = vmul.f32 0.5, %v3978_v46  ;;  %v12168_v46 = vld [vmem:[#allocation51_spill] sm:$0xff] }
 0x409   : > { %v3586_v4 = vsub.f32 %v3522_v16, %v3554_v62  ;;  %v3619_v49 = vmax.f32 %v3587_v15, 0.0  ;;  %v5867_v63 = vld [vmem:[%s6834_s10 + $0x18] sm:$0xff]  ;;  %v3975_v59 = vsel %vm3974_vm2, %v10837_v48, %v3971_v42  ;;  %v3990_v62 = vsub.f32 1.5, %v3989_v27  ;;  %5223 = vmatpush.bf16.msrb.mxu1 %v5875_v23  ;;  %v12173_v23 = vld [vmem:[#allocation69_spill] sm:$0xff] }
 0x40a   : > { %v4408_v15 = vadd.f32 %v4407_v53, %v12168_v46  ;;  %v4437_v56 = vadd.f32 %v4436_v58, %v12168_v46  ;;  %v12169_v48 = vunpack.c.l.bf16 %v10873_v55  ;;  %v12170_v27 = vunpack.c.h.bf16 %v10873_v55  ;;  %v11027_v53 = vld [vmem:[%s6860_s9 + $0x18] sm:$0xff]  ;;  %v5874_v58 = vld [vmem:[%s6834_s10 + $0x50] sm:$0xff]  ;;  %5134 = vmatpush.bf16.msrb.mxu0 %v5867_v63 }
 0x40b   : > { %v10987_v51 = vpop.eup %6355  ;;  %v3618_v13 = vmax.f32 %v3586_v4, 0.0  ;;  %v11005_v7 = vadd.f32 1e-05, %v3619_v49  ;;  %12171 = vst [vmem:[#allocation149_spill] sm:$0xff] %v11027_v53  ;;  %v5866_v55 = vld [vmem:[%s6834_s10 + $0x10] sm:$0xff]  ;;  %vm3993_vm6 = vweird.f32 %v10903_v6  ;;  %v12175_v63 = vsub.f32 %v10032_v47, %v10732_v3 }
 0x40c   : > { %v3997_v16 = vmul.f32 %v10987_v51, %v10944_v61  ;;  %v11017_v42 = vmul.f32 %v4843_v31, %v12169_v48  ;;  %v11021_v49 = vmul.f32 %v4844_v35, %v12170_v27  ;;  %v11038_v31 = vpack.c.bf16 %v10858_v19, %v10855_v22  ;;  %vm3994_vm9 = vmor %vm3992_vm3, %vm3993_vm6 }
 0x40d   : > { %v11007_v50 = vpop.eup %6357  ;;  %v11013_v39 = vadd.f32 1e-05, %v3618_v13  ;;  %6359 = vrsqrt.f32 %v11005_v7  ;;  %v3991_v35 = vmul.f32 %v10903_v6, %v3990_v62  ;;  %v12174_v48 = vsub.f32 %v10025_v41, %v10732_v3  ;;  %5224 = vmatpush.bf16.msrb.mxu1 %v5874_v58  ;;  %v5873_v41 = vld [vmem:[%s6834_s10 + $0x48] sm:$0xff]  ;;  %v12176_v3 = vld [vmem:[#allocation143_spill] sm:$0xff] }
 0x40e   : > { %v3998_v4 = vmul.f32 %v10987_v51, %v3997_v16  ;;  %v4007_v29 = vmul.f32 %v11007_v50, %v10961_v5  ;;  %v3980_v16 = vsub.f32 1.5, %v3979_v40  ;;  %12172 = vst [vmem:[#allocation141_spill] sm:$0xff] %v11038_v31  ;;  %v11055_v22 = vpack.c.bf16 %v4437_v56, %v4408_v15  ;;  %5135 = vmatpush.bf16.msrb.mxu0 %v5866_v55  ;;  %v5865_v58 = vld [vmem:[%s6834_s10 + $0x8] sm:$0xff] }
 0x40f   : > { %5741 = vmatmul.msk.bf16.gmra.mxu0 %vm4380_vm5, %v11027_v53  ;;  %6361 = vrsqrt.f32 %v11013_v39  ;;  %5745 = vmatmul.msk.bf16.gmra.mxu1 %vm4380_vm5, %v11027_v53  ;;  %v11048_v27 = vmul.f32 %v3975_v59, %v12174_v48  ;;  %v11053_v53 = vmul.f32 %v3975_v59, %v12175_v63  ;;  %vm3983_vm7 = vweird.f32 %v10917_v28  ;;  %v4409_v59 = vpop.f32.mrf.mxu0  ;;  %v4438_v15 = vpop.f32.mrf.mxu1 }
 0x410   : > { %v3999_v13 = vmul.f32 0.5, %v3998_v4  ;;  %v4008_v4 = vmul.f32 %v11007_v50, %v4007_v29  ;;  %vm4003_vm8 = vweird.f32 %v10987_v51  ;;  %v3981_v47 = vmul.f32 %v10917_v28, %v3980_v16  ;;  %vm3984_vm13 = vmor %vm3982_vm4, %vm3983_vm7 }
 0x411   : > { %v3678_v56 = vsub.f32 %v12176_v3, %v10891_v32  ;;  %v3995_v63 = vsel %vm3994_vm9, %v10903_v6, %v3991_v35  ;;  %vm4013_vm10 = vweird.f32 %v11007_v50  ;;  %vm4002_vm11 = vweird.f32 %v10944_v61  ;;  %v12177_v3 = vld [vmem:[#allocation73_spill] sm:$0xff]  ;;  %v11087_v35 = vpop.permute.xlu1 %4297  ;;  %5225 = vmatpush.bf16.msrb.mxu1 %v5873_v41 }
 0x412   : > { %v4000_v19 = vsub.f32 1.5, %v3999_v13  ;;  %v4009_v29 = vmul.f32 0.5, %v4008_v4  ;;  %v3679_v48 = vsub.f32 %v12177_v3, %v10891_v32  ;;  %vm4004_vm12 = vmor %vm4002_vm11, %vm4003_vm8  ;;  %vm4012_vm14 = vweird.f32 %v10961_v5  ;;  %v5872_v3 = vld [vmem:[%s6834_s10 + $0x40] sm:$0xff]  ;;  %5136 = vmatpush.bf16.msrb.mxu0 %v5865_v58 }
 0x413   : > { %v11073_v4 = vpop.eup %6359  ;;  %v12179_v20 = vsub.f32 %v10134_v36, %v10766_v1  ;;  %vm4014_vm15 = vmor %vm4012_vm14, %vm4013_vm10  ;;  %v4410_v31 = vadd.f32 %v4409_v59, %v11087_v35  ;;  %v4846_v36 = vunpack.c.h.bf16 %v11055_v22  ;;  %v12181_v8 = vsub.f32 %v10110_v38, %v10775_v18 }
 0x414   : > { %v4001_v13 = vmul.f32 %v10987_v51, %v4000_v19  ;;  %v4010_v40 = vsub.f32 1.5, %v4009_v29  ;;  %v12178_v19 = vld [vmem:[#allocation68_spill] sm:$0xff]  ;;  %v4027_v6 = vmul.f32 %v11073_v4, %v11005_v7  ;;  %v12182_v58 = vsub.f32 %v10119_v21, %v10775_v18  ;;  %v12185_v18 = vld [vmem:[#allocation146_spill] sm:$0xff] }
 0x415   : > { %v6362_v16 = vpop.eup %6361  ;;  %v3676_v55 = vsub.f32 %v12178_v19, %v10885_v9  ;;  %v3985_v19 = vsel %vm3984_vm13, %v10917_v28, %v3981_v47  ;;  %v4090_v62 = vmul.f32 %v3995_v63, %v12179_v20  ;;  %v4439_v28 = vadd.f32 %v4438_v15, %v11087_v35  ;;  %5226 = vmatpush.bf16.msrb.mxu1 %v5872_v3 }
 0x416   : > { %v4011_v61 = vmul.f32 %v11007_v50, %v4010_v40  ;;  %v4005_v32 = vsel %vm4004_vm12, %v10987_v51, %v4001_v13  ;;  %v4017_v29 = vmul.f32 %v6362_v16, %v11013_v39  ;;  %v3677_v40 = vsub.f32 %v12180_v60, %v10885_v9  ;;  %v5864_v51 = vld [vmem:[%s6834_s10] sm:$0xff]  ;;  %s5382_s10 = sshll.u32 %s12237_s6, 4  ;;  %s5383_s10 = int_to_ptr.hbm [resolvable:$true] %s5382_s10 }
 0x417   : > { %v4028_v5 = vmul.f32 %v11073_v4, %v4027_v6  ;;  %v4092_v47 = vmul.f32 %v4005_v32, %v3676_v55  ;;  %v4088_v9 = vmul.f32 %v3985_v19, %v12181_v8  ;;  %v4089_v6 = vmul.f32 %v3985_v19, %v12182_v58  ;;  %5137 = vmatpush.bf16.msrb.mxu0 %v5864_v51  ;;  %v12184_v55 = vld [vmem:[#allocation145_spill] sm:$0xff] }
 0x418   : > { %v4015_v13 = vsel %vm4014_vm15, %v11007_v50, %v4011_v61  ;;  %v4018_v41 = vmul.f32 %v6362_v16, %v4017_v29  ;;  %v4093_v20 = vmul.f32 %v4005_v32, %v3677_v40  ;;  %v12183_v50 = vsub.f32 %v12165_v10, %v10766_v1  ;;  %v11125_v40 = vpop.f32.mrf.mxu0  ;;  %v11127_v10 = vpop.f32.mrf.mxu1 }
 0x419   : > { %v4029_v46 = vmul.f32 0.5, %v4028_v5  ;;  %v4094_v15 = vmul.f32 %v4015_v13, %v3678_v56  ;;  %v4095_v29 = vmul.f32 %v4015_v13, %v3679_v48  ;;  %vm4033_vm0 = vweird.f32 %v11073_v4 }
 0x41a   : > { %v4091_v61 = vmul.f32 %v3995_v63, %v12183_v50  ;;  %v4019_v59 = vmul.f32 0.5, %v4018_v41  ;;  %v4160_v32 = vmul.f32 %v12184_v55, %v4090_v62  ;;  %vm4023_vm1 = vweird.f32 %v6362_v16  ;;  %v12186_v62 = vld [vmem:[#allocation72_spill] sm:$0xff] }
 0x41b   : > { %v4030_v60 = vsub.f32 1.5, %v4029_v46  ;;  %v4748_v8 = vpack.c.bf16 %v4439_v28, %v4410_v31  ;;  %v4162_v21 = vmul.f32 %v12184_v55, %v4092_v47  ;;  %v4163_v19 = vmul.f32 %v12185_v18, %v4093_v20  ;;  %v12187_v31 = vld [vmem:[#allocation128_spill] sm:$0xff]  ;;  %v12192_v20 = vld [vmem:[#allocation79_spill] sm:$0xff] }
 0x41c   : > { %v4020_v38 = vsub.f32 1.5, %v4019_v59  ;;  %vm4032_vm2 = vweird.f32 %v11005_v7  ;;  %vm4022_vm3 = vweird.f32 %v11013_v39  ;;  %v3682_v48 = vsub.f32 %v12186_v62, %v10955_v2 }
 0x41d   : > { %v4031_v1 = vmul.f32 %v11073_v4, %v4030_v60  ;;  %v3683_v56 = vsub.f32 %v12187_v31, %v10955_v2  ;;  %vm4034_vm4 = vmor %vm4032_vm2, %vm4033_vm0  ;;  %v12188_v63 = vpack.c.bf16 %v11017_v42, %v10981_v57  ;;  %v4161_v3 = vmul.f32 %v12185_v18, %v4091_v61 }
 0x41e   : > { %v4021_v46 = vmul.f32 %v6362_v16, %v4020_v38  ;;  %vm4024_vm6 = vmor %vm4022_vm3, %vm4023_vm1  ;;  %v12189_v39 = vpack.c.bf16 %v11021_v49, %v10991_v34  ;;  %v4164_v5 = vmul.f32 %v12184_v55, %v4094_v15  ;;  %v4165_v2 = vmul.f32 %v12185_v18, %v4095_v29  ;;  %v12193_v34 = vld [vmem:[#allocation138_spill] sm:$0xff] }
 0x41f   : > { %5138 = vmatmul.bf16.vlgmr.msrb.gmra.mxu0 %v12188_v63  ;;  %v4035_v7 = vsel %vm4034_vm4, %v11073_v4, %v4031_v1  ;;  %v4847_v28 = vunpack.c.l.bf16 %v4748_v8  ;;  %v12190_v57 = vsub.f32 %v12167_v26, %v10950_v43  ;;  %v12191_v47 = vsub.f32 %v12173_v23, %v10950_v43 }
 0x420   : > { %5227 = vmatmul.bf16.vlgmr.msrb.gmra.mxu1 %v12189_v39  ;;  %v4025_v51 = vsel %vm4024_vm6, %v6362_v16, %v4021_v46  ;;  %v4098_v13 = vmul.f32 %v4035_v7, %v3682_v48  ;;  %v4099_v41 = vmul.f32 %v4035_v7, %v3683_v56  ;;  %v4232_v58 = vadd.f32 %v12192_v20, %v4162_v21 }
 0x421   : > { %v4096_v42 = vmul.f32 %v4025_v51, %v12190_v57  ;;  %v4097_v4 = vmul.f32 %v4025_v51, %v12191_v47  ;;  %v4233_v49 = vadd.f32 %v12193_v34, %v4163_v19  ;;  %v4848_v16 = vunpack.c.h.bf16 %v4748_v8 }
 0x422   : > { %v4168_v50 = vmul.f32 %v12184_v55, %v4098_v13  ;;  %v4169_v61 = vmul.f32 %v12185_v18, %v4099_v41  ;;  %v4158_v59 = vmul.f32 %v12184_v55, %v4088_v9  ;;  %v4234_v29 = vadd.f32 %v12192_v20, %v4164_v5  ;;  %v4414_v5 = vpop.f32.mrf.mxu0 }
 0x423   : > { %v4166_v15 = vmul.f32 %v12184_v55, %v4096_v42  ;;  %v4167_v26 = vmul.f32 %v12185_v18, %v4097_v4  ;;  %v4235_v43 = vadd.f32 %v12193_v34, %v4165_v2  ;;  %v12194_v38 = vunpack.c.l.bf16 %v12161_v24  ;;  %v4443_v2 = vpop.f32.mrf.mxu1  ;;  %v12199_v42 = vld [vmem:[#allocation74_spill] sm:$0xff] }
 0x424   : > { %v4238_v23 = vadd.f32 %v12192_v20, %v4168_v50  ;;  %v4239_v60 = vadd.f32 %v12193_v34, %v4169_v61  ;;  %v12195_v21 = vunpack.c.l.bf16 %v11055_v22  ;;  %v12196_v8 = vunpack.c.h.bf16 %v12161_v24 }
 0x425   : > { %v4236_v1 = vadd.f32 %v12192_v20, %v4166_v15  ;;  %v4237_v46 = vadd.f32 %v12193_v34, %v4167_v26  ;;  %v4268_v62 = vpack.c.bf16 %v4233_v49, %v4232_v58  ;;  %v4159_v48 = vmul.f32 %v12185_v18, %v4089_v6  ;;  %v12200_v58 = vld [vmem:[#allocation134_spill] sm:$0xff] }
 0x426   : > { %v4909_v19 = vmul.f32 %v12195_v21, %v12194_v38  ;;  %v4910_v9 = vmul.f32 %v4846_v36, %v12196_v8  ;;  %v4271_v31 = vpack.c.bf16 %v4239_v60, %v4238_v23  ;;  %v12197_v56 = vunpack.c.l.bf16 %v10894_v52 }
 0x427   : > { %v12198_v7 = vunpack.c.h.bf16 %v10894_v52  ;;  %v4230_v22 = vadd.f32 %v12192_v20, %v4160_v32  ;;  %v4270_v24 = vpack.c.bf16 %v4237_v46, %v4236_v1  ;;  %v4269_v36 = vpack.c.bf16 %v4235_v43, %v4234_v29  ;;  %v11194_v43 = vpop.permute.xlu2 %4307 }
 0x428   : > { %v4911_v63 = vmul.f32 %v4847_v28, %v12197_v56  ;;  %v4228_v51 = vadd.f32 %v12192_v20, %v4158_v59  ;;  %v4231_v13 = vadd.f32 %v12193_v34, %v4161_v3  ;;  %v4669_v41 = vunpack.c.l.b16 %v4271_v31 }
 0x429   : > { %v4912_v39 = vmul.f32 %v4848_v16, %v12198_v7  ;;  %v4670_v57 = vunpack.c.h.b16 %v4271_v31  ;;  %v4229_v6 = vadd.f32 %v12193_v34, %v4159_v48  ;;  %v4154_v28 = vmul.f32 %v12184_v55, %v12199_v42  ;;  %v11191_v16 = vpop.permute.xlu0 %4302 }
 0x42a   : > { %v4667_v47 = vunpack.c.l.b16 %v4270_v24  ;;  %v4668_v52 = vunpack.c.h.b16 %v4270_v24  ;;  %v4663_v4 = vunpack.c.l.b16 %v4268_v62  ;;  %v4155_v32 = vmul.f32 %v12185_v18, %v12200_v58 }
 0x42b   : > { %v4664_v49 = vunpack.c.h.b16 %v4268_v62  ;;  %v4267_v50 = vpack.c.bf16 %v4231_v13, %v4230_v22  ;;  %v4156_v61 = vmul.f32 %v12184_v55, %v11048_v27  ;;  %v4157_v3 = vmul.f32 %v12185_v18, %v11053_v53  ;;  %v4446_v7 = vpop.f32.mrf.mxu1  ;;  %v12201_v13 = vld [vmem:[#allocation91_spill] sm:$0xff] }
 0x42c   : > { %v4677_v59 = vpack.c.b16 %v4669_v41, %v4667_v47  ;;  %v4678_v15 = vpack.c.b16 %v4670_v57, %v4668_v52  ;;  %v4971_v26 = vpack.c.bf16 %v4911_v63, %v4909_v19  ;;  %v4224_v29 = vadd.f32 %v12192_v20, %v4154_v28  ;;  %v4417_v63 = vpop.f32.mrf.mxu0 }
 0x42d   : > { %v4972_v23 = vpack.c.bf16 %v4912_v39, %v4910_v9  ;;  %v4665_v60 = vunpack.c.l.b16 %v4269_v36  ;;  %v4666_v38 = vunpack.c.h.b16 %v4269_v36  ;;  %v4266_v21 = vpack.c.bf16 %v4229_v6, %v4228_v51 }
 0x42e   : > { %v1879_v8 = vmul.f32 0.044715, %v10882_v37  ;;  %4691 = vmatpush.bf16.msrb.mxu2 %v4677_v59  ;;  %4720 = vmatpush.bf16.msrb.mxu3 %v4678_v15  ;;  %v4225_v27 = vadd.f32 %v12193_v34, %v4155_v32  ;;  %v4226_v53 = vadd.f32 %v12192_v20, %v4156_v61  ;;  %v4227_v55 = vadd.f32 %v12193_v34, %v4157_v3 }
 0x42f   : > { %5143 = vmatmul.bf16.gmra.mxu0 %v4971_v26  ;;  %v4675_v18 = vpack.c.b16 %v4665_v60, %v4663_v4  ;;  %v4676_v19 = vpack.c.b16 %v4666_v38, %v4664_v49  ;;  %v4661_v1 = vunpack.c.l.b16 %v4267_v50  ;;  %v4413_v9 = vadd.f32 %v11125_v40, %v11191_v16  ;;  %v12202_v4 = vld [vmem:[#allocation96_spill] sm:$0xff] }
 0x430   : > { %5232 = vmatmul.bf16.gmra.mxu1 %v4972_v23  ;;  %v4662_v46 = vunpack.c.h.b16 %v4267_v50  ;;  %v4264_v62 = vpack.c.bf16 %v4225_v27, %v4224_v29  ;;  %v4265_v48 = vpack.c.bf16 %v4227_v55, %v4226_v53  ;;  %v4415_v37 = vadd.f32 %v4414_v5, %v11194_v43  ;;  %v11211_v5 = vpop.f32.mrf.mxu2  ;;  %v12203_v50 = vld [vmem:[#allocation108_spill] sm:$0xff] }
 0x431   : > { %v1880_v31 = vmul.f32 0.044715, %v10888_v25  ;;  %v4442_v20 = vadd.f32 %v11127_v10, %v11191_v16  ;;  %v4444_v34 = vadd.f32 %v4443_v2, %v11194_v43  ;;  %v11209_v56 = vpack.c.bf16 %v10879_v0, %v10869_v54  ;;  %v11213_v25 = vpop.f32.mrf.mxu3 }
 0x432   : > { %4692 = vmatpush.bf16.msrb.mxu2 %v4675_v18  ;;  %4721 = vmatpush.bf16.msrb.mxu3 %v4676_v19  ;;  %v4659_v40 = vunpack.c.l.b16 %v4266_v21  ;;  %v4660_v39 = vunpack.c.h.b16 %v4266_v21  ;;  %v4655_v22 = vunpack.c.l.b16 %v4264_v62  ;;  %v4657_v24 = vunpack.c.l.b16 %v4265_v48  ;;  %v11235_v21 = vpop.permute.xlu1 %4312 }
 0x433   : > { %v4656_v36 = vunpack.c.h.b16 %v4264_v62  ;;  %v4658_v10 = vunpack.c.h.b16 %v4265_v48  ;;  %v4749_v51 = vpack.c.bf16 %v4442_v20, %v4413_v9  ;;  %v4750_v2 = vpack.c.bf16 %v4444_v34, %v4415_v37  ;;  %v12204_v48 = vld [vmem:[#allocation97_spill] sm:$0xff] }
 0x434   : > { %v11217_v54 = vadd.f32 %v12201_v13, %v12090_v30  ;;  %v4673_v0 = vpack.c.b16 %v4661_v1, %v4659_v40  ;;  %v4674_v41 = vpack.c.b16 %v4662_v46, %v4660_v39  ;;  %v4671_v57 = vpack.c.b16 %v4657_v24, %v4655_v22  ;;  %v4419_v19 = vpop.f32.mrf.mxu0  ;;  %v4448_v1 = vpop.f32.mrf.mxu1  ;;  %v12205_v24 = vld [vmem:[#allocation98_spill] sm:$0xff] }
 0x435   : > { %v1943_v6 = vadd.f32 %v1879_v8, %v10826_v33  ;;  %v4672_v42 = vpack.c.b16 %v4658_v10, %v4656_v36  ;;  %v3170_v28 = vpack.c.bf16 %v10866_v12, %v10861_v44  ;;  %v4849_v47 = vunpack.c.l.bf16 %v4749_v51  ;;  %v12206_v10 = vld [vmem:[#allocation99_spill] sm:$0xff] }
 0x436   : > { %v1944_v52 = vadd.f32 %v1880_v31, %v10832_v17  ;;  %v11225_v58 = vadd.f32 %v12202_v4, %v12101_v11  ;;  %4693 = vmatpush.bf16.msrb.mxu2 %v4673_v0  ;;  %4722 = vmatpush.bf16.msrb.mxu3 %v4674_v41  ;;  %v4850_v32 = vunpack.c.h.bf16 %v4749_v51  ;;  %v2131_v49 = vadd.f32 1.0, %v10929_v14 }
 0x437   : > { %v4785_v61 = vunpack.c.l.bf16 %v12203_v50  ;;  %v4851_v3 = vunpack.c.l.bf16 %v4750_v2  ;;  %v2132_v59 = vadd.f32 1.0, %v10934_v45  ;;  %v1755_v44 = vmul.f32 %v11217_v54, %v11217_v54  ;;  %v11237_v45 = vpop.permute.xlu2 %4317 }
 0x438   : > { %v4786_v12 = vunpack.c.h.bf16 %v12203_v50  ;;  %v4852_v15 = vunpack.c.h.bf16 %v4750_v2  ;;  %v2007_v26 = vmul.f32 0.7978846, %v1943_v6  ;;  %v4787_v29 = vunpack.c.l.bf16 %v3170_v28  ;;  %v4502_v46 = vpop.f32.mrf.mxu2 }
 0x439   : > { %v4913_v23 = vmul.f32 %v4849_v47, %v4785_v61  ;;  %v2008_v60 = vmul.f32 0.7978846, %v1944_v52  ;;  %v1756_v38 = vmul.f32 %v11225_v58, %v11225_v58  ;;  %v4788_v14 = vunpack.c.h.bf16 %v3170_v28  ;;  %v4531_v62 = vpop.f32.mrf.mxu3 }
 0x43a   : > { %4694 = vmatpush.bf16.msrb.mxu2 %v4671_v57  ;;  %4723 = vmatpush.bf16.msrb.mxu3 %v4672_v42  ;;  %v4914_v8 = vmul.f32 %v4850_v32, %v4786_v12  ;;  %v4915_v27 = vmul.f32 %v4851_v3, %v4787_v29  ;;  %v2195_v53 = vmul.f32 0.5, %v2131_v49  ;;  %v2196_v55 = vmul.f32 0.5, %v2132_v59  ;;  %v12208_v42 = vld [vmem:[#allocation104_spill] sm:$0xff] }
 0x43b   : > { %v1819_v18 = vmul.f32 %v1755_v44, %v11217_v54  ;;  %v4916_v9 = vmul.f32 %v4852_v15, %v4788_v14  ;;  %6363 = vtanh.f32 %v2007_v26  ;;  %v4418_v31 = vadd.f32 %v4417_v63, %v11235_v21  ;;  %v12209_v15 = vld [vmem:[#allocation112_spill] sm:$0xff] }
 0x43c   : > { %v4973_v37 = vpack.c.bf16 %v4915_v27, %v4913_v23  ;;  %v4447_v20 = vadd.f32 %v4446_v7, %v11235_v21  ;;  %6365 = vtanh.f32 %v2008_v60  ;;  %v1820_v34 = vmul.f32 %v1756_v38, %v11225_v58  ;;  %v12207_v7 = vld [vmem:[#allocation102_spill] sm:$0xff] }
 0x43d   : > { %5746 = vmatmul.msk.bf16.vlgmr.msrb.gmra.mxu2 %vm4380_vm5, %v12204_v48  ;;  %5750 = vmatmul.msk.bf16.vlgmr.msrb.gmra.mxu3 %vm4380_vm5, %v12204_v48  ;;  %v4974_v40 = vpack.c.bf16 %v4916_v9, %v4914_v8  ;;  %v4420_v39 = vadd.f32 %v4419_v19, %v11237_v45  ;;  %v4449_v22 = vadd.f32 %v4448_v1, %v11237_v45  ;;  %v1883_v2 = vmul.f32 0.044715, %v1819_v18 }
 0x43e   : > { %v2259_v36 = vmul.f32 %v2195_v53, %v12205_v24  ;;  %v2260_v51 = vmul.f32 %v2196_v55, %v12206_v10  ;;  %v4751_v13 = vpack.c.bf16 %v4447_v20, %v4418_v31  ;;  %v1884_v0 = vmul.f32 0.044715, %v1820_v34  ;;  %v12210_v31 = vld [vmem:[#allocation49_spill] sm:$0xff] }
 0x43f   : > { %5148 = vmatmul.bf16.gmra.mxu0 %v4973_v37  ;;  %v11253_v41 = vadd.f32 %v12207_v7, %v12090_v30  ;;  %v4752_v57 = vpack.c.bf16 %v4449_v22, %v4420_v39  ;;  %v11257_v28 = vadd.f32 %v12208_v42, %v12101_v11  ;;  %v1947_v47 = vadd.f32 %v1883_v2, %v11217_v54 }
 0x440   : > { %5237 = vmatmul.bf16.gmra.mxu1 %v4974_v40  ;;  %v3172_v52 = vpack.c.bf16 %v2260_v51, %v2259_v36  ;;  %v4853_v4 = vunpack.c.l.bf16 %v4751_v13  ;;  %v1948_v49 = vadd.f32 %v1884_v0, %v11225_v58  ;;  %v4854_v50 = vunpack.c.h.bf16 %v4751_v13  ;;  %v11263_v44 = vpop.f32.mrf.mxu2  ;;  %v12211_v40 = vld [vmem:[#allocation151_spill] sm:$0xff] }
 0x441   : > { %v6364_v63 = vpop.eup %6363  ;;  %v1759_v3 = vmul.f32 %v11253_v41, %v11253_v41  ;;  %v4855_v59 = vunpack.c.l.bf16 %v4752_v57  ;;  %v11265_v12 = vpop.f32.mrf.mxu3  ;;  %v4789_v26 = vunpack.c.l.bf16 %v12209_v15  ;;  %v1760_v29 = vmul.f32 %v11257_v28, %v11257_v28  ;;  %v12212_v51 = vld [vmem:[#allocation139_spill] sm:$0xff] }
 0x442   : > { %v6366_v6 = vpop.eup %6365  ;;  %v2135_v32 = vadd.f32 1.0, %v6364_v63  ;;  %v4856_v23 = vunpack.c.h.bf16 %v4752_v57  ;;  %v4790_v60 = vunpack.c.h.bf16 %v12209_v15  ;;  %v2011_v38 = vmul.f32 0.7978846, %v1947_v47 }
 0x443   : > { %v2136_v61 = vadd.f32 1.0, %v6366_v6  ;;  %v4791_v14 = vunpack.c.l.bf16 %v3172_v52  ;;  %v4917_v8 = vmul.f32 %v4853_v4, %v4789_v26  ;;  %v2012_v53 = vmul.f32 0.7978846, %v1948_v49 }
 0x444   : > { %v2199_v27 = vmul.f32 0.5, %v2135_v32  ;;  %v4792_v55 = vunpack.c.h.bf16 %v3172_v52  ;;  %v4918_v18 = vmul.f32 %v4854_v50, %v4790_v60  ;;  %v1823_v1 = vmul.f32 %v1759_v3, %v11253_v41 }
 0x445   : > { %v2200_v19 = vmul.f32 0.5, %v2136_v61  ;;  %v4919_v9 = vmul.f32 %v4855_v59, %v4791_v14  ;;  %v1824_v48 = vmul.f32 %v1760_v29, %v11257_v28  ;;  %6367 = vtanh.f32 %v2011_v38 }
 0x446   : > { %v4920_v37 = vmul.f32 %v4856_v23, %v4792_v55  ;;  %v4503_v20 = vadd.f32 %v4502_v46, %v12210_v31  ;;  %v4532_v34 = vadd.f32 %v4531_v62, %v12210_v31  ;;  %v2263_v22 = vmul.f32 %v2199_v27, %v10826_v33 }
 0x447   : > { %v4975_v39 = vpack.c.bf16 %v4919_v9, %v4917_v8  ;;  %6369 = vtanh.f32 %v2012_v53  ;;  %v2264_v36 = vmul.f32 %v2200_v19, %v10832_v17  ;;  %v1887_v10 = vmul.f32 0.044715, %v1823_v1  ;;  %v12213_v17 = vld [vmem:[#allocation105_spill] sm:$0xff] }
 0x448   : > { %v4976_v24 = vpack.c.bf16 %v4920_v37, %v4918_v18  ;;  %v4501_v2 = vadd.f32 %v11211_v5, %v12212_v51  ;;  %v4530_v46 = vadd.f32 %v11213_v25, %v12212_v51  ;;  %v1888_v62 = vmul.f32 0.044715, %v1824_v48  ;;  %v4507_v0 = vpop.f32.mrf.mxu2  ;;  %v12214_v5 = vld [vmem:[#allocation106_spill] sm:$0xff] }
 0x449   : > { %v4754_v13 = vpack.c.bf16 %v4532_v34, %v4503_v20  ;;  %v4536_v63 = vpop.f32.mrf.mxu3  ;;  %v1951_v33 = vadd.f32 %v1887_v10, %v11253_v41  ;;  %v3174_v6 = vpack.c.bf16 %v2264_v36, %v2263_v22  ;;  %v11288_v47 = vadd.f32 %v12213_v17, %v12090_v30 }
 0x44a   : > { %v4753_v57 = vpack.c.bf16 %v4530_v46, %v4501_v2  ;;  %v11292_v52 = vadd.f32 %v12214_v5, %v12101_v11  ;;  %v1952_v25 = vadd.f32 %v1888_v62, %v11257_v28  ;;  %v12215_v11 = vld [vmem:[#allocation116_spill] sm:$0xff]  ;;  %v4508_v34 = vadd.f32 %v4507_v0, %v11087_v35  ;;  %v12217_v2 = vld [vmem:[#allocation51_spill] sm:$0xff] }
 0x44b   : > { %v6368_v7 = vpop.eup %6367  ;;  %v4859_v4 = vunpack.c.l.bf16 %v4754_v13  ;;  %v4860_v49 = vunpack.c.h.bf16 %v4754_v13  ;;  %v2015_v61 = vmul.f32 0.7978846, %v1951_v33  ;;  %v4795_v59 = vunpack.c.l.bf16 %v3174_v6 }
 0x44c   : > { %v2139_v32 = vadd.f32 1.0, %v6368_v7  ;;  %v4857_v3 = vunpack.c.l.bf16 %v4753_v57  ;;  %v1763_v15 = vmul.f32 %v11288_v47, %v11288_v47  ;;  %v1764_v30 = vmul.f32 %v11292_v52, %v11292_v52 }
 0x44d   : > { %5747 = vmatmul.msk.bf16.gmra.mxu2 %vm4380_vm5, %v12211_v40  ;;  %5751 = vmatmul.msk.bf16.gmra.mxu3 %vm4380_vm5, %v12211_v40  ;;  %v6370_v42 = vpop.eup %6369  ;;  %v4858_v26 = vunpack.c.h.bf16 %v4753_v57  ;;  %v4796_v29 = vunpack.c.h.bf16 %v3174_v6  ;;  %v2016_v23 = vmul.f32 0.7978846, %v1952_v25  ;;  %v4793_v60 = vunpack.c.l.bf16 %v12215_v11 }
 0x44e   : > { %v2140_v50 = vadd.f32 1.0, %v6370_v42  ;;  %v4923_v38 = vmul.f32 %v4859_v4, %v4795_v59  ;;  %v4794_v14 = vunpack.c.h.bf16 %v12215_v11  ;;  %v2203_v27 = vmul.f32 0.5, %v2139_v32 }
 0x44f   : > { %5153 = vmatmul.bf16.gmra.mxu0 %v4975_v39  ;;  %v4924_v8 = vmul.f32 %v4860_v49, %v4796_v29  ;;  %6371 = vtanh.f32 %v2015_v61  ;;  %v4921_v19 = vmul.f32 %v4857_v3, %v4793_v60  ;;  %v1827_v1 = vmul.f32 %v1763_v15, %v11288_v47  ;;  %v12216_v39 = vld [vmem:[#allocation150_spill] sm:$0xff] }
 0x450   : > { %5242 = vmatmul.bf16.gmra.mxu1 %v4976_v24  ;;  %v2204_v53 = vmul.f32 0.5, %v2140_v50  ;;  %v11301_v55 = vpop.f32.mrf.mxu2  ;;  %v1828_v9 = vmul.f32 %v1764_v30, %v11292_v52  ;;  %v4922_v20 = vmul.f32 %v4858_v26, %v4794_v14  ;;  %6373 = vtanh.f32 %v2016_v23  ;;  %v12218_v26 = vld [vmem:[#allocation77_spill] sm:$0xff] }
 0x451   : > { %v11303_v18 = vpop.f32.mrf.mxu3  ;;  %v4537_v40 = vadd.f32 %v4536_v63, %v11087_v35  ;;  %v4977_v22 = vpack.c.bf16 %v4923_v38, %v4921_v19  ;;  %v2267_v36 = vmul.f32 %v2203_v27, %v11217_v54  ;;  %v4506_v46 = vadd.f32 %v11263_v44, %v12217_v2 }
 0x452   : > { %v4978_v24 = vpack.c.bf16 %v4924_v8, %v4922_v20  ;;  %v2268_v10 = vmul.f32 %v2204_v53, %v11225_v58  ;;  %v4535_v62 = vadd.f32 %v11265_v12, %v12217_v2  ;;  %v1891_v13 = vmul.f32 0.044715, %v1827_v1  ;;  %v12219_v20 = vld [vmem:[#allocation149_spill] sm:$0xff] }
 0x453   : > { %v1892_v63 = vmul.f32 0.044715, %v1828_v9  ;;  %v4756_v7 = vpack.c.bf16 %v4537_v40, %v4508_v34  ;;  %v4797_v29 = vunpack.c.l.bf16 %v12218_v26  ;;  %v4798_v60 = vunpack.c.h.bf16 %v12218_v26 }
 0x454   : > { %v4755_v57 = vpack.c.bf16 %v4535_v62, %v4506_v46  ;;  %v3176_v6 = vpack.c.bf16 %v2268_v10, %v2267_v36  ;;  %v1955_v54 = vadd.f32 %v1891_v13, %v11288_v47  ;;  %v4511_v40 = vadd.f32 %v11301_v55, %v11191_v16 }
 0x455   : > { %v6372_v0 = vpop.eup %6371  ;;  %v1956_v5 = vadd.f32 %v1892_v63, %v11292_v52  ;;  %v4863_v44 = vunpack.c.l.bf16 %v4756_v7  ;;  %v4864_v4 = vunpack.c.h.bf16 %v4756_v7 }
 0x456   : > { %v6374_v33 = vpop.eup %6373  ;;  %v2143_v42 = vadd.f32 1.0, %v6372_v0  ;;  %v4861_v49 = vunpack.c.l.bf16 %v4755_v57  ;;  %v4799_v50 = vunpack.c.l.bf16 %v3176_v6  ;;  %v2019_v3 = vmul.f32 0.7978846, %v1955_v54 }
 0x457   : > { %v2144_v25 = vadd.f32 1.0, %v6374_v33  ;;  %v4862_v59 = vunpack.c.h.bf16 %v4755_v57  ;;  %v4800_v15 = vunpack.c.h.bf16 %v3176_v6  ;;  %v2020_v30 = vmul.f32 0.7978846, %v1956_v5 }
 0x458   : > { %v4512_v12 = vpop.f32.mrf.mxu2  ;;  %v2207_v61 = vmul.f32 0.5, %v2143_v42  ;;  %v4927_v23 = vmul.f32 %v4863_v44, %v4799_v50  ;;  %v4925_v14 = vmul.f32 %v4861_v49, %v4797_v29  ;;  %6375 = vtanh.f32 %v2019_v3 }
 0x459   : > { %v4541_v32 = vpop.f32.mrf.mxu3  ;;  %v2208_v11 = vmul.f32 0.5, %v2144_v25  ;;  %v4928_v38 = vmul.f32 %v4864_v4, %v4800_v15  ;;  %v4926_v19 = vmul.f32 %v4862_v59, %v4798_v60  ;;  %6377 = vtanh.f32 %v2020_v30 }
 0x45a   : > { %v2271_v8 = vmul.f32 %v2207_v61, %v11253_v41  ;;  %v4513_v1 = vadd.f32 %v4512_v12, %v11194_v43  ;;  %v4542_v9 = vadd.f32 %v4541_v32, %v11194_v43  ;;  %v4979_v34 = vpack.c.bf16 %v4927_v23, %v4925_v14  ;;  %v12220_v32 = vld [vmem:[#allocation78_spill] sm:$0xff] }
 0x45b   : > { %v2272_v41 = vmul.f32 %v2208_v11, %v11257_v28  ;;  %v4801_v49 = vunpack.c.l.bf16 %v12220_v32  ;;  %v4802_v15 = vunpack.c.h.bf16 %v12220_v32 }
 0x45c   : > { %v11307_v48 = vpop.f32.mrf.mxu0  ;;  %v11309_v37 = vpop.f32.mrf.mxu1  ;;  %v4758_v10 = vpack.c.bf16 %v4542_v9, %v4513_v1 }
 0x45d   : > { %5748 = vmatmul.msk.bf16.gmra.mxu2 %vm4380_vm5, %v12216_v39  ;;  %5752 = vmatmul.msk.bf16.gmra.mxu3 %vm4380_vm5, %v12216_v39  ;;  %v4540_v39 = vadd.f32 %v11303_v18, %v11191_v16  ;;  %v3178_v13 = vpack.c.bf16 %v2272_v41, %v2271_v8  ;;  %v4599_v42 = vadd.f32 %v11307_v48, %v12212_v51 }
 0x45e   : > { %v6376_v46 = vpop.eup %6375  ;;  %v4867_v33 = vunpack.c.l.bf16 %v4758_v10  ;;  %v4868_v6 = vunpack.c.h.bf16 %v4758_v10  ;;  %v4628_v54 = vadd.f32 %v11309_v37, %v12212_v51 }
 0x45f   : > { %5158 = vmatmul.bf16.gmra.mxu0 %v4977_v22  ;;  %v4980_v22 = vpack.c.bf16 %v4928_v38, %v4926_v19  ;;  %v4757_v62 = vpack.c.bf16 %v4540_v39, %v4511_v40  ;;  %v6378_v0 = vpop.eup %6377  ;;  %v2147_v28 = vadd.f32 1.0, %v6376_v46  ;;  %v4803_v18 = vunpack.c.l.bf16 %v3178_v13 }
 0x460   : > { %5247 = vmatmul.bf16.gmra.mxu1 %v4978_v24  ;;  %v4515_v24 = vpop.f32.mrf.mxu2  ;;  %v2148_v55 = vadd.f32 1.0, %v6378_v0  ;;  %v4804_v4 = vunpack.c.h.bf16 %v3178_v13  ;;  %v4761_v48 = vpack.c.bf16 %v4628_v54, %v4599_v42 }
 0x461   : > { %v4544_v36 = vpop.f32.mrf.mxu3  ;;  %v4865_v57 = vunpack.c.l.bf16 %v4757_v62  ;;  %v4866_v25 = vunpack.c.h.bf16 %v4757_v62  ;;  %v2211_v12 = vmul.f32 0.5, %v2147_v28  ;;  %v4931_v50 = vmul.f32 %v4867_v33, %v4803_v18 }
 0x462   : > { %v2212_v61 = vmul.f32 0.5, %v2148_v55  ;;  %v4932_v30 = vmul.f32 %v4868_v6, %v4804_v4  ;;  %v4516_v8 = vadd.f32 %v4515_v24, %v11235_v21  ;;  %v4545_v19 = vadd.f32 %v4544_v36, %v11235_v21 }
 0x463   : > { %v4929_v29 = vmul.f32 %v4865_v57, %v4801_v49  ;;  %v4873_v9 = vunpack.c.l.bf16 %v4761_v48 }
 0x464   : > { %v4600_v17 = vpop.f32.mrf.mxu0  ;;  %v4629_v58 = vpop.f32.mrf.mxu1  ;;  %v2276_v14 = vmul.f32 %v2212_v61, %v11292_v52  ;;  %v4759_v62 = vpack.c.bf16 %v4545_v19, %v4516_v8  ;;  %v12225_v8 = vld [vmem:[#allocation133_spill] sm:$0xff] }
 0x465   : > { %v4601_v5 = vadd.f32 %v4600_v17, %v12210_v31  ;;  %v4630_v44 = vadd.f32 %v4629_v58, %v12210_v31  ;;  %v4930_v17 = vmul.f32 %v4866_v25, %v4802_v15  ;;  %v2275_v58 = vmul.f32 %v2211_v12, %v11288_v47  ;;  %v12221_v47 = vld [vmem:[#allocation89_spill] sm:$0xff] }
 0x466   : > { %v4981_v38 = vpack.c.bf16 %v4931_v50, %v4929_v29  ;;  %v4809_v40 = vunpack.c.l.bf16 %v12221_v47  ;;  %v4810_v46 = vunpack.c.h.bf16 %v12221_v47  ;;  %v4869_v42 = vunpack.c.l.bf16 %v4759_v62  ;;  %v12223_v50 = vld [vmem:[#allocation60_spill] sm:$0xff] }
 0x467   : > { %v4762_v26 = vpack.c.bf16 %v4630_v44, %v4601_v5  ;;  %v4982_v1 = vpack.c.bf16 %v4932_v30, %v4930_v17  ;;  %v3180_v24 = vpack.c.bf16 %v2276_v14, %v2275_v58  ;;  %v4870_v32 = vunpack.c.h.bf16 %v4759_v62 }
 0x468   : > { %v4517_v3 = vpop.f32.mrf.mxu2  ;;  %v11369_v13 = vmul.f32 %v4873_v9, %v4809_v40  ;;  %v4805_v61 = vunpack.c.l.bf16 %v12223_v50  ;;  %v4815_v19 = vunpack.c.l.bf16 %v12225_v8  ;;  %v4816_v9 = vunpack.c.h.bf16 %v12225_v8 }
 0x469   : > { %v4546_v59 = vpop.f32.mrf.mxu3  ;;  %v4518_v23 = vadd.f32 %v4517_v3, %v11237_v45  ;;  %v4876_v41 = vunpack.c.h.bf16 %v4762_v26  ;;  %v4807_v5 = vunpack.c.l.bf16 %v3180_v24  ;;  %v4808_v49 = vunpack.c.h.bf16 %v3180_v24 }
 0x46a   : > { %v4547_v11 = vadd.f32 %v4546_v59, %v11237_v45  ;;  %v4806_v59 = vunpack.c.h.bf16 %v12223_v50 }
 0x46c   : > { %v11328_v27 = vpop.f32.mrf.mxu0  ;;  %v11330_v53 = vpop.f32.mrf.mxu1  ;;  %v4760_v39 = vpack.c.bf16 %v4547_v11, %v4518_v23  ;;  %v4934_v29 = vmul.f32 %v4870_v32, %v4806_v59  ;;  %v12227_v32 = vld [vmem:[#allocation119_spill] sm:$0xff] }
 0x46d   : > { %5749 = vmatmul.msk.bf16.gmra.mxu2 %vm4380_vm5, %v12219_v20  ;;  %5753 = vmatmul.msk.bf16.gmra.mxu3 %vm4380_vm5, %v12219_v20  ;;  %v4874_v20 = vunpack.c.h.bf16 %v4761_v48  ;;  %v4604_v44 = vadd.f32 %v11328_v27, %v12217_v2  ;;  %v4633_v25 = vadd.f32 %v11330_v53, %v12217_v2  ;;  %v4933_v27 = vmul.f32 %v4869_v42, %v4805_v61 }
 0x46e   : > { %v4871_v55 = vunpack.c.l.bf16 %v4760_v39  ;;  %v4872_v54 = vunpack.c.h.bf16 %v4760_v39  ;;  %v4820_v61 = vunpack.c.h.bf16 %v12227_v32 }
 0x46f   : > { %5163 = vmatmul.bf16.gmra.mxu0 %v4979_v34  ;;  %v4875_v34 = vunpack.c.l.bf16 %v4762_v26  ;;  %v11373_v0 = vmul.f32 %v4874_v20, %v4810_v46  ;;  %v4763_v30 = vpack.c.bf16 %v4633_v25, %v4604_v44 }
 0x470   : > { %5252 = vmatmul.bf16.gmra.mxu1 %v4980_v22  ;;  %v12222_v22 = vld [vmem:[#allocation131_spill] sm:$0xff]  ;;  %v4935_v3 = vmul.f32 %v4871_v55, %v4807_v5  ;;  %v4936_v15 = vmul.f32 %v4872_v54, %v4808_v49  ;;  %v4819_v49 = vunpack.c.l.bf16 %v12227_v32 }
 0x471   : > { %v4811_v10 = vunpack.c.l.bf16 %v12222_v22  ;;  %v4812_v52 = vunpack.c.h.bf16 %v12222_v22  ;;  %v4878_v23 = vunpack.c.h.bf16 %v4763_v30 }
 0x472   : > { %v4983_v17 = vpack.c.bf16 %v4935_v3, %v4933_v27  ;;  %v4984_v58 = vpack.c.bf16 %v4936_v15, %v4934_v29 }
 0x473   : > { %v11371_v36 = vmul.f32 %v4875_v34, %v4811_v10  ;;  %v4940_v28 = vmul.f32 %v4876_v41, %v4812_v52 }
 0x474   : > { %v11343_v63 = vpop.f32.mrf.mxu0  ;;  %v11345_v7 = vpop.f32.mrf.mxu1 }
 0x475   : > { %v4985_v6 = vpack.c.bf16 %v11371_v36, %v11369_v13  ;;  %v4986_v18 = vpack.c.bf16 %v4940_v28, %v11373_v0  ;;  %v4606_v4 = vadd.f32 %v11343_v63, %v11087_v35  ;;  %v4635_v12 = vadd.f32 %v11345_v7, %v11087_v35  ;;  %v6403_v13 = vld [vmem:[%s6845_s15] sm:$0x7] }
 0x476   : > { %v4877_v63 = vunpack.c.l.bf16 %v4763_v30  ;;  %v11399_v36 = vperm.slane %v6403_v13, 2 }
 0x477   : > { %v4764_v48 = vpack.c.bf16 %v4635_v12, %v4606_v4  ;;  %v6404_v12 = vld [vmem:[#allocation10] sm:$0xff] }
 0x479   : > { %v4879_v11 = vunpack.c.l.bf16 %v4764_v48  ;;  %v4880_v7 = vunpack.c.h.bf16 %v4764_v48 }
 0x47b   : > { %v4943_v34 = vmul.f32 %v4879_v11, %v4815_v19  ;;  %v4944_v47 = vmul.f32 %v4880_v7, %v4816_v9  ;;  %v6405_v7 = vld [vmem:[#allocation10 + $0x8] sm:$0xff] }
 0x47c   : > { %v11355_v37 = vpop.f32.mrf.mxu0  ;;  %v11360_v60 = vpop.f32.mrf.mxu1 }
 0x47d   : > { %v4609_v46 = vadd.f32 %v11355_v37, %v11191_v16  ;;  %v4638_v52 = vadd.f32 %v11360_v60, %v11191_v16  ;;  %v12226_v60 = vld [vmem:[#allocation65_spill] sm:$0xff] }
 0x47e   : > { %v4818_v50 = vunpack.c.h.bf16 %v12226_v60 }
 0x47f   : > { %5168 = vmatmul.bf16.gmra.mxu0 %v4981_v38  ;;  %v12224_v38 = vld [vmem:[#allocation61_spill] sm:$0xff]  ;;  %v4765_v0 = vpack.c.bf16 %v4638_v52, %v4609_v46  ;;  %v12229_v52 = vld [vmem:[#allocation122_spill] sm:$0xff] }
 0x480   : > { %5257 = vmatmul.bf16.gmra.mxu1 %v4982_v1  ;;  %v4813_v14 = vunpack.c.l.bf16 %v12224_v38  ;;  %v4814_v1 = vunpack.c.h.bf16 %v12224_v38  ;;  %v4824_v13 = vunpack.c.h.bf16 %v12229_v52 }
 0x481   : > { %v4881_v5 = vunpack.c.l.bf16 %v4765_v0  ;;  %v4882_v44 = vunpack.c.h.bf16 %v4765_v0 }
 0x482   : > { %v4941_v20 = vmul.f32 %v4877_v63, %v4813_v14  ;;  %v4942_v41 = vmul.f32 %v4878_v23, %v4814_v1 }
 0x483   : > { %v4946_v15 = vmul.f32 %v4882_v44, %v4818_v50  ;;  %v6408_v50 = vld [vmem:[#allocation10 + $0x20] sm:$0xff] }
 0x484   : > { %v4610_v33 = vpop.f32.mrf.mxu0  ;;  %v4639_v57 = vpop.f32.mrf.mxu1  ;;  %v4987_v22 = vpack.c.bf16 %v4943_v34, %v4941_v20  ;;  %v4988_v10 = vpack.c.bf16 %v4944_v47, %v4942_v41 }
 0x485   : > { %v4611_v62 = vadd.f32 %v4610_v33, %v11194_v43  ;;  %v4640_v24 = vadd.f32 %v4639_v57, %v11194_v43  ;;  %v4817_v33 = vunpack.c.l.bf16 %v12226_v60 }
 0x487   : > { %v4766_v28 = vpack.c.bf16 %v4640_v24, %v4611_v62  ;;  %v4945_v3 = vmul.f32 %v4881_v5, %v4817_v33  ;;  %v4823_v62 = vunpack.c.l.bf16 %v12229_v52 }
 0x489   : > { %v4883_v25 = vunpack.c.l.bf16 %v4766_v28  ;;  %v4884_v37 = vunpack.c.h.bf16 %v4766_v28 }
 0x48b   : > { %v4947_v59 = vmul.f32 %v4883_v25, %v4819_v49  ;;  %v4948_v30 = vmul.f32 %v4884_v37, %v4820_v61  ;;  %v6407_v37 = vld [vmem:[#allocation10 + $0x18] sm:$0xff] }
 0x48c   : > { %v4613_v26 = vpop.f32.mrf.mxu0  ;;  %v4642_v53 = vpop.f32.mrf.mxu1 }
 0x48d   : > { %v4990_v29 = vpack.c.bf16 %v4948_v30, %v4946_v15 }
 0x48f   : > { %5173 = vmatmul.bf16.gmra.mxu0 %v4983_v17  ;;  %v4614_v17 = vadd.f32 %v4613_v26, %v11235_v21 }
 0x490   : > { %5262 = vmatmul.bf16.gmra.mxu1 %v4984_v58  ;;  %v4643_v58 = vadd.f32 %v4642_v53, %v11235_v21  ;;  %v12228_v53 = vld [vmem:[#allocation66_spill] sm:$0xff] }
 0x491   : > { %v4822_v24 = vunpack.c.h.bf16 %v12228_v53 }
 0x492   : > { %v4767_v14 = vpack.c.bf16 %v4643_v58, %v4614_v17 }
 0x494   : > { %v4615_v40 = vpop.f32.mrf.mxu0  ;;  %v4644_v39 = vpop.f32.mrf.mxu1  ;;  %v4885_v20 = vunpack.c.l.bf16 %v4767_v14  ;;  %v4886_v34 = vunpack.c.h.bf16 %v4767_v14 }
 0x495   : > { %v4616_v63 = vadd.f32 %v4615_v40, %v11237_v45  ;;  %v4645_v23 = vadd.f32 %v4644_v39, %v11237_v45  ;;  %v4821_v40 = vunpack.c.l.bf16 %v12228_v53  ;;  %v6406_v39 = vld [vmem:[#allocation10 + $0x10] sm:$0xff] }
 0x497   : > { %v4768_v8 = vpack.c.bf16 %v4645_v23, %v4616_v63  ;;  %v4949_v0 = vmul.f32 %v4885_v20, %v4821_v40  ;;  %v6409_v63 = vld [vmem:[#allocation10 + $0x28] sm:$0xff] }
 0x499   : > { %v4887_v41 = vunpack.c.l.bf16 %v4768_v8  ;;  %v4888_v26 = vunpack.c.h.bf16 %v4768_v8 }
 0x49b   : > { %v4951_v28 = vmul.f32 %v4887_v41, %v4823_v62 }
 0x49c   : > { %v5139_v55 = vpop.f32.mrf.mxu0 }
 0x49d   : > { %v5140_v42 = vadd.f32 %v5139_v55, %v11399_v36  ;;  %v5228_v54 = vpop.f32.mrf.mxu1  ;;  %v4950_v55 = vmul.f32 %v4886_v34, %v4822_v24  ;;  %v6410_v24 = vld [vmem:[#allocation10 + $0x30] sm:$0xff] }
 0x49f   : > { %v5229_v4 = vadd.f32 %v5228_v54, %v5140_v42  ;;  %5178 = vmatmul.bf16.gmra.mxu0 %v4985_v6  ;;  %v4952_v42 = vmul.f32 %v4888_v26, %v4824_v13 }
 0x4a0   : > { %5267 = vmatmul.bf16.gmra.mxu1 %v4986_v18  ;;  %v4989_v18 = vpack.c.bf16 %v4947_v59, %v4945_v3 }
 0x4a1   : > { %v5308_v57 = vadd.f32 %v6404_v12, %v5229_v4  ;;  %v4992_v44 = vpack.c.bf16 %v4952_v42, %v4950_v55 }
 0x4a3   : > { %5340 = vst [vmem:[#allocation10] sm:$0xff] %v5308_v57 }
 0x4a4   : > { %v5141_v48 = vpop.f32.mrf.mxu0 }
 0x4a5   : > { %v5142_v27 = vadd.f32 %v5141_v48, %v11399_v36  ;;  %v5230_v6 = vpop.f32.mrf.mxu1 }
 0x4a7   : > { %v5231_v11 = vadd.f32 %v5230_v6, %v5142_v27 }
 0x4a9   : > { %v5309_v38 = vadd.f32 %v6405_v7, %v5231_v11 }
 0x4ab   : > { %5341 = vst [vmem:[#allocation10 + $0x8] sm:$0xff] %v5309_v38 }
 0x4ac   : > { %v5144_v19 = vpop.f32.mrf.mxu0 }
 0x4ad   : > { %v5145_v1 = vadd.f32 %v5144_v19, %v11399_v36  ;;  %v5233_v9 = vpop.f32.mrf.mxu1  ;;  %v12231_v19 = vld [vmem:[#allocation100_spill] sm:$0xff] }
 0x4ae   : > { %v4828_v26 = vunpack.c.h.bf16 %v12231_v19 }
 0x4af   : > { %v5234_v47 = vadd.f32 %v5233_v9, %v5145_v1  ;;  %5183 = vmatmul.bf16.gmra.mxu0 %v4987_v22  ;;  %v4827_v1 = vunpack.c.l.bf16 %v12231_v19 }
 0x4b0   : > { %5272 = vmatmul.bf16.gmra.mxu1 %v4988_v10  ;;  %v4991_v10 = vpack.c.bf16 %v4951_v28, %v4949_v0 }
 0x4b1   : > { %v5310_v46 = vadd.f32 %v6406_v39, %v5234_v47 }
 0x4b3   : > { %5342 = vst [vmem:[#allocation10 + $0x10] sm:$0xff] %v5310_v46 }
 0x4b4   : > { %v5146_v54 = vpop.f32.mrf.mxu0 }
 0x4b5   : > { %v5147_v5 = vadd.f32 %v5146_v54, %v11399_v36  ;;  %v5235_v22 = vpop.f32.mrf.mxu1 }
 0x4b7   : > { %v5236_v25 = vadd.f32 %v5235_v22, %v5147_v5 }
 0x4b9   : > { %v5311_v4 = vadd.f32 %v6407_v37, %v5236_v25 }
 0x4bb   : > { %5343 = vst [vmem:[#allocation10 + $0x18] sm:$0xff] %v5311_v4  ;;  %v6411_v4 = vld [vmem:[#allocation10 + $0x38] sm:$0xff] }
 0x4bc   : > { %v5149_v60 = vpop.f32.mrf.mxu0 }
 0x4bd   : > { %v5150_v33 = vadd.f32 %v5149_v60, %v11399_v36  ;;  %v5238_v12 = vpop.f32.mrf.mxu1 }
 0x4bf   : > { %v5239_v57 = vadd.f32 %v5238_v12, %v5150_v33  ;;  %5188 = vmatmul.bf16.gmra.mxu0 %v4989_v18 }
 0x4c0   : > { %5277 = vmatmul.bf16.gmra.mxu1 %v4990_v29  ;;  %v4696_v32 = vpop.f32.mrf.mxu2  ;;  %v4725_v49 = vpop.f32.mrf.mxu3 }
 0x4c1   : > { %v5312_v61 = vadd.f32 %v6408_v50, %v5239_v57  ;;  %v4697_v3 = vadd.f32 %v4696_v32, %v12212_v51  ;;  %v4726_v59 = vadd.f32 %v4725_v49, %v12212_v51  ;;  %v12230_v51 = vld [vmem:[#allocation140_spill] sm:$0xff] }
 0x4c2   : > { %v4825_v8 = vunpack.c.l.bf16 %v12230_v51  ;;  %v4826_v47 = vunpack.c.h.bf16 %v12230_v51 }
 0x4c3   : > { %5344 = vst [vmem:[#allocation10 + $0x20] sm:$0xff] %v5312_v61  ;;  %v4769_v27 = vpack.c.bf16 %v4726_v59, %v4697_v3  ;;  %v12233_v3 = vld [vmem:[#allocation92_spill] sm:$0xff] }
 0x4c4   : > { %v5151_v15 = vpop.f32.mrf.mxu0  ;;  %v4831_v59 = vunpack.c.l.bf16 %v12233_v3 }
 0x4c5   : > { %v5152_v30 = vadd.f32 %v5151_v15, %v11399_v36  ;;  %v5240_v48 = vpop.f32.mrf.mxu1  ;;  %v4889_v11 = vunpack.c.l.bf16 %v4769_v27  ;;  %v4890_v38 = vunpack.c.h.bf16 %v4769_v27 }
 0x4c7   : > { %v5241_v6 = vadd.f32 %v5240_v48, %v5152_v30  ;;  %v4954_v62 = vmul.f32 %v4890_v38, %v4826_v47 }
 0x4c8   : > { %v4698_v17 = vpop.f32.mrf.mxu2  ;;  %v4727_v58 = vpop.f32.mrf.mxu3 }
 0x4c9   : > { %v5313_v18 = vadd.f32 %v6409_v63, %v5241_v6  ;;  %v4699_v29 = vadd.f32 %v4698_v17, %v12210_v31  ;;  %v4728_v23 = vadd.f32 %v4727_v58, %v12210_v31  ;;  %v4953_v31 = vmul.f32 %v4889_v11, %v4825_v8 }
 0x4ca   : > { %v4832_v6 = vunpack.c.h.bf16 %v12233_v3 }
 0x4cb   : > { %5345 = vst [vmem:[#allocation10 + $0x28] sm:$0xff] %v5313_v18  ;;  %v4770_v7 = vpack.c.bf16 %v4728_v23, %v4699_v29 }
 0x4cc   : > { %v5154_v14 = vpop.f32.mrf.mxu0 }
 0x4cd   : > { %v4891_v9 = vunpack.c.l.bf16 %v4770_v7  ;;  %v4892_v20 = vunpack.c.h.bf16 %v4770_v7  ;;  %v5155_v34 = vadd.f32 %v5154_v14, %v11399_v36  ;;  %v5243_v41 = vpop.f32.mrf.mxu1  ;;  %v6412_v7 = vld [vmem:[#allocation10 + $0x40] sm:$0xff] }
 0x4cf   : > { %v5244_v53 = vadd.f32 %v5243_v41, %v5155_v34  ;;  %5193 = vmatmul.bf16.gmra.mxu0 %v4991_v10  ;;  %v4955_v40 = vmul.f32 %v4891_v9, %v4827_v1  ;;  %v4956_v39 = vmul.f32 %v4892_v20, %v4828_v26 }
 0x4d0   : > { %5282 = vmatmul.bf16.gmra.mxu1 %v4992_v44  ;;  %v4701_v46 = vpop.f32.mrf.mxu2  ;;  %v4730_v52 = vpop.f32.mrf.mxu3 }
 0x4d1   : > { %v5314_v13 = vadd.f32 %v6410_v24, %v5244_v53  ;;  %v4993_v0 = vpack.c.bf16 %v4955_v40, %v4953_v31  ;;  %v4994_v28 = vpack.c.bf16 %v4956_v39, %v4954_v62  ;;  %v4702_v55 = vadd.f32 %v4701_v46, %v12217_v2  ;;  %v6413_v53 = vld [vmem:[#allocation10 + $0x48] sm:$0xff] }
 0x4d2   : > { %v4731_v42 = vadd.f32 %v4730_v52, %v12217_v2  ;;  %v12232_v2 = vld [vmem:[#allocation152_spill] sm:$0xff] }
 0x4d3   : > { %5346 = vst [vmem:[#allocation10 + $0x30] sm:$0xff] %v5314_v13  ;;  %v4829_v61 = vunpack.c.l.bf16 %v12232_v2  ;;  %v4830_v17 = vunpack.c.h.bf16 %v12232_v2 }
 0x4d4   : > { %v5156_v54 = vpop.f32.mrf.mxu0  ;;  %v4771_v10 = vpack.c.bf16 %v4731_v42, %v4702_v55 }
 0x4d5   : > { %v5157_v5 = vadd.f32 %v5156_v54, %v11399_v36  ;;  %v5245_v22 = vpop.f32.mrf.mxu1 }
 0x4d6   : > { %v4893_v57 = vunpack.c.l.bf16 %v4771_v10  ;;  %v4894_v49 = vunpack.c.h.bf16 %v4771_v10 }
 0x4d7   : > { %v5246_v25 = vadd.f32 %v5245_v22, %v5157_v5 }
 0x4d8   : > { %v4703_v37 = vpop.f32.mrf.mxu2  ;;  %v4732_v44 = vpop.f32.mrf.mxu3  ;;  %v4958_v11 = vmul.f32 %v4894_v49, %v4830_v17 }
 0x4d9   : > { %v5315_v60 = vadd.f32 %v6411_v4, %v5246_v25  ;;  %v4704_v33 = vadd.f32 %v4703_v37, %v11087_v35  ;;  %v4733_v12 = vadd.f32 %v4732_v44, %v11087_v35  ;;  %v4957_v35 = vmul.f32 %v4893_v57, %v4829_v61 }
 0x4db   : > { %5347 = vst [vmem:[#allocation10 + $0x38] sm:$0xff] %v5315_v60  ;;  %v4772_v32 = vpack.c.bf16 %v4733_v12, %v4704_v33  ;;  %v6414_v12 = vld [vmem:[#allocation10 + $0x50] sm:$0xff] }
 0x4dc   : > { %v5159_v50 = vpop.f32.mrf.mxu0 }
 0x4dd   : > { %v4895_v15 = vunpack.c.l.bf16 %v4772_v32  ;;  %v4896_v30 = vunpack.c.h.bf16 %v4772_v32  ;;  %v5160_v48 = vadd.f32 %v5159_v50, %v11399_v36  ;;  %v5248_v27 = vpop.f32.mrf.mxu1 }
 0x4df   : > { %v5249_v58 = vadd.f32 %v5248_v27, %v5160_v48  ;;  %5198 = vmatmul.bf16.gmra.mxu0 %v4993_v0  ;;  %v4959_v63 = vmul.f32 %v4895_v15, %v4831_v59  ;;  %v4960_v18 = vmul.f32 %v4896_v30, %v4832_v6  ;;  %v12235_v0 = vld [vmem:[#allocation87_spill] sm:$0xff]  ;;  %v6415_v6 = vld [vmem:[#allocation10 + $0x58] sm:$0xff] }
 0x4e0   : > { %5287 = vmatmul.bf16.gmra.mxu1 %v4994_v28  ;;  %v4706_v29 = vpop.f32.mrf.mxu2  ;;  %v4735_v23 = vpop.f32.mrf.mxu3  ;;  %v4835_v28 = vunpack.c.l.bf16 %v12235_v0  ;;  %v4836_v22 = vunpack.c.h.bf16 %v12235_v0 }
 0x4e1   : > { %v5316_v38 = vadd.f32 %v6412_v7, %v5249_v58  ;;  %v4995_v14 = vpack.c.bf16 %v4959_v63, %v4957_v35  ;;  %v4996_v51 = vpack.c.bf16 %v4960_v18, %v4958_v11  ;;  %v4707_v8 = vadd.f32 %v4706_v29, %v11191_v16 }
 0x4e2   : > { %v4736_v19 = vadd.f32 %v4735_v23, %v11191_v16  ;;  %v12234_v16 = vld [vmem:[#allocation95_spill] sm:$0xff]  ;;  %v12236_v23 = vld [vmem:[#allocation141_spill] sm:$0xff]  ;;  %v4839_v7 = vunpack.c.l.bf16 %v11209_v56 }
 0x4e3   : > { %5348 = vst [vmem:[#allocation10 + $0x40] sm:$0xff] %v5316_v38  ;;  %v4833_v13 = vunpack.c.l.bf16 %v12234_v16  ;;  %v4834_v10 = vunpack.c.h.bf16 %v12234_v16  ;;  %v4837_v11 = vunpack.c.l.bf16 %v12236_v23  ;;  %v4838_v38 = vunpack.c.h.bf16 %v12236_v23 }
 0x4e4   : > { %v5161_v1 = vpop.f32.mrf.mxu0  ;;  %v4773_v34 = vpack.c.bf16 %v4736_v19, %v4707_v8 }
 0x4e5   : > { %v5162_v9 = vadd.f32 %v5161_v1, %v11399_v36  ;;  %v5250_v20 = vpop.f32.mrf.mxu1  ;;  %v4840_v1 = vunpack.c.h.bf16 %v11209_v56 }
 0x4e6   : > { %v4897_v46 = vunpack.c.l.bf16 %v4773_v34  ;;  %v4898_v62 = vunpack.c.h.bf16 %v4773_v34 }
 0x4e7   : > { %v5251_v41 = vadd.f32 %v5250_v20, %v5162_v9 }
 0x4e8   : > { %v4708_v26 = vpop.f32.mrf.mxu2  ;;  %v4737_v47 = vpop.f32.mrf.mxu3  ;;  %v4962_v33 = vmul.f32 %v4898_v62, %v4834_v10  ;;  %v6417_v62 = vld [vmem:[#allocation10 + $0x68] sm:$0xff]  ;;  %v6419_v10 = vld [vmem:[#allocation10 + $0x78] sm:$0xff] }
 0x4e9   : > { %v5317_v31 = vadd.f32 %v6413_v53, %v5251_v41  ;;  %v4709_v40 = vadd.f32 %v4708_v26, %v11194_v43  ;;  %v4738_v39 = vadd.f32 %v4737_v47, %v11194_v43  ;;  %v4961_v43 = vmul.f32 %v4897_v46, %v4833_v13  ;;  %v6416_v26 = vld [vmem:[#allocation10 + $0x60] sm:$0xff] }
 0x4eb   : > { %5349 = vst [vmem:[#allocation10 + $0x48] sm:$0xff] %v5317_v31  ;;  %v4774_v52 = vpack.c.bf16 %v4738_v39, %v4709_v40 }
 0x4ec   : > { %v5164_v24 = vpop.f32.mrf.mxu0 }
 0x4ed   : > { %v4899_v55 = vunpack.c.l.bf16 %v4774_v52  ;;  %v4900_v42 = vunpack.c.h.bf16 %v4774_v52  ;;  %v5165_v54 = vadd.f32 %v5164_v24, %v11399_v36  ;;  %v5253_v5 = vpop.f32.mrf.mxu1 }
 0x4ef   : > { %v5254_v25 = vadd.f32 %v5253_v5, %v5165_v54  ;;  %5203 = vmatmul.bf16.gmra.mxu0 %v4995_v14  ;;  %v4963_v37 = vmul.f32 %v4899_v55, %v4835_v28  ;;  %v4964_v44 = vmul.f32 %v4900_v42, %v4836_v22  ;;  %v6418_v28 = vld [vmem:[#allocation10 + $0x70] sm:$0xff] }
 0x4f0   : > { %5292 = vmatmul.bf16.gmra.mxu1 %v4996_v51  ;;  %v4711_v4 = vpop.f32.mrf.mxu2  ;;  %v4740_v60 = vpop.f32.mrf.mxu3 }
 0x4f1   : > { %v5318_v57 = vadd.f32 %v6414_v12, %v5254_v25  ;;  %v4997_v32 = vpack.c.bf16 %v4963_v37, %v4961_v43  ;;  %v4712_v49 = vadd.f32 %v4711_v4, %v11235_v21  ;;  %v4741_v50 = vadd.f32 %v4740_v60, %v11235_v21  ;;  %v6420_v60 = vld [vmem:[#allocation10 + $0x80] sm:$0xff] }
 0x4f2   : > { %v4998_v2 = vpack.c.bf16 %v4964_v44, %v4962_v33 }
 0x4f3   : > { %5350 = vst [vmem:[#allocation10 + $0x50] sm:$0xff] %v5318_v57  ;;  %v4775_v15 = vpack.c.bf16 %v4741_v50, %v4712_v49  ;;  %v6421_v50 = vld [vmem:[#allocation10 + $0x88] sm:$0xff] }
 0x4f4   : > { %v5166_v61 = vpop.f32.mrf.mxu0 }
 0x4f5   : > { %v5167_v3 = vadd.f32 %v5166_v61, %v11399_v36  ;;  %v5255_v59 = vpop.f32.mrf.mxu1  ;;  %v4901_v63 = vunpack.c.l.bf16 %v4775_v15  ;;  %v4902_v18 = vunpack.c.h.bf16 %v4775_v15 }
 0x4f7   : > { %v5256_v30 = vadd.f32 %v5255_v59, %v5167_v3  ;;  %v4965_v9 = vmul.f32 %v4901_v63, %v4837_v11  ;;  %v4966_v34 = vmul.f32 %v4902_v18, %v4838_v38  ;;  %v6424_v11 = vld [vmem:[#allocation10 + $0xa0] sm:$0xff] }
 0x4f8   : > { %v4713_v48 = vpop.f32.mrf.mxu2  ;;  %v4742_v27 = vpop.f32.mrf.mxu3 }
 0x4f9   : > { %v5319_v17 = vadd.f32 %v6415_v6, %v5256_v30  ;;  %v4714_v58 = vadd.f32 %v4713_v48, %v11237_v45  ;;  %v4743_v35 = vadd.f32 %v4742_v27, %v11237_v45  ;;  %v6422_v30 = vld [vmem:[#allocation10 + $0x90] sm:$0xff] }
 0x4fb   : > { %5351 = vst [vmem:[#allocation10 + $0x58] sm:$0xff] %v5319_v17  ;;  %v4776_v21 = vpack.c.bf16 %v4743_v35, %v4714_v58  ;;  %v6423_v35 = vld [vmem:[#allocation10 + $0x98] sm:$0xff] }
 0x4fc   : > { %v5169_v29 = vpop.f32.mrf.mxu0 }
 0x4fd   : > { %v4903_v14 = vunpack.c.l.bf16 %v4776_v21  ;;  %v4904_v51 = vunpack.c.h.bf16 %v4776_v21  ;;  %v5170_v8 = vadd.f32 %v5169_v29, %v11399_v36  ;;  %v5258_v19 = vpop.f32.mrf.mxu1 }
 0x4ff   : > { %v5259_v45 = vadd.f32 %v5258_v19, %v5170_v8  ;;  %5208 = vmatmul.bf16.gmra.mxu0 %v4997_v32  ;;  %v4967_v20 = vmul.f32 %v4903_v14, %v4839_v7  ;;  %v4968_v41 = vmul.f32 %v4904_v51, %v4840_v1  ;;  %v6425_v19 = vld [vmem:[#allocation10 + $0xa8] sm:$0xff] }
 0x500   : > { %5297 = vmatmul.bf16.gmra.mxu1 %v4998_v2 }
 0x501   : > { %v5320_v47 = vadd.f32 %v6416_v26, %v5259_v45  ;;  %v4999_v53 = vpack.c.bf16 %v4967_v20, %v4965_v9  ;;  %v5000_v31 = vpack.c.bf16 %v4968_v41, %v4966_v34  ;;  %v6426_v41 = vld [vmem:[#allocation10 + $0xb0] sm:$0xff] }
 0x503   : > { %5352 = vst [vmem:[#allocation10 + $0x60] sm:$0xff] %v5320_v47 }
 0x504   : > { %v5171_v40 = vpop.f32.mrf.mxu0 }
 0x505   : > { %v5172_v39 = vadd.f32 %v5171_v40, %v11399_v36  ;;  %v5260_v46 = vpop.f32.mrf.mxu1 }
 0x507   : > { %v5261_v52 = vadd.f32 %v5260_v46, %v5172_v39  ;;  %v6427_v39 = vld [vmem:[#allocation10 + $0xb8] sm:$0xff] }
 0x509   : > { %v5321_v24 = vadd.f32 %v6417_v62, %v5261_v52 }
 0x50b   : > { %5353 = vst [vmem:[#allocation10 + $0x68] sm:$0xff] %v5321_v24 }
 0x50c   : > { %v5174_v56 = vpop.f32.mrf.mxu0 }
 0x50d   : > { %v5175_v16 = vadd.f32 %v5174_v56, %v11399_v36  ;;  %v5263_v13 = vpop.f32.mrf.mxu1 }
 0x50f   : > { %v5264_v0 = vadd.f32 %v5263_v13, %v5175_v16  ;;  %5213 = vmatmul.bf16.gmra.mxu0 %v4999_v53  ;;  %v6428_v16 = vld [vmem:[#allocation10 + $0xc0] sm:$0xff] }
 0x510   : > { %5302 = vmatmul.bf16.gmra.mxu1 %v5000_v31 }
 0x511   : > { %v5322_v55 = vadd.f32 %v6418_v28, %v5264_v0 }
 0x513   : > { %5354 = vst [vmem:[#allocation10 + $0x70] sm:$0xff] %v5322_v55 }
 0x514   : > { %v5176_v42 = vpop.f32.mrf.mxu0 }
 0x515   : > { %v5177_v54 = vadd.f32 %v5176_v42, %v11399_v36  ;;  %v5265_v5 = vpop.f32.mrf.mxu1 }
 0x517   : > { %v5266_v22 = vadd.f32 %v5265_v5, %v5177_v54  ;;  %v6429_v54 = vld [vmem:[#allocation10 + $0xc8] sm:$0xff] }
 0x519   : > { %v5323_v25 = vadd.f32 %v6419_v10, %v5266_v22 }
 0x51b   : > { %5355 = vst [vmem:[#allocation10 + $0x78] sm:$0xff] %v5323_v25 }
 0x51c   : > { %v5179_v43 = vpop.f32.mrf.mxu0 }
 0x51d   : > { %v5180_v37 = vadd.f32 %v5179_v43, %v11399_v36  ;;  %v5268_v44 = vpop.f32.mrf.mxu1 }
 0x51f   : > { %v5269_v4 = vadd.f32 %v5268_v44, %v5180_v37  ;;  %v6430_v37 = vld [vmem:[#allocation10 + $0xd0] sm:$0xff] }
 0x521   : > { %v5324_v33 = vadd.f32 %v6420_v60, %v5269_v4 }
 0x523   : > { %5356 = vst [vmem:[#allocation10 + $0x80] sm:$0xff] %v5324_v33 }
 0x524   : > { %v5181_v12 = vpop.f32.mrf.mxu0 }
 0x525   : > { %v5182_v57 = vadd.f32 %v5181_v12, %v11399_v36  ;;  %v5270_v32 = vpop.f32.mrf.mxu1 }
 0x527   : > { %v5271_v49 = vadd.f32 %v5270_v32, %v5182_v57  ;;  %v6431_v57 = vld [vmem:[#allocation10 + $0xd8] sm:$0xff] }
 0x529   : > { %v5325_v2 = vadd.f32 %v6421_v50, %v5271_v49 }
 0x52b   : > { %5357 = vst [vmem:[#allocation10 + $0x88] sm:$0xff] %v5325_v2 }
 0x52c   : > { %v5184_v61 = vpop.f32.mrf.mxu0 }
 0x52d   : > { %v5185_v3 = vadd.f32 %v5184_v61, %v11399_v36  ;;  %v5273_v59 = vpop.f32.mrf.mxu1 }
 0x52f   : > { %v5274_v15 = vadd.f32 %v5273_v59, %v5185_v3  ;;  %v6432_v3 = vld [vmem:[#allocation10 + $0xe0] sm:$0xff] }
 0x531   : > { %v5326_v48 = vadd.f32 %v6422_v30, %v5274_v15 }
 0x533   : > { %5358 = vst [vmem:[#allocation10 + $0x90] sm:$0xff] %v5326_v48 }
 0x534   : > { %v5186_v27 = vpop.f32.mrf.mxu0 }
 0x535   : > { %v5187_v6 = vadd.f32 %v5186_v27, %v11399_v36  ;;  %v5275_v17 = vpop.f32.mrf.mxu1 }
 0x537   : > { %v5276_v58 = vadd.f32 %v5275_v17, %v5187_v6  ;;  %v6433_v6 = vld [vmem:[#allocation10 + $0xe8] sm:$0xff] }
 0x539   : > { %v5327_v63 = vadd.f32 %v6423_v35, %v5276_v58 }
 0x53b   : > { %5359 = vst [vmem:[#allocation10 + $0x98] sm:$0xff] %v5327_v63 }
 0x53c   : > { %v5189_v18 = vpop.f32.mrf.mxu0 }
 0x53d   : > { %v5190_v21 = vadd.f32 %v5189_v18, %v11399_v36  ;;  %v5278_v29 = vpop.f32.mrf.mxu1 }
 0x53f   : > { %v5279_v23 = vadd.f32 %v5278_v29, %v5190_v21  ;;  %v6434_v21 = vld [vmem:[#allocation10 + $0xf0] sm:$0xff] }
 0x541   : > { %v5328_v7 = vadd.f32 %v6424_v11, %v5279_v23 }
 0x543   : > { %5360 = vst [vmem:[#allocation10 + $0xa0] sm:$0xff] %v5328_v7 }
 0x544   : > { %v5191_v38 = vpop.f32.mrf.mxu0 }
 0x545   : > { %v5192_v14 = vadd.f32 %v5191_v38, %v11399_v36  ;;  %v5280_v51 = vpop.f32.mrf.mxu1 }
 0x547   : > { %v5281_v8 = vadd.f32 %v5280_v51, %v5192_v14  ;;  %v6435_v14 = vld [vmem:[#allocation10 + $0xf8] sm:$0xff] }
 0x549   : > { %v5329_v1 = vadd.f32 %v6425_v19, %v5281_v8 }
 0x54b   : > { %5361 = vst [vmem:[#allocation10 + $0xa8] sm:$0xff] %v5329_v1 }
 0x54c   : > { %v5194_v9 = vpop.f32.mrf.mxu0 }
 0x54d   : > { %v5195_v45 = vadd.f32 %v5194_v9, %v11399_v36  ;;  %v5283_v20 = vpop.f32.mrf.mxu1 }
 0x54f   : > { %v5284_v34 = vadd.f32 %v5283_v20, %v5195_v45 }
 0x551   : > { %v5330_v26 = vadd.f32 %v6426_v41, %v5284_v34 }
 0x553   : > { %5362 = vst [vmem:[#allocation10 + $0xb0] sm:$0xff] %v5330_v26 }
 0x554   : > { %v5196_v47 = vpop.f32.mrf.mxu0 }
 0x555   : > { %v5197_v53 = vadd.f32 %v5196_v47, %v11399_v36  ;;  %v5285_v31 = vpop.f32.mrf.mxu1 }
 0x557   : > { %v5286_v40 = vadd.f32 %v5285_v31, %v5197_v53 }
 0x559   : > { %v5331_v46 = vadd.f32 %v6427_v39, %v5286_v40 }
 0x55b   : > { %5363 = vst [vmem:[#allocation10 + $0xb8] sm:$0xff] %v5331_v46 }
 0x55c   : > { %v5199_v52 = vpop.f32.mrf.mxu0 }
 0x55d   : > { %v5200_v62 = vadd.f32 %v5199_v52, %v11399_v36  ;;  %v5288_v24 = vpop.f32.mrf.mxu1 }
 0x55f   : > { %v5289_v56 = vadd.f32 %v5288_v24, %v5200_v62 }
 0x561   : > { %v5332_v13 = vadd.f32 %v6428_v16, %v5289_v56 }
 0x563   : > { %5364 = vst [vmem:[#allocation10 + $0xc0] sm:$0xff] %v5332_v13 }
 0x564   : > { %v5201_v0 = vpop.f32.mrf.mxu0 }
 0x565   : > { %v5202_v28 = vadd.f32 %v5201_v0, %v11399_v36  ;;  %v5290_v55 = vpop.f32.mrf.mxu1 }
 0x567   : > { %v5291_v42 = vadd.f32 %v5290_v55, %v5202_v28 }
 0x569   : > { %v5333_v5 = vadd.f32 %v6429_v54, %v5291_v42 }
 0x56b   : > { %5365 = vst [vmem:[#allocation10 + $0xc8] sm:$0xff] %v5333_v5 }
 0x56c   : > { %v5204_v22 = vpop.f32.mrf.mxu0 }
 0x56d   : > { %v5205_v10 = vadd.f32 %v5204_v22, %v11399_v36  ;;  %v5293_v25 = vpop.f32.mrf.mxu1 }
 0x56f   : > { %v5294_v43 = vadd.f32 %v5293_v25, %v5205_v10 }
 0x571   : > { %v5334_v44 = vadd.f32 %v6430_v37, %v5294_v43 }
 0x573   : > { %5366 = vst [vmem:[#allocation10 + $0xd0] sm:$0xff] %v5334_v44 }
 0x574   : > { %v5206_v4 = vpop.f32.mrf.mxu0 }
 0x575   : > { %v5207_v60 = vadd.f32 %v5206_v4, %v11399_v36  ;;  %v5295_v33 = vpop.f32.mrf.mxu1 }
 0x577   : > { %v5296_v12 = vadd.f32 %v5295_v33, %v5207_v60 }
 0x579   : > { %v5335_v32 = vadd.f32 %v6431_v57, %v5296_v12 }
 0x57b   : > { %5367 = vst [vmem:[#allocation10 + $0xd8] sm:$0xff] %v5335_v32 }
 0x57c   : > { %v5209_v49 = vpop.f32.mrf.mxu0 }
 0x57d   : > { %v5210_v50 = vadd.f32 %v5209_v49, %v11399_v36  ;;  %v5298_v2 = vpop.f32.mrf.mxu1 }
 0x57f   : > { %v5299_v61 = vadd.f32 %v5298_v2, %v5210_v50 }
 0x581   : > { %v5336_v59 = vadd.f32 %v6432_v3, %v5299_v61 }
 0x583   : > { %5368 = vst [vmem:[#allocation10 + $0xe0] sm:$0xff] %v5336_v59 }
 0x584   : > { %v5211_v15 = vpop.f32.mrf.mxu0 }
 0x585   : > { %v5212_v30 = vadd.f32 %v5211_v15, %v11399_v36  ;;  %v5300_v48 = vpop.f32.mrf.mxu1 }
 0x587   : > { %v5301_v27 = vadd.f32 %v5300_v48, %v5212_v30 }
 0x589   : > { %v5337_v17 = vadd.f32 %v6433_v6, %v5301_v27 }
 0x58b   : > { %5369 = vst [vmem:[#allocation10 + $0xe8] sm:$0xff] %v5337_v17 }
 0x58c   : > { %v5214_v58 = vpop.f32.mrf.mxu0 }
 0x58d   : > { %v5215_v35 = vadd.f32 %v5214_v58, %v11399_v36  ;;  %v5303_v63 = vpop.f32.mrf.mxu1 }
 0x58f   : > { %v5304_v18 = vadd.f32 %v5303_v63, %v5215_v35 }
 0x591   : > { %v5338_v29 = vadd.f32 %v6434_v21, %v5304_v18 }
 0x593   : > { %5370 = vst [vmem:[#allocation10 + $0xf0] sm:$0xff] %v5338_v29 }
 0x594   : > { %v5216_v23 = vpop.f32.mrf.mxu0 }
 0x595   : > { %v5217_v11 = vadd.f32 %v5216_v23, %v11399_v36  ;;  %v5305_v7 = vpop.f32.mrf.mxu1 }
 0x597   : > { %v5306_v38 = vadd.f32 %v5305_v7, %v5217_v11 }
 0x599   : > { %v5339_v51 = vadd.f32 %v6435_v14, %v5306_v38 }
 0x59b   : > { %5371 = vst [vmem:[#allocation10 + $0xf8] sm:$0xff] %v5339_v51 }
 0x59c   : > { %5907 = dma.vmem_to_hbm [thread:$0]  (%p5927_p3), %s5381_s16, 4096, %s5383_s10, [#allocation4], %s6657_s18, %s6657_s18, %s6658_s19  }
 0x59d   : > { %6621 = dma.done.wait (%p5927_p3), [#allocation4], 4096  }
 0x59e   : > { %6623 = vsyncadd (%p5927_p3), [#allocation4], 4294963200 }
 0x59f PF: > { %s12238_s26 = sld [smem:[#allocation16_spill]]  ;;  %s12242_s27 = smov %s6630_s28 }
 0x5a0   : > { %s12239_s12 = sld [smem:[#allocation18_spill]]  ;;  %s12243_s28 = smov %s6634_s29 }
 0x5a1   : > { %s12240_s30 = sld [smem:[#allocation15_spill]] }
 0x5a2   : > { %s12241_s9 = sld [smem:[#allocation17_spill]] }
 0x5a5   : > { %s26_s10 = sadd.s32 1, %s12238_s26  }
 0x5a6   : > { %p23_p4 = scmp.ge.s32.totalorder %s26_s10, 4   ;;  %s12244_s29 = smov %s12239_s12 }
 0x5a8   :  { %25 = sbr.rel (!%p23_p4) target bundleno = 14 (0xe), region = 136 }
 0x5ad   :  { %5399 = vsyncpa [#allocation3], 1 }
 0x5ae   :  { %5401 = vsyncpa [#allocation3 + $0x1], 1 }
 0x5af   :  { %5402 = vsyncpa [#allocation6], 1 }
 0x5b0   :  { %5404 = vsyncpa [#allocation6 + $0x1], 1 }
 0x5b1   :  { %5405 = vsyncpa [#allocation9], 1 }
 0x5b2   :  { %5407 = vsyncpa [#allocation9 + $0x1], 1 }
 0x5b3   :  { %5408 = vsyncpa [#allocation4], 1 }
 0x5b4   :  { %5410 = vsyncpa [#allocation4 + $0x1], 1 }

</bundles_post_ra>
